<compile_context>
chip_gen: v7x
topology: tpu7x:2x2x1
jax: 0.10.0
libtpu: 0.0.40
codegen_flags: <defaults>
</compile_context>

<pallas_src>
import functools

import numpy as np
import jax
import jax.numpy as jnp
from jax import lax
from jax.experimental import pallas as pl
from jax.experimental.pallas import tpu as pltpu


def _round_up(x, m):
    return (x + m - 1) // m * m


# ----------------------------------------------------------------------------
# Pallas kernel: one (batch, M-tile) block
# ----------------------------------------------------------------------------
def _deform_conv_kernel(x_ref, w_ref, pm_ref, o_ref, *, Hp, Wp, Wp_pad, ks):
    # x_ref : [1, C, S_pad]  bf16   zero-padded input, flattened (S_pad=Hp*Wp_pad)
    # w_ref : [1, N, O, C]   bf16   main conv weight, tap-major
    # pm_ref: [1, 3, N, tm]  f32    stacked (row coords, col coords, mod logits)
    # o_ref : [1, O, tm]     f32
    N = ks * ks
    C = x_ref.shape[1]
    O = o_ref.shape[1]
    tm = pm_ref.shape[3]
    S_pad = Hp * Wp_pad

    px = pm_ref[0, 0]          # [N, tm] sampling row ("x") coords, padded frame
    py = pm_ref[0, 1]          # [N, tm] sampling col ("y") coords
    ml = pm_ref[0, 2]          # [N, tm] modulation logits

    # integer corners, clamped exactly like the PyTorch reference
    fl_x = jnp.floor(px)
    fl_y = jnp.floor(py)
    r_lo_f = jnp.clip(fl_x, 0.0, Hp - 1.0)
    r_hi_f = jnp.clip(fl_x + 1.0, 0.0, Hp - 1.0)
    c_lo_f = jnp.clip(fl_y, 0.0, Wp - 1.0)
    c_hi_f = jnp.clip(fl_y + 1.0, 0.0, Wp - 1.0)
    pxc = jnp.clip(px, 0.0, Hp - 1.0)
    pyc = jnp.clip(py, 0.0, Wp - 1.0)

    # separable bilinear weights (g_lt = wr_lo*wc_lo, g_rb = wr_hi*wc_hi, ...)
    wr_lo = 1.0 + (r_lo_f - pxc)
    wr_hi = 1.0 - (r_hi_f - pxc)
    wc_lo = 1.0 + (c_lo_f - pyc)
    wc_hi = 1.0 - (c_hi_f - pyc)

    # DCNv2 modulation folded into the row weights (one sigmoid + 2 muls, [N,tm])
    m_mod = jax.nn.sigmoid(ml)
    wr_lo = wr_lo * m_mod
    wr_hi = wr_hi * m_mod

    r_lo = r_lo_f.astype(jnp.int32)
    r_hi = r_hi_f.astype(jnp.int32)
    c_lo = c_lo_f.astype(jnp.int32)
    c_hi = c_hi_f.astype(jnp.int32)

    # factorized one-hot scatter: rows [N, Hp, tm], cols [N, Wp_pad, tm]
    ih = lax.broadcasted_iota(jnp.int32, (N, Hp, tm), 1)
    iw = lax.broadcasted_iota(jnp.int32, (N, Wp_pad, tm), 1)
    gr = (jnp.where(ih == r_lo[:, None, :], wr_lo[:, None, :], 0.0)
          + jnp.where(ih == r_hi[:, None, :], wr_hi[:, None, :], 0.0))
    gc = (jnp.where(iw == c_lo[:, None, :], wc_lo[:, None, :], 0.0)
          + jnp.where(iw == c_hi[:, None, :], wc_hi[:, None, :], 0.0))

    # bf16 scatter planes -> per-tap outer product built directly in bf16
    gr = gr.astype(jnp.bfloat16)
    gc = gc.astype(jnp.bfloat16)

    x_flat = x_ref[0]                                   # [C, S_pad] bf16

    acc = jnp.zeros((O, tm), jnp.float32)
    for n in range(N):                                  # static 9-tap unroll
        # modulated bilinear scatter matrix for tap n, [S_pad, tm] bf16
        # (Wp_pad % 16 == 0 keeps the packed-bf16 collapse tile-aligned)
        gmat_n = (gr[n][:, None, :] * gc[n][None, :, :]).reshape(S_pad, tm)
        # gather + bilinear interp + modulation as one deep-K MXU matmul
        xg_n = jnp.dot(x_flat, gmat_n, preferred_element_type=jnp.float32)
        # channel contraction with this tap's weight slice
        acc = acc + jnp.dot(w_ref[0, n], xg_n.astype(jnp.bfloat16),
                            preferred_element_type=jnp.float32)
    o_ref[0] = acc


# ----------------------------------------------------------------------------
# Wrapper (small aux convs, coordinate grids, padding / stacking, reshapes)
# ----------------------------------------------------------------------------
def _conv2d_nchw(x, w, b=None, stride=1, padding=0):
    out = lax.conv_general_dilated(
        x, w, (stride, stride),
        ((padding, padding), (padding, padding)),
        dimension_numbers=("NCHW", "OIHW", "NCHW"))
    if b is not None:
        out = out + b[None, :, None, None]
    return out


def _base_grid(H, W, kernel_size, stride):
    # p_0 + p_n exactly as in _get_p_0 / _get_p_n (padding=True => start at 1)
    kk = kernel_size
    d = jnp.arange(-(kk - 1) // 2, (kk - 1) // 2 + 1)
    p_n_x = jnp.repeat(d, kk)     # [-1,-1,-1,0,0,0,1,1,1] for k=3
    p_n_y = jnp.tile(d, kk)       # [-1,0,1,-1,0,1,-1,0,1]
    p0x = (jnp.arange(H) * stride + 1)[:, None] * jnp.ones((1, W))
    p0y = (jnp.arange(W) * stride + 1)[None, :] * jnp.ones((H, 1))
    base_x = p0x[None, :, :] + p_n_x[:, None, None]   # [N, H, W]
    base_y = p0y[None, :, :] + p_n_y[:, None, None]   # [N, H, W]
    return base_x.astype(jnp.float32), base_y.astype(jnp.float32)


def deform_conv2d_forward(x, params, kernel_size=3, padding=1, stride=1,
                          block_m=256):
    # block_m: output-spatial tile (lane dim).  256 fills v6e/v7x MXU lanes;
    # use 128 on v5e, 512 for very large feature maps on v6e.
    B, C, H, W = x.shape
    ks = kernel_size
    N = ks * ks
    O = params["conv_w"].shape[0]
    M = H * W
    Hp, Wp = H + 2 * padding, W + 2 * padding
    Wp_pad = _round_up(Wp, 16)           # packed-bf16 sublane-aligned collapse
    S_pad = Hp * Wp_pad
    tm = min(block_m, _round_up(M, 128))
    M_pad = _round_up(M, tm)
    num_m = M_pad // tm

    # offset / modulation branches (p_conv, m_conv) — small 3x3 convs, JAX glue
    offset = _conv2d_nchw(x, params["p_w"], params["p_b"], stride, 1)  # [B,2N,H,W]
    mlog = _conv2d_nchw(x, params["m_w"], params["m_b"], stride, 1)    # [B,N,H,W]

    base_x, base_y = _base_grid(H, W, ks, stride)
    p_x = (base_x[None] + offset[:, :N]).reshape(B, N, M)
    p_y = (base_y[None] + offset[:, N:]).reshape(B, N, M)
    ml = mlog.reshape(B, N, M)
    # one stacked coord/modulation tensor -> one BlockSpec / one DMA per step
    pm = jnp.stack([p_x, p_y, ml], axis=1).astype(jnp.float32)   # [B, 3, N, M]
    if M_pad != M:
        pm = jnp.pad(pm, ((0, 0), (0, 0), (0, 0), (0, M_pad - M)))

    # zero-pad input spatially (conv padding) and along W up to Wp_pad, flatten
    x_pad = jnp.pad(
        x, ((0, 0), (0, 0), (padding, padding),
            (padding, padding + (Wp_pad - Wp))))
    x_flat = x_pad.reshape(B, C, S_pad).astype(jnp.bfloat16)

    # main conv weight, tap-major: [1, N, O, C]  (bf16 MXU operand)
    w_t = jnp.transpose(params["conv_w"].reshape(O, C, N),
                        (2, 0, 1))[None].astype(jnp.bfloat16)

    kern = functools.partial(_deform_conv_kernel,
                             Hp=Hp, Wp=Wp, Wp_pad=Wp_pad, ks=ks)

    # v7x megacore balance: if B == 1, lead with the (splittable) M-tile axis;
    # otherwise lead with B so x_flat / w blocks stay resident across inner m.
    if B == 1 and num_m > 1:
        grid = (num_m, B)
        b_of = lambda i, j: j
        m_of = lambda i, j: i
    else:
        grid = (B, num_m)
        b_of = lambda i, j: i
        m_of = lambda i, j: j

    in_specs = [
        pl.BlockSpec((1, C, S_pad), lambda i, j: (b_of(i, j), 0, 0)),
        pl.BlockSpec((1, N, O, C), lambda i, j: (0, 0, 0, 0)),
        pl.BlockSpec((1, 3, N, tm), lambda i, j: (b_of(i, j), 0, 0, m_of(i, j))),
    ]
    out_specs = pl.BlockSpec((1, O, tm), lambda i, j: (b_of(i, j), 0, m_of(i, j)))

    # VMEM budget: double-buffered blocks + in-kernel intermediates (+headroom)
    est_vmem = (2 * (C * S_pad * 2)              # x block (bf16, dbl-buffered)
                + 2 * (N * O * C * 2)            # weight block
                + 2 * (3 * N * tm * 4)           # coords / modulation block
                + 2 * (O * tm * 4)               # output block
                + N * (Hp + Wp_pad) * tm * 6     # gr/gc (f32 build + bf16 copy)
                + 2 * S_pad * tm * 2             # per-tap gmat (bf16), x2 slack
                + (C + O) * tm * 4)              # xg_n + accumulator
    vmem_limit = int(min(max(32 * 1024 * 1024, 2 * est_vmem),
                         100 * 1024 * 1024))

    flops = (2 * B * M_pad * N * C * (S_pad + O)   # gather + weight matmuls
             + B * M_pad * N * S_pad)              # gmat outer products
    bytes_accessed = (B * C * S_pad * 2            # x_flat (bf16)
                      + N * O * C * 2              # weights (bf16)
                      + B * 3 * N * M_pad * 4      # coords + modulation
                      + B * O * M_pad * 4)         # output (f32)

    out_flat = pl.pallas_call(
        kern,
        out_shape=jax.ShapeDtypeStruct((B, O, M_pad), jnp.float32),
        grid_spec=pltpu.PrefetchScalarGridSpec(
            num_scalar_prefetch=0,
            grid=grid,
            in_specs=in_specs,
            out_specs=out_specs,
        ),
        compiler_params=pltpu.CompilerParams(
            dimension_semantics=("parallel", "parallel"),
            vmem_limit_bytes=vmem_limit,
        ),
        cost_estimate=pl.CostEstimate(
            flops=int(flops),
            transcendentals=int(B * N * M_pad),
            bytes_accessed=int(bytes_accessed),
        ),
    )(x_flat, w_t, pm)

    if M_pad != M:                      # only pay the slice copy when padded
        out_flat = out_flat[:, :, :M]
    out = out_flat.reshape(B, O, H, W)
    # use_contrastive=False in the default config => contrastive_loss == 0
    return out, jnp.float32(0.0)


# ----------------------------------------------------------------------------
# Pure-JAX reference (mirrors the PyTorch code path) for verification
# ----------------------------------------------------------------------------
def ref_forward(x, params, kernel_size=3, padding=1, stride=1):
    B, C, H, W = x.shape
    N = kernel_size * kernel_size
    Hp, Wp = H + 2 * padding, W + 2 * padding

    offset = _conv2d_nchw(x, params["p_w"], params["p_b"], stride, 1)
    m = jax.nn.sigmoid(_conv2d_nchw(x, params["m_w"], params["m_b"], stride, 1))

    base_x, base_y = _base_grid(H, W, kernel_size, stride)
    base = jnp.concatenate([base_x, base_y], axis=0)                 # [2N,H,W]
    p = (base[None] + offset).transpose(0, 2, 3, 1)                  # [B,H,W,2N]

    x_pad = jnp.pad(x, ((0, 0), (0, 0), (padding, padding), (padding, padding)))

    q_lt = jnp.floor(p)
    q_rb = q_lt + 1.0
    q_lt_x = jnp.clip(q_lt[..., :N], 0, Hp - 1)
    q_lt_y = jnp.clip(q_lt[..., N:], 0, Wp - 1)
    q_rb_x = jnp.clip(q_rb[..., :N], 0, Hp - 1)
    q_rb_y = jnp.clip(q_rb[..., N:], 0, Wp - 1)
    pxc = jnp.clip(p[..., :N], 0, Hp - 1)
    pyc = jnp.clip(p[..., N:], 0, Wp - 1)

    g_lt = (1 + (q_lt_x - pxc)) * (1 + (q_lt_y - pyc))
    g_rb = (1 - (q_rb_x - pxc)) * (1 - (q_rb_y - pyc))
    g_lb = (1 + (q_lt_x - pxc)) * (1 - (q_rb_y - pyc))
    g_rt = (1 - (q_rb_x - pxc)) * (1 + (q_lt_y - pyc))

    x_flat = x_pad.reshape(B, C, Hp * Wp)

    def gather(qx, qy):
        idx = (qx * Wp + qy).astype(jnp.int32).reshape(B, 1, -1)
        idx = jnp.broadcast_to(idx, (B, C, idx.shape[-1]))
        g = jnp.take_along_axis(x_flat, idx, axis=2)
        return g.reshape(B, C, H, W, N)

    x_off = (g_lt[:, None] * gather(q_lt_x, q_lt_y)
             + g_rb[:, None] * gather(q_rb_x, q_rb_y)
             + g_lb[:, None] * gather(q_lt_x, q_rb_y)
             + g_rt[:, None] * gather(q_rb_x, q_lt_y))

    x_off = x_off * m.transpose(0, 2, 3, 1)[:, None]                 # modulation

    ks = kernel_size
    parts = [x_off[..., s:s + ks].reshape(B, C, H, W * ks) for s in range(0, N, ks)]
    xr = jnp.concatenate(parts, axis=-1).reshape(B, C, H * ks, W * ks)

    out = lax.conv_general_dilated(
        xr, params["conv_w"], (ks, ks), "VALID",
        dimension_numbers=("NCHW", "OIHW", "NCHW"))
    return out


# ----------------------------------------------------------------------------
if __name__ == "__main__":
    key = jax.random.PRNGKey(0)
    B, C, H, W, O, ks = 2, 4, 16, 16, 8, 3
    N = ks * ks
    k1, k2, k3, k4 = jax.random.split(key, 4)

    x = jax.random.normal(k1, (B, C, H, W), jnp.float32)

    bound = 1.0 / float(np.sqrt(C * ks * ks))
    params = {
        # p_conv: weight set to 0 in __init__ (nn.init.constant_), bias ~ U(-b, b)
        "p_w": jnp.zeros((2 * N, C, ks, ks), jnp.float32),
        "p_b": jax.random.uniform(k2, (2 * N,), jnp.float32, -bound, bound),
        # m_conv: weight set to 0 in __init__, bias ~ U(-b, b)
        "m_w": jnp.zeros((N, C, ks, ks), jnp.float32),
        "m_b": jax.random.uniform(k3, (N,), jnp.float32, -bound, bound),
        # main conv (kernel_size=3, stride=3, bias=False), deterministic random weight
        "conv_w": jax.random.normal(k4, (O, C, ks, ks), jnp.float32) * bound,
    }

    out, closs = deform_conv2d_forward(x, params, kernel_size=ks, padding=1, stride=1)
    out = jax.block_until_ready(out)

    ref = jax.block_until_ready(ref_forward(x, params, kernel_size=ks, padding=1, stride=1))
    # bf16 MXU operands with f32 accumulation -> compare at bf16-level tolerance
    np.testing.assert_allclose(np.asarray(out), np.asarray(ref), rtol=2e-2, atol=3e-2)
    assert out.shape == (B, O, H, W)
    print("KERNEL_OK")
</pallas_src>

<mosaic_0001>
module attributes {stable_mosaic.version = 11 : i64} {
  func.func @_deform_conv_kernel(%arg0: i32, %arg1: i32, %arg2: memref<1x4x576xbf16, #tpu.memory_space<vmem>>, %arg3: memref<1x9x8x4xbf16, #tpu.memory_space<vmem>>, %arg4: memref<1x3x9x256xf32, #tpu.memory_space<vmem>>, %arg5: memref<1x8x256xf32, #tpu.memory_space<vmem>>) attributes {dimension_semantics = [#tpu.dimension_semantics<parallel>, #tpu.dimension_semantics<parallel>], iteration_bounds = array<i64: 2, 1>, scalar_prefetch = 0 : i64, scratch_operands = 0 : i64, tpu.core_type = #tpu.core_type<tc>, window_params = [{transform_indices = @transform_0, window_bounds = array<i64: 1, 4, 576>}, {pipeline_mode = #tpu.pipeline_mode<synchronous>, transform_indices = @transform_1, window_bounds = array<i64: 1, 9, 8, 4>}, {transform_indices = @transform_2, window_bounds = array<i64: 1, 3, 9, 256>}, {transform_indices = @transform_3, window_bounds = array<i64: 1, 8, 256>}]} {
    %c0 = arith.constant 0 : index
    %c0_0 = arith.constant 0 : index
    %c0_1 = arith.constant 0 : index
    %c0_2 = arith.constant 0 : index
    %0 = vector.load %arg4[%c0, %c0_0, %c0_1, %c0_2] : memref<1x3x9x256xf32, #tpu.memory_space<vmem>>, vector<1x1x9x256xf32>
    %1 = vector.shape_cast %0 : vector<1x1x9x256xf32> to vector<9x256xf32>
    %c0_3 = arith.constant 0 : index
    %c1 = arith.constant 1 : index
    %c0_4 = arith.constant 0 : index
    %c0_5 = arith.constant 0 : index
    %2 = vector.load %arg4[%c0_3, %c1, %c0_4, %c0_5] : memref<1x3x9x256xf32, #tpu.memory_space<vmem>>, vector<1x1x9x256xf32>
    %3 = vector.shape_cast %2 : vector<1x1x9x256xf32> to vector<9x256xf32>
    %c0_6 = arith.constant 0 : index
    %c2 = arith.constant 2 : index
    %c0_7 = arith.constant 0 : index
    %c0_8 = arith.constant 0 : index
    %4 = vector.load %arg4[%c0_6, %c2, %c0_7, %c0_8] : memref<1x3x9x256xf32, #tpu.memory_space<vmem>>, vector<1x1x9x256xf32>
    %5 = vector.shape_cast %4 : vector<1x1x9x256xf32> to vector<9x256xf32>
    %6 = math.floor %1 : vector<9x256xf32>
    %7 = math.floor %3 : vector<9x256xf32>
    %cst = arith.constant 0.000000e+00 : f32
    %cst_9 = arith.constant 1.700000e+01 : f32
    %8 = vector.broadcast %cst : f32 to vector<9x256xf32>
    %9 = arith.maximumf %8, %6 : vector<9x256xf32>
    %10 = vector.broadcast %cst_9 : f32 to vector<9x256xf32>
    %11 = arith.minimumf %10, %9 : vector<9x256xf32>
    %cst_10 = arith.constant 1.000000e+00 : f32
    %12 = vector.broadcast %cst_10 : f32 to vector<9x256xf32>
    %13 = arith.addf %6, %12 : vector<9x256xf32>
    %cst_11 = arith.constant 0.000000e+00 : f32
    %cst_12 = arith.constant 1.700000e+01 : f32
    %14 = vector.broadcast %cst_11 : f32 to vector<9x256xf32>
    %15 = arith.maximumf %14, %13 : vector<9x256xf32>
    %16 = vector.broadcast %cst_12 : f32 to vector<9x256xf32>
    %17 = arith.minimumf %16, %15 : vector<9x256xf32>
    %cst_13 = arith.constant 0.000000e+00 : f32
    %cst_14 = arith.constant 1.700000e+01 : f32
    %18 = vector.broadcast %cst_13 : f32 to vector<9x256xf32>
    %19 = arith.maximumf %18, %7 : vector<9x256xf32>
    %20 = vector.broadcast %cst_14 : f32 to vector<9x256xf32>
    %21 = arith.minimumf %20, %19 : vector<9x256xf32>
    %cst_15 = arith.constant 1.000000e+00 : f32
    %22 = vector.broadcast %cst_15 : f32 to vector<9x256xf32>
    %23 = arith.addf %7, %22 : vector<9x256xf32>
    %cst_16 = arith.constant 0.000000e+00 : f32
    %cst_17 = arith.constant 1.700000e+01 : f32
    %24 = vector.broadcast %cst_16 : f32 to vector<9x256xf32>
    %25 = arith.maximumf %24, %23 : vector<9x256xf32>
    %26 = vector.broadcast %cst_17 : f32 to vector<9x256xf32>
    %27 = arith.minimumf %26, %25 : vector<9x256xf32>
    %cst_18 = arith.constant 0.000000e+00 : f32
    %cst_19 = arith.constant 1.700000e+01 : f32
    %28 = vector.broadcast %cst_18 : f32 to vector<9x256xf32>
    %29 = arith.maximumf %28, %1 : vector<9x256xf32>
    %30 = vector.broadcast %cst_19 : f32 to vector<9x256xf32>
    %31 = arith.minimumf %30, %29 : vector<9x256xf32>
    %cst_20 = arith.constant 0.000000e+00 : f32
    %cst_21 = arith.constant 1.700000e+01 : f32
    %32 = vector.broadcast %cst_20 : f32 to vector<9x256xf32>
    %33 = arith.maximumf %32, %3 : vector<9x256xf32>
    %34 = vector.broadcast %cst_21 : f32 to vector<9x256xf32>
    %35 = arith.minimumf %34, %33 : vector<9x256xf32>
    %36 = arith.subf %11, %31 : vector<9x256xf32>
    %cst_22 = arith.constant 1.000000e+00 : f32
    %37 = vector.broadcast %cst_22 : f32 to vector<9x256xf32>
    %38 = arith.addf %37, %36 : vector<9x256xf32>
    %39 = arith.subf %17, %31 : vector<9x256xf32>
    %cst_23 = arith.constant 1.000000e+00 : f32
    %40 = vector.broadcast %cst_23 : f32 to vector<9x256xf32>
    %41 = arith.subf %40, %39 : vector<9x256xf32>
    %42 = arith.subf %21, %35 : vector<9x256xf32>
    %cst_24 = arith.constant 1.000000e+00 : f32
    %43 = vector.broadcast %cst_24 : f32 to vector<9x256xf32>
    %44 = arith.addf %43, %42 : vector<9x256xf32>
    %45 = arith.subf %27, %35 : vector<9x256xf32>
    %cst_25 = arith.constant 1.000000e+00 : f32
    %46 = vector.broadcast %cst_25 : f32 to vector<9x256xf32>
    %47 = arith.subf %46, %45 : vector<9x256xf32>
    %48 = arith.negf %5 : vector<9x256xf32>
    %49 = math.exp %48 : vector<9x256xf32>
    %cst_26 = arith.constant 1.000000e+00 : f32
    %50 = vector.broadcast %cst_26 : f32 to vector<9x256xf32>
    %51 = arith.addf %50, %49 : vector<9x256xf32>
    %52 = arith.divf %50, %51 : vector<9x256xf32>
    %53 = arith.mulf %38, %52 : vector<9x256xf32>
    %54 = arith.mulf %41, %52 : vector<9x256xf32>
    %55 = arith.fptosi %11 : vector<9x256xf32> to vector<9x256xi32>
    %56 = arith.fptosi %17 : vector<9x256xf32> to vector<9x256xi32>
    %57 = arith.fptosi %21 : vector<9x256xf32> to vector<9x256xi32>
    %58 = arith.fptosi %27 : vector<9x256xf32> to vector<9x256xi32>
    %59 = tpu.iota {dimensions = array<i32: 1>} : vector<9x18x256xi32>
    %60 = tpu.iota {dimensions = array<i32: 1>} : vector<9x32x256xi32>
    %61 = vector.shape_cast %55 : vector<9x256xi32> to vector<9x1x256xi32>
    %62 = vector.broadcast %61 : vector<9x1x256xi32> to vector<9x18x256xi32>
    %63 = arith.cmpi eq, %59, %62 : vector<9x18x256xi32>
    %64 = vector.shape_cast %53 : vector<9x256xf32> to vector<9x1x256xf32>
    %cst_27 = arith.constant 0.000000e+00 : f32
    %65 = vector.shape_cast %64 : vector<9x1x256xf32> to vector<9x1x256xf32>
    %66 = vector.broadcast %65 : vector<9x1x256xf32> to vector<9x18x256xf32>
    %67 = vector.broadcast %cst_27 : f32 to vector<9x18x256xf32>
    %68 = arith.select %63, %66, %67 : vector<9x18x256xi1>, vector<9x18x256xf32>
    %69 = vector.shape_cast %56 : vector<9x256xi32> to vector<9x1x256xi32>
    %70 = vector.broadcast %69 : vector<9x1x256xi32> to vector<9x18x256xi32>
    %71 = arith.cmpi eq, %59, %70 : vector<9x18x256xi32>
    %72 = vector.shape_cast %54 : vector<9x256xf32> to vector<9x1x256xf32>
    %cst_28 = arith.constant 0.000000e+00 : f32
    %73 = vector.shape_cast %72 : vector<9x1x256xf32> to vector<9x1x256xf32>
    %74 = vector.broadcast %73 : vector<9x1x256xf32> to vector<9x18x256xf32>
    %75 = vector.broadcast %cst_28 : f32 to vector<9x18x256xf32>
    %76 = arith.select %71, %74, %75 : vector<9x18x256xi1>, vector<9x18x256xf32>
    %77 = arith.addf %68, %76 : vector<9x18x256xf32>
    %78 = vector.shape_cast %57 : vector<9x256xi32> to vector<9x1x256xi32>
    %79 = vector.broadcast %78 : vector<9x1x256xi32> to vector<9x32x256xi32>
    %80 = arith.cmpi eq, %60, %79 : vector<9x32x256xi32>
    %81 = vector.shape_cast %44 : vector<9x256xf32> to vector<9x1x256xf32>
    %cst_29 = arith.constant 0.000000e+00 : f32
    %82 = vector.shape_cast %81 : vector<9x1x256xf32> to vector<9x1x256xf32>
    %83 = vector.broadcast %82 : vector<9x1x256xf32> to vector<9x32x256xf32>
    %84 = vector.broadcast %cst_29 : f32 to vector<9x32x256xf32>
    %85 = arith.select %80, %83, %84 : vector<9x32x256xi1>, vector<9x32x256xf32>
    %86 = vector.shape_cast %58 : vector<9x256xi32> to vector<9x1x256xi32>
    %87 = vector.broadcast %86 : vector<9x1x256xi32> to vector<9x32x256xi32>
    %88 = arith.cmpi eq, %60, %87 : vector<9x32x256xi32>
    %89 = vector.shape_cast %47 : vector<9x256xf32> to vector<9x1x256xf32>
    %cst_30 = arith.constant 0.000000e+00 : f32
    %90 = vector.shape_cast %89 : vector<9x1x256xf32> to vector<9x1x256xf32>
    %91 = vector.broadcast %90 : vector<9x1x256xf32> to vector<9x32x256xf32>
    %92 = vector.broadcast %cst_30 : f32 to vector<9x32x256xf32>
    %93 = arith.select %88, %91, %92 : vector<9x32x256xi1>, vector<9x32x256xf32>
    %94 = arith.addf %85, %93 : vector<9x32x256xf32>
    %95 = arith.truncf %77 : vector<9x18x256xf32> to vector<9x18x256xbf16>
    %96 = arith.truncf %94 : vector<9x32x256xf32> to vector<9x32x256xbf16>
    %c0_31 = arith.constant 0 : index
    %c0_32 = arith.constant 0 : index
    %c0_33 = arith.constant 0 : index
    %97 = vector.load %arg2[%c0_31, %c0_32, %c0_33] : memref<1x4x576xbf16, #tpu.memory_space<vmem>>, vector<1x4x576xbf16>
    %98 = vector.shape_cast %97 : vector<1x4x576xbf16> to vector<4x576xbf16>
    %cst_34 = arith.constant 0.000000e+00 : f32
    %99 = vector.broadcast %cst_34 : f32 to vector<8x256xf32>
    %100 = vector.extract_strided_slice %95 {offsets = [0, 0, 0], sizes = [1, 18, 256], strides = [1, 1, 1]} : vector<9x18x256xbf16> to vector<1x18x256xbf16>
    %101 = vector.shape_cast %100 : vector<1x18x256xbf16> to vector<18x256xbf16>
    %102 = vector.shape_cast %101 : vector<18x256xbf16> to vector<18x1x256xbf16>
    %103 = vector.extract_strided_slice %96 {offsets = [0, 0, 0], sizes = [1, 32, 256], strides = [1, 1, 1]} : vector<9x32x256xbf16> to vector<1x32x256xbf16>
    %104 = vector.shape_cast %103 : vector<1x32x256xbf16> to vector<32x256xbf16>
    %105 = vector.shape_cast %104 : vector<32x256xbf16> to vector<1x32x256xbf16>
    %106 = vector.broadcast %102 : vector<18x1x256xbf16> to vector<18x32x256xbf16>
    %107 = vector.broadcast %105 : vector<1x32x256xbf16> to vector<18x32x256xbf16>
    %108 = arith.mulf %106, %107 : vector<18x32x256xbf16>
    %109 = vector.shape_cast %108 : vector<18x32x256xbf16> to vector<576x256xbf16>
    %cst_35 = arith.constant dense<0.000000e+00> : vector<4x256xf32>
    %110 = tpu.matmul %98, %109, %cst_35 {dimension_numbers = #tpu.dot_dimension_numbers<[1], [0], [0], [1], [0, 0, 1, 1], [], []>} : vector<4x576xbf16>, vector<576x256xbf16>, vector<4x256xf32> -> vector<4x256xf32>
    %c0_36 = arith.constant 0 : index
    %c0_37 = arith.constant 0 : index
    %c0_38 = arith.constant 0 : index
    %c0_39 = arith.constant 0 : index
    %111 = vector.load %arg3[%c0_36, %c0_37, %c0_38, %c0_39] : memref<1x9x8x4xbf16, #tpu.memory_space<vmem>>, vector<1x1x8x4xbf16>
    %112 = vector.shape_cast %111 : vector<1x1x8x4xbf16> to vector<8x4xbf16>
    %113 = arith.truncf %110 : vector<4x256xf32> to vector<4x256xbf16>
    %cst_40 = arith.constant dense<0.000000e+00> : vector<8x256xf32>
    %114 = tpu.matmul %112, %113, %cst_40 {dimension_numbers = #tpu.dot_dimension_numbers<[1], [0], [0], [1], [0, 0, 1, 1], [], []>} : vector<8x4xbf16>, vector<4x256xbf16>, vector<8x256xf32> -> vector<8x256xf32>
    %115 = arith.addf %99, %114 : vector<8x256xf32>
    %116 = vector.extract_strided_slice %95 {offsets = [1, 0, 0], sizes = [1, 18, 256], strides = [1, 1, 1]} : vector<9x18x256xbf16> to vector<1x18x256xbf16>
    %117 = vector.shape_cast %116 : vector<1x18x256xbf16> to vector<18x256xbf16>
    %118 = vector.shape_cast %117 : vector<18x256xbf16> to vector<18x1x256xbf16>
    %119 = vector.extract_strided_slice %96 {offsets = [1, 0, 0], sizes = [1, 32, 256], strides = [1, 1, 1]} : vector<9x32x256xbf16> to vector<1x32x256xbf16>
    %120 = vector.shape_cast %119 : vector<1x32x256xbf16> to vector<32x256xbf16>
    %121 = vector.shape_cast %120 : vector<32x256xbf16> to vector<1x32x256xbf16>
    %122 = vector.broadcast %118 : vector<18x1x256xbf16> to vector<18x32x256xbf16>
    %123 = vector.broadcast %121 : vector<1x32x256xbf16> to vector<18x32x256xbf16>
    %124 = arith.mulf %122, %123 : vector<18x32x256xbf16>
    %125 = vector.shape_cast %124 : vector<18x32x256xbf16> to vector<576x256xbf16>
    %cst_41 = arith.constant dense<0.000000e+00> : vector<4x256xf32>
    %126 = tpu.matmul %98, %125, %cst_41 {dimension_numbers = #tpu.dot_dimension_numbers<[1], [0], [0], [1], [0, 0, 1, 1], [], []>} : vector<4x576xbf16>, vector<576x256xbf16>, vector<4x256xf32> -> vector<4x256xf32>
    %c0_42 = arith.constant 0 : index
    %c1_43 = arith.constant 1 : index
    %c0_44 = arith.constant 0 : index
    %c0_45 = arith.constant 0 : index
    %127 = vector.load %arg3[%c0_42, %c1_43, %c0_44, %c0_45] : memref<1x9x8x4xbf16, #tpu.memory_space<vmem>>, vector<1x1x8x4xbf16>
    %128 = vector.shape_cast %127 : vector<1x1x8x4xbf16> to vector<8x4xbf16>
    %129 = arith.truncf %126 : vector<4x256xf32> to vector<4x256xbf16>
    %cst_46 = arith.constant dense<0.000000e+00> : vector<8x256xf32>
    %130 = tpu.matmul %128, %129, %cst_46 {dimension_numbers = #tpu.dot_dimension_numbers<[1], [0], [0], [1], [0, 0, 1, 1], [], []>} : vector<8x4xbf16>, vector<4x256xbf16>, vector<8x256xf32> -> vector<8x256xf32>
    %131 = arith.addf %115, %130 : vector<8x256xf32>
    %132 = vector.extract_strided_slice %95 {offsets = [2, 0, 0], sizes = [1, 18, 256], strides = [1, 1, 1]} : vector<9x18x256xbf16> to vector<1x18x256xbf16>
    %133 = vector.shape_cast %132 : vector<1x18x256xbf16> to vector<18x256xbf16>
    %134 = vector.shape_cast %133 : vector<18x256xbf16> to vector<18x1x256xbf16>
    %135 = vector.extract_strided_slice %96 {offsets = [2, 0, 0], sizes = [1, 32, 256], strides = [1, 1, 1]} : vector<9x32x256xbf16> to vector<1x32x256xbf16>
    %136 = vector.shape_cast %135 : vector<1x32x256xbf16> to vector<32x256xbf16>
    %137 = vector.shape_cast %136 : vector<32x256xbf16> to vector<1x32x256xbf16>
    %138 = vector.broadcast %134 : vector<18x1x256xbf16> to vector<18x32x256xbf16>
    %139 = vector.broadcast %137 : vector<1x32x256xbf16> to vector<18x32x256xbf16>
    %140 = arith.mulf %138, %139 : vector<18x32x256xbf16>
    %141 = vector.shape_cast %140 : vector<18x32x256xbf16> to vector<576x256xbf16>
    %cst_47 = arith.constant dense<0.000000e+00> : vector<4x256xf32>
    %142 = tpu.matmul %98, %141, %cst_47 {dimension_numbers = #tpu.dot_dimension_numbers<[1], [0], [0], [1], [0, 0, 1, 1], [], []>} : vector<4x576xbf16>, vector<576x256xbf16>, vector<4x256xf32> -> vector<4x256xf32>
    %c0_48 = arith.constant 0 : index
    %c2_49 = arith.constant 2 : index
    %c0_50 = arith.constant 0 : index
    %c0_51 = arith.constant 0 : index
    %143 = vector.load %arg3[%c0_48, %c2_49, %c0_50, %c0_51] : memref<1x9x8x4xbf16, #tpu.memory_space<vmem>>, vector<1x1x8x4xbf16>
    %144 = vector.shape_cast %143 : vector<1x1x8x4xbf16> to vector<8x4xbf16>
    %145 = arith.truncf %142 : vector<4x256xf32> to vector<4x256xbf16>
    %cst_52 = arith.constant dense<0.000000e+00> : vector<8x256xf32>
    %146 = tpu.matmul %144, %145, %cst_52 {dimension_numbers = #tpu.dot_dimension_numbers<[1], [0], [0], [1], [0, 0, 1, 1], [], []>} : vector<8x4xbf16>, vector<4x256xbf16>, vector<8x256xf32> -> vector<8x256xf32>
    %147 = arith.addf %131, %146 : vector<8x256xf32>
    %148 = vector.extract_strided_slice %95 {offsets = [3, 0, 0], sizes = [1, 18, 256], strides = [1, 1, 1]} : vector<9x18x256xbf16> to vector<1x18x256xbf16>
    %149 = vector.shape_cast %148 : vector<1x18x256xbf16> to vector<18x256xbf16>
    %150 = vector.shape_cast %149 : vector<18x256xbf16> to vector<18x1x256xbf16>
    %151 = vector.extract_strided_slice %96 {offsets = [3, 0, 0], sizes = [1, 32, 256], strides = [1, 1, 1]} : vector<9x32x256xbf16> to vector<1x32x256xbf16>
    %152 = vector.shape_cast %151 : vector<1x32x256xbf16> to vector<32x256xbf16>
    %153 = vector.shape_cast %152 : vector<32x256xbf16> to vector<1x32x256xbf16>
    %154 = vector.broadcast %150 : vector<18x1x256xbf16> to vector<18x32x256xbf16>
    %155 = vector.broadcast %153 : vector<1x32x256xbf16> to vector<18x32x256xbf16>
    %156 = arith.mulf %154, %155 : vector<18x32x256xbf16>
    %157 = vector.shape_cast %156 : vector<18x32x256xbf16> to vector<576x256xbf16>
    %cst_53 = arith.constant dense<0.000000e+00> : vector<4x256xf32>
    %158 = tpu.matmul %98, %157, %cst_53 {dimension_numbers = #tpu.dot_dimension_numbers<[1], [0], [0], [1], [0, 0, 1, 1], [], []>} : vector<4x576xbf16>, vector<576x256xbf16>, vector<4x256xf32> -> vector<4x256xf32>
    %c0_54 = arith.constant 0 : index
    %c3 = arith.constant 3 : index
    %c0_55 = arith.constant 0 : index
    %c0_56 = arith.constant 0 : index
    %159 = vector.load %arg3[%c0_54, %c3, %c0_55, %c0_56] : memref<1x9x8x4xbf16, #tpu.memory_space<vmem>>, vector<1x1x8x4xbf16>
    %160 = vector.shape_cast %159 : vector<1x1x8x4xbf16> to vector<8x4xbf16>
    %161 = arith.truncf %158 : vector<4x256xf32> to vector<4x256xbf16>
    %cst_57 = arith.constant dense<0.000000e+00> : vector<8x256xf32>
    %162 = tpu.matmul %160, %161, %cst_57 {dimension_numbers = #tpu.dot_dimension_numbers<[1], [0], [0], [1], [0, 0, 1, 1], [], []>} : vector<8x4xbf16>, vector<4x256xbf16>, vector<8x256xf32> -> vector<8x256xf32>
    %163 = arith.addf %147, %162 : vector<8x256xf32>
    %164 = vector.extract_strided_slice %95 {offsets = [4, 0, 0], sizes = [1, 18, 256], strides = [1, 1, 1]} : vector<9x18x256xbf16> to vector<1x18x256xbf16>
    %165 = vector.shape_cast %164 : vector<1x18x256xbf16> to vector<18x256xbf16>
    %166 = vector.shape_cast %165 : vector<18x256xbf16> to vector<18x1x256xbf16>
    %167 = vector.extract_strided_slice %96 {offsets = [4, 0, 0], sizes = [1, 32, 256], strides = [1, 1, 1]} : vector<9x32x256xbf16> to vector<1x32x256xbf16>
    %168 = vector.shape_cast %167 : vector<1x32x256xbf16> to vector<32x256xbf16>
    %169 = vector.shape_cast %168 : vector<32x256xbf16> to vector<1x32x256xbf16>
    %170 = vector.broadcast %166 : vector<18x1x256xbf16> to vector<18x32x256xbf16>
    %171 = vector.broadcast %169 : vector<1x32x256xbf16> to vector<18x32x256xbf16>
    %172 = arith.mulf %170, %171 : vector<18x32x256xbf16>
    %173 = vector.shape_cast %172 : vector<18x32x256xbf16> to vector<576x256xbf16>
    %cst_58 = arith.constant dense<0.000000e+00> : vector<4x256xf32>
    %174 = tpu.matmul %98, %173, %cst_58 {dimension_numbers = #tpu.dot_dimension_numbers<[1], [0], [0], [1], [0, 0, 1, 1], [], []>} : vector<4x576xbf16>, vector<576x256xbf16>, vector<4x256xf32> -> vector<4x256xf32>
    %c0_59 = arith.constant 0 : index
    %c4 = arith.constant 4 : index
    %c0_60 = arith.constant 0 : index
    %c0_61 = arith.constant 0 : index
    %175 = vector.load %arg3[%c0_59, %c4, %c0_60, %c0_61] : memref<1x9x8x4xbf16, #tpu.memory_space<vmem>>, vector<1x1x8x4xbf16>
    %176 = vector.shape_cast %175 : vector<1x1x8x4xbf16> to vector<8x4xbf16>
    %177 = arith.truncf %174 : vector<4x256xf32> to vector<4x256xbf16>
    %cst_62 = arith.constant dense<0.000000e+00> : vector<8x256xf32>
    %178 = tpu.matmul %176, %177, %cst_62 {dimension_numbers = #tpu.dot_dimension_numbers<[1], [0], [0], [1], [0, 0, 1, 1], [], []>} : vector<8x4xbf16>, vector<4x256xbf16>, vector<8x256xf32> -> vector<8x256xf32>
    %179 = arith.addf %163, %178 : vector<8x256xf32>
    %180 = vector.extract_strided_slice %95 {offsets = [5, 0, 0], sizes = [1, 18, 256], strides = [1, 1, 1]} : vector<9x18x256xbf16> to vector<1x18x256xbf16>
    %181 = vector.shape_cast %180 : vector<1x18x256xbf16> to vector<18x256xbf16>
    %182 = vector.shape_cast %181 : vector<18x256xbf16> to vector<18x1x256xbf16>
    %183 = vector.extract_strided_slice %96 {offsets = [5, 0, 0], sizes = [1, 32, 256], strides = [1, 1, 1]} : vector<9x32x256xbf16> to vector<1x32x256xbf16>
    %184 = vector.shape_cast %183 : vector<1x32x256xbf16> to vector<32x256xbf16>
    %185 = vector.shape_cast %184 : vector<32x256xbf16> to vector<1x32x256xbf16>
    %186 = vector.broadcast %182 : vector<18x1x256xbf16> to vector<18x32x256xbf16>
    %187 = vector.broadcast %185 : vector<1x32x256xbf16> to vector<18x32x256xbf16>
    %188 = arith.mulf %186, %187 : vector<18x32x256xbf16>
    %189 = vector.shape_cast %188 : vector<18x32x256xbf16> to vector<576x256xbf16>
    %cst_63 = arith.constant dense<0.000000e+00> : vector<4x256xf32>
    %190 = tpu.matmul %98, %189, %cst_63 {dimension_numbers = #tpu.dot_dimension_numbers<[1], [0], [0], [1], [0, 0, 1, 1], [], []>} : vector<4x576xbf16>, vector<576x256xbf16>, vector<4x256xf32> -> vector<4x256xf32>
    %c0_64 = arith.constant 0 : index
    %c5 = arith.constant 5 : index
    %c0_65 = arith.constant 0 : index
    %c0_66 = arith.constant 0 : index
    %191 = vector.load %arg3[%c0_64, %c5, %c0_65, %c0_66] : memref<1x9x8x4xbf16, #tpu.memory_space<vmem>>, vector<1x1x8x4xbf16>
    %192 = vector.shape_cast %191 : vector<1x1x8x4xbf16> to vector<8x4xbf16>
    %193 = arith.truncf %190 : vector<4x256xf32> to vector<4x256xbf16>
    %cst_67 = arith.constant dense<0.000000e+00> : vector<8x256xf32>
    %194 = tpu.matmul %192, %193, %cst_67 {dimension_numbers = #tpu.dot_dimension_numbers<[1], [0], [0], [1], [0, 0, 1, 1], [], []>} : vector<8x4xbf16>, vector<4x256xbf16>, vector<8x256xf32> -> vector<8x256xf32>
    %195 = arith.addf %179, %194 : vector<8x256xf32>
    %196 = vector.extract_strided_slice %95 {offsets = [6, 0, 0], sizes = [1, 18, 256], strides = [1, 1, 1]} : vector<9x18x256xbf16> to vector<1x18x256xbf16>
    %197 = vector.shape_cast %196 : vector<1x18x256xbf16> to vector<18x256xbf16>
    %198 = vector.shape_cast %197 : vector<18x256xbf16> to vector<18x1x256xbf16>
    %199 = vector.extract_strided_slice %96 {offsets = [6, 0, 0], sizes = [1, 32, 256], strides = [1, 1, 1]} : vector<9x32x256xbf16> to vector<1x32x256xbf16>
    %200 = vector.shape_cast %199 : vector<1x32x256xbf16> to vector<32x256xbf16>
    %201 = vector.shape_cast %200 : vector<32x256xbf16> to vector<1x32x256xbf16>
    %202 = vector.broadcast %198 : vector<18x1x256xbf16> to vector<18x32x256xbf16>
    %203 = vector.broadcast %201 : vector<1x32x256xbf16> to vector<18x32x256xbf16>
    %204 = arith.mulf %202, %203 : vector<18x32x256xbf16>
    %205 = vector.shape_cast %204 : vector<18x32x256xbf16> to vector<576x256xbf16>
    %cst_68 = arith.constant dense<0.000000e+00> : vector<4x256xf32>
    %206 = tpu.matmul %98, %205, %cst_68 {dimension_numbers = #tpu.dot_dimension_numbers<[1], [0], [0], [1], [0, 0, 1, 1], [], []>} : vector<4x576xbf16>, vector<576x256xbf16>, vector<4x256xf32> -> vector<4x256xf32>
    %c0_69 = arith.constant 0 : index
    %c6 = arith.constant 6 : index
    %c0_70 = arith.constant 0 : index
    %c0_71 = arith.constant 0 : index
    %207 = vector.load %arg3[%c0_69, %c6, %c0_70, %c0_71] : memref<1x9x8x4xbf16, #tpu.memory_space<vmem>>, vector<1x1x8x4xbf16>
    %208 = vector.shape_cast %207 : vector<1x1x8x4xbf16> to vector<8x4xbf16>
    %209 = arith.truncf %206 : vector<4x256xf32> to vector<4x256xbf16>
    %cst_72 = arith.constant dense<0.000000e+00> : vector<8x256xf32>
    %210 = tpu.matmul %208, %209, %cst_72 {dimension_numbers = #tpu.dot_dimension_numbers<[1], [0], [0], [1], [0, 0, 1, 1], [], []>} : vector<8x4xbf16>, vector<4x256xbf16>, vector<8x256xf32> -> vector<8x256xf32>
    %211 = arith.addf %195, %210 : vector<8x256xf32>
    %212 = vector.extract_strided_slice %95 {offsets = [7, 0, 0], sizes = [1, 18, 256], strides = [1, 1, 1]} : vector<9x18x256xbf16> to vector<1x18x256xbf16>
    %213 = vector.shape_cast %212 : vector<1x18x256xbf16> to vector<18x256xbf16>
    %214 = vector.shape_cast %213 : vector<18x256xbf16> to vector<18x1x256xbf16>
    %215 = vector.extract_strided_slice %96 {offsets = [7, 0, 0], sizes = [1, 32, 256], strides = [1, 1, 1]} : vector<9x32x256xbf16> to vector<1x32x256xbf16>
    %216 = vector.shape_cast %215 : vector<1x32x256xbf16> to vector<32x256xbf16>
    %217 = vector.shape_cast %216 : vector<32x256xbf16> to vector<1x32x256xbf16>
    %218 = vector.broadcast %214 : vector<18x1x256xbf16> to vector<18x32x256xbf16>
    %219 = vector.broadcast %217 : vector<1x32x256xbf16> to vector<18x32x256xbf16>
    %220 = arith.mulf %218, %219 : vector<18x32x256xbf16>
    %221 = vector.shape_cast %220 : vector<18x32x256xbf16> to vector<576x256xbf16>
    %cst_73 = arith.constant dense<0.000000e+00> : vector<4x256xf32>
    %222 = tpu.matmul %98, %221, %cst_73 {dimension_numbers = #tpu.dot_dimension_numbers<[1], [0], [0], [1], [0, 0, 1, 1], [], []>} : vector<4x576xbf16>, vector<576x256xbf16>, vector<4x256xf32> -> vector<4x256xf32>
    %c0_74 = arith.constant 0 : index
    %c7 = arith.constant 7 : index
    %c0_75 = arith.constant 0 : index
    %c0_76 = arith.constant 0 : index
    %223 = vector.load %arg3[%c0_74, %c7, %c0_75, %c0_76] : memref<1x9x8x4xbf16, #tpu.memory_space<vmem>>, vector<1x1x8x4xbf16>
    %224 = vector.shape_cast %223 : vector<1x1x8x4xbf16> to vector<8x4xbf16>
    %225 = arith.truncf %222 : vector<4x256xf32> to vector<4x256xbf16>
    %cst_77 = arith.constant dense<0.000000e+00> : vector<8x256xf32>
    %226 = tpu.matmul %224, %225, %cst_77 {dimension_numbers = #tpu.dot_dimension_numbers<[1], [0], [0], [1], [0, 0, 1, 1], [], []>} : vector<8x4xbf16>, vector<4x256xbf16>, vector<8x256xf32> -> vector<8x256xf32>
    %227 = arith.addf %211, %226 : vector<8x256xf32>
    %228 = vector.extract_strided_slice %95 {offsets = [8, 0, 0], sizes = [1, 18, 256], strides = [1, 1, 1]} : vector<9x18x256xbf16> to vector<1x18x256xbf16>
    %229 = vector.shape_cast %228 : vector<1x18x256xbf16> to vector<18x256xbf16>
    %230 = vector.shape_cast %229 : vector<18x256xbf16> to vector<18x1x256xbf16>
    %231 = vector.extract_strided_slice %96 {offsets = [8, 0, 0], sizes = [1, 32, 256], strides = [1, 1, 1]} : vector<9x32x256xbf16> to vector<1x32x256xbf16>
    %232 = vector.shape_cast %231 : vector<1x32x256xbf16> to vector<32x256xbf16>
    %233 = vector.shape_cast %232 : vector<32x256xbf16> to vector<1x32x256xbf16>
    %234 = vector.broadcast %230 : vector<18x1x256xbf16> to vector<18x32x256xbf16>
    %235 = vector.broadcast %233 : vector<1x32x256xbf16> to vector<18x32x256xbf16>
    %236 = arith.mulf %234, %235 : vector<18x32x256xbf16>
    %237 = vector.shape_cast %236 : vector<18x32x256xbf16> to vector<576x256xbf16>
    %cst_78 = arith.constant dense<0.000000e+00> : vector<4x256xf32>
    %238 = tpu.matmul %98, %237, %cst_78 {dimension_numbers = #tpu.dot_dimension_numbers<[1], [0], [0], [1], [0, 0, 1, 1], [], []>} : vector<4x576xbf16>, vector<576x256xbf16>, vector<4x256xf32> -> vector<4x256xf32>
    %c0_79 = arith.constant 0 : index
    %c8 = arith.constant 8 : index
    %c0_80 = arith.constant 0 : index
    %c0_81 = arith.constant 0 : index
    %239 = vector.load %arg3[%c0_79, %c8, %c0_80, %c0_81] : memref<1x9x8x4xbf16, #tpu.memory_space<vmem>>, vector<1x1x8x4xbf16>
    %240 = vector.shape_cast %239 : vector<1x1x8x4xbf16> to vector<8x4xbf16>
    %241 = arith.truncf %238 : vector<4x256xf32> to vector<4x256xbf16>
    %cst_82 = arith.constant dense<0.000000e+00> : vector<8x256xf32>
    %242 = tpu.matmul %240, %241, %cst_82 {dimension_numbers = #tpu.dot_dimension_numbers<[1], [0], [0], [1], [0, 0, 1, 1], [], []>} : vector<8x4xbf16>, vector<4x256xbf16>, vector<8x256xf32> -> vector<8x256xf32>
    %243 = arith.addf %227, %242 : vector<8x256xf32>
    %c0_83 = arith.constant 0 : index
    %c0_84 = arith.constant 0 : index
    %c0_85 = arith.constant 0 : index
    %244 = vector.load %arg5[%c0_83, %c0_84, %c0_85] : memref<1x8x256xf32, #tpu.memory_space<vmem>>, vector<1x8x256xf32>
    %245 = vector.shape_cast %244 : vector<1x8x256xf32> to vector<8x256xf32>
    %246 = vector.shape_cast %243 : vector<8x256xf32> to vector<1x8x256xf32>
    tpu.vector_store %arg5[%c0_83, %c0_84, %c0_85], %246 {strides = array<i32>} : memref<1x8x256xf32, #tpu.memory_space<vmem>>, vector<1x8x256xf32>,
    return
  }
  func.func @transform_0(%arg0: i32, %arg1: i32) -> (i32, i32, i32) {
    %c0_i32 = arith.constant 0 : i32
    %c0_i32_0 = arith.constant 0 : i32
    %c0_i32_1 = arith.constant 0 : i32
    return %arg0, %c0_i32, %c0_i32_0 : i32, i32, i32
  }
  func.func @transform_1(%arg0: i32, %arg1: i32) -> (i32, i32, i32, i32) {
    %c0_i32 = arith.constant 0 : i32
    %c0_i32_0 = arith.constant 0 : i32
    %c0_i32_1 = arith.constant 0 : i32
    %c0_i32_2 = arith.constant 0 : i32
    %c0_i32_3 = arith.constant 0 : i32
    return %c0_i32, %c0_i32_0, %c0_i32_1, %c0_i32_2 : i32, i32, i32, i32
  }
  func.func @transform_2(%arg0: i32, %arg1: i32) -> (i32, i32, i32, i32) {
    %c0_i32 = arith.constant 0 : i32
    %c0_i32_0 = arith.constant 0 : i32
    %c0_i32_1 = arith.constant 0 : i32
    return %arg0, %c0_i32, %c0_i32_0, %arg1 : i32, i32, i32, i32
  }
  func.func @transform_3(%arg0: i32, %arg1: i32) -> (i32, i32, i32) {
    %c0_i32 = arith.constant 0 : i32
    %c0_i32_0 = arith.constant 0 : i32
    return %arg0, %c0_i32, %arg1 : i32, i32, i32
  }
}

</mosaic_0001>

<bundles_post_ra>
// kernel: tpu_custom_call.1
= control target key start
LH: loop header
LB: loop body
LE: loop exit
PB: predicated region body
PF: predicated region fallthrough
CT: control target
= control target key end

     0   :  { %8 = vsyncpa [#allocation3], 0  ;;  %s14156_s0 = inlined_call_operand.vmem [shape: bf16[2,4,576], index: 0, kind: input, shape index: {}]   ;;  %s14157_s1 = inlined_call_operand.vmem [shape: bf16[1,9,8,4], index: 1, kind: input, shape index: {}]   ;;  %s14158_s2 = inlined_call_operand.vmem [shape: f32[2,3,9,256], index: 2, kind: input, shape index: {}]   ;;  %s14159_s3 = inlined_call_operand.hbm [shape: f32[2,8,256], index: 3, kind: output, shape index: {}]  }
   0x1   :  { %10 = vsyncpa [#allocation3 + $0x1], 0  ;;  %s9665_s12 = smov 0   ;;  %s9667_s13 = smov 0  }
   0x2   :  { %s9669_s14 = smov 0   ;;  %s9671_s15 = smov 0  }
   0x3   :  { %s9673_s16 = smov 0   ;;  %s9675_s17 = smov 0  }
   0x4 LB: > { %s9178_s18 = sadd.s32 4294967295, %s9639_s17   ;;  %s9179_s19 = sadd.s32 4294967294, %s9639_s17   ;;  %s9639_s17 = sphi %s9675_s17, %s16_s17   ;;  %s9635_s16 = sphi %s9673_s16, %s14686_s16   ;;  %s9631_s15 = sphi %s9671_s15, %s14685_s15   ;;  %s9627_s14 = sphi %s9669_s14, %s14684_s14   ;;  %s9623_s13 = sphi %s9667_s13, %s14683_s13   ;;  %s9619_s12 = sphi %s9665_s12, %s14682_s12  }
   0x5   : > { %s28_s20 = sadd.s32 1, %s9635_s16  ;;  %s112_s21 = sadd.s32 1, %s9627_s14 }
   0x6   : > { %p30_p0 = scmp.ge.s32.totalorder %s28_s20, 2  ;;  %p122_p1 = scmp.ne.s32.totalorder %s9627_s14, %s9623_s13 }
   0x7   : > { %p123_p2 = scmp.eq.s32.totalorder %s9178_s18, 1  ;;  %p128_p3 = scmp.ne.s32.totalorder %s9623_s13, %s9619_s12 }
   0x8   : > { %s14688_s20 = smov (%p30_p0, %s28_s20), 0  ;;  %p129_p5 = scmp.eq.s32.totalorder %s9179_s19, 1 }
   0x9   : > { %p9705_p4 = por %p123_p2, %p122_p1  ;;  %s107_s23 = ssub.s32 %s9635_s16, %s14688_s20 }
   0xa   : > { %p9182_p6 = scmp.ge.s32.totalorder %s9639_s17, 1  ;;  %p110_p7 = scmp.eq.s32.totalorder %s107_s23, 0 }
   0xb   : > { %p9712_p8 = por %p129_p5, %p128_p3  ;;  %p171_p9 = scmp.lt.s32.totalorder %s9639_s17, 3 }
   0xc   : > { %s9718_s25 = scalar_select %p110_p7, %s9627_s14, %s112_s21  }
   0xd   : > { %p172_p10 = pnand %p9182_p6, %p171_p9 }
   0xf   : > { %175 = sbr.rel (%p172_p10) target bundleno = 2177 (0x881), region = 32 }
  0x16   : > { %p204_p11 = scmp.lt.s32.totalorder %s9631_s15, 1  ;;  %v379_v28 = vlaneseq  ;;  %v9641_v29 = vmov 1966171168   ;;  %s201_s9 = sand.u32 1, %s9623_s13  }
  0x17   : > { %v387_v30 = vunpack.c.l.s4 %v9641_v29  ;;  %s9183_s10 = sshll.u32 %s201_s9, 4  ;;  %s9347_s19 = sshll.u32 %s9631_s15, 8 }
  0x18   : > { %s9722_s26 = scalar_select %p204_p11, %s9631_s15, 1  ;;  %v9748_v33 = vshrl.u32 %v379_v28, 7 }
  0x19   : > { %v388_v34 = vunpack.c.0.s8 %v387_v30  ;;  %s203_s11 = scalar_lea.vmem [#allocation2], %s9183_s10  ;;  %s9644_s15 = smov [#allocation2]  }
  0x1a   : > { %s9449_s27 = smul.u32 96, %s9722_s26  ;;  %14263 = vst [vmem:[#allocation5_spill] sm:$0xff] %v9748_v33  ;;  %v9755_v58 = vadd.s32 8, %v9748_v33  ;;  %v9758_v59 = vadd.s32 16, %v9748_v33  ;;  %s9090_s18 = sshll.u32 %s203_s11, 4  ;;  %s14106_s18 = int_to_ptr.vmem [resolvable:$true] %s9090_s18 }
  0x1b   : > { %v9751_v46 = vsub.s32 %v388_v34, %v9748_v33  ;;  %s9448_s4 = smul.u32 10, %s9722_s26  ;;  %s14111_s26 = scalar_lea.hbm %s14159_s3, %s9347_s19 }
  0x1c   : > { %s9728_s30 = scalar_lea.vmem %s14158_s2, %s9449_s27  ;;  %14265 = vst [vmem:[#allocation7_spill] sm:$0xff] %v9755_v58  ;;  %14266 = vst [vmem:[#allocation8_spill] sm:$0xff] %v9758_v59  ;;  %s9074_s27 = scalar_lea.sflag [#allocation3], %s201_s9 }
  0x1d   : > { %v9186_v0 = vld [vmem:[%s9728_s30 + $0x20] sm:$0xff]  ;;  %v9187_v1 = vld [vmem:[%s9728_s30 + $0x28] sm:$0xff]  ;;  %14264 = vst [vmem:[#allocation6_spill] sm:$0xff] %v9751_v46  ;;  %s11431_s7 = scalar_lea.vmem %s14156_s0, %s9448_s4  ;;  %s9561_s28 = scalar_lea.vmem %s14106_s18, 256 }
  0x1e   : > { %v239_v2 = vfloor.f32 %v9186_v0  ;;  %v240_v3 = vfloor.f32 %v9187_v1  ;;  %v291_v6 = vmax.f32 %v9186_v0, 0.0  ;;  %v292_v7 = vmax.f32 %v9187_v1, 0.0  ;;  %v9190_v18 = vld [vmem:[%s9728_s30 + $0x40] sm:$0xff]  ;;  %v9191_v22 = vld [vmem:[%s9728_s30 + $0x48] sm:$0xff]  ;;  %p9562_p12 = scmp.ne.s32.totalorder %s14106_s18, %s9561_s28  ;;  %s9565_s29 = sshll.u32 %s9644_s15, 4  ;;  %s9566_s29 = int_to_ptr.vmem [resolvable:$false] %s9565_s29 }
  0x1f   : > { %v9194_v24 = vmul.f32 -1.442695, %v9190_v18  ;;  %v9195_v25 = vmul.f32 -1.442695, %v9191_v22  ;;  %v221_v26 = vld [vmem:[%s9728_s30] sm:$0xff]  ;;  %v222_v27 = vld [vmem:[%s9728_s30 + $0x8] sm:$0xff]  ;;  %p9568_p1 = scmp.lt.s32.totalorder %s14106_s18, %s9566_s29 }
  0x20   : > { %v263_v4 = vmax.f32 %v239_v2, 0.0  ;;  %v264_v5 = vmax.f32 %v240_v3, 0.0  ;;  %v9732_v10 = vmin.f32 %v291_v6, 17.0  ;;  %v9734_v11 = vmin.f32 %v292_v7, 17.0  ;;  %p9563_p13 = pnand %p9562_p12, %p9705_p4 }
  0x21   : > { %9541 = vpow2.f32 %v9194_v24  ;;  %v235_v31 = vfloor.f32 %v221_v26  ;;  %v236_v32 = vfloor.f32 %v222_v27  ;;  %v283_v38 = vmax.f32 %v221_v26, 0.0 }
  0x22   : > { %v267_v8 = vmin.f32 %v263_v4, 17.0  ;;  %v268_v9 = vmin.f32 %v264_v5, 17.0  ;;  %9543 = vpow2.f32 %v9195_v25  ;;  %v271_v42 = vadd.f32 1.0, %v239_v2  ;;  %p9564_p0 = pneg %p9563_p13 }
  0x23   : > { %v243_v35 = vmax.f32 %v235_v31, 0.0  ;;  %v251_v36 = vadd.f32 1.0, %v235_v31  ;;  %v252_v37 = vadd.f32 1.0, %v236_v32  ;;  %v244_v39 = vmax.f32 %v236_v32, 0.0 }
  0x24   : > { %v9466_v12 = vtrunc.f32 %v267_v8  ;;  %v9468_v13 = vtrunc.f32 %v268_v9  ;;  %v315_v14 = vsub.f32 %v267_v8, %v9732_v10  ;;  %v316_v15 = vsub.f32 %v268_v9, %v9734_v11 }
  0x25   : > { %v272_v43 = vadd.f32 1.0, %v240_v3  ;;  %v284_v45 = vmax.f32 %v222_v27, 0.0  ;;  %v247_v47 = vmin.f32 %v243_v35, 17.0  ;;  %v255_v48 = vmax.f32 %v251_v36, 0.0 }
  0x26   : > { %v9467_v16 = vcvt.f32.s32 %v9466_v12  ;;  %v9469_v17 = vcvt.f32.s32 %v9468_v13  ;;  %v9739_v19 = vadd.f32 1.0, %v315_v14  ;;  %v9741_v20 = vadd.f32 1.0, %v316_v15 }
  0x27   : > { %v256_v49 = vmax.f32 %v252_v37, 0.0  ;;  %v287_v50 = vmin.f32 %v283_v38, 17.0  ;;  %v248_v51 = vmin.f32 %v244_v39, 17.0  ;;  %v275_v54 = vmax.f32 %v271_v42, 0.0 }
  0x28   : > { %v1247_v21 = vcombine.high %v9467_v16, %v9469_v17  ;;  %v1460_v23 = vcombine.high %v9739_v19, %v9741_v20  ;;  %v1246_v40 = vcombine.low %v9467_v16, %v9469_v17  ;;  %v276_v55 = vmax.f32 %v272_v43, 0.0 }
  0x29   : > { %v288_v57 = vmin.f32 %v284_v45, 17.0  ;;  %v259_v60 = vmin.f32 %v255_v48, 17.0  ;;  %v260_v61 = vmin.f32 %v256_v49, 17.0  ;;  %v299_v62 = vsub.f32 %v247_v47, %v287_v50 }
  0x2a   : > { %v1254_v53 = vrot.slane %v1246_v40, %v9751_v46  ;;  %v9760_v63 = vtrunc.f32 %v247_v47  ;;  %v9762_v0 = vtrunc.f32 %v248_v51  ;;  %v1261_v1 = vrot.slane %v1247_v21, %v9751_v46 }
  0x2b   : > { %v9542_v41 = vpop.eup %9541  ;;  %v9765_v3 = vmin.f32 %v275_v54, 17.0  ;;  %v9767_v4 = vmin.f32 %v276_v55, 17.0  ;;  %v9770_v5 = vadd.s32 24, %v9748_v33  ;;  %v300_v6 = vsub.f32 %v248_v51, %v288_v57 }
  0x2c   : > { %v9544_v44 = vpop.eup %9543  ;;  %v343_v52 = vadd.f32 1.0, %v9542_v41  ;;  %14267 = vst [vmem:[#allocation9_spill] sm:$0xff] %v9760_v63  ;;  %14268 = vst [vmem:[#allocation10_spill] sm:$0xff] %v9762_v0  ;;  %v1262_v2 = vcombine.high %v1254_v53, %v1254_v53  ;;  %v9773_v7 = vsub.s32 0, %v9748_v33  ;;  %v9776_v8 = vsub.s32 1, %v9748_v33 }
  0x2d   : > { %v344_v56 = vadd.f32 1.0, %v9544_v44  ;;  %14269 = vst [vmem:[#allocation11_spill] sm:$0xff] %v9770_v5  ;;  %v1263_v9 = vcombine.high %v1261_v1, %v1261_v1  ;;  %v303_v12 = vadd.f32 1.0, %v299_v62  ;;  %v307_v13 = vsub.f32 %v259_v60, %v287_v50 }
  0x2e   : > { %9545 = vrcp.f32 %v343_v52  ;;  %14270 = vst [vmem:[#allocation12_spill] sm:$0xff] %v9773_v7  ;;  %14271 = vst [vmem:[#allocation13_spill] sm:$0xff] %v9776_v8  ;;  %v308_v14 = vsub.f32 %v260_v61, %v288_v57  ;;  %v14160_v15 = vcvt.f32.s32 %v9760_v63  ;;  %v14161_v16 = vcvt.f32.s32 %v9762_v0 }
  0x2f   : > { %9547 = vrcp.f32 %v344_v56  ;;  %v9458_v17 = vtrunc.f32 %v259_v60  ;;  %v9781_v18 = vrot.slane %v1254_v53, %v9751_v46  ;;  %v9784_v21 = vrot.slane %v1262_v2, %v9751_v46 }
  0x30   : > { %v9460_v22 = vtrunc.f32 %v260_v61  ;;  %v9474_v24 = vtrunc.f32 %v9765_v3  ;;  %v9476_v25 = vtrunc.f32 %v9767_v4  ;;  %v1459_v26 = vcombine.low %v9739_v19, %v9741_v20 }
  0x31   : > { %v1277_v27 = vrot.slane %v1261_v1, %v9751_v46  ;;  %v1291_v28 = vrot.slane %v1263_v9, %v9751_v46  ;;  %v1292_v29 = vcombine.high %v9781_v18, %v9781_v18  ;;  %v1294_v30 = vcombine.high %v9784_v21, %v9784_v21 }
  0x32   : > { %v304_v31 = vadd.f32 1.0, %v300_v6  ;;  %v311_v32 = vsub.f32 1.0, %v307_v13  ;;  %v312_v34 = vsub.f32 1.0, %v308_v14  ;;  %v9800_v37 = vcvt.f32.s32 %v9458_v17 }
  0x33   : > { %v1293_v38 = vcombine.high %v1277_v27, %v1277_v27  ;;  %v1295_v39 = vcombine.high %v1291_v28, %v1291_v28  ;;  %v9802_v40 = vcvt.f32.s32 %v9460_v22  ;;  %v9804_v41 = vcvt.f32.s32 %v9474_v24 }
  0x34   : > { %14272 = vst [vmem:[#allocation14_spill] sm:$0xff] %v9800_v37  ;;  %v9806_v42 = vcvt.f32.s32 %v9476_v25  ;;  %v1467_v43 = vrot.slane %v1459_v26, %v9751_v46  ;;  %v9813_v45 = vcombine.low %v14160_v15, %v14161_v16  ;;  %v9816_v47 = vrot.slane %v1292_v29, %v9773_v7 }
  0x35   : > { %14273 = vst [vmem:[#allocation15_spill] sm:$0xff] %v9802_v40  ;;  %v9819_v48 = vrot.slane %v1292_v29, %v9776_v8  ;;  %v9822_v49 = vrot.slane %v1294_v30, %v9773_v7  ;;  %v9825_v51 = vrot.slane %v1294_v30, %v9776_v8  ;;  %v9828_v52 = vrot.slane %v1277_v27, %v9773_v7 }
  0x36   : > { %v9831_v53 = vrot.slane %v1277_v27, %v9776_v8  ;;  %v9834_v54 = vrot.slane %v1291_v28, %v9773_v7  ;;  %v9837_v55 = vrot.slane %v1291_v28, %v9776_v8  ;;  %v9840_v56 = vrot.slane %v1293_v38, %v9773_v7 }
  0x37   : > { %v9843_v57 = vrot.slane %v1293_v38, %v9776_v8  ;;  %v9846_v60 = vrot.slane %v1295_v39, %v9773_v7  ;;  %v9851_v62 = vrot.slane %v1295_v39, %v9776_v8  ;;  %v1474_v1 = vrot.slane %v1460_v23, %v9751_v46 }
  0x38   : > { %v9546_v44 = vpop.eup %9545  ;;  %v1475_v2 = vcombine.high %v1467_v43, %v1467_v43  ;;  %vm1399_vm0 = vcmp.eq.s32.totalorder %v9748_v33, %v9816_v47  ;;  %vm1400_vm1 = vcmp.eq.s32.totalorder %v9748_v33, %v9819_v48  ;;  %vm1401_vm2 = vcmp.eq.s32.totalorder %v9755_v58, %v9816_v47 }
  0x39   : > { %v9548_v50 = vpop.eup %9547  ;;  %v9848_v61 = vmul.f32 %v9546_v44, %v303_v12  ;;  %v9859_v9 = vmul.f32 %v9546_v44, %v311_v32  ;;  %vm1402_vm3 = vcmp.eq.s32.totalorder %v9755_v58, %v9819_v48  ;;  %v1476_v19 = vcombine.high %v1474_v1, %v1474_v1 }
  0x3a   : > { %v9857_v6 = vmul.f32 %v9548_v50, %v304_v31  ;;  %v9861_v13 = vmul.f32 %v9548_v50, %v312_v34  ;;  %vm1403_vm4 = vcmp.eq.s32.totalorder %v9758_v59, %v9816_v47  ;;  %vm1404_vm5 = vcmp.eq.s32.totalorder %v9758_v59, %v9819_v48 }
  0x3b   : > { %14274 = vst [vmem:[#allocation16_spill] sm:$0xff] %v9848_v61  ;;  %14276 = vst [vmem:[#allocation18_spill] sm:$0xff] %v9859_v9  ;;  %vm1405_vm6 = vcmp.eq.s32.totalorder %v9770_v5, %v9816_v47  ;;  %vm1406_vm7 = vcmp.eq.s32.totalorder %v9770_v5, %v9819_v48  ;;  %v9882_v20 = vrot.slane %v1467_v43, %v9751_v46 }
  0x3c   : > { %14275 = vst [vmem:[#allocation17_spill] sm:$0xff] %v9857_v6  ;;  %14277 = vst [vmem:[#allocation19_spill] sm:$0xff] %v9861_v13  ;;  %vm1407_vm8 = vcmp.eq.s32.totalorder %v9748_v33, %v9822_v49  ;;  %v9893_v23 = vrot.slane %v1475_v2, %v9751_v46  ;;  %v1490_v17 = vrot.slane %v1474_v1, %v9751_v46 }
  0x3d   : > { %v1505_v12 = vcombine.high %v9882_v20, %v9882_v20  ;;  %v1504_v22 = vrot.slane %v1476_v19, %v9751_v46  ;;  %vm1420_vm11 = vcmp.eq.s32.totalorder %v9758_v59, %v9831_v53  ;;  %vm1433_vm10 = vcmp.eq.s32.totalorder %v9755_v58, %v9840_v56 }
  0x3e   : > { %v1507_v24 = vcombine.high %v9893_v23, %v9893_v23  ;;  %v1506_v25 = vcombine.high %v1490_v17, %v1490_v17  ;;  %vm1434_vm12 = vcmp.eq.s32.totalorder %v9755_v58, %v9843_v57  ;;  %v1559_v30 = vrot.slane %v1490_v17, %v9773_v7 }
  0x3f   : > { %v1508_v26 = vcombine.high %v1504_v22, %v1504_v22  ;;  %v1543_v27 = vrot.slane %v1505_v12, %v9773_v7  ;;  %v1547_v28 = vrot.slane %v1505_v12, %v9776_v8  ;;  %v1563_v32 = vrot.slane %v1490_v17, %v9776_v8 }
  0x40   : > { %v1551_v29 = vrot.slane %v1507_v24, %v9773_v7  ;;  %v1555_v31 = vrot.slane %v1507_v24, %v9776_v8  ;;  %v1567_v34 = vrot.slane %v1504_v22, %v9773_v7  ;;  %v1571_v38 = vrot.slane %v1504_v22, %v9776_v8 }
  0x41   : > { %v1575_v39 = vrot.slane %v1506_v25, %v9773_v7  ;;  %v1579_v43 = vrot.slane %v1506_v25, %v9776_v8  ;;  %v1583_v44 = vrot.slane %v1508_v26, %v9773_v7  ;;  %v1587_v50 = vrot.slane %v1508_v26, %v9776_v8 }
  0x42   : > { %vm1443_vm14 = vcmp.eq.s32.totalorder %v9758_v59, %v9846_v60  ;;  %vm1444_vm13 = vcmp.eq.s32.totalorder %v9758_v59, %v9851_v62  ;;  %vm1445_vm15 = vcmp.eq.s32.totalorder %v9770_v5, %v9846_v60  ;;  %vm1446_vm9 = vcmp.eq.s32.totalorder %v9770_v5, %v9851_v62 }
  0x43   : > { %v9988_v1 = vsel %vm1399_vm0, %v1543_v27, 0.0  ;;  %v9993_v2 = vsel %vm1400_vm1, %v1547_v28, 0.0  ;;  %v9998_v19 = vsel %vm1401_vm2, %v1543_v27, 0.0  ;;  %v10003_v12 = vsel %vm1402_vm3, %v1547_v28, 0.0 }
  0x44   : > { %v10008_v17 = vsel %vm1403_vm4, %v1543_v27, 0.0  ;;  %v10013_v22 = vsel %vm1404_vm5, %v1547_v28, 0.0  ;;  %v10018_v24 = vsel %vm1405_vm6, %v1543_v27, 0.0  ;;  %v10023_v25 = vsel %vm1406_vm7, %v1547_v28, 0.0 }
  0x45   : > { %v10028_v26 = vsel %vm1407_vm8, %v1551_v29, 0.0  ;;  %vm14279_vm0 = vcmp.eq.s32.totalorder %v9748_v33, %v9825_v51  ;;  %vm14281_vm1 = vcmp.eq.s32.totalorder %v9755_v58, %v9822_v49  ;;  %vm14283_vm2 = vcmp.eq.s32.totalorder %v9755_v58, %v9825_v51 }
  0x46   : > { %14278 = vst [vmem:[#allocation20_spill] sm:$0xff] %v10028_v26  ;;  %v10033_v15 = vsel %vm14279_vm0, %v1555_v31, 0.0  ;;  %v10038_v47 = vsel %vm14281_vm1, %v1551_v29, 0.0  ;;  %v10043_v48 = vsel %vm14283_vm2, %v1555_v31, 0.0  ;;  %vm14285_vm3 = vcmp.eq.s32.totalorder %v9758_v59, %v9822_v49 }
  0x47   : > { %14280 = vst [vmem:[#allocation21_spill] sm:$0xff] %v10033_v15  ;;  %14282 = vst [vmem:[#allocation22_spill] sm:$0xff] %v10038_v47  ;;  %v10048_v27 = vsel %vm14285_vm3, %v1551_v29, 0.0  ;;  %vm14287_vm4 = vcmp.eq.s32.totalorder %v9758_v59, %v9825_v51  ;;  %vm14289_vm5 = vcmp.eq.s32.totalorder %v9770_v5, %v9822_v49  ;;  %vm14291_vm6 = vcmp.eq.s32.totalorder %v9770_v5, %v9825_v51 }
  0x48   : > { %14284 = vst [vmem:[#allocation23_spill] sm:$0xff] %v10043_v48  ;;  %14286 = vst [vmem:[#allocation24_spill] sm:$0xff] %v10048_v27  ;;  %v10053_v28 = vsel %vm14287_vm4, %v1555_v31, 0.0  ;;  %v10058_v16 = vsel %vm14289_vm5, %v1551_v29, 0.0  ;;  %v10063_v14 = vsel %vm14291_vm6, %v1555_v31, 0.0  ;;  %vm14293_vm7 = vcmp.eq.s32.totalorder %v9748_v33, %v9828_v52 }
  0x49   : > { %14288 = vst [vmem:[#allocation25_spill] sm:$0xff] %v10053_v28  ;;  %14290 = vst [vmem:[#allocation26_spill] sm:$0xff] %v10058_v16  ;;  %v10068_v36 = vsel %vm14293_vm7, %v1559_v30, 0.0  ;;  %vm14295_vm8 = vcmp.eq.s32.totalorder %v9748_v33, %v9831_v53  ;;  %vm14297_vm0 = vcmp.eq.s32.totalorder %v9755_v58, %v9828_v52  ;;  %vm14299_vm1 = vcmp.eq.s32.totalorder %v9755_v58, %v9831_v53 }
  0x4a   : > { %14292 = vst [vmem:[#allocation27_spill] sm:$0xff] %v10063_v14  ;;  %14294 = vst [vmem:[#allocation28_spill] sm:$0xff] %v10068_v36  ;;  %v10073_v35 = vsel %vm14295_vm8, %v1563_v32, 0.0  ;;  %v10078_v49 = vsel %vm14297_vm0, %v1559_v30, 0.0  ;;  %v10083_v51 = vsel %vm14299_vm1, %v1563_v32, 0.0  ;;  %vm14301_vm2 = vcmp.eq.s32.totalorder %v9758_v59, %v9828_v52 }
  0x4b   : > { %14296 = vst [vmem:[#allocation29_spill] sm:$0xff] %v10073_v35  ;;  %14298 = vst [vmem:[#allocation30_spill] sm:$0xff] %v10078_v49  ;;  %v10088_v29 = vsel %vm14301_vm2, %v1559_v30, 0.0  ;;  %v10093_v31 = vsel %vm1420_vm11, %v1563_v32, 0.0  ;;  %vm14304_vm3 = vcmp.eq.s32.totalorder %v9770_v5, %v9828_v52  ;;  %vm14306_vm4 = vcmp.eq.s32.totalorder %v9770_v5, %v9831_v53 }
  0x4c   : > { %14300 = vst [vmem:[#allocation31_spill] sm:$0xff] %v10083_v51  ;;  %14302 = vst [vmem:[#allocation32_spill] sm:$0xff] %v10088_v29  ;;  %v10098_v63 = vsel %vm14304_vm3, %v1559_v30, 0.0  ;;  %v10103_v0 = vsel %vm14306_vm4, %v1563_v32, 0.0  ;;  %vm14308_vm5 = vcmp.eq.s32.totalorder %v9748_v33, %v9834_v54  ;;  %vm14310_vm6 = vcmp.eq.s32.totalorder %v9748_v33, %v9837_v55 }
  0x4d   : > { %14303 = vst [vmem:[#allocation33_spill] sm:$0xff] %v10093_v31  ;;  %14305 = vst [vmem:[#allocation34_spill] sm:$0xff] %v10098_v63  ;;  %v10108_v51 = vsel %vm14308_vm5, %v1567_v34, 0.0  ;;  %v10113_v29 = vsel %vm14310_vm6, %v1571_v38, 0.0  ;;  %vm14312_vm11 = vcmp.eq.s32.totalorder %v9755_v58, %v9834_v54  ;;  %vm14314_vm7 = vcmp.eq.s32.totalorder %v9755_v58, %v9837_v55 }
  0x4e   : > { %14307 = vst [vmem:[#allocation35_spill] sm:$0xff] %v10103_v0  ;;  %14309 = vst [vmem:[#allocation36_spill] sm:$0xff] %v10108_v51  ;;  %v10118_v52 = vsel %vm14312_vm11, %v1567_v34, 0.0  ;;  %v10123_v53 = vsel %vm14314_vm7, %v1571_v38, 0.0  ;;  %vm14316_vm8 = vcmp.eq.s32.totalorder %v9758_v59, %v9834_v54  ;;  %vm14318_vm0 = vcmp.eq.s32.totalorder %v9758_v59, %v9837_v55 }
  0x4f   : > { %14311 = vst [vmem:[#allocation37_spill] sm:$0xff] %v10113_v29  ;;  %14313 = vst [vmem:[#allocation38_spill] sm:$0xff] %v10118_v52  ;;  %v10128_v30 = vsel %vm14316_vm8, %v1567_v34, 0.0  ;;  %v10133_v32 = vsel %vm14318_vm0, %v1571_v38, 0.0  ;;  %vm14320_vm1 = vcmp.eq.s32.totalorder %v9770_v5, %v9834_v54  ;;  %vm14322_vm2 = vcmp.eq.s32.totalorder %v9770_v5, %v9837_v55 }
  0x50   : > { %14315 = vst [vmem:[#allocation39_spill] sm:$0xff] %v10123_v53  ;;  %14317 = vst [vmem:[#allocation40_spill] sm:$0xff] %v10128_v30  ;;  %v10138_v29 = vsel %vm14320_vm1, %v1567_v34, 0.0  ;;  %v10143_v52 = vsel %vm14322_vm2, %v1571_v38, 0.0  ;;  %vm14324_vm3 = vcmp.eq.s32.totalorder %v9748_v33, %v9840_v56  ;;  %vm14326_vm4 = vcmp.eq.s32.totalorder %v9748_v33, %v9843_v57 }
  0x51   : > { %14319 = vst [vmem:[#allocation41_spill] sm:$0xff] %v10133_v32  ;;  %14321 = vst [vmem:[#allocation42_spill] sm:$0xff] %v10138_v29  ;;  %v10148_v53 = vsel %vm14324_vm3, %v1575_v39, 0.0  ;;  %v10153_v30 = vsel %vm14326_vm4, %v1579_v43, 0.0  ;;  %v10158_v54 = vsel %vm1433_vm10, %v1575_v39, 0.0  ;;  %v10163_v55 = vsel %vm1434_vm12, %v1579_v43, 0.0 }
  0x52   : > { %14323 = vst [vmem:[#allocation43_spill] sm:$0xff] %v10143_v52  ;;  %14325 = vst [vmem:[#allocation44_spill] sm:$0xff] %v10148_v53  ;;  %vm14330_vm5 = vcmp.eq.s32.totalorder %v9758_v59, %v9840_v56  ;;  %vm14332_vm6 = vcmp.eq.s32.totalorder %v9758_v59, %v9843_v57  ;;  %vm14334_vm11 = vcmp.eq.s32.totalorder %v9770_v5, %v9840_v56 }
  0x53   : > { %14327 = vst [vmem:[#allocation45_spill] sm:$0xff] %v10153_v30  ;;  %14328 = vst [vmem:[#allocation46_spill] sm:$0xff] %v10158_v54  ;;  %v10168_v34 = vsel %vm14330_vm5, %v1575_v39, 0.0  ;;  %v10173_v38 = vsel %vm14332_vm6, %v1579_v43, 0.0  ;;  %v10178_v30 = vsel %vm14334_vm11, %v1575_v39, 0.0  ;;  %vm14336_vm10 = vcmp.eq.s32.totalorder %v9770_v5, %v9843_v57 }
  0x54   : > { %14329 = vst [vmem:[#allocation47_spill] sm:$0xff] %v10163_v55  ;;  %14331 = vst [vmem:[#allocation48_spill] sm:$0xff] %v10168_v34  ;;  %v10183_v54 = vsel %vm14336_vm10, %v1579_v43, 0.0  ;;  %vm14338_vm12 = vcmp.eq.s32.totalorder %v9748_v33, %v9846_v60  ;;  %vm14340_vm7 = vcmp.eq.s32.totalorder %v9748_v33, %v9851_v62  ;;  %vm14342_vm8 = vcmp.eq.s32.totalorder %v9755_v58, %v9846_v60 }
  0x55   : > { %14333 = vst [vmem:[#allocation49_spill] sm:$0xff] %v10173_v38  ;;  %14335 = vst [vmem:[#allocation50_spill] sm:$0xff] %v10178_v30  ;;  %v10188_v55 = vsel %vm14338_vm12, %v1583_v44, 0.0  ;;  %v10193_v34 = vsel %vm14340_vm7, %v1587_v50, 0.0  ;;  %v10198_v56 = vsel %vm14342_vm8, %v1583_v44, 0.0  ;;  %vm14344_vm0 = vcmp.eq.s32.totalorder %v9755_v58, %v9851_v62 }
  0x56   : > { %14337 = vst [vmem:[#allocation51_spill] sm:$0xff] %v10183_v54  ;;  %14339 = vst [vmem:[#allocation52_spill] sm:$0xff] %v10188_v55  ;;  %v10203_v57 = vsel %vm14344_vm0, %v1587_v50, 0.0  ;;  %v10208_v39 = vsel %vm1443_vm14, %v1583_v44, 0.0  ;;  %v10213_v43 = vsel %vm1444_vm13, %v1587_v50, 0.0  ;;  %v579_v60 = vcombine.low %v9848_v61, %v9857_v6 }
  0x57   : > { %14341 = vst [vmem:[#allocation53_spill] sm:$0xff] %v10193_v34  ;;  %14343 = vst [vmem:[#allocation54_spill] sm:$0xff] %v10198_v56  ;;  %v10218_v34 = vsel %vm1445_vm15, %v1583_v44, 0.0  ;;  %v10223_v56 = vsel %vm1446_vm9, %v1587_v50, 0.0  ;;  %v10241_v62 = vrot.slane %v9813_v45, %v9751_v46  ;;  %v983_v44 = vcombine.low %v9859_v9, %v9861_v13 }
  0x58   : > { %14345 = vst [vmem:[#allocation55_spill] sm:$0xff] %v10203_v57  ;;  %14346 = vst [vmem:[#allocation56_spill] sm:$0xff] %v10208_v39  ;;  %v788_v57 = vcombine.low %v9800_v37, %v9802_v40  ;;  %v14350_v39 = vsub.f32 %v9765_v3, %v9732_v10  ;;  %v10296_v37 = vrot.slane %v9781_v18, %v9773_v7 }
  0x59   : > { %14347 = vst [vmem:[#allocation57_spill] sm:$0xff] %v10213_v43  ;;  %14348 = vst [vmem:[#allocation58_spill] sm:$0xff] %v10218_v34  ;;  %v14351_v43 = vsub.f32 %v9767_v4, %v9734_v11  ;;  %v10251_v11 = vrot.slane %v579_v60, %v9751_v46  ;;  %v10255_v4 = vrot.slane %v10241_v62, %v9751_v46 }
  0x5a   : > { %14349 = vst [vmem:[#allocation59_spill] sm:$0xff] %v10223_v56  ;;  %v10230_v55 = vsub.f32 1.0, %v14350_v39  ;;  %14352 = vst [vmem:[#allocation60_spill] sm:$0xff] %v10241_v62  ;;  %v10248_v3 = vrot.slane %v788_v57, %v9751_v46  ;;  %v10258_v50 = vrot.slane %v983_v44, %v9751_v46  ;;  %v1686_v57 = vcombine.low %v9804_v41, %v9806_v42 }
  0x5b   : > { %v10235_v54 = vsub.f32 1.0, %v14351_v43  ;;  %14354 = vst [vmem:[#allocation62_spill] sm:$0xff] %v10251_v11  ;;  %14355 = vst [vmem:[#allocation63_spill] sm:$0xff] %v10255_v4  ;;  %v10266_v39 = vrot.slane %v10251_v11, %v9751_v46  ;;  %v10272_v43 = vrot.slane %v10255_v4, %v9773_v7  ;;  %v10280_v44 = vrot.slane %v10255_v4, %v9776_v8 }
  0x5c   : > { %14353 = vst [vmem:[#allocation61_spill] sm:$0xff] %v10248_v3  ;;  %14356 = vst [vmem:[#allocation64_spill] sm:$0xff] %v10258_v50  ;;  %v10262_v45 = vrot.slane %v10248_v3, %v9751_v46  ;;  %v10276_v60 = vrot.slane %v10258_v50, %v9751_v46  ;;  %v1694_v40 = vrot.slane %v1686_v57, %v9751_v46 }
  0x5d   : > { %14358 = vst [vmem:[#allocation66_spill] sm:$0xff] %v10266_v39  ;;  %14359 = vst [vmem:[#allocation67_spill] sm:$0xff] %v10272_v43  ;;  %v10292_v13 = vrot.slane %v10266_v39, %v9773_v7  ;;  %vm521_vm9 = vcmp.eq.s32.totalorder %v9748_v33, %v10272_v43  ;;  %v10303_v61 = vrot.slane %v10266_v39, %v9776_v8 }
  0x5e   : > { %14357 = vst [vmem:[#allocation65_spill] sm:$0xff] %v10262_v45  ;;  %14360 = vst [vmem:[#allocation68_spill] sm:$0xff] %v10276_v60  ;;  %v10284_v10 = vrot.slane %v10262_v45, %v9773_v7  ;;  %v10288_v9 = vrot.slane %v10262_v45, %v9776_v8  ;;  %v10307_v6 = vrot.slane %v10276_v60, %v9773_v7 }
  0x5f   : > { %14361 = vst [vmem:[#allocation69_spill] sm:$0xff] %v10280_v44  ;;  %14364 = vst [vmem:[#allocation72_spill] sm:$0xff] %v10292_v13  ;;  %v10311_v45 = vrot.slane %v10276_v60, %v9776_v8  ;;  %vm522_vm13 = vcmp.eq.s32.totalorder %v9748_v33, %v10280_v44  ;;  %v10321_v57 = vrot.slane %v9781_v18, %v9776_v8  ;;  %v734_v4 = vsel %vm521_vm9, %v10292_v13, 0.0 }
  0x60   : > { %14362 = vst [vmem:[#allocation70_spill] sm:$0xff] %v10284_v10  ;;  %14363 = vst [vmem:[#allocation71_spill] sm:$0xff] %v10288_v9  ;;  %vm925_vm14 = vcmp.eq.s32.totalorder %v9748_v33, %v10284_v10  ;;  %vm926_vm15 = vcmp.eq.s32.totalorder %v9748_v33, %v10288_v9  ;;  %v10325_v39 = vrot.slane %v9784_v21, %v9773_v7  ;;  %v735_v44 = vsel %vm522_vm13, %v10303_v61, 0.0 }
  0x61   : > { %14365 = vst [vmem:[#allocation73_spill] sm:$0xff] %v10303_v61  ;;  %14366 = vst [vmem:[#allocation74_spill] sm:$0xff] %v10307_v6  ;;  %v10329_v60 = vrot.slane %v9784_v21, %v9776_v8  ;;  %vm1383_vm1 = vcmp.eq.s32.totalorder %v9748_v33, %v10296_v37  ;;  %v14368_v9 = vcombine.high %v9804_v41, %v9806_v42  ;;  %v1138_v43 = vsel %vm925_vm14, %v10307_v6, 0.0 }
  0x62   : > { %14367 = vst [vmem:[#allocation75_spill] sm:$0xff] %v10311_v45  ;;  %v1702_v18 = vcombine.high %v1694_v40, %v1694_v40  ;;  %v1139_v50 = vsel %vm926_vm15, %v10311_v45, 0.0  ;;  %v10343_v21 = vrot.slane %v9882_v20, %v9773_v7  ;;  %vm1384_vm2 = vcmp.eq.s32.totalorder %v9748_v33, %v10321_v57 }
  0x63   : > { %v1701_v10 = vrot.slane %v14368_v9, %v9751_v46  ;;  %vm1385_vm3 = vcmp.eq.s32.totalorder %v9755_v58, %v10296_v37  ;;  %v10351_v41 = vrot.slane %v9882_v20, %v9776_v8  ;;  %vm1386_vm4 = vcmp.eq.s32.totalorder %v9755_v58, %v10321_v57 }
  0x64   : > { %vm1387_vm5 = vcmp.eq.s32.totalorder %v9758_v59, %v10296_v37  ;;  %v1710_v9 = vrot.slane %v1694_v40, %v9751_v46  ;;  %v1899_v45 = vcombine.low %v10230_v55, %v10235_v54  ;;  %v10360_v61 = vadd.f32 %v1138_v43, %v734_v4 }
  0x65   : > { %v1703_v42 = vcombine.high %v1701_v10, %v1701_v10  ;;  %v10362_v6 = vadd.f32 %v1139_v50, %v735_v44  ;;  %vm1388_vm6 = vcmp.eq.s32.totalorder %v9758_v59, %v10321_v57  ;;  %v10367_v20 = vrot.slane %v1702_v18, %v9751_v46 }
  0x66   : > { %v10371_v13 = vrot.slane %v9893_v23, %v9773_v7  ;;  %v10375_v40 = vrot.slane %v9893_v23, %v9776_v8  ;;  %v10381_v4 = vsel %vm1383_vm1, %v10343_v21, 0.0  ;;  %v1732_v50 = vcombine.high %v1710_v9, %v1710_v9 }
  0x67   : > { %14369 = vst [vmem:[#allocation76_spill] sm:$0xff] %v10381_v4  ;;  %v10387_v43 = vsel %vm1384_vm2, %v10351_v41, 0.0  ;;  %v1717_v44 = vrot.slane %v1701_v10, %v9751_v46  ;;  %v1731_v18 = vrot.slane %v1703_v42, %v9751_v46  ;;  %v1734_v23 = vcombine.high %v10367_v20, %v10367_v20 }
  0x68   : > { %14370 = vst [vmem:[#allocation77_spill] sm:$0xff] %v10387_v43  ;;  %v10397_v3 = vsel %vm1385_vm3, %v10343_v21, 0.0  ;;  %v10403_v11 = vsel %vm1386_vm4, %v10351_v41, 0.0  ;;  %v10409_v10 = vsel %vm1387_vm5, %v10343_v21, 0.0  ;;  %v1907_v42 = vrot.slane %v1899_v45, %v9751_v46 }
  0x69   : > { %14371 = vst [vmem:[#allocation78_spill] sm:$0xff] %v10397_v3  ;;  %14372 = vst [vmem:[#allocation79_spill] sm:$0xff] %v10403_v11  ;;  %v10413_v43 = vsel %vm1388_vm6, %v10351_v41, 0.0  ;;  %v1733_v4 = vcombine.high %v1717_v44, %v1717_v44  ;;  %v1735_v56 = vcombine.high %v1731_v18, %v1731_v18  ;;  %v10418_v34 = vrot.slane %v1710_v9, %v9773_v7 }
  0x6a   : > { %14373 = vst [vmem:[#allocation80_spill] sm:$0xff] %v10409_v10  ;;  %14374 = vst [vmem:[#allocation81_spill] sm:$0xff] %v10413_v43  ;;  %v10421_v11 = vrot.slane %v1710_v9, %v9776_v8  ;;  %v10424_v30 = vrot.slane %v1732_v50, %v9773_v7  ;;  %v10427_v10 = vrot.slane %v1732_v50, %v9776_v8 }
  0x6b   : > { %v10430_v45 = vrot.slane %v1734_v23, %v9773_v7  ;;  %v10433_v43 = vrot.slane %v1734_v23, %v9776_v8  ;;  %v10436_v3 = vrot.slane %v1717_v44, %v9773_v7  ;;  %v10439_v38 = vrot.slane %v1717_v44, %v9776_v8 }
  0x6c   : > { %v10442_v9 = vrot.slane %v1731_v18, %v9773_v7  ;;  %v10445_v53 = vrot.slane %v1731_v18, %v9776_v8  ;;  %v14375_v50 = vcombine.high %v10230_v55, %v10235_v54  ;;  %v1915_v29 = vcombine.high %v1907_v42, %v1907_v42 }
  0x6d   : > { %v10452_v23 = vrot.slane %v1733_v4, %v9773_v7  ;;  %v10455_v32 = vrot.slane %v1733_v4, %v9776_v8  ;;  %v10458_v44 = vrot.slane %v1735_v56, %v9773_v7  ;;  %v10461_v51 = vrot.slane %v1735_v56, %v9776_v8 }
  0x6e   : > { %v1914_v52 = vrot.slane %v14375_v50, %v9751_v46  ;;  %vm1839_vm11 = vcmp.eq.s32.totalorder %v9748_v33, %v10424_v30  ;;  %vm1840_vm10 = vcmp.eq.s32.totalorder %v9748_v33, %v10427_v10  ;;  %vm1841_vm12 = vcmp.eq.s32.totalorder %v9755_v58, %v10424_v30 }
  0x6f   : > { %vm1842_vm7 = vcmp.eq.s32.totalorder %v9755_v58, %v10427_v10  ;;  %vm1843_vm8 = vcmp.eq.s32.totalorder %v9758_v59, %v10424_v30  ;;  %vm1844_vm0 = vcmp.eq.s32.totalorder %v9758_v59, %v10427_v10  ;;  %vm1845_vm9 = vcmp.eq.s32.totalorder %v9770_v5, %v10424_v30 }
  0x70   : > { %v1916_v54 = vcombine.high %v1914_v52, %v1914_v52  ;;  %vm1846_vm13 = vcmp.eq.s32.totalorder %v9770_v5, %v10427_v10  ;;  %v10480_v55 = vrot.slane %v1907_v42, %v9751_v46  ;;  %vm1847_vm14 = vcmp.eq.s32.totalorder %v9748_v33, %v10430_v45 }
  0x71   : > { %v10491_v56 = vrot.slane %v1915_v29, %v9751_v46  ;;  %v1930_v29 = vrot.slane %v1914_v52, %v9751_v46  ;;  %vm1860_vm2 = vcmp.eq.s32.totalorder %v9758_v59, %v10439_v38  ;;  %vm1873_vm1 = vcmp.eq.s32.totalorder %v9755_v58, %v10452_v23 }
  0x72   : > { %v1945_v4 = vcombine.high %v10480_v55, %v10480_v55  ;;  %v1944_v18 = vrot.slane %v1916_v54, %v9751_v46  ;;  %vm1874_vm3 = vcmp.eq.s32.totalorder %v9755_v58, %v10455_v32  ;;  %vm1883_vm5 = vcmp.eq.s32.totalorder %v9758_v59, %v10458_v44 }
  0x73   : > { %v1947_v42 = vcombine.high %v10491_v56, %v10491_v56  ;;  %v1946_v52 = vcombine.high %v1930_v29, %v1930_v29  ;;  %v1999_v31 = vrot.slane %v1930_v29, %v9773_v7  ;;  %v2003_v49 = vrot.slane %v1930_v29, %v9776_v8 }
  0x74   : > { %v1948_v50 = vcombine.high %v1944_v18, %v1944_v18  ;;  %v1983_v54 = vrot.slane %v1945_v4, %v9773_v7  ;;  %v1987_v0 = vrot.slane %v1945_v4, %v9776_v8  ;;  %v2007_v35 = vrot.slane %v1944_v18, %v9773_v7 }
  0x75   : > { %v1991_v63 = vrot.slane %v1947_v42, %v9773_v7  ;;  %v1995_v4 = vrot.slane %v1947_v42, %v9776_v8  ;;  %v2011_v36 = vrot.slane %v1944_v18, %v9776_v8  ;;  %v2015_v42 = vrot.slane %v1946_v52, %v9773_v7 }
  0x76   : > { %v2019_v29 = vrot.slane %v1946_v52, %v9776_v8  ;;  %v2023_v14 = vrot.slane %v1948_v50, %v9773_v7  ;;  %v2027_v18 = vrot.slane %v1948_v50, %v9776_v8  ;;  %vm1884_vm4 = vcmp.eq.s32.totalorder %v9758_v59, %v10461_v51 }
  0x77   : > { %v10586_v52 = vsel %vm1839_vm11, %v1983_v54, 0.0  ;;  %v10591_v50 = vsel %vm1840_vm10, %v1987_v0, 0.0  ;;  %v10596_v16 = vsel %vm1841_vm12, %v1983_v54, 0.0  ;;  %v10601_v28 = vsel %vm1842_vm7, %v1987_v0, 0.0 }
  0x78   : > { %vm1389_vm15 = vcmp.eq.s32.totalorder %v9770_v5, %v10296_v37  ;;  %vm1390_vm11 = vcmp.eq.s32.totalorder %v9770_v5, %v10321_v57  ;;  %vm1391_vm10 = vcmp.eq.s32.totalorder %v9748_v33, %v10325_v39  ;;  %vm1392_vm6 = vcmp.eq.s32.totalorder %v9748_v33, %v10329_v60 }
  0x79   : > { %v10614_v27 = vsel %vm1843_vm8, %v1983_v54, 0.0  ;;  %v10619_v48 = vsel %vm1844_vm0, %v1987_v0, 0.0  ;;  %v10624_v47 = vsel %vm1845_vm9, %v1983_v54, 0.0  ;;  %v10629_v15 = vsel %vm1846_vm13, %v1987_v0, 0.0 }
  0x7a   : > { %vm1393_vm12 = vcmp.eq.s32.totalorder %v9755_v58, %v10325_v39  ;;  %v10638_v26 = vsel %vm1847_vm14, %v1991_v63, 0.0  ;;  %vm14376_vm8 = vcmp.eq.s32.totalorder %v9748_v33, %v10433_v43  ;;  %vm14378_vm0 = vcmp.eq.s32.totalorder %v9755_v58, %v10430_v45 }
  0x7b   : > { %v10643_v30 = vsel %vm14376_vm8, %v1995_v4, 0.0  ;;  %v10648_v0 = vsel %vm14378_vm0, %v1991_v63, 0.0  ;;  %vm14380_vm9 = vcmp.eq.s32.totalorder %v9755_v58, %v10433_v43  ;;  %vm14382_vm14 = vcmp.eq.s32.totalorder %v9758_v59, %v10430_v45 }
  0x7c   : > { %14377 = vst [vmem:[#allocation82_spill] sm:$0xff] %v10643_v30  ;;  %14379 = vst [vmem:[#allocation83_spill] sm:$0xff] %v10648_v0  ;;  %v10653_v10 = vsel %vm14380_vm9, %v1995_v4, 0.0  ;;  %v10660_v54 = vsel %vm14382_vm14, %v1991_v63, 0.0  ;;  %vm14383_vm8 = vcmp.eq.s32.totalorder %v9758_v59, %v10433_v43  ;;  %vm14384_vm0 = vcmp.eq.s32.totalorder %v9770_v5, %v10430_v45 }
  0x7d   : > { %14381 = vst [vmem:[#allocation84_spill] sm:$0xff] %v10653_v10  ;;  %v10665_v30 = vsel %vm14383_vm8, %v1995_v4, 0.0  ;;  %v10670_v0 = vsel %vm14384_vm0, %v1991_v63, 0.0  ;;  %vm14385_vm9 = vcmp.eq.s32.totalorder %v9770_v5, %v10433_v43  ;;  %vm1396_vm13 = vcmp.eq.s32.totalorder %v9758_v59, %v10329_v60 }
  0x7e   : > { %v10675_v10 = vsel %vm14385_vm9, %v1995_v4, 0.0  ;;  %vm14387_vm7 = vcmp.eq.s32.totalorder %v9748_v33, %v10436_v3  ;;  %vm14389_vm0 = vcmp.eq.s32.totalorder %v9748_v33, %v10439_v38  ;;  %vm14391_vm9 = vcmp.eq.s32.totalorder %v9755_v58, %v10436_v3 }
  0x7f   : > { %14386 = vst [vmem:[#allocation85_spill] sm:$0xff] %v10675_v10  ;;  %v10686_v45 = vsel %vm14387_vm7, %v1999_v31, 0.0  ;;  %v10691_v63 = vsel %vm14389_vm0, %v2003_v49, 0.0  ;;  %v10696_v43 = vsel %vm14391_vm9, %v1999_v31, 0.0  ;;  %vm14393_vm14 = vcmp.eq.s32.totalorder %v9755_v58, %v10439_v38 }
  0x80   : > { %14388 = vst [vmem:[#allocation86_spill] sm:$0xff] %v10686_v45  ;;  %14390 = vst [vmem:[#allocation87_spill] sm:$0xff] %v10691_v63  ;;  %v10701_v4 = vsel %vm14393_vm14, %v2003_v49, 0.0  ;;  %vm14395_vm8 = vcmp.eq.s32.totalorder %v9758_v59, %v10436_v3  ;;  %v10711_v45 = vsel %vm1860_vm2, %v2003_v49, 0.0  ;;  %vm14397_vm7 = vcmp.eq.s32.totalorder %v9770_v5, %v10436_v3 }
  0x81   : > { %14392 = vst [vmem:[#allocation88_spill] sm:$0xff] %v10696_v43  ;;  %14394 = vst [vmem:[#allocation89_spill] sm:$0xff] %v10701_v4  ;;  %v10706_v10 = vsel %vm14395_vm8, %v1999_v31, 0.0  ;;  %v10716_v63 = vsel %vm14397_vm7, %v1999_v31, 0.0  ;;  %vm14398_vm0 = vcmp.eq.s32.totalorder %v9770_v5, %v10439_v38  ;;  %vm14399_vm14 = vcmp.eq.s32.totalorder %v9748_v33, %v10442_v9 }
  0x82   : > { %14396 = vst [vmem:[#allocation90_spill] sm:$0xff] %v10706_v10  ;;  %v10721_v43 = vsel %vm14398_vm0, %v2003_v49, 0.0  ;;  %v10726_v4 = vsel %vm14399_vm14, %v2007_v35, 0.0  ;;  %vm14400_vm8 = vcmp.eq.s32.totalorder %v9748_v33, %v10445_v53  ;;  %vm14402_vm2 = vcmp.eq.s32.totalorder %v9755_v58, %v10442_v9 }
  0x83   : > { %v10731_v10 = vsel %vm14400_vm8, %v2011_v36, 0.0  ;;  %v10736_v31 = vsel %vm14402_vm2, %v2007_v35, 0.0  ;;  %vm14404_vm9 = vcmp.eq.s32.totalorder %v9755_v58, %v10445_v53  ;;  %vm14406_vm7 = vcmp.eq.s32.totalorder %v9758_v59, %v10442_v9 }
  0x84   : > { %14401 = vst [vmem:[#allocation91_spill] sm:$0xff] %v10731_v10  ;;  %14403 = vst [vmem:[#allocation92_spill] sm:$0xff] %v10736_v31  ;;  %v10741_v49 = vsel %vm14404_vm9, %v2011_v36, 0.0  ;;  %v10746_v38 = vsel %vm14406_vm7, %v2007_v35, 0.0  ;;  %vm14408_vm0 = vcmp.eq.s32.totalorder %v9758_v59, %v10445_v53  ;;  %vm14409_vm14 = vcmp.eq.s32.totalorder %v9770_v5, %v10442_v9 }
  0x85   : > { %14405 = vst [vmem:[#allocation93_spill] sm:$0xff] %v10741_v49  ;;  %14407 = vst [vmem:[#allocation94_spill] sm:$0xff] %v10746_v38  ;;  %v10751_v3 = vsel %vm14408_vm0, %v2011_v36, 0.0  ;;  %v10756_v10 = vsel %vm14409_vm14, %v2007_v35, 0.0  ;;  %vm14410_vm8 = vcmp.eq.s32.totalorder %v9770_v5, %v10445_v53  ;;  %vm14411_vm2 = vcmp.eq.s32.totalorder %v9748_v33, %v10452_v23 }
  0x86   : > { %v10761_v31 = vsel %vm14410_vm8, %v2011_v36, 0.0  ;;  %v10766_v49 = vsel %vm14411_vm2, %v2015_v42, 0.0  ;;  %vm14412_vm9 = vcmp.eq.s32.totalorder %v9748_v33, %v10455_v32  ;;  %v10776_v35 = vsel %vm1873_vm1, %v2015_v42, 0.0 }
  0x87   : > { %v10771_v38 = vsel %vm14412_vm9, %v2019_v29, 0.0  ;;  %14414 = vst [vmem:[#allocation96_spill] sm:$0xff] %v10776_v35  ;;  %v10781_v36 = vsel %vm1874_vm3, %v2019_v29, 0.0  ;;  %vm14416_vm7 = vcmp.eq.s32.totalorder %v9758_v59, %v10452_v23  ;;  %vm14418_vm0 = vcmp.eq.s32.totalorder %v9758_v59, %v10455_v32 }
  0x88   : > { %14413 = vst [vmem:[#allocation95_spill] sm:$0xff] %v10771_v38  ;;  %14415 = vst [vmem:[#allocation97_spill] sm:$0xff] %v10781_v36  ;;  %v10786_v53 = vsel %vm14416_vm7, %v2015_v42, 0.0  ;;  %v10791_v9 = vsel %vm14418_vm0, %v2019_v29, 0.0  ;;  %vm14419_vm14 = vcmp.eq.s32.totalorder %v9770_v5, %v10452_v23  ;;  %vm14420_vm1 = vcmp.eq.s32.totalorder %v9770_v5, %v10455_v32  ;;  %v14478_v62 = vld [vmem:[#allocation88_spill] sm:$0xff] }
  0x89   : > { %14417 = vst [vmem:[#allocation98_spill] sm:$0xff] %v10786_v53  ;;  %v10796_v38 = vsel %vm14419_vm14, %v2015_v42, 0.0  ;;  %v10801_v35 = vsel %vm14420_vm1, %v2019_v29, 0.0  ;;  %vm14421_vm3 = vcmp.eq.s32.totalorder %v9748_v33, %v10458_v44  ;;  %vm14422_vm8 = vcmp.eq.s32.totalorder %v9748_v33, %v10461_v51 }
  0x8a   : > { %v10806_v36 = vsel %vm14421_vm3, %v2023_v14, 0.0  ;;  %v10811_v53 = vsel %vm14422_vm8, %v2027_v18, 0.0  ;;  %vm14424_vm2 = vcmp.eq.s32.totalorder %v9755_v58, %v10458_v44  ;;  %vm14426_vm9 = vcmp.eq.s32.totalorder %v9755_v58, %v10461_v51 }
  0x8b   : > { %14423 = vst [vmem:[#allocation99_spill] sm:$0xff] %v10811_v53  ;;  %v10816_v23 = vsel %vm14424_vm2, %v2023_v14, 0.0  ;;  %v10821_v32 = vsel %vm14426_vm9, %v2027_v18, 0.0  ;;  %v10826_v42 = vsel %vm1883_vm5, %v2023_v14, 0.0  ;;  %v10831_v29 = vsel %vm1884_vm4, %v2027_v18, 0.0 }
  0x8c   : > { %14425 = vst [vmem:[#allocation100_spill] sm:$0xff] %v10816_v23  ;;  %14427 = vst [vmem:[#allocation101_spill] sm:$0xff] %v10826_v42  ;;  %vm14429_vm7 = vcmp.eq.s32.totalorder %v9770_v5, %v10458_v44  ;;  %vm14430_vm0 = vcmp.eq.s32.totalorder %v9770_v5, %v10461_v51  ;;  %v10847_v42 = vsel %vm1389_vm15, %v10343_v21, 0.0  ;;  %v10865_v51 = vsel %vm1392_vm6, %v10375_v40, 0.0 }
  0x8d   : > { %14428 = vst [vmem:[#allocation102_spill] sm:$0xff] %v10831_v29  ;;  %v10836_v53 = vsel %vm14429_vm7, %v2023_v14, 0.0  ;;  %v10841_v23 = vsel %vm14430_vm0, %v2027_v18, 0.0  ;;  %14431 = vst [vmem:[#allocation103_spill] sm:$0xff] %v10847_v42  ;;  %v10853_v29 = vsel %vm1390_vm11, %v10351_v41, 0.0  ;;  %v10859_v14 = vsel %vm1391_vm10, %v10371_v13, 0.0 }
  0x8e   : > { %14432 = vst [vmem:[#allocation104_spill] sm:$0xff] %v10853_v29  ;;  %14433 = vst [vmem:[#allocation105_spill] sm:$0xff] %v10859_v14  ;;  %v10871_v37 = vsel %vm1393_vm12, %v10371_v13, 0.0  ;;  %vm14436_vm15 = vcmp.eq.s32.totalorder %v9755_v58, %v10329_v60  ;;  %v10881_v21 = vrot.slane %v10480_v55, %v9773_v7  ;;  %v10885_v41 = vrot.slane %v10480_v55, %v9776_v8  ;;  %v14475_v14 = vld [vmem:[#allocation29_spill] sm:$0xff]  ;;  %v14477_v29 = vld [vmem:[#allocation30_spill] sm:$0xff] }
  0x8f   : > { %14434 = vst [vmem:[#allocation106_spill] sm:$0xff] %v10865_v51  ;;  %14435 = vst [vmem:[#allocation107_spill] sm:$0xff] %v10871_v37  ;;  %v10877_v57 = vsel %vm14436_vm15, %v10375_v40, 0.0  ;;  %vm14438_vm4 = vcmp.eq.s32.totalorder %v9758_v59, %v10325_v39  ;;  %vm1823_vm5 = vcmp.eq.s32.totalorder %v9748_v33, %v10418_v34  ;;  %vm1824_vm6 = vcmp.eq.s32.totalorder %v9748_v33, %v10421_v11  ;;  %v14481_v42 = vld [vmem:[#allocation32_spill] sm:$0xff] }
  0x90   : > { %14437 = vst [vmem:[#allocation108_spill] sm:$0xff] %v10877_v57  ;;  %v10891_v44 = vsel %vm14438_vm4, %v10371_v13, 0.0  ;;  %v14440_v18 = vpack.c.bf16 %v10362_v6, %v10360_v61  ;;  %v10907_v55 = vsel %vm1396_vm13, %v10375_v40, 0.0  ;;  %vm14443_vm11 = vcmp.eq.s32.totalorder %v9770_v5, %v10325_v39 }
  0x91   : > { %14439 = vst [vmem:[#allocation109_spill] sm:$0xff] %v10891_v44  ;;  %14442 = vst [vmem:[#allocation111_spill] sm:$0xff] %v10907_v55  ;;  %v10913_v44 = vsel %vm14443_vm11, %v10371_v13, 0.0  ;;  %vm14445_vm10 = vcmp.eq.s32.totalorder %v9770_v5, %v10329_v60  ;;  %v10923_v61 = vrot.slane %v10367_v20, %v9773_v7  ;;  %v10927_v6 = vrot.slane %v10367_v20, %v9776_v8  ;;  %v14474_v55 = vld [vmem:[#allocation86_spill] sm:$0xff] }
  0x92   : > { %v10901_v57 = vrot.slane %v14440_v18, %v9751_v46  ;;  %14444 = vst [vmem:[#allocation112_spill] sm:$0xff] %v10913_v44  ;;  %v10919_v37 = vsel %vm14445_vm10, %v10375_v40, 0.0  ;;  %v10935_v39 = vrot.slane %v10491_v56, %v9773_v7  ;;  %v10939_v60 = vrot.slane %v10491_v56, %v9776_v8  ;;  %v14476_v8 = vld [vmem:[#allocation87_spill] sm:$0xff] }
  0x93   : > { %14446 = vst [vmem:[#allocation113_spill] sm:$0xff] %v10919_v37  ;;  %14447 = vst [vmem:[#allocation114_spill] sm:$0xff] %v10923_v61  ;;  %v10942_v40 = vsel %vm1823_vm5, %v10881_v21, 0.0  ;;  %v10945_v20 = vsel %vm1824_vm6, %v10885_v41, 0.0  ;;  %v10949_v18 = vadd.f32 %v10586_v52, %v9988_v1  ;;  %v10953_v13 = vadd.f32 %v10591_v50, %v9993_v2  ;;  %v14473_v37 = vld [vmem:[#allocation28_spill] sm:$0xff]  ;;  %v14479_v46 = vld [vmem:[#allocation31_spill] sm:$0xff] }
  0x94   : > { %14441 = vst [vmem:[#allocation110_spill] sm:$0xff] %v10901_v57  ;;  %14448 = vst [vmem:[#allocation115_spill] sm:$0xff] %v10927_v6  ;;  %v10957_v44 = vadd.f32 %v10596_v16, %v9998_v19  ;;  %v10961_v56 = vadd.f32 %v10601_v28, %v10003_v12  ;;  %vm1825_vm12 = vcmp.eq.s32.totalorder %v9755_v58, %v10418_v34  ;;  %v14457_v12 = vld [vmem:[#allocation20_spill] sm:$0xff] }
  0x95   : > { %14449 = vst [vmem:[#allocation116_spill] sm:$0xff] %v10939_v60  ;;  %14450 = vst [vmem:[#allocation117_spill] sm:$0xff] %v10953_v13  ;;  %vm1826_vm13 = vcmp.eq.s32.totalorder %v9755_v58, %v10421_v11  ;;  %vm1827_vm14 = vcmp.eq.s32.totalorder %v9758_v59, %v10418_v34  ;;  %vm1828_vm1 = vcmp.eq.s32.totalorder %v9758_v59, %v10421_v11  ;;  %v14466_v28 = vld [vmem:[#allocation84_spill] sm:$0xff]  ;;  %v14513_v13 = vld [vmem:[#allocation54_spill] sm:$0xff] }
  0x96   : > { %14451 = vst [vmem:[#allocation118_spill] sm:$0xff] %v10957_v44  ;;  %14452 = vst [vmem:[#allocation119_spill] sm:$0xff] %v10961_v56  ;;  %v10973_v16 = vadd.f32 %v10614_v27, %v10008_v17  ;;  %v10977_v1 = vadd.f32 %v10619_v48, %v10013_v22  ;;  %v10981_v2 = vadd.f32 %v10624_v47, %v10018_v24  ;;  %v14459_v22 = vld [vmem:[#allocation21_spill] sm:$0xff]  ;;  %v14460_v24 = vld [vmem:[#allocation82_spill] sm:$0xff] }
  0x97   : > { %v10985_v19 = vadd.f32 %v10629_v15, %v10023_v25  ;;  %vm1829_vm3 = vcmp.eq.s32.totalorder %v9770_v5, %v10418_v34  ;;  %vm1830_vm8 = vcmp.eq.s32.totalorder %v9770_v5, %v10421_v11  ;;  %vm1831_vm2 = vcmp.eq.s32.totalorder %v9748_v33, %v10923_v61  ;;  %v14462_v25 = vld [vmem:[#allocation22_spill] sm:$0xff]  ;;  %v14463_v47 = vld [vmem:[#allocation83_spill] sm:$0xff]  ;;  %v14507_v56 = vld [vmem:[#allocation49_spill] sm:$0xff] }
  0x98   : > { %14453 = vst [vmem:[#allocation120_spill] sm:$0xff] %v10973_v16  ;;  %14454 = vst [vmem:[#allocation121_spill] sm:$0xff] %v10977_v1  ;;  %vm1832_vm9 = vcmp.eq.s32.totalorder %v9748_v33, %v10927_v6  ;;  %v10997_v17 = vadd.f32 %v10638_v26, %v14457_v12  ;;  %v11001_v15 = vadd.f32 %v14460_v24, %v14459_v22  ;;  %v14465_v27 = vld [vmem:[#allocation23_spill] sm:$0xff]  ;;  %v14468_v26 = vld [vmem:[#allocation24_spill] sm:$0xff] }
  0x99   : > { %14455 = vst [vmem:[#allocation122_spill] sm:$0xff] %v10981_v2  ;;  %14456 = vst [vmem:[#allocation123_spill] sm:$0xff] %v10985_v19  ;;  %v11005_v48 = vadd.f32 %v14463_v47, %v14462_v25  ;;  %v11009_v52 = vadd.f32 %v14466_v28, %v14465_v27  ;;  %vm1833_vm7 = vcmp.eq.s32.totalorder %v9755_v58, %v10923_v61  ;;  %v14469_v12 = vld [vmem:[#allocation25_spill] sm:$0xff]  ;;  %v14470_v24 = vld [vmem:[#allocation26_spill] sm:$0xff] }
  0x9a   : > { %14458 = vst [vmem:[#allocation20_spill] sm:$0xff] %v10997_v17  ;;  %14461 = vst [vmem:[#allocation21_spill] sm:$0xff] %v11001_v15  ;;  %vm1834_vm0 = vcmp.eq.s32.totalorder %v9755_v58, %v10927_v6  ;;  %vm1835_vm15 = vcmp.eq.s32.totalorder %v9758_v59, %v10923_v61  ;;  %vm1836_vm4 = vcmp.eq.s32.totalorder %v9758_v59, %v10927_v6  ;;  %v14471_v47 = vld [vmem:[#allocation27_spill] sm:$0xff]  ;;  %v14472_v27 = vld [vmem:[#allocation85_spill] sm:$0xff]  ;;  %v11135_v34 = vsel %vm1833_vm7, %v10935_v39, 0.0 }
  0x9b   : > { %14464 = vst [vmem:[#allocation82_spill] sm:$0xff] %v11005_v48  ;;  %14467 = vst [vmem:[#allocation22_spill] sm:$0xff] %v11009_v52  ;;  %v2154_v50 = vadd.f32 %v10660_v54, %v14468_v26  ;;  %v2155_v22 = vadd.f32 %v10665_v30, %v14469_v12  ;;  %v2156_v25 = vadd.f32 %v10670_v0, %v14470_v24  ;;  %v14480_v54 = vld [vmem:[#allocation89_spill] sm:$0xff]  ;;  %v14482_v30 = vld [vmem:[#allocation90_spill] sm:$0xff]  ;;  %v11141_v11 = vsel %vm1834_vm0, %v10939_v60, 0.0 }
  0x9c   : > { %v2157_v28 = vadd.f32 %v14472_v27, %v14471_v47  ;;  %v2158_v51 = vadd.f32 %v14474_v55, %v14473_v37  ;;  %v2159_v7 = vadd.f32 %v14476_v8, %v14475_v14  ;;  %v2160_v57 = vadd.f32 %v14478_v62, %v14477_v29  ;;  %v14483_v52 = vld [vmem:[#allocation33_spill] sm:$0xff]  ;;  %v14484_v24 = vld [vmem:[#allocation34_spill] sm:$0xff]  ;;  %v14485_v27 = vld [vmem:[#allocation35_spill] sm:$0xff]  ;;  %14524 = vst [vmem:[#allocation84_spill] sm:$0xff] %v11135_v34 }
  0x9d   : > { %v2161_v26 = vadd.f32 %v14480_v54, %v14479_v46  ;;  %v2162_v12 = vadd.f32 %v14482_v30, %v14481_v42  ;;  %v2163_v0 = vadd.f32 %v10711_v45, %v14483_v52  ;;  %v2164_v47 = vadd.f32 %v10716_v63, %v14484_v24  ;;  %v14486_v55 = vld [vmem:[#allocation36_spill] sm:$0xff]  ;;  %v14487_v14 = vld [vmem:[#allocation37_spill] sm:$0xff]  ;;  %v14488_v62 = vld [vmem:[#allocation91_spill] sm:$0xff]  ;;  %14525 = vst [vmem:[#allocation24_spill] sm:$0xff] %v11141_v11 }
  0x9e   : > { %v2165_v37 = vadd.f32 %v10721_v43, %v14485_v27  ;;  %v2166_v8 = vadd.f32 %v10726_v4, %v14486_v55  ;;  %v2167_v29 = vadd.f32 %v14488_v62, %v14487_v14  ;;  %v14489_v15 = vld [vmem:[#allocation38_spill] sm:$0xff]  ;;  %v14490_v46 = vld [vmem:[#allocation92_spill] sm:$0xff]  ;;  %v14491_v48 = vld [vmem:[#allocation39_spill] sm:$0xff]  ;;  %vm1837_vm5 = vcmp.eq.s32.totalorder %v9770_v5, %v10923_v61 }
  0x9f   : > { %v2168_v54 = vadd.f32 %v14490_v46, %v14489_v15  ;;  %v14492_v42 = vld [vmem:[#allocation93_spill] sm:$0xff]  ;;  %v14493_v17 = vld [vmem:[#allocation40_spill] sm:$0xff]  ;;  %v14494_v45 = vld [vmem:[#allocation94_spill] sm:$0xff]  ;;  %vm1838_vm6 = vcmp.eq.s32.totalorder %v9770_v5, %v10927_v6 }
  0xa0   : > { %v2169_v30 = vadd.f32 %v14492_v42, %v14491_v48  ;;  %v2170_v52 = vadd.f32 %v14494_v45, %v14493_v17  ;;  %v14495_v19 = vld [vmem:[#allocation41_spill] sm:$0xff]  ;;  %v14496_v24 = vld [vmem:[#allocation42_spill] sm:$0xff]  ;;  %v14497_v27 = vld [vmem:[#allocation43_spill] sm:$0xff] }
  0xa1   : > { %v2171_v63 = vadd.f32 %v10751_v3, %v14495_v19  ;;  %v2172_v43 = vadd.f32 %v10756_v10, %v14496_v24  ;;  %v2173_v4 = vadd.f32 %v10761_v31, %v14497_v27  ;;  %v14498_v55 = vld [vmem:[#allocation44_spill] sm:$0xff]  ;;  %v14499_v62 = vld [vmem:[#allocation45_spill] sm:$0xff]  ;;  %v14500_v15 = vld [vmem:[#allocation95_spill] sm:$0xff]  ;;  %v2179_v10 = vadd.f32 %v10791_v9, %v14507_v56 }
  0xa2   : > { %v2174_v14 = vadd.f32 %v10766_v49, %v14498_v55  ;;  %v2175_v46 = vadd.f32 %v14500_v15, %v14499_v62  ;;  %v14501_v1 = vld [vmem:[#allocation46_spill] sm:$0xff]  ;;  %v14502_v48 = vld [vmem:[#allocation96_spill] sm:$0xff]  ;;  %v14503_v2 = vld [vmem:[#allocation47_spill] sm:$0xff] }
  0xa3   : > { %v2176_v42 = vadd.f32 %v14502_v48, %v14501_v1  ;;  %v14504_v17 = vld [vmem:[#allocation97_spill] sm:$0xff]  ;;  %v14505_v16 = vld [vmem:[#allocation48_spill] sm:$0xff]  ;;  %v14506_v3 = vld [vmem:[#allocation98_spill] sm:$0xff] }
  0xa4   : > { %v2177_v45 = vadd.f32 %v14504_v17, %v14503_v2  ;;  %v2178_v19 = vadd.f32 %v14506_v3, %v14505_v16  ;;  %v14508_v24 = vld [vmem:[#allocation50_spill] sm:$0xff]  ;;  %v14509_v27 = vld [vmem:[#allocation51_spill] sm:$0xff]  ;;  %v14510_v55 = vld [vmem:[#allocation52_spill] sm:$0xff] }
  0xa5   : > { %v2180_v31 = vadd.f32 %v10796_v38, %v14508_v24  ;;  %v2181_v49 = vadd.f32 %v10801_v35, %v14509_v27  ;;  %v2182_v62 = vadd.f32 %v10806_v36, %v14510_v55  ;;  %v14511_v15 = vld [vmem:[#allocation53_spill] sm:$0xff]  ;;  %v14512_v1 = vld [vmem:[#allocation99_spill] sm:$0xff]  ;;  %v14514_v2 = vld [vmem:[#allocation100_spill] sm:$0xff] }
  0xa6   : > { %v2183_v48 = vadd.f32 %v14512_v1, %v14511_v15  ;;  %v2184_v17 = vadd.f32 %v14514_v2, %v14513_v13  ;;  %v14515_v44 = vld [vmem:[#allocation55_spill] sm:$0xff]  ;;  %v14516_v38 = vld [vmem:[#allocation56_spill] sm:$0xff]  ;;  %v14517_v35 = vld [vmem:[#allocation101_spill] sm:$0xff]  ;;  %v2058_v15 = vsel %vm1827_vm14, %v10881_v21, 0.0  ;;  %v2061_v1 = vsel %vm1830_vm8, %v10885_v41, 0.0 }
  0xa7   : > { %v2185_v16 = vadd.f32 %v10821_v32, %v14515_v44  ;;  %v2186_v9 = vadd.f32 %v14517_v35, %v14516_v38  ;;  %v14518_v56 = vld [vmem:[#allocation57_spill] sm:$0xff]  ;;  %v14519_v36 = vld [vmem:[#allocation102_spill] sm:$0xff]  ;;  %v14521_v55 = vld [vmem:[#allocation59_spill] sm:$0xff]  ;;  %v2056_v32 = vsel %vm1825_vm12, %v10881_v21, 0.0  ;;  %v2057_v44 = vsel %vm1826_vm13, %v10885_v41, 0.0 }
  0xa8   : > { %v2187_v3 = vadd.f32 %v14519_v36, %v14518_v56  ;;  %v14520_v24 = vld [vmem:[#allocation58_spill] sm:$0xff]  ;;  %v2189_v13 = vadd.f32 %v10841_v23, %v14521_v55  ;;  %v2060_v23 = vsel %vm1829_vm3, %v10881_v21, 0.0  ;;  %v11123_v2 = vsel %vm1831_vm2, %v10935_v39, 0.0  ;;  %v14528_v35 = vld [vmem:[#allocation76_spill] sm:$0xff]  ;;  %v14529_v36 = vld [vmem:[#allocation77_spill] sm:$0xff] }
  0xa9   : > { %v2188_v27 = vadd.f32 %v10836_v53, %v14520_v24  ;;  %v2059_v53 = vsel %vm1828_vm1, %v10885_v41, 0.0  ;;  %14522 = vst [vmem:[#allocation83_spill] sm:$0xff] %v11123_v2  ;;  %v11129_v38 = vsel %vm1832_vm9, %v10939_v60, 0.0  ;;  %v11147_v21 = vsel %vm1835_vm15, %v10935_v39, 0.0  ;;  %v14530_v55 = vld [vmem:[#allocation78_spill] sm:$0xff]  ;;  %v14531_v11 = vld [vmem:[#allocation79_spill] sm:$0xff] }
  0xaa   : > { %14523 = vst [vmem:[#allocation23_spill] sm:$0xff] %v11129_v38  ;;  %14526 = vst [vmem:[#allocation25_spill] sm:$0xff] %v11147_v21  ;;  %v11153_v41 = vsel %vm1836_vm4, %v10939_v60, 0.0  ;;  %v2126_v56 = vadd.f32 %v10942_v40, %v14528_v35  ;;  %v2127_v24 = vadd.f32 %v10945_v20, %v14529_v36  ;;  %v2128_v58 = vadd.f32 %v2056_v32, %v14530_v55  ;;  %v14532_v38 = vld [vmem:[#allocation118_spill] sm:$0xff]  ;;  %v14533_v21 = vld [vmem:[#allocation117_spill] sm:$0xff] }
  0xab   : > { %14527 = vst [vmem:[#allocation26_spill] sm:$0xff] %v11153_v41  ;;  %v2129_v34 = vadd.f32 %v2057_v44, %v14531_v11  ;;  %v11163_v2 = vpack.c.bf16 %v14532_v38, %v10949_v18  ;;  %v14534_v33 = vld [vmem:[#allocation119_spill] sm:$0xff]  ;;  %v14535_v59 = vld [vmem:[#allocation120_spill] sm:$0xff]  ;;  %v14536_v41 = vld [vmem:[#allocation122_spill] sm:$0xff]  ;;  %v11185_v38 = vpack.c.bf16 %v2156_v25, %v2154_v50  ;;  %v11195_v55 = vpack.c.bf16 %v2165_v37, %v2163_v0 }
  0xac   : > { %v11167_v61 = vpack.c.bf16 %v14534_v33, %v14533_v21  ;;  %v11171_v6 = vpack.c.bf16 %v14536_v41, %v14535_v59  ;;  %v14537_v40 = vld [vmem:[#allocation121_spill] sm:$0xff]  ;;  %v14538_v35 = vld [vmem:[#allocation123_spill] sm:$0xff]  ;;  %v14539_v20 = vld [vmem:[#allocation20_spill] sm:$0xff]  ;;  %v11187_v33 = vpack.c.bf16 %v2157_v28, %v2155_v22  ;;  %v11189_v21 = vpack.c.bf16 %v2160_v57, %v2158_v51 }
  0xad   : > { %v11175_v60 = vpack.c.bf16 %v14538_v35, %v14537_v40  ;;  %v14540_v32 = vld [vmem:[#allocation82_spill] sm:$0xff]  ;;  %v14542_v44 = vld [vmem:[#allocation21_spill] sm:$0xff]  ;;  %14545 = vst [vmem:[#allocation28_spill] sm:$0xff] %v11185_v38  ;;  %v11191_v59 = vpack.c.bf16 %v2161_v26, %v2159_v7  ;;  %v11193_v41 = vpack.c.bf16 %v2164_v47, %v2162_v12  ;;  %14550 = vst [vmem:[#allocation88_spill] sm:$0xff] %v11195_v55  ;;  %v11225_v0 = vsel %vm1837_vm5, %v10935_v39, 0.0 }
  0xae   : > { %v11179_v36 = vpack.c.bf16 %v14540_v32, %v14539_v20  ;;  %v14543_v11 = vld [vmem:[#allocation22_spill] sm:$0xff]  ;;  %14546 = vst [vmem:[#allocation86_spill] sm:$0xff] %v11187_v33  ;;  %14547 = vst [vmem:[#allocation29_spill] sm:$0xff] %v11189_v21  ;;  %v11197_v40 = vpack.c.bf16 %v2168_v54, %v2166_v8  ;;  %v11199_v35 = vpack.c.bf16 %v2169_v30, %v2167_v29  ;;  %v14564_v47 = vld [vmem:[#allocation116_spill] sm:$0xff] }
  0xaf   : > { %v11183_v18 = vpack.c.bf16 %v14543_v11, %v14542_v44  ;;  %14548 = vst [vmem:[#allocation87_spill] sm:$0xff] %v11191_v59  ;;  %14549 = vst [vmem:[#allocation30_spill] sm:$0xff] %v11193_v41  ;;  %v11201_v20 = vpack.c.bf16 %v2172_v43, %v2170_v52  ;;  %v11203_v32 = vpack.c.bf16 %v2173_v4, %v2171_v63  ;;  %v11231_v8 = vsel %vm1838_vm6, %v14564_v47, 0.0  ;;  %v14566_v29 = vld [vmem:[#allocation80_spill] sm:$0xff]  ;;  %v14567_v30 = vld [vmem:[#allocation81_spill] sm:$0xff] }
  0xb0   : > { %14541 = vst [vmem:[#allocation27_spill] sm:$0xff] %v11179_v36  ;;  %14551 = vst [vmem:[#allocation31_spill] sm:$0xff] %v11197_v40  ;;  %v11205_v50 = vpack.c.bf16 %v2176_v42, %v2174_v14  ;;  %v11207_v22 = vpack.c.bf16 %v2177_v45, %v2175_v46  ;;  %v11209_v51 = vpack.c.bf16 %v2180_v31, %v2178_v19  ;;  %v14568_v63 = vld [vmem:[#allocation103_spill] sm:$0xff]  ;;  %v14569_v4 = vld [vmem:[#allocation6_spill] sm:$0xff] }
  0xb1   : > { %14544 = vst [vmem:[#allocation85_spill] sm:$0xff] %v11183_v18  ;;  %14552 = vst [vmem:[#allocation89_spill] sm:$0xff] %v11199_v35  ;;  %v11211_v7 = vpack.c.bf16 %v2181_v49, %v2179_v10  ;;  %v11213_v57 = vpack.c.bf16 %v2184_v17, %v2182_v62  ;;  %v11215_v25 = vpack.c.bf16 %v2185_v16, %v2183_v48  ;;  %v14570_v14 = vld [vmem:[#allocation110_spill] sm:$0xff]  ;;  %v14571_v42 = vld [vmem:[#allocation60_spill] sm:$0xff] }
  0xb2   : > { %14553 = vst [vmem:[#allocation32_spill] sm:$0xff] %v11201_v20  ;;  %14554 = vst [vmem:[#allocation90_spill] sm:$0xff] %v11203_v32  ;;  %v11217_v28 = vpack.c.bf16 %v2188_v27, %v2186_v9  ;;  %v11219_v26 = vpack.c.bf16 %v2189_v13, %v2187_v3  ;;  %v2130_v54 = vadd.f32 %v2058_v15, %v14566_v29  ;;  %v14574_v19 = vld [vmem:[#allocation62_spill] sm:$0xff]  ;;  %v14575_v31 = vld [vmem:[#allocation104_spill] sm:$0xff] }
  0xb3   : > { %14555 = vst [vmem:[#allocation33_spill] sm:$0xff] %v11205_v50  ;;  %14556 = vst [vmem:[#allocation34_spill] sm:$0xff] %v11207_v22  ;;  %v2131_v52 = vadd.f32 %v2059_v53, %v14567_v30  ;;  %v2132_v43 = vadd.f32 %v2060_v23, %v14568_v63  ;;  %v11238_v46 = vrot.slane %v14570_v14, %v14569_v4  ;;  %v14576_v48 = vld [vmem:[#allocation61_spill] sm:$0xff]  ;;  %v14577_v16 = vld [vmem:[#allocation64_spill] sm:$0xff] }
  0xb4   : > { %14557 = vst [vmem:[#allocation35_spill] sm:$0xff] %v11209_v51  ;;  %14558 = vst [vmem:[#allocation36_spill] sm:$0xff] %v11211_v7  ;;  %v14572_v39 = vcombine.high %v14571_v42, %v14571_v42  ;;  %v595_v10 = vcombine.high %v14574_v19, %v14574_v19  ;;  %v2133_v49 = vadd.f32 %v2061_v1, %v14575_v31  ;;  %v14578_v13 = vld [vmem:[#allocation12_spill] sm:$0xff]  ;;  %v14579_v53 = vld [vmem:[#allocation13_spill] sm:$0xff] }
  0xb5   : > { %14559 = vst [vmem:[#allocation37_spill] sm:$0xff] %v11213_v57  ;;  %14560 = vst [vmem:[#allocation91_spill] sm:$0xff] %v11215_v25  ;;  %v11249_v62 = vpack.c.bf16 %v2128_v58, %v2126_v56  ;;  %v804_v17 = vcombine.high %v14576_v48, %v14576_v48  ;;  %v999_v9 = vcombine.high %v14577_v16, %v14577_v16  ;;  %v14584_v12 = vld [vmem:[#allocation5_spill] sm:$0xff]  ;;  %v2342_v47 = vunpack.i.h.s16 %v11238_v46  ;;  %v14587_v32 = vld [vmem:[#allocation106_spill] sm:$0xff] }
  0xb6   : > { %14561 = vst [vmem:[#allocation38_spill] sm:$0xff] %v11217_v28  ;;  %14562 = vst [vmem:[#allocation92_spill] sm:$0xff] %v11219_v26  ;;  %v11244_v45 = vrot.slane %v14572_v39, %v14569_v4  ;;  %v11255_v3 = vpack.c.bf16 %v2129_v34, %v2127_v24  ;;  %v9201_v27 = vpack.i.b16 %v11238_v46, %v11238_v46  ;;  %v14588_v40 = vld [vmem:[#allocation23_spill] sm:$0xff]  ;;  %v14592_v7 = vld [vmem:[#allocation24_spill] sm:$0xff] }
  0xb7   : > { %v11268_v58 = vrot.slane %v595_v10, %v14569_v4  ;;  %v11271_v1 = vrot.slane %v804_v17, %v14569_v4  ;;  %v11274_v34 = vrot.slane %v999_v9, %v14569_v4  ;;  %v14583_v56 = vcombine.high %v14570_v14, %v14570_v14  ;;  %v14593_v22 = vld [vmem:[#allocation109_spill] sm:$0xff]  ;;  %v14595_v33 = vld [vmem:[#allocation111_spill] sm:$0xff] }
  0xb8   : > { %14573 = vst [vmem:[#allocation39_spill] sm:$0xff] %v11244_v45  ;;  %v11261_v15 = vrot.slane %v11244_v45, %v14578_v13  ;;  %v11265_v23 = vrot.slane %v11244_v45, %v14579_v53  ;;  %v2384_v44 = vrot.slane %v9201_v27, %v14579_v53  ;;  %v2380_v11 = vrot.slane %v9201_v27, %v14578_v13  ;;  %v14608_v41 = vld [vmem:[#allocation73_spill] sm:$0xff] }
  0xb9   : > { %14580 = vst [vmem:[#allocation93_spill] sm:$0xff] %v11268_v58  ;;  %14581 = vst [vmem:[#allocation40_spill] sm:$0xff] %v11271_v1  ;;  %v11280_v24 = vrot.slane %v14583_v56, %v14569_v4  ;;  %v11291_v37 = vrot.slane %v11268_v58, %v14578_v13  ;;  %v11295_v29 = vrot.slane %v11268_v58, %v14579_v53 }
  0xba   : > { %14582 = vst [vmem:[#allocation94_spill] sm:$0xff] %v11274_v34  ;;  %vm527_vm11 = vcmp.eq.s32.totalorder %v14584_v12, %v11261_v15  ;;  %vm528_vm10 = vcmp.eq.s32.totalorder %v14584_v12, %v11265_v23  ;;  %v11299_v30 = vrot.slane %v11271_v1, %v14578_v13  ;;  %v11301_v63 = vpack.c.bf16 %v2132_v43, %v2130_v54 }
  0xbb   : > { %v11303_v14 = vpack.c.bf16 %v2133_v49, %v2131_v52  ;;  %v2529_v42 = vpack.i.b16 %v2384_v44, %v2384_v44  ;;  %v2522_v39 = vpack.i.b16 %v2380_v11, %v2380_v11  ;;  %v740_v19 = vsel %vm527_vm11, %v11291_v37, 0.0  ;;  %v14585_v11 = vld [vmem:[#allocation105_spill] sm:$0xff] }
  0xbc   : > { %v741_v10 = vsel %vm528_vm10, %v11295_v29, 0.0  ;;  %v11309_v31 = vrot.slane %v11271_v1, %v14579_v53  ;;  %vm931_vm12 = vcmp.eq.s32.totalorder %v14584_v12, %v11299_v30  ;;  %v11317_v52 = vrot.slane %v11274_v34, %v14578_v13 }
  0xbd   : > { %v2534_v48 = vrot.slane %v2529_v42, %v14578_v13  ;;  %v2527_v54 = vrot.slane %v2522_v39, %v14578_v13  ;;  %v11321_v43 = vrot.slane %v11274_v34, %v14579_v53  ;;  %v2360_v49 = vpack.i.b16 %v2342_v47, %v2342_v47  ;;  %v14586_v42 = vld [vmem:[#allocation83_spill] sm:$0xff]  ;;  %v14605_v34 = vld [vmem:[#allocation69_spill] sm:$0xff] }
  0xbe   : > { %vm932_vm13 = vcmp.eq.s32.totalorder %v14584_v12, %v11309_v31  ;;  %v9202_v17 = vpack.i.b16 %v11280_v24, %v11280_v24  ;;  %v2344_v16 = vunpack.i.h.s16 %v11280_v24  ;;  %v1144_v56 = vsel %vm931_vm12, %v11317_v52, 0.0 }
  0xbf   : > { %v2774_v9 = vmul.bf16 %v2534_v48, %v11255_v3  ;;  %v2773_v27 = vmul.bf16 %v2527_v54, %v11249_v62  ;;  %v1145_v44 = vsel %vm932_vm13, %v11321_v43, 0.0  ;;  %v2134_v39 = vadd.f32 %v14586_v42, %v14585_v11 }
  0xc0   : > { %v1198_v28 = vadd.f32 %v1144_v56, %v740_v19  ;;  %v1199_v26 = vadd.f32 %v1145_v44, %v741_v10  ;;  %v2776_v47 = vmul.bf16 %v2534_v48, %v11303_v14  ;;  %v2392_v57 = vrot.slane %v2360_v49, %v14579_v53  ;;  %v14589_v10 = vld [vmem:[#allocation107_spill] sm:$0xff]  ;;  %v14590_v56 = vld [vmem:[#allocation84_spill] sm:$0xff] }
  0xc1   : > { %2879 = vmatprep.subr.bf16.mxu0 %v2774_v9  ;;  %v2388_v25 = vrot.slane %v2360_v49, %v14578_v13  ;;  %v2400_v5 = vrot.slane %v9202_v17, %v14579_v53  ;;  %v2396_v20 = vrot.slane %v9202_v17, %v14578_v13  ;;  %v2135_v35 = vadd.f32 %v14588_v40, %v14587_v32  ;;  %v14591_v49 = vld [vmem:[#allocation108_spill] sm:$0xff]  ;;  %v14594_v17 = vld [vmem:[#allocation25_spill] sm:$0xff]  ;;  %v14596_v40 = vld [vmem:[#allocation26_spill] sm:$0xff] }
  0xc2   : > { %2880 = vmatpush1.bf16.msra.mxu0 %v2773_v27  ;;  %v9212_v51 = vpack.c.bf16 %v1199_v26, %v1198_v28  ;;  %v2775_v11 = vmul.bf16 %v2527_v54, %v11301_v63  ;;  %v2362_v19 = vpack.i.b16 %v2344_v16, %v2344_v16  ;;  %v2136_v48 = vadd.f32 %v14590_v56, %v14589_v10  ;;  %v14597_v26 = vld [vmem:[#allocation113_spill] sm:$0xff] }
  0xc3   : > { %2881 = vmatprep.subr.bf16.mxu0 %v2776_v47  ;;  %v2543_v9 = vpack.i.b16 %v2392_v57, %v2392_v57  ;;  %v2536_v44 = vpack.i.b16 %v2388_v25, %v2388_v25  ;;  %v2557_v42 = vpack.i.b16 %v2400_v5, %v2400_v5  ;;  %v2137_v50 = vadd.f32 %v14592_v7, %v14591_v49  ;;  %v14598_v5 = vld [vmem:[#allocation112_spill] sm:$0xff] }
  0xc4   : > { %v2138_v38 = vadd.f32 %v14594_v17, %v14593_v22  ;;  %v2139_v32 = vadd.f32 %v14596_v40, %v14595_v33  ;;  %v3017_v28 = vrot.slane %v9212_v51, %v14569_v4  ;;  %v2141_v54 = vadd.f32 %v11231_v8, %v14597_v26 }
  0xc5   : > { %v2548_v16 = vrot.slane %v2543_v9, %v14578_v13  ;;  %v2541_v57 = vrot.slane %v2536_v44, %v14578_v13  ;;  %v2550_v25 = vpack.i.b16 %v2396_v20, %v2396_v20  ;;  %v2140_v27 = vadd.f32 %v11225_v0, %v14598_v5 }
  0xc6   : > { %v3025_v7 = vcombine.high %v3017_v28, %v3017_v28  ;;  %v11358_v47 = vrot.slane %v3017_v28, %v14569_v4  ;;  %2882 = vmatpush1.bf16.msra.mxu0 %v2775_v11  ;;  %v2408_v33 = vrot.slane %v2362_v19, %v14579_v53  ;;  %v2562_v10 = vrot.slane %v2557_v42, %v14578_v13 }
  0xc7   : > { %v2778_v22 = vmul.bf16 %v2548_v16, %v11255_v3  ;;  %v2777_v51 = vmul.bf16 %v2541_v57, %v11249_v62  ;;  %v2780_v8 = vmul.bf16 %v2548_v16, %v11303_v14  ;;  %v11365_v56 = vpack.c.bf16 %v2136_v48, %v2134_v39 }
  0xc8   : > { %v11367_v20 = vpack.c.bf16 %v2137_v50, %v2135_v35  ;;  %v9215_v0 = vpack.i.b16 %v11358_v47, %v11358_v47  ;;  %v3075_v9 = vunpack.i.h.s16 %v11358_v47  ;;  %v11372_v11 = vpack.c.bf16 %v2141_v54, %v2139_v32 }
  0xc9   : > { %2883 = vmatprep.subr.bf16.mxu0 %v2778_v22  ;;  %v2555_v44 = vrot.slane %v2550_v25, %v14578_v13  ;;  %v11376_v49 = vrot.slane %v3025_v7, %v14569_v4  ;;  %v2404_v17 = vrot.slane %v2362_v19, %v14578_v13  ;;  %v2779_v48 = vmul.bf16 %v2541_v57, %v11301_v63 }
  0xca   : > { %v3117_v39 = vrot.slane %v9215_v0, %v14579_v53  ;;  %v3113_v35 = vrot.slane %v9215_v0, %v14578_v13  ;;  %2884 = vmatpush1.bf16.msra.mxu0 %v2777_v51  ;;  %v3093_v50 = vpack.i.b16 %v3075_v9, %v3075_v9  ;;  %v9642_v42 = vmov 1983009808  }
  0xcb   : > { %v2849_v40 = vunpack.c.l.s4 %v9642_v42  ;;  %2885 = vmatprep.subr.bf16.mxu0 %v2780_v8  ;;  %v2782_v32 = vmul.bf16 %v2562_v10, %v11255_v3  ;;  %v9216_v28 = vpack.i.b16 %v11376_v49, %v11376_v49  ;;  %v2571_v26 = vpack.i.b16 %v2408_v33, %v2408_v33 }
  0xcc   : > { %v3262_v54 = vpack.i.b16 %v3117_v39, %v3117_v39  ;;  %v3255_v16 = vpack.i.b16 %v3113_v35, %v3113_v35  ;;  %v3125_v19 = vrot.slane %v3093_v50, %v14579_v53  ;;  %v3121_v25 = vrot.slane %v3093_v50, %v14578_v13 }
  0xcd   : > { %v11387_v5 = vpack.c.bf16 %v2140_v27, %v2138_v38  ;;  %v2564_v7 = vpack.i.b16 %v2404_v17, %v2404_v17  ;;  %v3077_v57 = vunpack.i.h.s16 %v11376_v49  ;;  %v2322_v22 = vcombine.high %v11238_v46, %v11238_v46 }
  0xce   : > { %v3267_v51 = vrot.slane %v3262_v54, %v14578_v13  ;;  %v3260_v8 = vrot.slane %v3255_v16, %v14578_v13  ;;  %v3276_v0 = vpack.i.b16 %v3125_v19, %v3125_v19  ;;  %2886 = vmatpush1.bf16.msra.mxu0 %v2779_v48  ;;  %v2781_v33 = vmul.bf16 %v2555_v44, %v11249_v62 }
  0xcf   : > { %v2850_v9 = vunpack.c.0.s8 %v2849_v40  ;;  %v3269_v39 = vpack.i.b16 %v3121_v25, %v3121_v25  ;;  %2887 = vmatprep.subr.bf16.mxu0 %v2782_v32  ;;  %v3133_v38 = vrot.slane %v9216_v28, %v14579_v53  ;;  %v2576_v27 = vrot.slane %v2571_v26, %v14578_v13 }
  0xd0   : > { %v3507_v17 = vmul.bf16 %v3267_v51, %v11367_v20  ;;  %v3506_v35 = vmul.bf16 %v3260_v8, %v11365_v56  ;;  %v3509_v46 = vmul.bf16 %v3267_v51, %v11372_v11  ;;  %v2784_v50 = vmul.bf16 %v2562_v10, %v11303_v14 }
  0xd1   : > { %v3281_v48 = vrot.slane %v3276_v0, %v14578_v13  ;;  %v3129_v42 = vrot.slane %v9216_v28, %v14578_v13  ;;  %v3095_v40 = vpack.i.b16 %v3077_v57, %v3077_v57  ;;  %v9203_v54 = vpack.i.b16 %v2322_v22, %v2322_v22 }
  0xd2   : > { %3578 = vmatprep.subr.bf16.mxu1 %v3507_v17  ;;  %2888 = vmatpush1.bf16.msra.mxu0 %v2781_v33  ;;  %v2783_v32 = vmul.bf16 %v2555_v44, %v11301_v63  ;;  %v2569_v26 = vrot.slane %v2564_v7, %v14578_v13  ;;  %v2346_v16 = vunpack.i.h.s16 %v2322_v22  ;;  %v3508_v19 = vmul.bf16 %v3260_v8, %v11387_v5 }
  0xd3   : > { %3579 = vmatpush1.bf16.msra.mxu1 %v3506_v35  ;;  %v3274_v25 = vrot.slane %v3269_v39, %v14578_v13  ;;  %v3290_v51 = vpack.i.b16 %v3133_v38, %v3133_v38  ;;  %v2786_v10 = vmul.bf16 %v2576_v27, %v11255_v3  ;;  %v11410_v28 = vsub.s32 %v2850_v9, %v14584_v12 }
  0xd4   : > { %3580 = vmatprep.subr.bf16.mxu1 %v3509_v46  ;;  %v3511_v57 = vmul.bf16 %v3281_v48, %v11367_v20  ;;  %2889 = vmatprep.subr.bf16.mxu0 %v2784_v50  ;;  %v3283_v44 = vpack.i.b16 %v3129_v42, %v3129_v42  ;;  %v3141_v7 = vrot.slane %v3095_v40, %v14579_v53 }
  0xd5   : > { %v2416_v22 = vrot.slane %v9203_v54, %v14579_v53  ;;  %v11417_v8 = vcombine.high %v11280_v24, %v11280_v24  ;;  %v2785_v0 = vmul.bf16 %v2569_v26, %v11249_v62  ;;  %v2412_v33 = vrot.slane %v9203_v54, %v14578_v13 }
  0xd6   : > { %2890 = vmatpush1.bf16.msra.mxu0 %v2783_v32  ;;  %v3055_v9 = vcombine.high %v11358_v47, %v11358_v47  ;;  %v2364_v39 = vpack.i.b16 %v2346_v16, %v2346_v16  ;;  %v3510_v38 = vmul.bf16 %v3274_v25, %v11365_v56  ;;  %v11425_v17 = vrot.slane %v3290_v51, %v14578_v13 }
  0xd7   : > { %3581 = vmatpush1.bf16.msra.mxu1 %v3508_v19  ;;  %2891 = vmatprep.subr.bf16.mxu0 %v2786_v10  ;;  %v2788_v35 = vmul.bf16 %v2576_v27, %v11303_v14  ;;  %v3513_v24 = vmul.bf16 %v3281_v48, %v11372_v11  ;;  %v2585_v47 = vpack.i.b16 %v2416_v22, %v2416_v22  ;;  %v2270_v10 = vld [vmem:[%s11431_s7] sm:$0xff]  ;;  %v2348_v36 = vunpack.i.h.s16 %v11417_v8 }
  0xd8   : > { %3582 = vmatprep.subr.bf16.mxu1 %v3511_v57  ;;  %v2578_v46 = vpack.i.b16 %v2412_v33, %v2412_v33  ;;  %v9217_v50 = vpack.i.b16 %v3055_v9, %v3055_v9  ;;  %v11435_v42 = vrot.slane %v3283_v44, %v14578_v13  ;;  %v3304_v54 = vpack.i.b16 %v3141_v7, %v3141_v7 }
  0xd9   : > { %v3137_v32 = vrot.slane %v3095_v40, %v14578_v13  ;;  %v2424_v27 = vrot.slane %v2364_v39, %v14579_v53  ;;  %v2787_v16 = vmul.bf16 %v2569_v26, %v11301_v63  ;;  %v2590_v19 = vrot.slane %v2585_v47, %v14578_v13  ;;  %v14599_v47 = vld [vmem:[#allocation67_spill] sm:$0xff] }
  0xda   : > { %2892 = vmatpush1.bf16.msra.mxu0 %v2785_v0  ;;  %v2583_v51 = vrot.slane %v2578_v46, %v14578_v13  ;;  %v2420_v48 = vrot.slane %v2364_v39, %v14578_v13  ;;  %v3512_v57 = vmul.bf16 %v3274_v25, %v11387_v5  ;;  %v9204_v40 = vpack.i.b16 %v11417_v8, %v11417_v8  ;;  %v14600_v25 = vld [vmem:[#allocation7_spill] sm:$0xff] }
  0xdb   : > { %3583 = vmatpush1.bf16.msra.mxu1 %v3510_v38  ;;  %2893 = vmatprep.subr.bf16.mxu0 %v2788_v35  ;;  %v2599_v44 = vpack.i.b16 %v2424_v27, %v2424_v27  ;;  %v3515_v7 = vmul.bf16 %v11425_v17, %v11367_v20  ;;  %v2790_v26 = vmul.bf16 %v2590_v19, %v11255_v3  ;;  %v3079_v0 = vunpack.i.h.s16 %v3055_v9 }
  0xdc   : > { %3584 = vmatprep.subr.bf16.mxu1 %v3513_v24  ;;  %v3149_v22 = vrot.slane %v9217_v50, %v14579_v53  ;;  %v2847_v33 = vcombine.high %v2270_v10, %v2270_v10  ;;  %v3297_v39 = vpack.i.b16 %v3137_v32, %v3137_v32  ;;  %v3145_v38 = vrot.slane %v9217_v50, %v14578_v13 }
  0xdd   : > { %vm523_vm14 = vcmp.eq.s32.totalorder %v14600_v25, %v14599_v47  ;;  %v11455_v35 = vrot.slane %v2270_v10, %v11410_v28  ;;  %v2789_v24 = vmul.bf16 %v2583_v51, %v11249_v62  ;;  %v11459_v46 = vrot.slane %v2599_v44, %v14578_v13 }
  0xde   : > { %2894 = vmatpush1.bf16.msra.mxu0 %v2787_v16  ;;  %v2592_v27 = vpack.i.b16 %v2420_v48, %v2420_v48  ;;  %v3514_v9 = vmul.bf16 %v11435_v42, %v11365_v56  ;;  %v2792_v50 = vmul.bf16 %v2590_v19, %v11303_v14  ;;  %v2432_v32 = vrot.slane %v9204_v40, %v14579_v53 }
  0xdf   : > { %14601 = vst [vmem:[#allocation41_spill] sm:$0xff] %v11455_v35  ;;  %3585 = vmatpush1.bf16.msra.mxu1 %v3512_v57  ;;  %2895 = vmatprep.subr.bf16.mxu0 %v2790_v26  ;;  %v3517_v16 = vmul.bf16 %v11425_v17, %v11372_v11  ;;  %v3309_v10 = vrot.slane %v3304_v54, %v14578_v13 }
  0xe0   : > { %3586 = vmatprep.subr.bf16.mxu1 %v3515_v7  ;;  %v3318_v44 = vpack.i.b16 %v3149_v22, %v3149_v22  ;;  %v3097_v18 = vpack.i.b16 %v3079_v0, %v3079_v0  ;;  %v3516_v48 = vmul.bf16 %v11435_v42, %v11387_v5  ;;  %v11472_v57 = vrot.slane %v3297_v39, %v14578_v13 }
  0xe1   : > { %v3311_v26 = vpack.i.b16 %v3145_v38, %v3145_v38  ;;  %v2791_v19 = vmul.bf16 %v2583_v51, %v11301_v63  ;;  %v2794_v8 = vmul.bf16 %v11459_v46, %v11255_v3  ;;  %v2597_v7 = vrot.slane %v2592_v27, %v14578_v13 }
  0xe2   : > { %2896 = vmatpush1.bf16.msra.mxu0 %v2789_v24  ;;  %v2428_v17 = vrot.slane %v9204_v40, %v14578_v13  ;;  %v11481_v54 = vcombine.high %v11455_v35, %v11455_v35  ;;  %v2613_v42 = vpack.i.b16 %v2432_v32, %v2432_v32  ;;  %v3057_v22 = vcombine.high %v11376_v49, %v11376_v49 }
  0xe3   : > { %3587 = vmatpush1.bf16.msra.mxu1 %v3514_v9  ;;  %2897 = vmatprep.subr.bf16.mxu0 %v2792_v50  ;;  %v2366_v0 = vpack.i.b16 %v2348_v36, %v2348_v36  ;;  %v3519_v51 = vmul.bf16 %v3309_v10, %v11367_v20  ;;  %v11487_v39 = vrot.slane %v3318_v44, %v14578_v13 }
  0xe4   : > { %14602 = vst [vmem:[#allocation42_spill] sm:$0xff] %v11481_v54  ;;  %3588 = vmatprep.subr.bf16.mxu1 %v3517_v16  ;;  %v3157_v38 = vrot.slane %v3097_v18, %v14579_v53  ;;  %v3153_v40 = vrot.slane %v3097_v18, %v14578_v13  ;;  %v11492_v24 = vrot.slane %v2847_v33, %v11410_v28  ;;  %v14604_v16 = vld [vmem:[#allocation72_spill] sm:$0xff] }
  0xe5   : > { %v11495_v27 = vrot.slane %v3311_v26, %v14578_v13  ;;  %v2606_v9 = vpack.i.b16 %v2428_v17, %v2428_v17  ;;  %2911 = vmatprep.mubr.bf16.mxu0 %v11481_v54  ;;  %v3518_v36 = vmul.bf16 %v11472_v57, %v11365_v56  ;;  %v3521_v49 = vmul.bf16 %v3309_v10, %v11372_v11 }
  0xe6   : > { %14603 = vst [vmem:[#allocation43_spill] sm:$0xff] %v11492_v24  ;;  %2898 = vmatpush1.bf16.msra.mxu0 %v2791_v19  ;;  %v2793_v50 = vmul.bf16 %v2597_v7, %v11249_v62  ;;  %v2796_v18 = vmul.bf16 %v11459_v46, %v11303_v14  ;;  %v2618_v28 = vrot.slane %v2613_v42, %v14578_v13  ;;  %v736_v44 = vsel %vm523_vm14, %v14604_v16, 0.0 }
  0xe7   : > { %3589 = vmatpush1.bf16.msra.mxu1 %v3516_v48  ;;  %2899 = vmatprep.subr.bf16.mxu0 %v2794_v8  ;;  %v9218_v33 = vpack.i.b16 %v3057_v22, %v3057_v22  ;;  %v2440_v32 = vrot.slane %v2366_v0, %v14579_v53  ;;  %v3520_v10 = vmul.bf16 %v11472_v57, %v11387_v5  ;;  %v3081_v42 = vunpack.i.h.s16 %v3057_v22 }
  0xe8   : > { %3590 = vmatprep.subr.bf16.mxu1 %v3519_v51  ;;  %v3523_v26 = vmul.bf16 %v11487_v39, %v11367_v20  ;;  %v3332_v46 = vpack.i.b16 %v3157_v38, %v3157_v38  ;;  %v3325_v48 = vpack.i.b16 %v3153_v40, %v3153_v40  ;;  %v3522_v19 = vmul.bf16 %v11495_v27, %v11365_v56  ;;  %v14606_v38 = vld [vmem:[#allocation70_spill] sm:$0xff] }
  0xe9   : > { %v11517_v8 = vrot.slane %v2606_v9, %v14578_v13  ;;  %v2436_v17 = vrot.slane %v2366_v0, %v14578_v13  ;;  %3610 = vmatprep.mubr.bf16.mxu1 %v11481_v54  ;;  %v3525_v51 = vmul.bf16 %v11487_v39, %v11372_v11  ;;  %v2795_v57 = vmul.bf16 %v2597_v7, %v11301_v63  ;;  %v14607_v9 = vld [vmem:[#allocation74_spill] sm:$0xff] }
  0xea   : > { %2900 = vmatpush1.bf16.msra.mxu0 %v2793_v50  ;;  %vm524_vm1 = vcmp.eq.s32.totalorder %v14600_v25, %v14605_v34  ;;  %vm927_vm3 = vcmp.eq.s32.totalorder %v14600_v25, %v14606_v38  ;;  %v2798_v40 = vmul.bf16 %v2618_v28, %v11255_v3  ;;  %v3165_v22 = vrot.slane %v9218_v33, %v14579_v53 }
  0xeb   : > { %3591 = vmatpush1.bf16.msra.mxu1 %v3518_v36  ;;  %2901 = vmatprep.subr.bf16.mxu0 %v2796_v18  ;;  %v2627_v0 = vpack.i.b16 %v2440_v32, %v2440_v32  ;;  %v1140_v58 = vsel %vm927_vm3, %v14607_v9, 0.0  ;;  %v11532_v39 = vrot.slane %v3332_v46, %v14578_v13  ;;  %v11535_v7 = vrot.slane %v3325_v48, %v14578_v13  ;;  %v14609_v32 = vld [vmem:[#allocation71_spill] sm:$0xff] }
  0xec   : > { %3592 = vmatprep.subr.bf16.mxu1 %v3521_v49  ;;  %v3161_v50 = vrot.slane %v9218_v33, %v14578_v13  ;;  %v2800_v1 = vmul.bf16 %v2618_v28, %v11303_v14  ;;  %v2797_v36 = vmul.bf16 %v11517_v8, %v11249_v62  ;;  %v2620_v18 = vpack.i.b16 %v2436_v17, %v2436_v17  ;;  %v14610_v48 = vld [vmem:[#allocation75_spill] sm:$0xff] }
  0xed   : > { %v3099_v45 = vpack.i.b16 %v3081_v42, %v3081_v42  ;;  %v737_v49 = vsel %vm524_vm1, %v14608_v41, 0.0  ;;  %vm928_vm8 = vcmp.eq.s32.totalorder %v14600_v25, %v14609_v32  ;;  %v1194_v46 = vadd.f32 %v1140_v58, %v736_v44 }
  0xee   : > { %2902 = vmatpush1.bf16.msra.mxu0 %v2795_v57  ;;  %vm529_vm2 = vcmp.eq.s32.totalorder %v14600_v25, %v11261_v15  ;;  %vm530_vm9 = vcmp.eq.s32.totalorder %v14600_v25, %v11265_v23  ;;  %v3346_v28 = vpack.i.b16 %v3165_v22, %v3165_v22  ;;  %v2632_v33 = vrot.slane %v2627_v0, %v14578_v13 }
  0xef   : > { %3593 = vmatpush1.bf16.msra.mxu1 %v3520_v10  ;;  %2903 = vmatprep.subr.bf16.mxu0 %v2798_v40  ;;  %v1141_v17 = vsel %vm928_vm8, %v14610_v48, 0.0  ;;  %v742_v42 = vsel %vm529_vm2, %v11291_v37, 0.0  ;;  %v743_v55 = vsel %vm530_vm9, %v11295_v29, 0.0  ;;  %vm933_vm7 = vcmp.eq.s32.totalorder %v14600_v25, %v11299_v30 }
  0xf0   : > { %3594 = vmatprep.subr.bf16.mxu1 %v3523_v26  ;;  %v1195_v57 = vadd.f32 %v1141_v17, %v737_v49  ;;  %vm934_vm0 = vcmp.eq.s32.totalorder %v14600_v25, %v11309_v31  ;;  %v3339_v58 = vpack.i.b16 %v3161_v50, %v3161_v50  ;;  %v2799_v44 = vmul.bf16 %v11517_v8, %v11301_v63 }
  0xf1   : > { %v3173_v10 = vrot.slane %v3099_v45, %v14579_v53  ;;  %v1146_v40 = vsel %vm933_vm7, %v11317_v52, 0.0  ;;  %v2625_v26 = vrot.slane %v2620_v18, %v14578_v13  ;;  %v1147_v0 = vsel %vm934_vm0, %v11321_v43, 0.0 }
  0xf2   : > { %2904 = vmatpush1.bf16.msra.mxu0 %v2797_v36  ;;  %v9199_v22 = vpack.c.bf16 %v1195_v57, %v1194_v46  ;;  %v1200_v49 = vadd.f32 %v1146_v40, %v742_v42  ;;  %v3524_v17 = vmul.bf16 %v11495_v27, %v11387_v5  ;;  %v2802_v50 = vmul.bf16 %v2632_v33, %v11255_v3 }
  0xf3   : > { %3595 = vmatpush1.bf16.msra.mxu1 %v3522_v19  ;;  %2905 = vmatprep.subr.bf16.mxu0 %v2800_v1  ;;  %v1201_v21 = vadd.f32 %v1147_v0, %v743_v55  ;;  %v3527_v8 = vmul.bf16 %v11532_v39, %v11367_v20  ;;  %v3526_v36 = vmul.bf16 %v11535_v7, %v11365_v56  ;;  %vm2875_vm2 = vcmask 523264  }
  0xf4   : > { %3596 = vmatprep.subr.bf16.mxu1 %v3525_v51  ;;  %v11573_v18 = vrot.slane %v3346_v28, %v14578_v13  ;;  %v2291_v46 = vrot.slane %v9199_v22, %v14569_v4  ;;  %v11577_v19 = vrot.slane %v3339_v58, %v14578_v13  ;;  %v3360_v27 = vpack.i.b16 %v3173_v10, %v3173_v10 }
  0xf5   : > { %v3169_v1 = vrot.slane %v3099_v45, %v14578_v13  ;;  %v9213_v42 = vpack.c.bf16 %v1201_v21, %v1200_v49  ;;  %v3529_v55 = vmul.bf16 %v11532_v39, %v11372_v11  ;;  %v2801_v51 = vmul.bf16 %v2625_v26, %v11249_v62 }
  0xf6   : > { %2906 = vmatpush1.bf16.msra.mxu0 %v2799_v44  ;;  %v11584_v57 = vrot.slane %v2291_v46, %v14569_v4  ;;  %v2293_v28 = vcombine.high %v2291_v46, %v2291_v46  ;;  %v3528_v40 = vmul.bf16 %v11535_v7, %v11387_v5  ;;  %v2804_v58 = vmul.bf16 %v2632_v33, %v11303_v14 }
  0xf7   : > { %3597 = vmatpush1.bf16.msra.mxu1 %v3524_v17  ;;  %2907 = vmatprep.subr.bf16.mxu0 %v2802_v50  ;;  %v11590_v45 = vrot.slane %v9213_v42, %v14569_v4  ;;  %v3531_v21 = vmul.bf16 %v11573_v18, %v11367_v20  ;;  %v3530_v7 = vmul.bf16 %v11577_v19, %v11365_v56 }
  0xf8   : > { %3598 = vmatprep.subr.bf16.mxu1 %v3527_v8  ;;  %v9205_v39 = vpack.i.b16 %v11584_v57, %v11584_v57  ;;  %v2350_v44 = vunpack.i.h.s16 %v11584_v57  ;;  %v11598_v10 = vrot.slane %v2293_v28, %v14569_v4  ;;  %v11603_v33 = vrot.slane %v3360_v27, %v14578_v13 }
  0xf9   : > { %v3353_v22 = vpack.i.b16 %v3169_v1, %v3169_v1  ;;  %v11607_v0 = vrot.slane %v11590_v45, %v14569_v4  ;;  %v2803_v49 = vmul.bf16 %v2625_v26, %v11301_v63  ;;  %v3533_v46 = vmul.bf16 %v11573_v18, %v11372_v11 }
  0xfa   : > { %2908 = vmatpush1.bf16.msra.mxu0 %v2801_v51  ;;  %v2448_v17 = vrot.slane %v9205_v39, %v14579_v53  ;;  %v2444_v50 = vrot.slane %v9205_v39, %v14578_v13  ;;  %v2368_v8 = vpack.i.b16 %v2350_v44, %v2350_v44  ;;  %v9206_v1 = vpack.i.b16 %v11598_v10, %v11598_v10 }
  0xfb   : > { %3599 = vmatpush1.bf16.msra.mxu1 %v3526_v36  ;;  %2909 = vmatprep.subr.bf16.mxu0 %v2804_v58  ;;  %v9219_v27 = vpack.i.b16 %v11607_v0, %v11607_v0  ;;  %v3532_v36 = vmul.bf16 %v11577_v19, %v11387_v5  ;;  %v3535_v18 = vmul.bf16 %v11603_v33, %v11367_v20  ;;  %v2352_v39 = vunpack.i.h.s16 %v11598_v10 }
  0xfc   : > { %3600 = vmatprep.subr.bf16.mxu1 %v3529_v55  ;;  %v2641_v42 = vpack.i.b16 %v2448_v17, %v2448_v17  ;;  %v2634_v51 = vpack.i.b16 %v2444_v50, %v2444_v50  ;;  %v2456_v26 = vrot.slane %v2368_v8, %v14579_v53  ;;  %v2452_v28 = vrot.slane %v2368_v8, %v14578_v13 }
  0xfd   : > { %v11625_v58 = vrot.slane %v3353_v22, %v14578_v13  ;;  %v3083_v50 = vunpack.i.h.s16 %v11607_v0  ;;  %v3181_v19 = vrot.slane %v9219_v27, %v14579_v53  ;;  %v11635_v59 = vcombine.high %v11492_v24, %v11492_v24  ;;  %v14612_v22 = vld [vmem:[#allocation8_spill] sm:$0xff] }
  0xfe   : > { %2910 = vmatpush1.bf16.msra.mxu0 %v2803_v49  ;;  %v2646_v55 = vrot.slane %v2641_v42, %v14578_v13  ;;  %v2639_v44 = vrot.slane %v2634_v51, %v14578_v13  ;;  %v2655_v17 = vpack.i.b16 %v2456_v26, %v2456_v26  ;;  %v2648_v8 = vpack.i.b16 %v2452_v28, %v2452_v28 }
  0xff   : > { %3601 = vmatpush1.bf16.msra.mxu1 %v3528_v40  ;;  %14611 = vst [vmem:[#allocation44_spill] sm:$0xff] %v11635_v59  ;;  %vm525_vm15 = vcmp.eq.s32.totalorder %v14612_v22, %v14599_v47  ;;  %v2464_v26 = vrot.slane %v9206_v1, %v14579_v53  ;;  %vm526_vm4 = vcmp.eq.s32.totalorder %v14612_v22, %v14605_v34 }
 0x100   : > { %3602 = vmatprep.subr.bf16.mxu1 %v3531_v21  ;;  %v2806_v49 = vmul.bf16 %v2646_v55, %v11255_v3  ;;  %v2805_v42 = vmul.bf16 %v2639_v44, %v11249_v62  ;;  %v2808_v51 = vmul.bf16 %v2646_v55, %v11303_v14  ;;  %v2660_v40 = vrot.slane %v2655_v17, %v14578_v13 }
 0x101   : > { %2912 = vmatmul.mubr.bf16.vlgmr.msra.gmra.mrb[0].mxu0 %v11455_v35  ;;  %vm929_vm5 = vcmp.eq.s32.totalorder %v14612_v22, %v14606_v38  ;;  %vm930_vm6 = vcmp.eq.s32.totalorder %v14612_v22, %v14609_v32  ;;  %v3177_v21 = vrot.slane %v9219_v27, %v14578_v13  ;;  %v3101_v28 = vpack.i.b16 %v3083_v50, %v3083_v50 }
 0x102   : > { %2920 = vmatprep.subr.bf16.mxu0 %v2806_v49  ;;  %v3026_v55 = vcombine.high %v11590_v45, %v11590_v45  ;;  %v2807_v17 = vmul.bf16 %v2639_v44, %v11301_v63  ;;  %v2653_v25 = vrot.slane %v2648_v8, %v14578_v13  ;;  %v2460_v54 = vrot.slane %v9206_v1, %v14578_v13 }
 0x103   : > { %3603 = vmatpush1.bf16.msra.mxu1 %v3530_v7  ;;  %2921 = vmatpush1.bf16.msra.mxu0 %v2805_v42  ;;  %v738_v49 = vsel %vm525_vm15, %v14604_v16, 0.0  ;;  %v3374_v27 = vpack.i.b16 %v3181_v19, %v3181_v19  ;;  %v2810_v45 = vmul.bf16 %v2660_v40, %v11255_v3  ;;  %v2669_v50 = vpack.i.b16 %v2464_v26, %v2464_v26 }
 0x104   : > { %3604 = vmatprep.subr.bf16.mxu1 %v3533_v46  ;;  %2922 = vmatprep.subr.bf16.mxu0 %v2808_v51  ;;  %v1142_v7 = vsel %vm929_vm5, %v14607_v9, 0.0  ;;  %v3534_v44 = vmul.bf16 %v11625_v58, %v11365_v56  ;;  %v3536_v1 = vmul.bf16 %v11625_v58, %v11387_v5  ;;  %v739_v47 = vsel %vm526_vm4, %v14608_v41, 0.0 }
 0x105   : > { %2952 = vmatprep.mubr.bf16.mxu0 %v11635_v59  ;;  %v1143_v16 = vsel %vm930_vm6, %v14610_v48, 0.0  ;;  %v3367_v38 = vpack.i.b16 %v3177_v21, %v3177_v21  ;;  %v3189_v9 = vrot.slane %v3101_v28, %v14579_v53  ;;  %v11682_v46 = vrot.slane %v3026_v55, %v14569_v4 }
 0x106   : > { %v2370_v19 = vpack.i.b16 %v2352_v39, %v2352_v39  ;;  %v2809_v58 = vmul.bf16 %v2653_v25, %v11249_v62  ;;  %v2662_v8 = vpack.i.b16 %v2460_v54, %v2460_v54  ;;  %v11685_v42 = vadd.f32 %v1142_v7, %v738_v49 }
 0x107   : > { %3605 = vmatpush1.bf16.msra.mxu1 %v3532_v36  ;;  %2923 = vmatpush1.bf16.msra.mxu0 %v2807_v17  ;;  %v3379_v41 = vrot.slane %v3374_v27, %v14578_v13  ;;  %v2812_v34 = vmul.bf16 %v2660_v40, %v11303_v14  ;;  %v2674_v32 = vrot.slane %v2669_v50, %v14578_v13  ;;  %v3085_v21 = vunpack.i.h.s16 %v11682_v46 }
 0x108   : > { %3606 = vmatprep.subr.bf16.mxu1 %v3535_v18  ;;  %2924 = vmatprep.subr.bf16.mxu0 %v2810_v45  ;;  %v3185_v48 = vrot.slane %v3101_v28, %v14578_v13  ;;  %v2472_v51 = vrot.slane %v2370_v19, %v14579_v53  ;;  %v2323_v36 = vcombine.high %v11584_v57, %v11584_v57 }
 0x109   : > { %v11694_v39 = vadd.f32 %v1143_v16, %v739_v47  ;;  %v3372_v54 = vrot.slane %v3367_v38, %v14578_v13  ;;  %v3388_v26 = vpack.i.b16 %v3189_v9, %v3189_v9  ;;  %v9220_v18 = vpack.i.b16 %v11682_v46, %v11682_v46 }
 0x10a   : > { %v2811_v40 = vmul.bf16 %v2653_v25, %v11301_v63  ;;  %v2667_v28 = vrot.slane %v2662_v8, %v14578_v13  ;;  %v2468_v55 = vrot.slane %v2370_v19, %v14578_v13  ;;  %v14613_v57 = vmul.bf16 %v11603_v33, %v11372_v11 }
 0x10b   : > { %3607 = vmatpush1.bf16.msra.mxu1 %v3534_v44  ;;  %2925 = vmatpush1.bf16.msra.mxu0 %v2809_v58  ;;  %v3539_v17 = vmul.bf16 %v3379_v41, %v11367_v20  ;;  %v2814_v49 = vmul.bf16 %v2674_v32, %v11255_v3  ;;  %v2683_v27 = vpack.i.b16 %v2472_v51, %v2472_v51  ;;  %v2354_v8 = vunpack.i.h.s16 %v2323_v36 }
 0x10c   : > { %3608 = vmatprep.subr.bf16.mxu1 %v14613_v57  ;;  %2926 = vmatprep.subr.bf16.mxu0 %v2812_v34  ;;  %v3381_v45 = vpack.i.b16 %v3185_v48, %v3185_v48  ;;  %v9200_v50 = vpack.c.bf16 %v11694_v39, %v11685_v42  ;;  %v11711_v25 = vrot.slane %v3388_v26, %v14578_v13 }
 0x10d   : > { %v3197_v7 = vrot.slane %v9220_v18, %v14579_v53  ;;  %v3103_v44 = vpack.i.b16 %v3085_v21, %v3085_v21  ;;  %v9207_v47 = vpack.i.b16 %v2323_v36, %v2323_v36  ;;  %v3538_v33 = vmul.bf16 %v3372_v54, %v11365_v56 }
 0x10e   : > { %v2813_v16 = vmul.bf16 %v2667_v28, %v11249_v62  ;;  %v2676_v38 = vpack.i.b16 %v2468_v55, %v2468_v55  ;;  %v3541_v9 = vmul.bf16 %v3379_v41, %v11372_v11  ;;  %v2816_v19 = vmul.bf16 %v2674_v32, %v11303_v14 }
 0x10f   : > { %3609 = vmatpush1.bf16.msra.mxu1 %v3536_v1  ;;  %2927 = vmatpush1.bf16.msra.mxu0 %v2811_v40  ;;  %v2688_v58 = vrot.slane %v2683_v27, %v14578_v13  ;;  %v3540_v34 = vmul.bf16 %v3372_v54, %v11387_v5  ;;  %v11721_v48 = vrot.slane %v3381_v45, %v14578_v13 }
 0x110   : > { %3619 = vmatprep.subr.bf16.mxu1 %v3539_v17  ;;  %2928 = vmatprep.subr.bf16.mxu0 %v2814_v49  ;;  %v3193_v1 = vrot.slane %v9220_v18, %v14578_v13  ;;  %v3056_v51 = vcombine.high %v11607_v0, %v11607_v0  ;;  %v3543_v41 = vmul.bf16 %v11711_v25, %v11367_v20 }
 0x111   : > { %v3402_v26 = vpack.i.b16 %v3197_v7, %v3197_v7  ;;  %v3205_v32 = vrot.slane %v3103_v44, %v14579_v53  ;;  %v2480_v36 = vrot.slane %v9207_v47, %v14579_v53  ;;  %v2815_v54 = vmul.bf16 %v2667_v28, %v11301_v63 }
 0x112   : > { %3611 = vmatmul.mubr.bf16.vlgmr.msra.gmra.mrb[0].mxu1 %v11455_v35  ;;  %v2681_v21 = vrot.slane %v2676_v38, %v14578_v13  ;;  %v2476_v18 = vrot.slane %v9207_v47, %v14578_v13  ;;  %v2818_v0 = vmul.bf16 %v2688_v58, %v11255_v3  ;;  %v2372_v55 = vpack.i.b16 %v2354_v8, %v2354_v8 }
 0x113   : > { %3620 = vmatpush1.bf16.msra.mxu1 %v3538_v33  ;;  %2929 = vmatpush1.bf16.msra.mxu0 %v2813_v16  ;;  %v2697_v40 = vpack.i.b16 %v2480_v36, %v2480_v36  ;;  %v3542_v57 = vmul.bf16 %v11721_v48, %v11365_v56  ;;  %v3395_v17 = vpack.i.b16 %v3193_v1, %v3193_v1  ;;  %v3087_v27 = vunpack.i.h.s16 %v3056_v51 }
 0x114   : > { %3621 = vmatprep.subr.bf16.mxu1 %v3541_v9  ;;  %2930 = vmatprep.subr.bf16.mxu0 %v2816_v19  ;;  %v9221_v49 = vpack.i.b16 %v3056_v51, %v3056_v51  ;;  %v3545_v28 = vmul.bf16 %v11711_v25, %v11372_v11  ;;  %v11741_v45 = vrot.slane %v3402_v26, %v14578_v13 }
 0x115   : > { %3651 = vmatprep.mubr.bf16.mxu1 %v11635_v59  ;;  %v3416_v7 = vpack.i.b16 %v3205_v32, %v3205_v32  ;;  %v3201_v47 = vrot.slane %v3103_v44, %v14578_v13  ;;  %v2817_v33 = vmul.bf16 %v2681_v21, %v11249_v62  ;;  %v2690_v16 = vpack.i.b16 %v2476_v18, %v2476_v18 }
 0x116   : > { %v2325_v38 = vcombine.high %v11598_v10, %v11598_v10  ;;  %v2820_v9 = vmul.bf16 %v2688_v58, %v11303_v14  ;;  %v2702_v25 = vrot.slane %v2697_v40, %v14578_v13  ;;  %v2488_v19 = vrot.slane %v2372_v55, %v14579_v53 }
 0x117   : > { %3622 = vmatpush1.bf16.msra.mxu1 %v3540_v34  ;;  %2931 = vmatpush1.bf16.msra.mxu0 %v2815_v54  ;;  %v11751_v8 = vrot.slane %v3395_v17, %v14578_v13  ;;  %v3213_v44 = vrot.slane %v9221_v49, %v14579_v53  ;;  %v3209_v34 = vrot.slane %v9221_v49, %v14578_v13 }
 0x118   : > { %3623 = vmatprep.subr.bf16.mxu1 %v3543_v41  ;;  %2932 = vmatprep.subr.bf16.mxu0 %v2818_v0  ;;  %v3105_v1 = vpack.i.b16 %v3087_v27, %v3087_v27  ;;  %v3544_v51 = vmul.bf16 %v11721_v48, %v11387_v5  ;;  %v3547_v10 = vmul.bf16 %v11741_v45, %v11367_v20 }
 0x119   : > { %v3409_v41 = vpack.i.b16 %v3201_v47, %v3201_v47  ;;  %v2819_v58 = vmul.bf16 %v2681_v21, %v11301_v63  ;;  %v2695_v26 = vrot.slane %v2690_v16, %v14578_v13  ;;  %v2484_v32 = vrot.slane %v2372_v55, %v14578_v13 }
 0x11a   : > { %v9208_v36 = vpack.i.b16 %v2325_v38, %v2325_v38  ;;  %v11763_v54 = vrot.slane %v3416_v7, %v14578_v13  ;;  %v2822_v48 = vmul.bf16 %v2702_v25, %v11255_v3  ;;  %v2711_v18 = vpack.i.b16 %v2488_v19, %v2488_v19 }
 0x11b   : > { %3624 = vmatpush1.bf16.msra.mxu1 %v3542_v57  ;;  %2933 = vmatpush1.bf16.msra.mxu0 %v2817_v33  ;;  %v3546_v0 = vmul.bf16 %v11751_v8, %v11365_v56  ;;  %v3430_v40 = vpack.i.b16 %v3213_v44, %v3213_v44  ;;  %v3423_v21 = vpack.i.b16 %v3209_v34, %v3209_v34 }
 0x11c   : > { %3625 = vmatprep.subr.bf16.mxu1 %v3545_v28  ;;  %2934 = vmatprep.subr.bf16.mxu0 %v2820_v9  ;;  %v3221_v57 = vrot.slane %v3105_v1, %v14579_v53  ;;  %v3549_v17 = vmul.bf16 %v11741_v45, %v11372_v11  ;;  %v3548_v55 = vmul.bf16 %v11751_v8, %v11387_v5  ;;  %v2356_v9 = vunpack.i.h.s16 %v2325_v38 }
 0x11d   : > { %v11774_v49 = vrot.slane %v3409_v41, %v14578_v13  ;;  %v3217_v27 = vrot.slane %v3105_v1, %v14578_v13  ;;  %v2821_v28 = vmul.bf16 %v2695_v26, %v11249_v62  ;;  %v2704_v7 = vpack.i.b16 %v2484_v32, %v2484_v32 }
 0x11e   : > { %v2496_v47 = vrot.slane %v9208_v36, %v14579_v53  ;;  %v3551_v33 = vmul.bf16 %v11763_v54, %v11367_v20  ;;  %v2824_v45 = vmul.bf16 %v2702_v25, %v11303_v14  ;;  %v2716_v16 = vrot.slane %v2711_v18, %v14578_v13 }
 0x11f   : > { %3626 = vmatpush1.bf16.msra.mxu1 %v3544_v51  ;;  %2935 = vmatpush1.bf16.msra.mxu0 %v2819_v58  ;;  %v11784_v19 = vrot.slane %v3430_v40, %v14578_v13  ;;  %v11787_v8 = vrot.slane %v3423_v21, %v14578_v13  ;;  %v3444_v44 = vpack.i.b16 %v3221_v57, %v3221_v57 }
 0x120   : > { %3627 = vmatprep.subr.bf16.mxu1 %v3547_v10  ;;  %2936 = vmatprep.subr.bf16.mxu0 %v2822_v48  ;;  %v3058_v34 = vcombine.high %v11682_v46, %v11682_v46  ;;  %vm531_vm11 = vcmp.eq.s32.totalorder %v14612_v22, %v11261_v15  ;;  %v3550_v1 = vmul.bf16 %v11774_v49, %v11365_v56 }
 0x121   : > { %v3553_v25 = vmul.bf16 %v11763_v54, %v11372_v11  ;;  %v3437_v38 = vpack.i.b16 %v3217_v27, %v3217_v27  ;;  %v2492_v51 = vrot.slane %v9208_v36, %v14578_v13  ;;  %v2823_v10 = vmul.bf16 %v2695_v26, %v11301_v63 }
 0x122   : > { %v2709_v41 = vrot.slane %v2704_v7, %v14578_v13  ;;  %v2725_v58 = vpack.i.b16 %v2496_v47, %v2496_v47  ;;  %v3552_v46 = vmul.bf16 %v11774_v49, %v11387_v5  ;;  %v2826_v32 = vmul.bf16 %v2716_v16, %v11255_v3 }
 0x123   : > { %3628 = vmatpush1.bf16.msra.mxu1 %v3546_v0  ;;  %2937 = vmatpush1.bf16.msra.mxu0 %v2821_v28  ;;  %v2374_v48 = vpack.i.b16 %v2356_v9, %v2356_v9  ;;  %v3555_v54 = vmul.bf16 %v11784_v19, %v11367_v20  ;;  %v3554_v36 = vmul.bf16 %v11787_v8, %v11365_v56  ;;  %v3089_v57 = vunpack.i.h.s16 %v3058_v34 }
 0x124   : > { %3629 = vmatprep.subr.bf16.mxu1 %v3549_v17  ;;  %2938 = vmatprep.subr.bf16.mxu0 %v2824_v45  ;;  %v11808_v18 = vrot.slane %v3444_v44, %v14578_v13  ;;  %v9222_v26 = vpack.i.b16 %v3058_v34, %v3058_v34  ;;  %v3557_v0 = vmul.bf16 %v11784_v19, %v11372_v11 }
 0x125   : > { %v11813_v40 = vrot.slane %v3437_v38, %v14578_v13  ;;  %v2718_v21 = vpack.i.b16 %v2492_v51, %v2492_v51  ;;  %v2825_v17 = vmul.bf16 %v2709_v41, %v11249_v62  ;;  %v2730_v49 = vrot.slane %v2725_v58, %v14578_v13 }
 0x126   : > { %v2333_v27 = vrot.slane %v9200_v50, %v14569_v4  ;;  %v3556_v28 = vmul.bf16 %v11787_v8, %v11387_v5  ;;  %v2828_v7 = vmul.bf16 %v2716_v16, %v11303_v14  ;;  %v2504_v47 = vrot.slane %v2374_v48, %v14579_v53 }
 0x127   : > { %3630 = vmatpush1.bf16.msra.mxu1 %v3548_v55  ;;  %2939 = vmatpush1.bf16.msra.mxu0 %v2823_v10  ;;  %v3559_v55 = vmul.bf16 %v11808_v18, %v11367_v20  ;;  %v2827_v45 = vmul.bf16 %v2709_v41, %v11301_v63  ;;  %v3229_v9 = vrot.slane %v9222_v26, %v14579_v53  ;;  %v744_v51 = vsel %vm531_vm11, %v11291_v37, 0.0 }
 0x128   : > { %3631 = vmatprep.subr.bf16.mxu1 %v3551_v33  ;;  %2940 = vmatprep.subr.bf16.mxu0 %v2826_v32  ;;  %v3225_v44 = vrot.slane %v9222_v26, %v14578_v13  ;;  %v3558_v42 = vmul.bf16 %v11813_v40, %v11365_v56  ;;  %v2723_v39 = vrot.slane %v2718_v21, %v14578_v13 }
 0x129   : > { %v2500_v50 = vrot.slane %v2374_v48, %v14578_v13  ;;  %v3107_v33 = vpack.i.b16 %v3089_v57, %v3089_v57  ;;  %v2830_v16 = vmul.bf16 %v2730_v49, %v11255_v3  ;;  %v2340_v34 = vrot.slane %v2333_v27, %v14569_v4 }
 0x12a   : > { %vm532_vm10 = vcmp.eq.s32.totalorder %v14612_v22, %v11265_v23  ;;  %v2739_v38 = vpack.i.b16 %v2504_v47, %v2504_v47  ;;  %vm935_vm12 = vcmp.eq.s32.totalorder %v14612_v22, %v11299_v30  ;;  %vm936_vm13 = vcmp.eq.s32.totalorder %v14612_v22, %v11309_v31  ;;  %v14614_v47 = vld [vmem:[#allocation63_spill] sm:$0xff] }
 0x12b   : > { %3632 = vmatpush1.bf16.msra.mxu1 %v3550_v1  ;;  %2941 = vmatpush1.bf16.msra.mxu0 %v2825_v17  ;;  %v3458_v1 = vpack.i.b16 %v3229_v9, %v3229_v9  ;;  %v3451_v10 = vpack.i.b16 %v3225_v44, %v3225_v44  ;;  %v9209_v41 = vpack.i.b16 %v2340_v34, %v2340_v34  ;;  %v745_v58 = vsel %vm532_vm10, %v11295_v29, 0.0 }
 0x12c   : > { %3633 = vmatprep.subr.bf16.mxu1 %v3553_v25  ;;  %2942 = vmatprep.subr.bf16.mxu0 %v2828_v7  ;;  %v2732_v23 = vpack.i.b16 %v2500_v50, %v2500_v50  ;;  %v2358_v25 = vunpack.i.h.s16 %v2340_v34  ;;  %v1148_v32 = vsel %vm935_vm12, %v11317_v52, 0.0  ;;  %v1149_v48 = vsel %vm936_vm13, %v11321_v43, 0.0 }
 0x12d   : > { %v2829_v15 = vmul.bf16 %v2723_v39, %v11249_v62  ;;  %v2832_v37 = vmul.bf16 %v2730_v49, %v11303_v14  ;;  %v2512_v30 = vrot.slane %v9209_v41, %v14579_v53  ;;  %v2744_v31 = vrot.slane %v2739_v38, %v14578_v13 }
 0x12e   : > { %v1202_v26 = vadd.f32 %v1148_v32, %v744_v51  ;;  %v1203_v29 = vadd.f32 %v1149_v48, %v745_v58  ;;  %v3561_v21 = vmul.bf16 %v11808_v18, %v11372_v11  ;;  %v3560_v52 = vmul.bf16 %v11813_v40, %v11387_v5  ;;  %v14615_v51 = vld [vmem:[#allocation66_spill] sm:$0xff] }
 0x12f   : > { %3634 = vmatpush1.bf16.msra.mxu1 %v3552_v46  ;;  %2943 = vmatpush1.bf16.msra.mxu0 %v2827_v45  ;;  %v11858_v43 = vrot.slane %v3458_v1, %v14578_v13  ;;  %v2508_v46 = vrot.slane %v9209_v41, %v14578_v13  ;;  %v11862_v57 = vrot.slane %v3451_v10, %v14578_v13  ;;  %v14616_v41 = vld [vmem:[#allocation65_spill] sm:$0xff] }
 0x130   : > { %3635 = vmatprep.subr.bf16.mxu1 %v3555_v54  ;;  %2944 = vmatprep.subr.bf16.mxu0 %v2830_v16  ;;  %v2737_v54 = vrot.slane %v2732_v23, %v14578_v13  ;;  %v2376_v17 = vpack.i.b16 %v2358_v25, %v2358_v25  ;;  %v9214_v49 = vpack.c.bf16 %v1203_v29, %v1202_v26 }
 0x131   : > { %v2831_v27 = vmul.bf16 %v2723_v39, %v11301_v63  ;;  %v2753_v7 = vpack.i.b16 %v2512_v30, %v2512_v30  ;;  %v430_v45 = vcombine.high %v14614_v47, %v14614_v47  ;;  %v2834_v9 = vmul.bf16 %v2744_v31, %v11255_v3  ;;  %v14617_v30 = vld [vmem:[#allocation68_spill] sm:$0xff] }
 0x132   : > { %v3237_v44 = vrot.slane %v3107_v33, %v14579_v53  ;;  %v3066_v50 = vrot.slane %v9214_v49, %v14569_v4  ;;  %v3565_v39 = vmul.bf16 %v11858_v43, %v11372_v11  ;;  %v3233_v16 = vrot.slane %v3107_v33, %v14578_v13 }
 0x133   : > { %3636 = vmatpush1.bf16.msra.mxu1 %v3554_v36  ;;  %2945 = vmatpush1.bf16.msra.mxu0 %v2829_v15  ;;  %v3563_v36 = vmul.bf16 %v11858_v43, %v11367_v20  ;;  %v2746_v34 = vpack.i.b16 %v2508_v46, %v2508_v46  ;;  %v3562_v19 = vmul.bf16 %v11862_v57, %v11365_v56 }
 0x134   : > { %3637 = vmatprep.subr.bf16.mxu1 %v3557_v0  ;;  %2946 = vmatprep.subr.bf16.mxu0 %v2832_v37  ;;  %v2833_v0 = vmul.bf16 %v2737_v54, %v11249_v62  ;;  %v2520_v38 = vrot.slane %v2376_v17, %v14579_v53  ;;  %v625_v1 = vcombine.high %v14615_v51, %v14615_v51 }
 0x135   : > { %v2758_v10 = vrot.slane %v2753_v7, %v14578_v13  ;;  %v11890_v33 = vrot.slane %v430_v45, %v14578_v13  ;;  %v834_v58 = vcombine.high %v14616_v41, %v14616_v41  ;;  %v3472_v23 = vpack.i.b16 %v3237_v44, %v3237_v44 }
 0x136   : > { %v2836_v25 = vmul.bf16 %v2744_v31, %v11303_v14  ;;  %v3073_v8 = vrot.slane %v3066_v50, %v14569_v4  ;;  %v2751_v32 = vrot.slane %v2746_v34, %v14578_v13  ;;  %v2516_v48 = vrot.slane %v2376_v17, %v14578_v13 }
 0x137   : > { %3638 = vmatpush1.bf16.msra.mxu1 %v3556_v28  ;;  %2947 = vmatpush1.bf16.msra.mxu0 %v2831_v27  ;;  %v2835_v28 = vmul.bf16 %v2737_v54, %v11301_v63  ;;  %v11903_v15 = vrot.slane %v430_v45, %v14579_v53  ;;  %v11906_v37 = vrot.slane %v625_v1, %v14578_v13 }
 0x138   : > { %3639 = vmatprep.subr.bf16.mxu1 %v3559_v55  ;;  %2948 = vmatprep.subr.bf16.mxu0 %v2834_v9  ;;  %v11909_v18 = vrot.slane %v834_v58, %v14578_v13  ;;  %v11912_v55 = vrot.slane %v834_v58, %v14579_v53  ;;  %v1029_v31 = vcombine.high %v14617_v30, %v14617_v30  ;;  %v3091_v50 = vunpack.i.h.s16 %v3073_v8 }
 0x139   : > { %v2838_v26 = vmul.bf16 %v2758_v10, %v11255_v3  ;;  %v2767_v29 = vpack.i.b16 %v2520_v38, %v2520_v38  ;;  %vm533_vm14 = vcmp.eq.s32.totalorder %v14584_v12, %v11890_v33  ;;  %v9223_v46 = vpack.i.b16 %v3073_v8, %v3073_v8 }
 0x13a   : > { %v11923_v54 = vrot.slane %v625_v1, %v14579_v53  ;;  %vm937_vm1 = vcmp.eq.s32.totalorder %v14584_v12, %v11909_v18  ;;  %v3465_v17 = vpack.i.b16 %v3233_v16, %v3233_v16  ;;  %vm534_vm3 = vcmp.eq.s32.totalorder %v14584_v12, %v11903_v15 }
 0x13b   : > { %3640 = vmatpush1.bf16.msra.mxu1 %v3558_v42  ;;  %2949 = vmatpush1.bf16.msra.mxu0 %v2833_v0  ;;  %vm938_vm8 = vcmp.eq.s32.totalorder %v14584_v12, %v11912_v55  ;;  %v11932_v40 = vrot.slane %v1029_v31, %v14578_v13  ;;  %v3477_v42 = vrot.slane %v3472_v23, %v14578_v13  ;;  %v746_v49 = vsel %vm533_vm14, %v11906_v37, 0.0 }
 0x13c   : > { %3641 = vmatprep.subr.bf16.mxu1 %v3561_v21  ;;  %2950 = vmatprep.subr.bf16.mxu0 %v2836_v25  ;;  %v2760_v21 = vpack.i.b16 %v2516_v48, %v2516_v48  ;;  %v11937_v27 = vrot.slane %v1029_v31, %v14579_v53  ;;  %v2837_v7 = vmul.bf16 %v2751_v32, %v11249_v62  ;;  %v747_v16 = vsel %vm534_vm3, %v11923_v54, 0.0 }
 0x13d   : > { %v2840_v47 = vmul.bf16 %v2758_v10, %v11303_v14  ;;  %v2772_v45 = vrot.slane %v2767_v29, %v14578_v13  ;;  %v1150_v9 = vsel %vm937_vm1, %v11932_v40, 0.0  ;;  %v3245_v44 = vrot.slane %v9223_v46, %v14579_v53 }
 0x13e   : > { %v1204_v34 = vadd.f32 %v1150_v9, %v746_v49  ;;  %v3564_v0 = vmul.bf16 %v11862_v57, %v11387_v5  ;;  %v3470_v38 = vrot.slane %v3465_v17, %v14578_v13  ;;  %v3241_v51 = vrot.slane %v9223_v46, %v14578_v13 }
 0x13f   : > { %3642 = vmatpush1.bf16.msra.mxu1 %v3560_v52  ;;  %2951 = vmatpush1.bf16.msra.mxu0 %v2835_v28  ;;  %v1151_v52 = vsel %vm938_vm8, %v11937_v27, 0.0  ;;  %v2839_v1 = vmul.bf16 %v2751_v32, %v11301_v63  ;;  %v2765_v10 = vrot.slane %v2760_v21, %v14578_v13  ;;  %v2842_v57 = vmul.bf16 %v2772_v45, %v11255_v3 }
 0x140   : > { %3643 = vmatprep.subr.bf16.mxu1 %v3563_v36  ;;  %2961 = vmatprep.subr.bf16.mxu0 %v2838_v26  ;;  %v3567_v36 = vmul.bf16 %v3477_v42, %v11367_v20  ;;  %v1205_v41 = vadd.f32 %v1151_v52, %v747_v16  ;;  %v3486_v58 = vpack.i.b16 %v3245_v44, %v3245_v44  ;;  %v14241_v25 = vmov 0   ;;  %v11992_v16 = vld.sshfl [vmem:[%s11431_s7 + $0x8] sm:$0x3 pattern:$0x76325410] }
 0x141   : > { %v3109_v23 = vpack.i.b16 %v3091_v50, %v3091_v50  ;;  %v3479_v28 = vpack.i.b16 %v3241_v51, %v3241_v51  ;;  %v3566_v32 = vmul.bf16 %v3470_v38, %v11365_v56  ;;  %v2841_v48 = vmul.bf16 %v2765_v10, %v11249_v62 }
 0x142   : > { %2953 = vmatmul.mubr.bf16.vlgmr.msra.gmra.mrb[0].mxu0 %v11492_v24  ;;  %v9230_v8 = vpack.c.bf16 %v1205_v41, %v1204_v34  ;;  %v2844_v3 = vmul.bf16 %v2772_v45, %v11303_v14  ;;  %v3568_v46 = vmul.bf16 %v3470_v38, %v11387_v5  ;;  %v2843_v17 = vmul.bf16 %v2765_v10, %v11301_v63 }
 0x143   : > { %3644 = vmatpush1.bf16.msra.mxu1 %v3562_v19  ;;  %2962 = vmatpush1.bf16.msra.mxu0 %v2837_v7  ;;  %v3569_v19 = vmul.bf16 %v3477_v42, %v11372_v11  ;;  %v3253_v30 = vrot.slane %v3109_v23, %v14579_v53  ;;  %v3249_v31 = vrot.slane %v3109_v23, %v14578_v13  ;;  %vm3709_vm1 = vcmask 1041408  }
 0x144   : > { %3645 = vmatprep.subr.bf16.mxu1 %v3565_v39  ;;  %2963 = vmatprep.subr.bf16.mxu0 %v2840_v47  ;;  %v3819_v43 = vrot.slane %v9230_v8, %v14569_v4  ;;  %v3491_v39 = vrot.slane %v3486_v58, %v14578_v13  ;;  %v3484_v62 = vrot.slane %v3479_v28, %v14578_v13  ;;  %vm3705_vm3 = vcmask 31744  }
 0x145   : > { %2993 = vmatprep.mubr.bf16.mxu0 %v14241_v25  ;;  %v3500_v7 = vpack.i.b16 %v3253_v30, %v3253_v30  ;;  %v3493_v47 = vpack.i.b16 %v3249_v31, %v3249_v31  ;;  %vm537_vm4 = vcmp.eq.s32.totalorder %v14612_v22, %v11890_v33  ;;  %vm538_vm5 = vcmp.eq.s32.totalorder %v14612_v22, %v11903_v15 }
 0x146   : > { %v11974_v26 = vrot.slane %v3819_v43, %v14569_v4  ;;  %v3827_v29 = vcombine.high %v3819_v43, %v3819_v43  ;;  %v3571_v49 = vmul.bf16 %v3491_v39, %v11367_v20  ;;  %v3570_v44 = vmul.bf16 %v3484_v62, %v11365_v56 }
 0x147   : > { %3646 = vmatpush1.bf16.msra.mxu1 %v3564_v0  ;;  %2964 = vmatpush1.bf16.msra.mxu0 %v2839_v1  ;;  %v3505_v38 = vrot.slane %v3500_v7, %v14578_v13  ;;  %v3498_v1 = vrot.slane %v3493_v47, %v14578_v13  ;;  %v3572_v58 = vmul.bf16 %v3484_v62, %v11387_v5 }
 0x148   : > { %3647 = vmatprep.subr.bf16.mxu1 %v3567_v36  ;;  %2965 = vmatprep.subr.bf16.mxu0 %v2842_v57  ;;  %v9233_v14 = vpack.i.b16 %v11974_v26, %v11974_v26  ;;  %v3877_v42 = vunpack.i.h.s16 %v11974_v26  ;;  %v11983_v21 = vrot.slane %v3827_v29, %v14569_v4  ;;  %v3573_v36 = vmul.bf16 %v3491_v39, %v11372_v11 }
 0x149   : > { %v3575_v43 = vmul.bf16 %v3505_v38, %v11367_v20  ;;  %v3574_v39 = vmul.bf16 %v3498_v1, %v11365_v56  ;;  %v3577_v20 = vmul.bf16 %v3505_v38, %v11372_v11  ;;  %v3576_v56 = vmul.bf16 %v3498_v1, %v11387_v5  ;;  %v14619_v1 = vld [vmem:[#allocation7_spill] sm:$0xff] }
 0x14a   : > { %v3919_v45 = vrot.slane %v9233_v14, %v14579_v53  ;;  %v3915_v9 = vrot.slane %v9233_v14, %v14578_v13  ;;  %v3895_v63 = vpack.i.b16 %v3877_v42, %v3877_v42  ;;  %v9234_v50 = vpack.i.b16 %v11983_v21, %v11983_v21  ;;  %v14618_v14 = vld [vmem:[#allocation42_spill] sm:$0xff] }
 0x14b   : > { %3648 = vmatpush1.bf16.msra.mxu1 %v3566_v32  ;;  %2966 = vmatpush1.bf16.msra.mxu0 %v2841_v48  ;;  %v3879_v48 = vunpack.i.h.s16 %v11983_v21  ;;  %v3857_v7 = vcombine.high %v11974_v26, %v11974_v26  ;;  %vm535_vm9 = vcmp.eq.s32.totalorder %v14619_v1, %v11890_v33  ;;  %vm536_vm7 = vcmp.eq.s32.totalorder %v14619_v1, %v11903_v15 }
 0x14c   : > { %3649 = vmatprep.subr.bf16.mxu1 %v3569_v19  ;;  %2967 = vmatprep.subr.bf16.mxu0 %v2844_v3  ;;  %v4064_v52 = vpack.i.b16 %v3919_v45, %v3919_v45  ;;  %v4057_v34 = vpack.i.b16 %v3915_v9, %v3915_v9  ;;  %v3927_v0 = vrot.slane %v3895_v63, %v14579_v53 }
 0x14d   : > { %v3923_v51 = vrot.slane %v3895_v63, %v14578_v13  ;;  %v3935_v8 = vrot.slane %v9234_v50, %v14579_v53  ;;  %v3931_v29 = vrot.slane %v9234_v50, %v14578_v13  ;;  %v9235_v50 = vpack.i.b16 %v3857_v7, %v3857_v7 }
 0x14e   : > { %v4069_v10 = vrot.slane %v4064_v52, %v14578_v13  ;;  %v4062_v41 = vrot.slane %v4057_v34, %v14578_v13  ;;  %v4078_v57 = vpack.i.b16 %v3927_v0, %v3927_v0  ;;  %vm939_vm0 = vcmp.eq.s32.totalorder %v14619_v1, %v11909_v18 }
 0x14f   : > { %3650 = vmatpush1.bf16.msra.mxu1 %v3568_v46  ;;  %2968 = vmatpush1.bf16.msra.mxu0 %v2843_v17  ;;  %v4071_v23 = vpack.i.b16 %v3923_v51, %v3923_v51  ;;  %v4092_v62 = vpack.i.b16 %v3935_v8, %v3935_v8  ;;  %v3897_v17 = vpack.i.b16 %v3879_v48, %v3879_v48  ;;  %v3881_v51 = vunpack.i.h.s16 %v3857_v7 }
 0x150   : > { %3660 = vmatprep.subr.bf16.mxu0 %v3571_v49  ;;  %v4309_v19 = vmul.bf16 %v4069_v10, %v11167_v61  ;;  %v4308_v28 = vmul.bf16 %v4062_v41, %v11163_v2  ;;  %v4311_v32 = vmul.bf16 %v4069_v10, %v11175_v60  ;;  %v4083_v3 = vrot.slane %v4078_v57, %v14578_v13 }
 0x151   : > { %v4310_v30 = vmul.bf16 %v4062_v41, %v11171_v6  ;;  %v4076_v31 = vrot.slane %v4071_v23, %v14578_v13  ;;  %v4085_v49 = vpack.i.b16 %v3931_v29, %v3931_v29  ;;  %v4097_v45 = vrot.slane %v4092_v62, %v14578_v13 }
 0x152   : > { %3652 = vmatmul.mubr.bf16.vlgmr.msra.gmra.mrb[0].mxu1 %v11492_v24  ;;  %9211 = vmatmul.mubr.msk.bf16.vlgmr.msra.gmra.mrb[0].mxu0 %vm2875_vm2, %v11992_v16  ;;  %v4313_v46 = vmul.bf16 %v4083_v3, %v11167_v61  ;;  %v4315_v47 = vmul.bf16 %v4083_v3, %v11175_v60  ;;  %v3943_v9 = vrot.slane %v3897_v17, %v14579_v53 }
 0x153   : > { %3661 = vmatpush1.bf16.msra.mxu0 %v3570_v44  ;;  %3692 = vmatprep.mubr.bf16.mxu0 %v14241_v25  ;;  %v4312_v42 = vmul.bf16 %v4076_v31, %v11163_v2  ;;  %v4314_v11 = vmul.bf16 %v4076_v31, %v11171_v6  ;;  %v4090_v5 = vrot.slane %v4085_v49, %v14578_v13 }
 0x154   : > { %3662 = vmatprep.subr.bf16.mxu0 %v3573_v36  ;;  %4380 = vmatprep.subr.bf16.mxu1 %v4309_v19  ;;  %v3939_v63 = vrot.slane %v3897_v17, %v14578_v13  ;;  %v4317_v26 = vmul.bf16 %v4097_v45, %v11167_v61  ;;  %v4106_v44 = vpack.i.b16 %v3943_v9, %v3943_v9  ;;  %v748_v19 = vsel %vm535_vm9, %v11906_v37, 0.0 }
 0x155   : > { %4381 = vmatpush1.bf16.msra.mxu1 %v4308_v28  ;;  %4412 = vmatprep.mubr.bf16.mxu1 %v14618_v14  ;;  %v4316_v52 = vmul.bf16 %v4090_v5, %v11163_v2  ;;  %v4319_v0 = vmul.bf16 %v4097_v45, %v11175_v60  ;;  %v3951_v38 = vrot.slane %v9235_v50, %v14579_v53  ;;  %v749_v28 = vsel %vm536_vm7, %v11923_v54, 0.0 }
 0x156   : > { %4382 = vmatprep.subr.bf16.mxu1 %v4311_v32  ;;  %v4099_v34 = vpack.i.b16 %v3939_v63, %v3939_v63  ;;  %v4111_v36 = vrot.slane %v4106_v44, %v14578_v13  ;;  %v4318_v10 = vmul.bf16 %v4090_v5, %v11171_v6  ;;  %v3947_v57 = vrot.slane %v9235_v50, %v14578_v13 }
 0x157   : > { %3663 = vmatpush1.bf16.msra.mxu0 %v3572_v58  ;;  %v4120_v23 = vpack.i.b16 %v3951_v38, %v3951_v38  ;;  %v3899_v8 = vpack.i.b16 %v3881_v51, %v3881_v51  ;;  %vm940_vm15 = vcmp.eq.s32.totalorder %v14619_v1, %v11912_v55  ;;  %v3859_v29 = vcombine.high %v11983_v21, %v11983_v21 }
 0x158   : > { %3664 = vmatprep.subr.bf16.mxu0 %v3575_v43  ;;  %v4104_v41 = vrot.slane %v4099_v34, %v14578_v13  ;;  %v4321_v58 = vmul.bf16 %v4111_v36, %v11167_v61  ;;  %v4113_v48 = vpack.i.b16 %v3947_v57, %v3947_v57  ;;  %v1152_v43 = vsel %vm939_vm0, %v11932_v40, 0.0 }
 0x159   : > { %4383 = vmatpush1.bf16.msra.mxu1 %v4310_v30  ;;  %v1153_v3 = vsel %vm940_vm15, %v11937_v27, 0.0  ;;  %v4125_v30 = vrot.slane %v4120_v23, %v14578_v13  ;;  %v3959_v31 = vrot.slane %v3899_v8, %v14579_v53  ;;  %v9236_v7 = vpack.i.b16 %v3859_v29, %v3859_v29 }
 0x15a   : > { %4384 = vmatprep.subr.bf16.mxu1 %v4313_v46  ;;  %v4320_v32 = vmul.bf16 %v4104_v41, %v11163_v2  ;;  %v1206_v46 = vadd.f32 %v1152_v43, %v748_v19  ;;  %v4322_v62 = vmul.bf16 %v4104_v41, %v11171_v6  ;;  %v4118_v17 = vrot.slane %v4113_v48, %v14578_v13 }
 0x15b   : > { %3665 = vmatpush1.bf16.msra.mxu0 %v3574_v39  ;;  %v4323_v39 = vmul.bf16 %v4111_v36, %v11175_v60  ;;  %v4134_v49 = vpack.i.b16 %v3959_v31, %v3959_v31  ;;  %v4327_v21 = vmul.bf16 %v4125_v30, %v11175_v60  ;;  %v3967_v5 = vrot.slane %v9236_v7, %v14579_v53 }
 0x15c   : > { %3666 = vmatprep.subr.bf16.mxu0 %v3577_v20  ;;  %v3955_v20 = vrot.slane %v3899_v8, %v14578_v13  ;;  %v3883_v63 = vunpack.i.h.s16 %v3859_v29  ;;  %v3963_v50 = vrot.slane %v9236_v7, %v14578_v13  ;;  %vm941_vm6 = vcmp.eq.s32.totalorder %v14612_v22, %v11909_v18 }
 0x15d   : > { %4385 = vmatpush1.bf16.msra.mxu1 %v4312_v42  ;;  %v4325_v42 = vmul.bf16 %v4125_v30, %v11167_v61  ;;  %v4148_v34 = vpack.i.b16 %v3967_v5, %v3967_v5  ;;  %vm942_vm11 = vcmp.eq.s32.totalorder %v14612_v22, %v11912_v55 }
 0x15e   : > { %4386 = vmatprep.subr.bf16.mxu1 %v4315_v47  ;;  %v4324_v47 = vmul.bf16 %v4118_v17, %v11163_v2  ;;  %v4127_v45 = vpack.i.b16 %v3955_v20, %v3955_v20  ;;  %v4141_v51 = vpack.i.b16 %v3963_v50, %v3963_v50 }
 0x15f   : > { %3667 = vmatpush1.bf16.msra.mxu0 %v3576_v56  ;;  %v1207_v56 = vadd.f32 %v1153_v3, %v749_v28  ;;  %v4153_v41 = vrot.slane %v4148_v34, %v14578_v13 }
 0x160   : > { %v4132_v44 = vrot.slane %v4127_v45, %v14578_v13  ;;  %v4146_v8 = vrot.slane %v4141_v51, %v14578_v13 }
 0x161   : > { %4387 = vmatpush1.bf16.msra.mxu1 %v4314_v11  ;;  %v9231_v9 = vpack.c.bf16 %v1207_v56, %v1206_v46  ;;  %v4139_v11 = vrot.slane %v4134_v49, %v14578_v13  ;;  %v4333_v28 = vmul.bf16 %v4153_v41, %v11167_v61 }
 0x162   : > { %9224 = vmatmul.mubr.msk.bf16.vlgmr.msra.gmra.mrb[4].mxu0 %vm2875_vm2, %v11992_v16  ;;  %4388 = vmatprep.subr.bf16.mxu1 %v4317_v26  ;;  %v4326_v26 = vmul.bf16 %v4118_v17, %v11171_v6  ;;  %v4328_v38 = vmul.bf16 %v4132_v44, %v11163_v2  ;;  %v4330_v23 = vmul.bf16 %v4132_v44, %v11171_v6 }
 0x163   : > { %3748 = vmatprep.mubr.bf16.mxu0 %v14241_v25  ;;  %v3826_v36 = vrot.slane %v9231_v9, %v14569_v4  ;;  %v4332_v43 = vmul.bf16 %v4146_v8, %v11163_v2  ;;  %v4334_v46 = vmul.bf16 %v4146_v8, %v11171_v6 }
 0x165   : > { %4389 = vmatpush1.bf16.msra.mxu1 %v4316_v52  ;;  %v4329_v52 = vmul.bf16 %v4139_v11, %v11167_v61  ;;  %v3828_v49 = vcombine.high %v3826_v36, %v3826_v36 }
 0x166   : > { %4390 = vmatprep.subr.bf16.mxu1 %v4319_v0  ;;  %v3901_v0 = vpack.i.b16 %v3883_v63, %v3883_v63 }
 0x168   : > { %v3975_v57 = vrot.slane %v3901_v0, %v14579_v53  ;;  %v3971_v19 = vrot.slane %v3901_v0, %v14578_v13 }
 0x169   : > { %4391 = vmatpush1.bf16.msra.mxu1 %v4318_v10  ;;  %v4331_v10 = vmul.bf16 %v4139_v11, %v11175_v60  ;;  %v12100_v11 = vrot.slane %v3828_v49, %v14569_v4 }
 0x16a   : > { %4392 = vmatprep.subr.bf16.mxu1 %v4321_v58  ;;  %v12078_v58 = vrot.slane %v3826_v36, %v14569_v4  ;;  %v4155_v3 = vpack.i.b16 %v3971_v19, %v3971_v19 }
 0x16c   : > { %v9237_v48 = vpack.i.b16 %v12078_v58, %v12078_v58  ;;  %v3885_v29 = vunpack.i.h.s16 %v12078_v58 }
 0x16d   : > { %4393 = vmatpush1.bf16.msra.mxu1 %v4320_v32  ;;  %v4162_v32 = vpack.i.b16 %v3975_v57, %v3975_v57 }
 0x16e   : > { %4394 = vmatprep.subr.bf16.mxu1 %v4323_v39  ;;  %v4335_v39 = vmul.bf16 %v4153_v41, %v11175_v60  ;;  %v3983_v31 = vrot.slane %v9237_v48, %v14579_v53  ;;  %v3979_v17 = vrot.slane %v9237_v48, %v14578_v13 }
 0x16f   : > { %v4167_v30 = vrot.slane %v4162_v32, %v14578_v13 }
 0x170   : > { %v4176_v56 = vpack.i.b16 %v3983_v31, %v3983_v31 }
 0x171   : > { %4395 = vmatpush1.bf16.msra.mxu1 %v4322_v62  ;;  %v4160_v62 = vrot.slane %v4155_v3, %v14578_v13  ;;  %v4337_v20 = vmul.bf16 %v4167_v30, %v11167_v61  ;;  %v4339_v45 = vmul.bf16 %v4167_v30, %v11175_v60  ;;  %v3858_v30 = vcombine.high %v12078_v58, %v12078_v58 }
 0x172   : > { %4396 = vmatprep.subr.bf16.mxu1 %v4325_v42  ;;  %v3903_v42 = vpack.i.b16 %v3885_v29, %v3885_v29  ;;  %v4181_v9 = vrot.slane %v4176_v56, %v14578_v13 }
 0x173   : > { %v4336_v7 = vmul.bf16 %v4160_v62, %v11163_v2  ;;  %v4338_v5 = vmul.bf16 %v4160_v62, %v11171_v6 }
 0x174   : > { %v4341_v44 = vmul.bf16 %v4181_v9, %v11167_v61  ;;  %v4343_v36 = vmul.bf16 %v4181_v9, %v11175_v60 }
 0x175   : > { %4397 = vmatpush1.bf16.msra.mxu1 %v4324_v47  ;;  %v4169_v47 = vpack.i.b16 %v3979_v17, %v3979_v17 }
 0x176   : > { %4398 = vmatprep.subr.bf16.mxu1 %v4327_v21  ;;  %v3991_v21 = vrot.slane %v3903_v42, %v14579_v53 }
 0x177   : > { %v4174_v63 = vrot.slane %v4169_v47, %v14578_v13  ;;  %v3889_v47 = vunpack.i.h.s16 %v3858_v30 }
 0x178   : > { %v4190_v50 = vpack.i.b16 %v3991_v21, %v3991_v21 }
 0x179   : > { %4399 = vmatpush1.bf16.msra.mxu1 %v4326_v26  ;;  %v3987_v26 = vrot.slane %v3903_v42, %v14578_v13  ;;  %v4340_v34 = vmul.bf16 %v4174_v63, %v11163_v2  ;;  %v4342_v41 = vmul.bf16 %v4174_v63, %v11171_v6 }
 0x17a   : > { %4400 = vmatprep.subr.bf16.mxu1 %v4329_v52  ;;  %v9238_v52 = vpack.i.b16 %v12100_v11, %v12100_v11 }
 0x17b   : > { %v4183_v0 = vpack.i.b16 %v3987_v26, %v3987_v26  ;;  %v3907_v26 = vpack.i.b16 %v3889_v47, %v3889_v47 }
 0x17c   : > { %v3999_v51 = vrot.slane %v9238_v52, %v14579_v53 }
 0x17d   : > { %4401 = vmatpush1.bf16.msra.mxu1 %v4328_v38  ;;  %v4195_v38 = vrot.slane %v4190_v50, %v14578_v13  ;;  %v4188_v57 = vrot.slane %v4183_v0, %v14578_v13  ;;  %v4023_v0 = vrot.slane %v3907_v26, %v14579_v53 }
 0x17e   : > { %4402 = vmatprep.subr.bf16.mxu1 %v4331_v10  ;;  %v3887_v10 = vunpack.i.h.s16 %v12100_v11  ;;  %v4204_v19 = vpack.i.b16 %v3999_v51, %v3999_v51 }
 0x17f   : > { %v4345_v8 = vmul.bf16 %v4195_v38, %v11167_v61  ;;  %v4344_v32 = vmul.bf16 %v4188_v57, %v11163_v2  ;;  %v4346_v31 = vmul.bf16 %v4188_v57, %v11171_v6  ;;  %v4246_v57 = vpack.i.b16 %v4023_v0, %v4023_v0 }
 0x180   : > { %v4209_v3 = vrot.slane %v4204_v19, %v14578_v13  ;;  %v750_v0 = vsel %vm537_vm4, %v11906_v37, 0.0 }
 0x181   : > { %4403 = vmatpush1.bf16.msra.mxu1 %v4330_v23  ;;  %v3995_v23 = vrot.slane %v9238_v52, %v14578_v13 }
 0x182   : > { %4404 = vmatprep.subr.bf16.mxu1 %v4333_v28  ;;  %v3905_v28 = vpack.i.b16 %v3887_v10, %v3887_v10  ;;  %v4349_v62 = vmul.bf16 %v4209_v3, %v11167_v61  ;;  %v4351_v49 = vmul.bf16 %v4209_v3, %v11175_v60  ;;  %v4019_v10 = vrot.slane %v3907_v26, %v14578_v13 }
 0x183   : > { %v4197_v48 = vpack.i.b16 %v3995_v23, %v3995_v23 }
 0x184   : > { %v4239_v19 = vpack.i.b16 %v4019_v10, %v4019_v10 }
 0x185   : > { %4405 = vmatpush1.bf16.msra.mxu1 %v4332_v43  ;;  %v4347_v43 = vmul.bf16 %v4195_v38, %v11175_v60  ;;  %v4202_v29 = vrot.slane %v4197_v48, %v14578_v13 }
 0x186   : > { %4406 = vmatprep.subr.bf16.mxu1 %v4335_v39  ;;  %v4007_v39 = vrot.slane %v3905_v28, %v14579_v53  ;;  %v4244_v3 = vrot.slane %v4239_v19, %v14578_v13 }
 0x187   : > { %v4348_v56 = vmul.bf16 %v4202_v29, %v11163_v2 }
 0x188   : > { %v4218_v17 = vpack.i.b16 %v4007_v39, %v4007_v39 }
 0x189   : > { %4407 = vmatpush1.bf16.msra.mxu1 %v4334_v46  ;;  %v4003_v46 = vrot.slane %v3905_v28, %v14578_v13 }
 0x18a   : > { %4408 = vmatprep.subr.bf16.mxu1 %v4337_v20  ;;  %v9239_v20 = vpack.i.b16 %v3858_v30, %v3858_v30  ;;  %v4223_v58 = vrot.slane %v4218_v17, %v14578_v13 }
 0x18b   : > { %v4211_v42 = vpack.i.b16 %v4003_v46, %v4003_v46  ;;  %v4360_v46 = vmul.bf16 %v4244_v3, %v11163_v2 }
 0x18c   : > { %v4011_v21 = vrot.slane %v9239_v20, %v14578_v13  ;;  %v4355_v52 = vmul.bf16 %v4223_v58, %v11175_v60 }
 0x18d   : > { %4409 = vmatpush1.bf16.msra.mxu1 %v4336_v7  ;;  %v4015_v7 = vrot.slane %v9239_v20, %v14579_v53  ;;  %v4216_v9 = vrot.slane %v4211_v42, %v14578_v13  ;;  %v4362_v42 = vmul.bf16 %v4244_v3, %v11171_v6  ;;  %v14625_v3 = vld [vmem:[#allocation16_spill] sm:$0xff] }
 0x18e   : > { %4410 = vmatprep.subr.bf16.mxu1 %v4339_v45  ;;  %v4350_v45 = vmul.bf16 %v4202_v29, %v11171_v6  ;;  %v4225_v50 = vpack.i.b16 %v4011_v21, %v4011_v21 }
 0x18f   : > { %v4232_v63 = vpack.i.b16 %v4015_v7, %v4015_v7  ;;  %v4354_v38 = vmul.bf16 %v4216_v9, %v11171_v6 }
 0x190   : > { %v4230_v51 = vrot.slane %v4225_v50, %v14578_v13 }
 0x191   : > { %4411 = vmatpush1.bf16.msra.mxu1 %v4338_v5  ;;  %v4353_v5 = vmul.bf16 %v4223_v58, %v11167_v61 }
 0x192   : > { %4421 = vmatprep.subr.bf16.mxu1 %v4341_v44  ;;  %v4352_v44 = vmul.bf16 %v4216_v9, %v11163_v2 }
 0x194   : > { %4413 = vmatmul.mubr.bf16.vlgmr.msra.gmra.mrb[4].mxu1 %v11455_v35 }
 0x195   : > { %4422 = vmatpush1.bf16.msra.mxu1 %v4340_v34  ;;  %4453 = vmatprep.mubr.bf16.mxu1 %v11635_v59  ;;  %v4237_v34 = vrot.slane %v4232_v63, %v14578_v13 }
 0x196   : > { %4423 = vmatprep.subr.bf16.mxu1 %v4343_v36  ;;  %v3860_v36 = vcombine.high %v12100_v11, %v12100_v11  ;;  %v4251_v11 = vrot.slane %v4246_v57, %v14578_v13 }
 0x197   : > { %v4359_v28 = vmul.bf16 %v4237_v34, %v11175_v60 }
 0x198   : > { %v9240_v23 = vpack.i.b16 %v3860_v36, %v3860_v36  ;;  %v3891_v48 = vunpack.i.h.s16 %v3860_v36  ;;  %v4361_v30 = vmul.bf16 %v4251_v11, %v11167_v61  ;;  %v4363_v17 = vmul.bf16 %v4251_v11, %v11175_v60 }
 0x199   : > { %4424 = vmatpush1.bf16.msra.mxu1 %v4342_v41  ;;  %v4357_v41 = vmul.bf16 %v4237_v34, %v11167_v61  ;;  %v751_v36 = vsel %vm538_vm5, %v11923_v54, 0.0 }
 0x19a   : > { %4425 = vmatprep.subr.bf16.mxu1 %v4345_v8  ;;  %v4356_v8 = vmul.bf16 %v4230_v51, %v11163_v2  ;;  %v4027_v39 = vrot.slane %v9240_v23, %v14578_v13  ;;  %v3909_v29 = vpack.i.b16 %v3891_v48, %v3891_v48 }
 0x19c   : > { %v4035_v58 = vrot.slane %v3909_v29, %v14578_v13 }
 0x19d   : > { %4426 = vmatpush1.bf16.msra.mxu1 %v4344_v32  ;;  %v4031_v32 = vrot.slane %v9240_v23, %v14579_v53 }
 0x19e   : > { %4427 = vmatprep.subr.bf16.mxu1 %v4347_v43  ;;  %v4358_v43 = vmul.bf16 %v4230_v51, %v11171_v6  ;;  %v4267_v9 = vpack.i.b16 %v4035_v58, %v4035_v58  ;;  %v1155_v51 = vsel %vm942_vm11, %v11937_v27, 0.0  ;;  %v14622_v27 = vld [vmem:[#allocation9_spill] sm:$0xff] }
 0x1a0   : > { %v4272_v26 = vrot.slane %v4267_v9, %v14578_v13 }
 0x1a1   : > { %4428 = vmatpush1.bf16.msra.mxu1 %v4346_v31  ;;  %v4260_v31 = vpack.i.b16 %v4031_v32, %v4031_v32  ;;  %v14623_v32 = vcvt.f32.s32 %v14622_v27 }
 0x1a2   : > { %4429 = vmatprep.subr.bf16.mxu1 %v4349_v62  ;;  %v4253_v62 = vpack.i.b16 %v4027_v39, %v4027_v39  ;;  %v4368_v50 = vmul.bf16 %v4272_v26, %v11163_v2  ;;  %v4370_v34 = vmul.bf16 %v4272_v26, %v11171_v6 }
 0x1a3   : > { %v4265_v20 = vrot.slane %v4260_v31, %v14578_v13  ;;  %v14627_v31 = vld [vmem:[#allocation14_spill] sm:$0xff] }
 0x1a5   : > { %4430 = vmatpush1.bf16.msra.mxu1 %v4348_v56  ;;  %v4039_v56 = vrot.slane %v3909_v29, %v14579_v53  ;;  %v4365_v7 = vmul.bf16 %v4265_v20, %v11167_v61  ;;  %v4367_v21 = vmul.bf16 %v4265_v20, %v11175_v60 }
 0x1a6   : > { %4431 = vmatprep.subr.bf16.mxu1 %v4351_v49  ;;  %v4258_v49 = vrot.slane %v4253_v62, %v14578_v13  ;;  %v14629_v62 = vld [vmem:[#allocation18_spill] sm:$0xff] }
 0x1a7   : > { %v4274_v47 = vpack.i.b16 %v4039_v56, %v4039_v56 }
 0x1a8   : > { %v4366_v63 = vmul.bf16 %v4258_v49, %v11171_v6 }
 0x1a9   : > { %4432 = vmatpush1.bf16.msra.mxu1 %v4350_v45  ;;  %v4364_v45 = vmul.bf16 %v4258_v49, %v11163_v2 }
 0x1aa   : > { %4433 = vmatprep.subr.bf16.mxu1 %v4353_v5  ;;  %v4279_v5 = vrot.slane %v4274_v47, %v14578_v13 }
 0x1ad   : > { %4434 = vmatpush1.bf16.msra.mxu1 %v4352_v44  ;;  %v4369_v44 = vmul.bf16 %v4279_v5, %v11167_v61 }
 0x1ae   : > { %4435 = vmatprep.subr.bf16.mxu1 %v4355_v52  ;;  %v4371_v52 = vmul.bf16 %v4279_v5, %v11175_v60 }
 0x1b1   : > { %4436 = vmatpush1.bf16.msra.mxu1 %v4354_v38  ;;  %v1154_v38 = vsel %vm941_vm6, %v11932_v40, 0.0  ;;  %v14620_v40 = vld [vmem:[#allocation10_spill] sm:$0xff] }
 0x1b2   : > { %4437 = vmatprep.subr.bf16.mxu1 %v4357_v41  ;;  %v1208_v10 = vadd.f32 %v1154_v38, %v750_v0  ;;  %v1209_v41 = vadd.f32 %v1155_v51, %v751_v36  ;;  %v14621_v11 = vcvt.f32.s32 %v14620_v40 }
 0x1b4   : > { %v9232_v33 = vpack.c.bf16 %v1209_v41, %v1208_v10  ;;  %v385_v48 = vcombine.high %v14623_v32, %v14621_v11 }
 0x1b5   : > { %4438 = vmatpush1.bf16.msra.mxu1 %v4356_v8 }
 0x1b6   : > { %4439 = vmatprep.subr.bf16.mxu1 %v4359_v28  ;;  %v3868_v57 = vrot.slane %v9232_v33, %v14569_v4  ;;  %v12203_v56 = vrot.slane %v385_v48, %v14569_v4 }
 0x1b8   : > { %v3875_v37 = vrot.slane %v3868_v57, %v14569_v4 }
 0x1b9   : > { %4440 = vmatpush1.bf16.msra.mxu1 %v4358_v43  ;;  %v14624_v43 = vld [vmem:[#allocation17_spill] sm:$0xff] }
 0x1ba   : > { %4441 = vmatprep.subr.bf16.mxu1 %v4361_v30  ;;  %v580_v39 = vcombine.high %v14625_v3, %v14624_v43  ;;  %v14626_v30 = vld [vmem:[#allocation15_spill] sm:$0xff]  ;;  %v9241_v20 = vpack.i.b16 %v3875_v37, %v3875_v37  ;;  %v3893_v48 = vunpack.i.h.s16 %v3875_v37 }
 0x1bb   : > { %v789_v29 = vcombine.high %v14627_v31, %v14626_v30 }
 0x1bd   : > { %4442 = vmatpush1.bf16.msra.mxu1 %v4360_v46  ;;  %v14628_v46 = vld [vmem:[#allocation19_spill] sm:$0xff]  ;;  %v12209_v49 = vrot.slane %v789_v29, %v14569_v4  ;;  %v9225_v29 = vld [vmem:[%s14157_s1 + $0x4] sm:$0xf] }
 0x1be   : > { %4443 = vmatprep.subr.bf16.mxu1 %v4363_v17  ;;  %v984_v17 = vcombine.high %v14629_v62, %v14628_v46  ;;  %v4043_v46 = vrot.slane %v9241_v20, %v14578_v13  ;;  %v3911_v62 = vpack.i.b16 %v3893_v48, %v3893_v48 }
 0x1bf   : > { %14631 = vst [vmem:[#allocation95_spill] sm:$0xff] %v12209_v49 }
 0x1c0   : > { %v12212_v58 = vrot.slane %v984_v17, %v14569_v4  ;;  %v4051_v48 = vrot.slane %v3911_v62, %v14578_v13 }
 0x1c1   : > { %4444 = vmatpush1.bf16.msra.mxu1 %v4362_v42  ;;  %v12206_v42 = vrot.slane %v580_v39, %v14569_v4 }
 0x1c2   : > { %4445 = vmatprep.subr.bf16.mxu1 %v4365_v7  ;;  %14632 = vst [vmem:[#allocation46_spill] sm:$0xff] %v12212_v58  ;;  %v12216_v7 = vrot.slane %v12203_v56, %v14569_v4  ;;  %v12228_v9 = vrot.slane %v12212_v58, %v14569_v4 }
 0x1c3   : > { %14630 = vst [vmem:[#allocation45_spill] sm:$0xff] %v12206_v42  ;;  %v12220_v47 = vrot.slane %v12206_v42, %v14569_v4 }
 0x1c4   : > { %v12233_v5 = vrot.slane %v12216_v7, %v14578_v13  ;;  %v12261_v0 = vrot.slane %v12228_v9, %v14579_v53 }
 0x1c5   : > { %4446 = vmatpush1.bf16.msra.mxu1 %v4364_v45  ;;  %v12224_v45 = vrot.slane %v12209_v49, %v14569_v4  ;;  %v12241_v26 = vrot.slane %v12220_v47, %v14578_v13 }
 0x1c6   : > { %4447 = vmatprep.subr.bf16.mxu1 %v4367_v21  ;;  %v4047_v21 = vrot.slane %v9241_v20, %v14579_v53  ;;  %vm545_vm10 = vcmp.eq.s32.totalorder %v14584_v12, %v12233_v5  ;;  %vm547_vm8 = vcmp.eq.s32.totalorder %v14619_v1, %v12233_v5  ;;  %vm549_vm15 = vcmp.eq.s32.totalorder %v14612_v22, %v12233_v5 }
 0x1c7   : > { %v758_v36 = vsel %vm545_vm10, %v12241_v26, 0.0 }
 0x1c8   : > { %v4288_v33 = vpack.i.b16 %v4047_v21, %v4047_v21 }
 0x1c9   : > { %4448 = vmatpush1.bf16.msra.mxu1 %v4366_v63  ;;  %v12237_v63 = vrot.slane %v12216_v7, %v14579_v53 }
 0x1ca   : > { %4449 = vmatprep.subr.bf16.mxu1 %v4369_v44  ;;  %v12245_v44 = vrot.slane %v12220_v47, %v14579_v53  ;;  %v12276_v3 = vrot.slane %v4288_v33, %v14578_v13 }
 0x1cb   : > { %vm546_vm12 = vcmp.eq.s32.totalorder %v14584_v12, %v12237_v63  ;;  %vm548_vm9 = vcmp.eq.s32.totalorder %v14619_v1, %v12237_v63  ;;  %vm550_vm4 = vcmp.eq.s32.totalorder %v14612_v22, %v12237_v63 }
 0x1cc   : > { %v759_v38 = vsel %vm546_vm12, %v12245_v44, 0.0 }
 0x1cd   : > { %4450 = vmatpush1.bf16.msra.mxu1 %v4368_v50  ;;  %v12249_v50 = vrot.slane %v12224_v45, %v14578_v13 }
 0x1ce   : > { %4451 = vmatprep.subr.bf16.mxu1 %v4371_v52  ;;  %v12253_v52 = vrot.slane %v12224_v45, %v14579_v53 }
 0x1cf   : > { %vm949_vm13 = vcmp.eq.s32.totalorder %v14584_v12, %v12249_v50  ;;  %vm951_vm7 = vcmp.eq.s32.totalorder %v14619_v1, %v12249_v50  ;;  %vm953_vm5 = vcmp.eq.s32.totalorder %v14612_v22, %v12249_v50 }
 0x1d0   : > { %vm950_vm14 = vcmp.eq.s32.totalorder %v14584_v12, %v12253_v52  ;;  %vm952_vm0 = vcmp.eq.s32.totalorder %v14619_v1, %v12253_v52  ;;  %vm954_vm6 = vcmp.eq.s32.totalorder %v14612_v22, %v12253_v52 }
 0x1d1   : > { %4452 = vmatpush1.bf16.msra.mxu1 %v4370_v34  ;;  %v12257_v34 = vrot.slane %v12228_v9, %v14578_v13  ;;  %v1163_v10 = vsel %vm950_vm14, %v12261_v0, 0.0 }
 0x1d3   : > { %v1162_v51 = vsel %vm949_vm13, %v12257_v34, 0.0  ;;  %v1166_v5 = vsel %vm953_vm5, %v12257_v34, 0.0 }
 0x1d4   : > { %4454 = vmatmul.mubr.bf16.vlgmr.msra.gmra.mrb[4].mxu1 %v11492_v24  ;;  %v1216_v57 = vadd.f32 %v1162_v51, %v758_v36 }
 0x1d5   : > { %5916 = vmatprep.mubr.bf16.mxu1 %v14618_v14 }
 0x225   : > { %v3653_v15 = vpop.f32.mrb[0].mxu1  ;;  %v12187_v23 = vpop.f32.mrb[0].mxu0 }
 0x226   : > { %v3655_v18 = vpop.f32.mrb[1].mxu1  ;;  %v12189_v8 = vpop.f32.mrb[1].mxu0  ;;  %v3003_v31 = vpack.c.bf16 %v12187_v23, %v12187_v23  ;;  %v4373_v23 = vmul.bf16 %v12276_v3, %v11167_v61 }
 0x227   : > { %v3657_v55 = vpop.f32.mrb[2].mxu1  ;;  %v2999_v19 = vpop.f32.mrb[2].mxu0 }
 0x228   : > { %v3658_v54 = vpop.f32.mrb[3].mxu1  ;;  %v3000_v28 = vpop.f32.mrb[3].mxu0  ;;  %v1217_v55 = vadd.f32 %v1163_v10, %v759_v38  ;;  %v3761_v36 = vsel %vm3709_vm1, %v3003_v31, 0  ;;  %v4281_v10 = vpack.i.b16 %v4043_v46, %v4043_v46 }
 0x22a   : > { %v9262_v11 = vpack.c.bf16 %v1217_v55, %v1216_v57 }
 0x22c   : > { %v5323_v39 = vrot.slane %v9262_v11, %v14569_v4 }
 0x22e   : > { %v5331_v37 = vcombine.high %v5323_v39, %v5323_v39 }
 0x230   : > { %v12299_v21 = vrot.slane %v5331_v37, %v14569_v4 }
 0x235   : > { %v3694_v41 = vpop.f32.mrb[4].mxu0 }
 0x236   : > { %v9348_v19 = vadd.f32 %v3694_v41, %v3653_v15  ;;  %v3696_v54 = vpop.f32.mrb[5].mxu0  ;;  %v3004_v15 = vpack.c.bf16 %v12189_v8, %v12189_v8  ;;  %v4055_v41 = vrot.slane %v3911_v62, %v14579_v53 }
 0x237   : > { %v9349_v28 = vadd.f32 %v3696_v54, %v3655_v18  ;;  %v3698_v40 = vpop.f32.mrb[6].mxu0  ;;  %v12286_v18 = vrot.slane %v5323_v39, %v14569_v4  ;;  %v9266_v54 = vpack.i.b16 %v12299_v21, %v12299_v21 }
 0x238   : > { %v3703_v27 = vpack.c.bf16 %v9348_v19, %v9348_v19  ;;  %v3699_v32 = vpop.f32.mrb[7].mxu0 }
 0x239   : > { %v3704_v43 = vpack.c.bf16 %v9349_v28, %v9349_v28  ;;  %v9265_v8 = vpack.i.b16 %v12286_v18, %v12286_v18  ;;  %v5381_v17 = vunpack.i.h.s16 %v12286_v18  ;;  %v4302_v32 = vpack.i.b16 %v4055_v41, %v4055_v41 }
 0x23a   : > { %v3711_v30 = vsel %vm3709_vm1, %v3703_v27, 0  ;;  %v4286_v27 = vrot.slane %v4281_v10, %v14578_v13 }
 0x23b   : > { %9226 = vmatprep.subr.msk.bf16.mxu0 %vm3709_vm1, %v3704_v43  ;;  %v5423_v20 = vrot.slane %v9265_v8, %v14579_v53  ;;  %v5419_v38 = vrot.slane %v9265_v8, %v14578_v13  ;;  %v5399_v51 = vpack.i.b16 %v5381_v17, %v5381_v17  ;;  %v14633_v43 = vld [vmem:[#allocation87_spill] sm:$0xff]  ;;  %v5383_v8 = vunpack.i.h.s16 %v12299_v21  ;;  %v3002_v17 = vld [vmem:[%s14157_s1] sm:$0xf] }
 0x23c   : > { %3717 = vmatpush1.bf16.msra.mxu0 %v3711_v30  ;;  %v14634_v30 = vld [vmem:[#allocation29_spill] sm:$0xff]  ;;  %v4372_v62 = vmul.bf16 %v4286_v27, %v11163_v2 }
 0x23d   : > { %9228 = vmatprep.subr.msk.bf16.mxu0 %vm3709_vm1, %v3004_v15  ;;  %v5568_v33 = vpack.i.b16 %v5423_v20, %v5423_v20  ;;  %v5561_v57 = vpack.i.b16 %v5419_v38, %v5419_v38  ;;  %v5431_v55 = vrot.slane %v5399_v51, %v14579_v53  ;;  %v5427_v19 = vrot.slane %v5399_v51, %v14578_v13  ;;  %v14635_v15 = vld [vmem:[#allocation88_spill] sm:$0xff]  ;;  %v14636_v51 = vld [vmem:[#allocation30_spill] sm:$0xff] }
 0x23e   : > { %v4295_v20 = vpack.i.b16 %v4051_v48, %v4051_v48  ;;  %v4307_v38 = vrot.slane %v4302_v32, %v14578_v13 }
 0x23f   : > { %9227 = vmatmul.mubr.msk.bf16.vlgmr.msra.gmra.mrb[8].mxu0 %vm3705_vm3, %v9225_v29  ;;  %v5573_v28 = vrot.slane %v5568_v33, %v14578_v13  ;;  %v5566_v40 = vrot.slane %v5561_v57, %v14578_v13  ;;  %v5582_v11 = vpack.i.b16 %v5431_v55, %v5431_v55  ;;  %v5575_v29 = vpack.i.b16 %v5427_v19, %v5427_v19 }
 0x240   : > { %3767 = vmatpush1.bf16.msra.mxu0 %v3761_v36  ;;  %3798 = vmatprep.mubr.bf16.mxu0 %v14241_v25  ;;  %v4375_v36 = vmul.bf16 %v12276_v3, %v11175_v60  ;;  %v5435_v33 = vrot.slane %v9266_v54, %v14578_v13  ;;  %v5401_v19 = vpack.i.b16 %v5383_v8, %v5383_v8 }
 0x241   : > { %4462 = vmatprep.subr.bf16.mxu0 %v4373_v23  ;;  %v5813_v39 = vmul.bf16 %v5573_v28, %v14633_v43  ;;  %v5812_v31 = vmul.bf16 %v5566_v40, %v14634_v30  ;;  %v5815_v37 = vmul.bf16 %v5573_v28, %v14635_v15  ;;  %v5587_v46 = vrot.slane %v5582_v11, %v14578_v13 }
 0x242   : > { %v5439_v23 = vrot.slane %v9266_v54, %v14579_v53  ;;  %v5814_v10 = vmul.bf16 %v5566_v40, %v14636_v51  ;;  %v5580_v41 = vrot.slane %v5575_v29, %v14578_v13  ;;  %v4374_v3 = vmul.bf16 %v4286_v27, %v11171_v6 }
 0x243   : > { %5884 = vmatprep.subr.bf16.mxu1 %v5813_v39  ;;  %v5817_v57 = vmul.bf16 %v5587_v46, %v14633_v43  ;;  %v4300_v28 = vrot.slane %v4295_v20, %v14578_v13  ;;  %v4377_v40 = vmul.bf16 %v4307_v38, %v11167_v61  ;;  %v5589_v54 = vpack.i.b16 %v5435_v33, %v5435_v33 }
 0x244   : > { %5885 = vmatpush1.bf16.msra.mxu1 %v5812_v31  ;;  %v5596_v55 = vpack.i.b16 %v5439_v23, %v5439_v23  ;;  %v5816_v11 = vmul.bf16 %v5580_v41, %v14634_v30  ;;  %v5819_v32 = vmul.bf16 %v5587_v46, %v14635_v15  ;;  %v5447_v39 = vrot.slane %v5401_v19, %v14579_v53 }
 0x245   : > { %5886 = vmatprep.subr.bf16.mxu1 %v5815_v37  ;;  %v5361_v27 = vcombine.high %v12286_v18, %v12286_v18  ;;  %v4376_v31 = vmul.bf16 %v4300_v28, %v11163_v2  ;;  %v4379_v37 = vmul.bf16 %v4307_v38, %v11175_v60  ;;  %v5818_v61 = vmul.bf16 %v5580_v41, %v14636_v51 }
 0x246   : > { %v5601_v48 = vrot.slane %v5596_v55, %v14578_v13  ;;  %v5594_v29 = vrot.slane %v5589_v54, %v14578_v13  ;;  %v5443_v46 = vrot.slane %v5401_v19, %v14578_v13  ;;  %v5610_v8 = vpack.i.b16 %v5447_v39, %v5447_v39 }
 0x247   : > { %v4378_v18 = vmul.bf16 %v4300_v28, %v11171_v6  ;;  %v5385_v38 = vunpack.i.h.s16 %v5361_v27  ;;  %v5363_v54 = vcombine.high %v12299_v21, %v12299_v21 }
 0x248   : > { %5887 = vmatpush1.bf16.msra.mxu1 %v5814_v10  ;;  %v5821_v23 = vmul.bf16 %v5601_v48, %v14633_v43  ;;  %v5820_v60 = vmul.bf16 %v5594_v29, %v14634_v30  ;;  %v5603_v2 = vpack.i.b16 %v5443_v46, %v5443_v46  ;;  %v5822_v10 = vmul.bf16 %v5594_v29, %v14636_v51 }
 0x249   : > { %5888 = vmatprep.subr.bf16.mxu1 %v5817_v57  ;;  %v5403_v55 = vpack.i.b16 %v5385_v38, %v5385_v38 }
 0x24a   : > { %v5608_v41 = vrot.slane %v5603_v2, %v14578_v13 }
 0x24b   : > { %9229 = vmatmul.mubr.msk.bf16.vlgmr.msra.gmra.mrb[8].mxu0 %vm3705_vm3, %v3002_v17  ;;  %v9267_v17 = vpack.i.b16 %v5361_v27, %v5361_v27 }
 0x24c   : > { %4463 = vmatpush1.bf16.msra.mxu0 %v4372_v62  ;;  %4494 = vmatprep.mubr.bf16.mxu0 %v14241_v25  ;;  %v5823_v62 = vmul.bf16 %v5601_v48, %v14635_v15  ;;  %v5824_v19 = vmul.bf16 %v5608_v41, %v14634_v30  ;;  %v5459_v48 = vrot.slane %v5403_v55, %v14578_v13 }
 0x24d   : > { %4464 = vmatprep.subr.bf16.mxu0 %v4375_v36  ;;  %5889 = vmatpush1.bf16.msra.mxu1 %v5816_v11  ;;  %v5615_v36 = vrot.slane %v5610_v8, %v14578_v13  ;;  %v5455_v20 = vrot.slane %v9267_v17, %v14579_v53  ;;  %v5451_v6 = vrot.slane %v9267_v17, %v14578_v13 }
 0x24e   : > { %5890 = vmatprep.subr.bf16.mxu1 %v5819_v32  ;;  %v5463_v11 = vrot.slane %v5403_v55, %v14579_v53  ;;  %v5826_v32 = vmul.bf16 %v5608_v41, %v14636_v51 }
 0x24f   : > { %v5825_v33 = vmul.bf16 %v5615_v36, %v14633_v43  ;;  %v5624_v57 = vpack.i.b16 %v5455_v20, %v5455_v20  ;;  %v5827_v28 = vmul.bf16 %v5615_v36, %v14635_v15 }
 0x250   : > { %4465 = vmatpush1.bf16.msra.mxu0 %v4374_v3  ;;  %v5617_v3 = vpack.i.b16 %v5451_v6, %v5451_v6  ;;  %v5638_v27 = vpack.i.b16 %v5463_v11, %v5463_v11 }
 0x251   : > { %4466 = vmatprep.subr.bf16.mxu0 %v4377_v40  ;;  %5891 = vmatpush1.bf16.msra.mxu1 %v5818_v61  ;;  %v5629_v40 = vrot.slane %v5624_v57, %v14578_v13  ;;  %v5631_v61 = vpack.i.b16 %v5459_v48, %v5459_v48 }
 0x252   : > { %5892 = vmatprep.subr.bf16.mxu1 %v5821_v23  ;;  %v5643_v21 = vrot.slane %v5638_v27, %v14578_v13  ;;  %v5387_v23 = vunpack.i.h.s16 %v5363_v54 }
 0x253   : > { %v5829_v39 = vmul.bf16 %v5629_v40, %v14633_v43  ;;  %v5831_v29 = vmul.bf16 %v5629_v40, %v14635_v15  ;;  %v5636_v17 = vrot.slane %v5631_v61, %v14578_v13 }
 0x254   : > { %4467 = vmatpush1.bf16.msra.mxu0 %v4376_v31  ;;  %v9268_v31 = vpack.i.b16 %v5363_v54, %v5363_v54  ;;  %v5835_v38 = vmul.bf16 %v5643_v21, %v14635_v15 }
 0x255   : > { %4468 = vmatprep.subr.bf16.mxu0 %v4379_v37  ;;  %5893 = vmatpush1.bf16.msra.mxu1 %v5820_v60  ;;  %v5833_v60 = vmul.bf16 %v5643_v21, %v14633_v43  ;;  %v5832_v36 = vmul.bf16 %v5636_v17, %v14634_v30  ;;  %v5834_v6 = vmul.bf16 %v5636_v17, %v14636_v51  ;;  %v760_v21 = vsel %vm547_vm8, %v12241_v26, 0.0 }
 0x256   : > { %5894 = vmatprep.subr.bf16.mxu1 %v5823_v62  ;;  %v5471_v46 = vrot.slane %v9268_v31, %v14579_v53  ;;  %v5405_v62 = vpack.i.b16 %v5387_v23, %v5387_v23  ;;  %v1164_v23 = vsel %vm951_vm7, %v12257_v34, 0.0 }
 0x257   : > { %v1218_v17 = vadd.f32 %v1164_v23, %v760_v21 }
 0x258   : > { %4469 = vmatpush1.bf16.msra.mxu0 %v4378_v18  ;;  %v5467_v18 = vrot.slane %v9268_v31, %v14578_v13  ;;  %v5652_v2 = vpack.i.b16 %v5471_v46, %v5471_v46  ;;  %v5479_v41 = vrot.slane %v5405_v62, %v14579_v53  ;;  %v5475_v57 = vrot.slane %v5405_v62, %v14578_v13 }
 0x259   : > { %5895 = vmatpush1.bf16.msra.mxu1 %v5822_v10  ;;  %v761_v46 = vsel %vm548_vm9, %v12245_v44, 0.0 }
 0x25a   : > { %5896 = vmatprep.subr.bf16.mxu1 %v5825_v33  ;;  %v5645_v20 = vpack.i.b16 %v5467_v18, %v5467_v18  ;;  %v5657_v10 = vrot.slane %v5652_v2, %v14578_v13 }
 0x25b   : > { %9242 = vmatmul.mubr.msk.bf16.vlgmr.msra.gmra.mrb[12].mxu0 %vm2875_vm2, %v11992_v16  ;;  %v5622_v16 = vrot.slane %v5617_v3, %v14578_v13 }
 0x25c   : > { %4548 = vmatprep.mubr.bf16.mxu0 %v14241_v25  ;;  %v5650_v33 = vrot.slane %v5645_v20, %v14578_v13  ;;  %v5837_v55 = vmul.bf16 %v5657_v10, %v14633_v43  ;;  %v5839_v40 = vmul.bf16 %v5657_v10, %v14635_v15 }
 0x25d   : > { %5897 = vmatpush1.bf16.msra.mxu1 %v5824_v19  ;;  %v5828_v37 = vmul.bf16 %v5622_v16, %v14634_v30  ;;  %v5830_v8 = vmul.bf16 %v5622_v16, %v14636_v51  ;;  %v5666_v19 = vpack.i.b16 %v5479_v41, %v5479_v41 }
 0x25e   : > { %5898 = vmatprep.subr.bf16.mxu1 %v5827_v28  ;;  %v5836_v3 = vmul.bf16 %v5650_v33, %v14634_v30  ;;  %v5659_v28 = vpack.i.b16 %v5475_v57, %v5475_v57  ;;  %v5838_v54 = vmul.bf16 %v5650_v33, %v14636_v51 }
 0x25f   : > { %v5671_v11 = vrot.slane %v5666_v19, %v14578_v13 }
 0x261   : > { %5899 = vmatpush1.bf16.msra.mxu1 %v5826_v32  ;;  %v5664_v32 = vrot.slane %v5659_v28, %v14578_v13  ;;  %v5841_v16 = vmul.bf16 %v5671_v11, %v14633_v43 }
 0x262   : > { %5900 = vmatprep.subr.bf16.mxu1 %v5829_v39  ;;  %v5843_v39 = vmul.bf16 %v5671_v11, %v14635_v15 }
 0x263   : > { %v5840_v48 = vmul.bf16 %v5664_v32, %v14634_v30  ;;  %v5842_v27 = vmul.bf16 %v5664_v32, %v14636_v51 }
 0x265   : > { %5901 = vmatpush1.bf16.msra.mxu1 %v5828_v37 }
 0x266   : > { %5902 = vmatprep.subr.bf16.mxu1 %v5831_v29 }
 0x269   : > { %5903 = vmatpush1.bf16.msra.mxu1 %v5830_v8  ;;  %v1165_v8 = vsel %vm952_vm0, %v12261_v0, 0.0 }
 0x26a   : > { %5904 = vmatprep.subr.bf16.mxu1 %v5833_v60  ;;  %v1219_v18 = vadd.f32 %v1165_v8, %v761_v46 }
 0x26c   : > { %v9263_v60 = vpack.c.bf16 %v1219_v18, %v1218_v17 }
 0x26d   : > { %5905 = vmatpush1.bf16.msra.mxu1 %v5832_v36 }
 0x26e   : > { %5906 = vmatprep.subr.bf16.mxu1 %v5835_v38  ;;  %v5330_v2 = vrot.slane %v9263_v60, %v14569_v4 }
 0x270   : > { %v5346_v62 = vrot.slane %v5330_v2, %v14569_v4 }
 0x271   : > { %5907 = vmatpush1.bf16.msra.mxu1 %v5834_v6 }
 0x272   : > { %5908 = vmatprep.subr.bf16.mxu1 %v5837_v55  ;;  %v9269_v36 = vpack.i.b16 %v5346_v62, %v5346_v62  ;;  %v5389_v20 = vunpack.i.h.s16 %v5346_v62 }
 0x274   : > { %v5487_v38 = vrot.slane %v9269_v36, %v14579_v53  ;;  %v5483_v10 = vrot.slane %v9269_v36, %v14578_v13  ;;  %v5407_v41 = vpack.i.b16 %v5389_v20, %v5389_v20 }
 0x275   : > { %5909 = vmatpush1.bf16.msra.mxu1 %v5836_v3 }
 0x276   : > { %5910 = vmatprep.subr.bf16.mxu1 %v5839_v40  ;;  %v5680_v6 = vpack.i.b16 %v5487_v38, %v5487_v38  ;;  %v5673_v33 = vpack.i.b16 %v5483_v10, %v5483_v10  ;;  %v5495_v57 = vrot.slane %v5407_v41, %v14579_v53  ;;  %v5491_v55 = vrot.slane %v5407_v41, %v14578_v13 }
 0x278   : > { %v5685_v19 = vrot.slane %v5680_v6, %v14578_v13  ;;  %v5678_v3 = vrot.slane %v5673_v33, %v14578_v13  ;;  %v5694_v28 = vpack.i.b16 %v5495_v57, %v5495_v57  ;;  %v5687_v40 = vpack.i.b16 %v5491_v55, %v5491_v55 }
 0x279   : > { %5911 = vmatpush1.bf16.msra.mxu1 %v5838_v54 }
 0x27a   : > { %5912 = vmatprep.subr.bf16.mxu1 %v5841_v16  ;;  %v5845_v11 = vmul.bf16 %v5685_v19, %v14633_v43  ;;  %v5844_v54 = vmul.bf16 %v5678_v3, %v14634_v30  ;;  %v5847_v32 = vmul.bf16 %v5685_v19, %v14635_v15  ;;  %v5699_v16 = vrot.slane %v5694_v28, %v14578_v13 }
 0x27b   : > { %v5362_v28 = vcombine.high %v5346_v62, %v5346_v62 }
 0x27c   : > { %v5851_v23 = vmul.bf16 %v5699_v16, %v14635_v15 }
 0x27d   : > { %5913 = vmatpush1.bf16.msra.mxu1 %v5840_v48  ;;  %v5332_v48 = vcombine.high %v5330_v2, %v5330_v2 }
 0x27e   : > { %5914 = vmatprep.subr.bf16.mxu1 %v5843_v39  ;;  %v5846_v39 = vmul.bf16 %v5678_v3, %v14636_v51 }
 0x281   : > { %5915 = vmatpush1.bf16.msra.mxu1 %v5842_v27  ;;  %v5692_v27 = vrot.slane %v5687_v40, %v14578_v13 }
 0x282   : > { %5925 = vmatprep.subr.bf16.mxu1 %v5845_v11 }
 0x283   : > { %v5848_v46 = vmul.bf16 %v5692_v27, %v14634_v30  ;;  %v5850_v2 = vmul.bf16 %v5692_v27, %v14636_v51 }
 0x284   : > { %5917 = vmatmul.mubr.bf16.vlgmr.msra.gmra.mrb[8].mxu1 %v11455_v35 }
 0x285   : > { %5957 = vmatprep.mubr.bf16.mxu1 %v11635_v59  ;;  %5926 = vmatpush1.bf16.msra.mxu1 %v5844_v54 }
 0x286   : > { %5927 = vmatprep.subr.bf16.mxu1 %v5847_v32  ;;  %v9271_v32 = vpack.i.b16 %v5362_v28, %v5362_v28 }
 0x289   : > { %5928 = vmatpush1.bf16.msra.mxu1 %v5846_v39  ;;  %v5515_v39 = vrot.slane %v9271_v32, %v14578_v13 }
 0x2a7   : > { %v12398_v31 = vpop.f32.mrb[4].mxu1 }
 0x2a8   : > { %v12400_v37 = vpop.f32.mrb[5].mxu1 }
 0x2a9   : > { %v4459_v61 = vpop.f32.mrb[6].mxu1 }
 0x2aa   : > { %v4460_v29 = vpop.f32.mrb[7].mxu1  ;;  %v5849_v61 = vmul.bf16 %v5699_v16, %v14633_v43 }
 0x2ab   : > { %v5360_v29 = vrot.slane %v5332_v48, %v14569_v4  ;;  %v5519_v48 = vrot.slane %v9271_v32, %v14579_v53 }
 0x2ac   : > { %5929 = vmatprep.subr.bf16.mxu1 %v5849_v61 }
 0x2ad   : > { %v9270_v21 = vpack.i.b16 %v5360_v29, %v5360_v29  ;;  %5930 = vmatpush1.bf16.msra.mxu1 %v5848_v46  ;;  %v5391_v36 = vunpack.i.h.s16 %v5360_v29  ;;  %v5736_v61 = vpack.i.b16 %v5519_v48, %v5519_v48  ;;  %v5393_v46 = vunpack.i.h.s16 %v5362_v28 }
 0x2ae   : > { %5931 = vmatprep.subr.bf16.mxu1 %v5851_v23 }
 0x2af   : > { %v5503_v8 = vrot.slane %v9270_v21, %v14579_v53  ;;  %v5499_v17 = vrot.slane %v9270_v21, %v14578_v13  ;;  %v5409_v10 = vpack.i.b16 %v5391_v36, %v5391_v36  ;;  %v5729_v21 = vpack.i.b16 %v5515_v39, %v5515_v39 }
 0x2b0   : > { %v5741_v23 = vrot.slane %v5736_v61, %v14578_v13 }
 0x2b1   : > { %v5708_v18 = vpack.i.b16 %v5503_v8, %v5503_v8  ;;  %v5701_v60 = vpack.i.b16 %v5499_v17, %v5499_v17  ;;  %5932 = vmatpush1.bf16.msra.mxu1 %v5850_v2  ;;  %v5511_v33 = vrot.slane %v5409_v10, %v14579_v53  ;;  %v5507_v57 = vrot.slane %v5409_v10, %v14578_v13 }
 0x2b2   : > { %v5734_v17 = vrot.slane %v5729_v21, %v14578_v13 }
 0x2b3   : > { %v5713_v20 = vrot.slane %v5708_v18, %v14578_v13  ;;  %v5706_v38 = vrot.slane %v5701_v60, %v14578_v13  ;;  %v5722_v19 = vpack.i.b16 %v5511_v33, %v5511_v33  ;;  %v5715_v3 = vpack.i.b16 %v5507_v57, %v5507_v57 }
 0x2b4   : > { %v5411_v18 = vpack.i.b16 %v5393_v46, %v5393_v46  ;;  %v5861_v60 = vmul.bf16 %v5741_v23, %v14633_v43  ;;  %v5364_v33 = vcombine.high %v5360_v29, %v5360_v29  ;;  %v5862_v57 = vmul.bf16 %v5734_v17, %v14636_v51 }
 0x2b5   : > { %v5853_v41 = vmul.bf16 %v5713_v20, %v14633_v43  ;;  %v5852_v6 = vmul.bf16 %v5706_v38, %v14634_v30  ;;  %v5855_v55 = vmul.bf16 %v5713_v20, %v14635_v15  ;;  %v5854_v40 = vmul.bf16 %v5706_v38, %v14636_v51 }
 0x2b6   : > { %v5727_v11 = vrot.slane %v5722_v19, %v14578_v13  ;;  %v5720_v54 = vrot.slane %v5715_v3, %v14578_v13  ;;  %v5527_v2 = vrot.slane %v5411_v18, %v14579_v53  ;;  %v5523_v36 = vrot.slane %v5411_v18, %v14578_v13 }
 0x2b7   : > { %5933 = vmatprep.subr.bf16.mxu1 %v5853_v41  ;;  %v5860_v20 = vmul.bf16 %v5734_v17, %v14634_v30  ;;  %v5863_v41 = vmul.bf16 %v5741_v23, %v14635_v15  ;;  %v9272_v3 = vpack.i.b16 %v5364_v33, %v5364_v33 }
 0x2b8   : > { %5934 = vmatpush1.bf16.msra.mxu1 %v5852_v6  ;;  %v5857_v16 = vmul.bf16 %v5727_v11, %v14633_v43  ;;  %v5856_v27 = vmul.bf16 %v5720_v54, %v14634_v30  ;;  %v5859_v62 = vmul.bf16 %v5727_v11, %v14635_v15  ;;  %v5858_v8 = vmul.bf16 %v5720_v54, %v14636_v51 }
 0x2b9   : > { %5935 = vmatprep.subr.bf16.mxu1 %v5855_v55  ;;  %v5750_v38 = vpack.i.b16 %v5527_v2, %v5527_v2  ;;  %v5743_v10 = vpack.i.b16 %v5523_v36, %v5523_v36  ;;  %v5535_v28 = vrot.slane %v9272_v3, %v14579_v53  ;;  %v763_v2 = vsel %vm550_vm4, %v12245_v44, 0.0 }
 0x2ba   : > { %v1167_v36 = vsel %vm954_vm6, %v12261_v0, 0.0 }
 0x2bb   : > { %v5755_v6 = vrot.slane %v5750_v38, %v14578_v13  ;;  %v5748_v55 = vrot.slane %v5743_v10, %v14578_v13  ;;  %v5764_v29 = vpack.i.b16 %v5535_v28, %v5535_v28  ;;  %v1221_v38 = vadd.f32 %v1167_v36, %v763_v2  ;;  %v14639_v2 = vld [vmem:[#allocation93_spill] sm:$0xff] }
 0x2bc   : > { %5936 = vmatpush1.bf16.msra.mxu1 %v5854_v40  ;;  %v5531_v40 = vrot.slane %v9272_v3, %v14578_v13 }
 0x2bd   : > { %5937 = vmatprep.subr.bf16.mxu1 %v5857_v16  ;;  %v5865_v19 = vmul.bf16 %v5755_v6, %v14633_v43  ;;  %v5864_v11 = vmul.bf16 %v5748_v55, %v14634_v30  ;;  %v5867_v54 = vmul.bf16 %v5755_v6, %v14635_v15  ;;  %v5395_v16 = vunpack.i.h.s16 %v5364_v33 }
 0x2be   : > { %v5757_v32 = vpack.i.b16 %v5531_v40, %v5531_v40  ;;  %v5769_v48 = vrot.slane %v5764_v29, %v14578_v13 }
 0x2c0   : > { %5938 = vmatpush1.bf16.msra.mxu1 %v5856_v27  ;;  %v5762_v39 = vrot.slane %v5757_v32, %v14578_v13  ;;  %v5866_v27 = vmul.bf16 %v5748_v55, %v14636_v51  ;;  %v5869_v61 = vmul.bf16 %v5769_v48, %v14633_v43 }
 0x2c1   : > { %5939 = vmatprep.subr.bf16.mxu1 %v5859_v62  ;;  %v5413_v62 = vpack.i.b16 %v5395_v16, %v5395_v16 }
 0x2c2   : > { %v5868_v21 = vmul.bf16 %v5762_v39, %v14634_v30  ;;  %v5870_v50 = vmul.bf16 %v5762_v39, %v14636_v51 }
 0x2c3   : > { %v5543_v46 = vrot.slane %v5413_v62, %v14579_v53  ;;  %v5539_v23 = vrot.slane %v5413_v62, %v14578_v13 }
 0x2c4   : > { %5940 = vmatpush1.bf16.msra.mxu1 %v5858_v8  ;;  %v5871_v8 = vmul.bf16 %v5769_v48, %v14635_v15 }
 0x2c5   : > { %5941 = vmatprep.subr.bf16.mxu1 %v5861_v60  ;;  %v5778_v17 = vpack.i.b16 %v5543_v46, %v5543_v46  ;;  %v5771_v18 = vpack.i.b16 %v5539_v23, %v5539_v23  ;;  %v762_v60 = vsel %vm549_vm15, %v12241_v26, 0.0 }
 0x2c7   : > { %v5783_v63 = vrot.slane %v5778_v17, %v14578_v13  ;;  %v5776_v52 = vrot.slane %v5771_v18, %v14578_v13  ;;  %v14638_v17 = vld [vmem:[#allocation40_spill] sm:$0xff] }
 0x2c8   : > { %5942 = vmatpush1.bf16.msra.mxu1 %v5860_v20  ;;  %v1220_v20 = vadd.f32 %v1166_v5, %v762_v60  ;;  %v836_v18 = vcombine.high %v14638_v17, %v14638_v17  ;;  %v627_v5 = vcombine.high %v14639_v2, %v14639_v2 }
 0x2c9   : > { %5943 = vmatprep.subr.bf16.mxu1 %v5863_v41  ;;  %v5873_v10 = vmul.bf16 %v5783_v63, %v14633_v43  ;;  %v5872_v26 = vmul.bf16 %v5776_v52, %v14634_v30  ;;  %v5875_v44 = vmul.bf16 %v5783_v63, %v14635_v15  ;;  %v5874_v6 = vmul.bf16 %v5776_v52, %v14636_v51  ;;  %v14640_v63 = vld [vmem:[#allocation94_spill] sm:$0xff] }
 0x2ca   : > { %v9264_v41 = vpack.c.bf16 %v1221_v38, %v1220_v20  ;;  %v12526_v38 = vrot.slane %v836_v18, %v14578_v13 }
 0x2cc   : > { %5944 = vmatpush1.bf16.msra.mxu1 %v5862_v57  ;;  %v5372_v34 = vrot.slane %v9264_v41, %v14569_v4  ;;  %v12533_v41 = vrot.slane %v627_v5, %v14578_v13  ;;  %vm943_vm12 = vcmp.eq.s32.totalorder %v14584_v12, %v12526_v38  ;;  %vm945_vm9 = vcmp.eq.s32.totalorder %v14619_v1, %v12526_v38 }
 0x2cd   : > { %5945 = vmatprep.subr.bf16.mxu1 %v5865_v19 }
 0x2ce   : > { %v5379_v0 = vrot.slane %v5372_v34, %v14569_v4 }
 0x2d0   : > { %5946 = vmatpush1.bf16.msra.mxu1 %v5864_v11  ;;  %v9273_v33 = vpack.i.b16 %v5379_v0, %v5379_v0  ;;  %v5397_v57 = vunpack.i.h.s16 %v5379_v0 }
 0x2d1   : > { %5947 = vmatprep.subr.bf16.mxu1 %v5867_v54 }
 0x2d2   : > { %v5551_v55 = vrot.slane %v9273_v33, %v14579_v53  ;;  %v5547_v19 = vrot.slane %v9273_v33, %v14578_v13  ;;  %v5415_v3 = vpack.i.b16 %v5397_v57, %v5397_v57 }
 0x2d4   : > { %5948 = vmatpush1.bf16.msra.mxu1 %v5866_v27  ;;  %v5792_v28 = vpack.i.b16 %v5551_v55, %v5551_v55  ;;  %v5785_v40 = vpack.i.b16 %v5547_v19, %v5547_v19  ;;  %v5559_v11 = vrot.slane %v5415_v3, %v14579_v53  ;;  %v5555_v54 = vrot.slane %v5415_v3, %v14578_v13  ;;  %v12558_v55 = vld.sshfl [vmem:[%s11431_s7 + $0x8] sm:$0x3 pattern:$0x76325410] }
 0x2d5   : > { %5949 = vmatprep.subr.bf16.mxu1 %v5869_v61 }
 0x2d6   : > { %v5797_v29 = vrot.slane %v5792_v28, %v14578_v13  ;;  %v5790_v32 = vrot.slane %v5785_v40, %v14578_v13  ;;  %v5806_v16 = vpack.i.b16 %v5559_v11, %v5559_v11  ;;  %v5799_v48 = vpack.i.b16 %v5555_v54, %v5555_v54 }
 0x2d8   : > { %5950 = vmatpush1.bf16.msra.mxu1 %v5868_v21  ;;  %v5877_v39 = vmul.bf16 %v5797_v29, %v14633_v43  ;;  %v5876_v27 = vmul.bf16 %v5790_v32, %v14634_v30  ;;  %v5879_v62 = vmul.bf16 %v5797_v29, %v14635_v15  ;;  %v5811_v61 = vrot.slane %v5806_v16, %v14578_v13  ;;  %v14637_v21 = vld [vmem:[#allocation39_spill] sm:$0xff] }
 0x2d9   : > { %5951 = vmatprep.subr.bf16.mxu1 %v5871_v8  ;;  %v432_v46 = vcombine.high %v14637_v21, %v14637_v21  ;;  %v5878_v23 = vmul.bf16 %v5790_v32, %v14636_v51  ;;  %v5804_v8 = vrot.slane %v5799_v48, %v14578_v13 }
 0x2da   : > { %v5881_v60 = vmul.bf16 %v5811_v61, %v14633_v43  ;;  %v12529_v43 = vrot.slane %v836_v18, %v14579_v53 }
 0x2db   : > { %v12517_v36 = vrot.slane %v432_v46, %v14578_v13  ;;  %v5880_v52 = vmul.bf16 %v5804_v8, %v14634_v30  ;;  %v12523_v20 = vrot.slane %v432_v46, %v14579_v53  ;;  %v5882_v34 = vmul.bf16 %v5804_v8, %v14636_v51 }
 0x2dc   : > { %5952 = vmatpush1.bf16.msra.mxu1 %v5870_v50  ;;  %v1031_v50 = vcombine.high %v14640_v63, %v14640_v63  ;;  %vm944_vm13 = vcmp.eq.s32.totalorder %v14584_v12, %v12529_v43  ;;  %vm946_vm7 = vcmp.eq.s32.totalorder %v14619_v1, %v12529_v43 }
 0x2dd   : > { %5953 = vmatprep.subr.bf16.mxu1 %v5873_v10  ;;  %v5883_v10 = vmul.bf16 %v5811_v61, %v14635_v15  ;;  %vm539_vm11 = vcmp.eq.s32.totalorder %v14584_v12, %v12517_v36  ;;  %vm540_vm10 = vcmp.eq.s32.totalorder %v14584_v12, %v12523_v20  ;;  %vm541_vm14 = vcmp.eq.s32.totalorder %v14619_v1, %v12517_v36 }
 0x2de   : > { %v12539_v30 = vrot.slane %v1031_v50, %v14578_v13  ;;  %v752_v15 = vsel %vm539_vm11, %v12533_v41, 0.0  ;;  %vm542_vm8 = vcmp.eq.s32.totalorder %v14619_v1, %v12523_v20  ;;  %vm543_vm6 = vcmp.eq.s32.totalorder %v14612_v22, %v12517_v36 }
 0x2df   : > { %vm544_vm11 = vcmp.eq.s32.totalorder %v14612_v22, %v12523_v20 }
 0x2e0   : > { %5954 = vmatpush1.bf16.msra.mxu1 %v5872_v26  ;;  %v12536_v26 = vrot.slane %v627_v5, %v14579_v53 }
 0x2e1   : > { %5955 = vmatprep.subr.bf16.mxu1 %v5875_v44  ;;  %v12542_v44 = vrot.slane %v1031_v50, %v14579_v53  ;;  %v14641_v50 = vld [vmem:[#allocation85_spill] sm:$0xff] }
 0x2e2   : > { %v753_v0 = vsel %vm540_vm10, %v12536_v26, 0.0  ;;  %vm947_vm10 = vcmp.eq.s32.totalorder %v14612_v22, %v12526_v38 }
 0x2e3   : > { %v1157_v51 = vsel %vm944_vm13, %v12542_v44, 0.0 }
 0x2e4   : > { %5956 = vmatpush1.bf16.msra.mxu1 %v5874_v6  ;;  %v1156_v6 = vsel %vm943_vm12, %v12539_v30, 0.0  ;;  %v1211_v57 = vadd.f32 %v1157_v51, %v753_v0  ;;  %v14643_v51 = vld [vmem:[#allocation86_spill] sm:$0xff]  ;;  %vm948_vm12 = vcmp.eq.s32.totalorder %v14612_v22, %v12529_v43 }
 0x2e5   : > { %5966 = vmatprep.subr.bf16.mxu1 %v5877_v39  ;;  %v1210_v33 = vadd.f32 %v1156_v6, %v752_v15 }
 0x2e7   : > { %5958 = vmatmul.mubr.bf16.vlgmr.msra.gmra.mrb[8].mxu1 %v11492_v24  ;;  %v9246_v19 = vpack.c.bf16 %v1211_v57, %v1210_v33 }
 0x2e8   : > { %5998 = vmatprep.mubr.bf16.mxu1 %v14241_v25  ;;  %5967 = vmatpush1.bf16.msra.mxu1 %v5876_v27  ;;  %v14646_v25 = vld [vmem:[#allocation33_spill] sm:$0xff] }
 0x2e9   : > { %5968 = vmatprep.subr.bf16.mxu1 %v5879_v62  ;;  %v4571_v3 = vrot.slane %v9246_v19, %v14569_v4 }
 0x2eb   : > { %v4587_v28 = vrot.slane %v4571_v3, %v14569_v4  ;;  %v4579_v48 = vcombine.high %v4571_v3, %v4571_v3 }
 0x2ec   : > { %5969 = vmatpush1.bf16.msra.mxu1 %v5878_v23 }
 0x2ed   : > { %5970 = vmatprep.subr.bf16.mxu1 %v5881_v60  ;;  %v9249_v40 = vpack.i.b16 %v4587_v28, %v4587_v28  ;;  %v4629_v54 = vunpack.i.h.s16 %v4587_v28  ;;  %v12570_v21 = vrot.slane %v4579_v48, %v14569_v4 }
 0x2ef   : > { %v4671_v11 = vrot.slane %v9249_v40, %v14579_v53  ;;  %v4667_v29 = vrot.slane %v9249_v40, %v14578_v13  ;;  %v4647_v16 = vpack.i.b16 %v4629_v54, %v4629_v54  ;;  %v4631_v3 = vunpack.i.h.s16 %v12570_v21  ;;  %v14644_v40 = vld [vmem:[#allocation28_spill] sm:$0xff] }
 0x2f0   : > { %5971 = vmatpush1.bf16.msra.mxu1 %v5880_v52 }
 0x2f1   : > { %5972 = vmatprep.subr.bf16.mxu1 %v5883_v10  ;;  %v4816_v32 = vpack.i.b16 %v4671_v11, %v4671_v11  ;;  %v4809_v39 = vpack.i.b16 %v4667_v29, %v4667_v29  ;;  %v4679_v61 = vrot.slane %v4647_v16, %v14579_v53  ;;  %v4675_v5 = vrot.slane %v4647_v16, %v14578_v13 }
 0x2f2   : > { %v4649_v48 = vpack.i.b16 %v4631_v3, %v4631_v3 }
 0x2f3   : > { %v4821_v62 = vrot.slane %v4816_v32, %v14578_v13  ;;  %v4814_v2 = vrot.slane %v4809_v39, %v14578_v13  ;;  %v4830_v10 = vpack.i.b16 %v4679_v61, %v4679_v61  ;;  %v4823_v6 = vpack.i.b16 %v4675_v5, %v4675_v5 }
 0x2f4   : > { %5973 = vmatpush1.bf16.msra.mxu1 %v5882_v34  ;;  %v9250_v34 = vpack.i.b16 %v12570_v21, %v12570_v21 }
 0x2f5   : > { %v5061_v52 = vmul.bf16 %v4821_v62, %v14641_v50  ;;  %v5063_v33 = vmul.bf16 %v4821_v62, %v14643_v51  ;;  %v4835_v57 = vrot.slane %v4830_v10, %v14578_v13  ;;  %v5062_v11 = vmul.bf16 %v4814_v2, %v14644_v40 }
 0x2f6   : > { %v4687_v19 = vrot.slane %v9250_v34, %v14579_v53  ;;  %v4828_v54 = vrot.slane %v4823_v6, %v14578_v13  ;;  %v4683_v29 = vrot.slane %v9250_v34, %v14578_v13  ;;  %v4609_v62 = vcombine.high %v4587_v28, %v4587_v28 }
 0x2f7   : > { %9274 = vmatmul.mubr.msk.bf16.vlgmr.msra.gmra.mrb[8].mxu1 %vm2875_vm2, %v12558_v55  ;;  %v5065_v32 = vmul.bf16 %v4835_v57, %v14641_v50  ;;  %v5067_v61 = vmul.bf16 %v4835_v57, %v14643_v51 }
 0x2f8   : > { %7420 = vmatprep.mubr.bf16.mxu1 %v14618_v14  ;;  %v4844_v16 = vpack.i.b16 %v4687_v19, %v4687_v19  ;;  %v4633_v10 = vunpack.i.h.s16 %v4609_v62 }
 0x2fa   : > { %v4651_v57 = vpack.i.b16 %v4633_v10, %v4633_v10 }
 0x32e   : > { %v4496_v27 = vpop.f32.mrb[12].mxu0 }
 0x32f   : > { %v9350_v46 = vadd.f32 %v4496_v27, %v12398_v31  ;;  %v4498_v23 = vpop.f32.mrb[13].mxu0  ;;  %v9243_v31 = vld [vmem:[%s14157_s1 + $0x8] sm:$0xf]  ;;  %v4837_v27 = vpack.i.b16 %v4683_v29, %v4683_v29 }
 0x330   : > { %v9351_v8 = vadd.f32 %v4498_v23, %v12400_v37  ;;  %v4500_v17 = vpop.f32.mrb[14].mxu0  ;;  %v14642_v37 = vld [vmem:[#allocation27_spill] sm:$0xff]  ;;  %v4695_v23 = vrot.slane %v4649_v48, %v14579_v53 }
 0x331   : > { %v4505_v18 = vpack.c.bf16 %v9350_v46, %v9350_v46  ;;  %v4501_v60 = vpop.f32.mrb[15].mxu0  ;;  %v5060_v0 = vmul.bf16 %v4814_v2, %v14642_v37  ;;  %v5064_v39 = vmul.bf16 %v4828_v54, %v14642_v37  ;;  %v4849_v46 = vrot.slane %v4844_v16, %v14578_v13 }
 0x332   : > { %v4506_v63 = vpack.c.bf16 %v9351_v8, %v9351_v8  ;;  %v4691_v8 = vrot.slane %v4649_v48, %v14578_v13  ;;  %v5066_v17 = vmul.bf16 %v4828_v54, %v14644_v40  ;;  %v9251_v60 = vpack.i.b16 %v4609_v62, %v4609_v62 }
 0x333   : > { %v4511_v15 = vsel %vm3709_vm1, %v4505_v18, 0  ;;  %v4842_v18 = vrot.slane %v4837_v27, %v14578_v13  ;;  %v5069_v2 = vmul.bf16 %v4849_v46, %v14641_v50  ;;  %v4858_v5 = vpack.i.b16 %v4695_v23, %v4695_v23 }
 0x334   : > { %9244 = vmatprep.subr.msk.bf16.mxu0 %vm3709_vm1, %v4506_v63  ;;  %v4851_v28 = vpack.i.b16 %v4691_v8, %v4691_v8  ;;  %v5071_v34 = vmul.bf16 %v4849_v46, %v14643_v51  ;;  %v4611_v16 = vcombine.high %v12570_v21, %v12570_v21  ;;  %v754_v48 = vsel %vm541_vm14, %v12533_v41, 0.0 }
 0x335   : > { %4517 = vmatpush1.bf16.msra.mxu0 %v4511_v15  ;;  %v5068_v63 = vmul.bf16 %v4842_v18, %v14642_v37  ;;  %v4863_v15 = vrot.slane %v4858_v5, %v14578_v13  ;;  %v1158_v27 = vsel %vm945_vm9, %v12539_v30, 0.0  ;;  %v1159_v62 = vsel %vm946_vm7, %v12542_v44, 0.0 }
 0x336   : > { %5132 = vmatprep.subr.bf16.mxu0 %v5061_v52  ;;  %v4703_v52 = vrot.slane %v9251_v60, %v14579_v53  ;;  %v4707_v23 = vrot.slane %v4651_v57, %v14578_v13  ;;  %v1212_v8 = vadd.f32 %v1158_v27, %v754_v48 }
 0x337   : > { %v5073_v19 = vmul.bf16 %v4863_v15, %v14641_v50 }
 0x338   : > { %9245 = vmatmul.mubr.msk.bf16.vlgmr.msra.gmra.mrb[8].mxu0 %vm3705_vm3, %v9243_v31  ;;  %v4856_v31 = vrot.slane %v4851_v28, %v14578_v13  ;;  %v4872_v6 = vpack.i.b16 %v4703_v52, %v4703_v52  ;;  %v4879_v28 = vpack.i.b16 %v4707_v23, %v4707_v23 }
 0x339   : > { %5133 = vmatpush1.bf16.msra.mxu0 %v5060_v0  ;;  %5164 = vmatprep.mubr.bf16.mxu0 %v14618_v14  ;;  %v5070_v0 = vmul.bf16 %v4842_v18, %v14644_v40 }
 0x33a   : > { %5134 = vmatprep.subr.bf16.mxu0 %v5063_v33  ;;  %v4699_v33 = vrot.slane %v9251_v60, %v14578_v13  ;;  %v5072_v3 = vmul.bf16 %v4856_v31, %v14642_v37  ;;  %v4877_v54 = vrot.slane %v4872_v6, %v14578_v13  ;;  %v9252_v60 = vpack.i.b16 %v4611_v16, %v4611_v16 }
 0x33c   : > { %v4865_v29 = vpack.i.b16 %v4699_v33, %v4699_v33  ;;  %v5077_v21 = vmul.bf16 %v4877_v54, %v14641_v50  ;;  %v5079_v52 = vmul.bf16 %v4877_v54, %v14643_v51  ;;  %v4715_v6 = vrot.slane %v9252_v60, %v14578_v13 }
 0x33d   : > { %5135 = vmatpush1.bf16.msra.mxu0 %v5062_v11  ;;  %v5075_v11 = vmul.bf16 %v4863_v15, %v14643_v51 }
 0x33e   : > { %5136 = vmatprep.subr.bf16.mxu0 %v5065_v32  ;;  %v4711_v32 = vrot.slane %v4651_v57, %v14579_v53  ;;  %v4870_v46 = vrot.slane %v4865_v29, %v14578_v13  ;;  %v4893_v54 = vpack.i.b16 %v4715_v6, %v4715_v6 }
 0x340   : > { %v4886_v18 = vpack.i.b16 %v4711_v32, %v4711_v32  ;;  %v5076_v5 = vmul.bf16 %v4870_v46, %v14642_v37 }
 0x341   : > { %5137 = vmatpush1.bf16.msra.mxu0 %v5064_v39  ;;  %v755_v39 = vsel %vm542_vm8, %v12536_v26, 0.0 }
 0x342   : > { %5138 = vmatprep.subr.bf16.mxu0 %v5067_v61  ;;  %v5074_v61 = vmul.bf16 %v4856_v31, %v14644_v40  ;;  %v4891_v10 = vrot.slane %v4886_v18, %v14578_v13  ;;  %v5078_v31 = vmul.bf16 %v4870_v46, %v14644_v40 }
 0x344   : > { %v5081_v57 = vmul.bf16 %v4891_v10, %v14641_v50 }
 0x345   : > { %5139 = vmatpush1.bf16.msra.mxu0 %v5066_v17  ;;  %v1213_v17 = vadd.f32 %v1159_v62, %v755_v39  ;;  %v4898_v62 = vrot.slane %v4893_v54, %v14578_v13 }
 0x346   : > { %5140 = vmatprep.subr.bf16.mxu0 %v5069_v2  ;;  %v4635_v2 = vunpack.i.h.s16 %v4611_v16  ;;  %v5083_v16 = vmul.bf16 %v4891_v10, %v14643_v51  ;;  %v431_v10 = vcombine.high %v12216_v7, %v12216_v7 }
 0x348   : > { %v4653_v15 = vpack.i.b16 %v4635_v2, %v4635_v2  ;;  %v12678_v7 = vrot.slane %v431_v10, %v14579_v53 }
 0x349   : > { %5141 = vmatpush1.bf16.msra.mxu0 %v5068_v63  ;;  %v9247_v63 = vpack.c.bf16 %v1213_v17, %v1212_v8  ;;  %v5084_v17 = vmul.bf16 %v4898_v62, %v14642_v37 }
 0x34a   : > { %5142 = vmatprep.subr.bf16.mxu0 %v5071_v34  ;;  %v4719_v34 = vrot.slane %v9252_v60, %v14579_v53  ;;  %v4723_v29 = vrot.slane %v4653_v15, %v14578_v13  ;;  %vm558_vm15 = vcmp.eq.s32.totalorder %v14584_v12, %v12678_v7  ;;  %vm560_vm14 = vcmp.eq.s32.totalorder %v14619_v1, %v12678_v7 }
 0x34b   : > { %v4578_v33 = vrot.slane %v9247_v63, %v14569_v4 }
 0x34d   : > { %5143 = vmatpush1.bf16.msra.mxu0 %v5070_v0  ;;  %v4884_v0 = vrot.slane %v4879_v28, %v14578_v13  ;;  %v12646_v32 = vrot.slane %v4578_v33, %v14569_v4 }
 0x34e   : > { %5144 = vmatprep.subr.bf16.mxu0 %v5073_v19  ;;  %v4900_v19 = vpack.i.b16 %v4719_v34, %v4719_v34  ;;  %v626_v34 = vcombine.high %v12220_v47, %v12220_v47 }
 0x34f   : > { %v5082_v27 = vmul.bf16 %v4884_v0, %v14644_v40  ;;  %v9253_v46 = vpack.i.b16 %v12646_v32, %v12646_v32  ;;  %v4637_v60 = vunpack.i.h.s16 %v12646_v32 }
 0x350   : > { %v4905_v48 = vrot.slane %v4900_v19, %v14578_v13  ;;  %v12681_v47 = vrot.slane %v626_v34, %v14578_v13 }
 0x351   : > { %5145 = vmatpush1.bf16.msra.mxu0 %v5072_v3  ;;  %v4727_v3 = vrot.slane %v4653_v15, %v14579_v53  ;;  %v4735_v18 = vrot.slane %v9253_v46, %v14579_v53  ;;  %v4731_v63 = vrot.slane %v9253_v46, %v14578_v13  ;;  %v835_v15 = vcombine.high %v12224_v45, %v12224_v45 }
 0x352   : > { %5146 = vmatprep.subr.bf16.mxu0 %v5075_v11  ;;  %v5080_v11 = vmul.bf16 %v4884_v0, %v14642_v37  ;;  %v5085_v23 = vmul.bf16 %v4905_v48, %v14641_v50  ;;  %v5087_v2 = vmul.bf16 %v4905_v48, %v14643_v51  ;;  %v4655_v19 = vpack.i.b16 %v4637_v60, %v4637_v60 }
 0x353   : > { %v4914_v39 = vpack.i.b16 %v4727_v3, %v4727_v3  ;;  %v12684_v45 = vrot.slane %v626_v34, %v14579_v53  ;;  %v12690_v3 = vrot.slane %v835_v15, %v14579_v53 }
 0x355   : > { %5147 = vmatpush1.bf16.msra.mxu0 %v5074_v61  ;;  %v4907_v61 = vpack.i.b16 %v4723_v29, %v4723_v29  ;;  %v4919_v8 = vrot.slane %v4914_v39, %v14578_v13  ;;  %v4921_v29 = vpack.i.b16 %v4731_v63, %v4731_v63  ;;  %v771_v39 = vsel %vm558_vm15, %v12684_v45, 0.0 }
 0x356   : > { %5148 = vmatprep.subr.bf16.mxu0 %v5077_v21  ;;  %vm962_vm5 = vcmp.eq.s32.totalorder %v14584_v12, %v12690_v3  ;;  %vm964_vm9 = vcmp.eq.s32.totalorder %v14619_v1, %v12690_v3 }
 0x357   : > { %v4912_v21 = vrot.slane %v4907_v61, %v14578_v13  ;;  %v5089_v28 = vmul.bf16 %v4919_v8, %v14641_v50  ;;  %v5091_v6 = vmul.bf16 %v4919_v8, %v14643_v51 }
 0x359   : > { %5149 = vmatpush1.bf16.msra.mxu0 %v5076_v5  ;;  %v5086_v5 = vmul.bf16 %v4898_v62, %v14644_v40  ;;  %v5088_v0 = vmul.bf16 %v4912_v21, %v14642_v37  ;;  %v4743_v62 = vrot.slane %v4655_v19, %v14579_v53  ;;  %v5090_v60 = vmul.bf16 %v4912_v21, %v14644_v40 }
 0x35a   : > { %5150 = vmatprep.subr.bf16.mxu0 %v5079_v52  ;;  %v4580_v52 = vcombine.high %v4578_v33, %v4578_v33  ;;  %v12675_v33 = vrot.slane %v431_v10, %v14578_v13 }
 0x35b   : > { %v4942_v63 = vpack.i.b16 %v4743_v62, %v4743_v62 }
 0x35c   : > { %vm557_vm0 = vcmp.eq.s32.totalorder %v14584_v12, %v12675_v33  ;;  %vm559_vm13 = vcmp.eq.s32.totalorder %v14619_v1, %v12675_v33  ;;  %vm561_vm7 = vcmp.eq.s32.totalorder %v14612_v22, %v12675_v33 }
 0x35d   : > { %5151 = vmatpush1.bf16.msra.mxu0 %v5078_v31  ;;  %v1030_v31 = vcombine.high %v12228_v9, %v12228_v9  ;;  %v12687_v9 = vrot.slane %v835_v15, %v14578_v13  ;;  %v770_v48 = vsel %vm557_vm0, %v12681_v47, 0.0  ;;  %vm562_vm0 = vcmp.eq.s32.totalorder %v14612_v22, %v12678_v7 }
 0x35e   : > { %5152 = vmatprep.subr.bf16.mxu0 %v5081_v57  ;;  %v4928_v57 = vpack.i.b16 %v4735_v18, %v4735_v18 }
 0x35f   : > { %v12696_v54 = vrot.slane %v1030_v31, %v14579_v53  ;;  %vm961_vm4 = vcmp.eq.s32.totalorder %v14584_v12, %v12687_v9  ;;  %v14647_v12 = vld [vmem:[#allocation36_spill] sm:$0xff]  ;;  %vm963_vm8 = vcmp.eq.s32.totalorder %v14619_v1, %v12687_v9  ;;  %vm965_vm15 = vcmp.eq.s32.totalorder %v14612_v22, %v12687_v9 }
 0x361   : > { %5153 = vmatpush1.bf16.msra.mxu0 %v5080_v11  ;;  %v12693_v11 = vrot.slane %v1030_v31, %v14578_v13  ;;  %v1175_v46 = vsel %vm962_vm5, %v12696_v54, 0.0 }
 0x362   : > { %5154 = vmatprep.subr.bf16.mxu0 %v5083_v16  ;;  %v12699_v16 = vrot.slane %v4580_v52, %v14569_v4  ;;  %v1229_v8 = vadd.f32 %v1175_v46, %v771_v39 }
 0x363   : > { %v1174_v61 = vsel %vm961_vm4, %v12693_v11, 0.0  ;;  %vm966_vm4 = vcmp.eq.s32.totalorder %v14612_v22, %v12690_v3 }
 0x364   : > { %v9254_v18 = vpack.i.b16 %v12699_v16, %v12699_v16  ;;  %v4639_v15 = vunpack.i.h.s16 %v12699_v16 }
 0x365   : > { %5155 = vmatpush1.bf16.msra.mxu0 %v5082_v27  ;;  %v4933_v27 = vrot.slane %v4928_v57, %v14578_v13  ;;  %v4947_v57 = vrot.slane %v4942_v63, %v14578_v13 }
 0x366   : > { %5156 = vmatprep.subr.bf16.mxu0 %v5085_v23  ;;  %v1228_v23 = vadd.f32 %v1174_v61, %v770_v48  ;;  %v4751_v34 = vrot.slane %v9254_v18, %v14579_v53  ;;  %v4747_v46 = vrot.slane %v9254_v18, %v14578_v13 }
 0x368   : > { %v4956_v61 = vpack.i.b16 %v4751_v34, %v4751_v34 }
 0x369   : > { %5157 = vmatpush1.bf16.msra.mxu0 %v5084_v17  ;;  %v4739_v17 = vrot.slane %v4655_v19, %v14578_v13 }
 0x36a   : > { %5158 = vmatprep.subr.bf16.mxu0 %v5087_v2  ;;  %v4926_v2 = vrot.slane %v4921_v29, %v14578_v13 }
 0x36b   : > { %v4935_v10 = vpack.i.b16 %v4739_v17, %v4739_v17 }
 0x36c   : > { %v5092_v31 = vmul.bf16 %v4926_v2, %v14642_v37  ;;  %v5094_v19 = vmul.bf16 %v4926_v2, %v14644_v40 }
 0x36d   : > { %5159 = vmatpush1.bf16.msra.mxu0 %v5086_v5  ;;  %v9294_v5 = vpack.c.bf16 %v1229_v8, %v1228_v23  ;;  %v4940_v62 = vrot.slane %v4935_v10, %v14578_v13  ;;  %v4949_v10 = vpack.i.b16 %v4747_v46, %v4747_v46  ;;  %v14645_v46 = vld [vmem:[#allocation34_spill] sm:$0xff] }
 0x36e   : > { %5160 = vmatprep.subr.bf16.mxu0 %v5089_v28  ;;  %v5093_v28 = vmul.bf16 %v4933_v27, %v14641_v50 }
 0x36f   : > { %v6827_v52 = vrot.slane %v9294_v5, %v14569_v4 }
 0x371   : > { %5161 = vmatpush1.bf16.msra.mxu0 %v5088_v0  ;;  %v12726_v0 = vrot.slane %v6827_v52, %v14569_v4  ;;  %v6835_v21 = vcombine.high %v6827_v52, %v6827_v52  ;;  %v5096_v52 = vmul.bf16 %v4940_v62, %v14642_v37 }
 0x372   : > { %5162 = vmatprep.subr.bf16.mxu0 %v5091_v6  ;;  %v5095_v6 = vmul.bf16 %v4933_v27, %v14643_v51  ;;  %v4657_v27 = vpack.i.b16 %v4639_v15, %v4639_v15  ;;  %v4610_v15 = vcombine.high %v12646_v32, %v12646_v32 }
 0x373   : > { %v9297_v29 = vpack.i.b16 %v12726_v0, %v12726_v0  ;;  %v6885_v48 = vunpack.i.h.s16 %v12726_v0  ;;  %v12735_v39 = vrot.slane %v6835_v21, %v14569_v4 }
 0x374   : > { %v4759_v34 = vrot.slane %v4657_v27, %v14579_v53  ;;  %v9255_v58 = vpack.i.b16 %v4610_v15, %v4610_v15 }
 0x375   : > { %5163 = vmatpush1.bf16.msra.mxu0 %v5090_v60  ;;  %v6927_v23 = vrot.slane %v9297_v29, %v14579_v53  ;;  %v6923_v8 = vrot.slane %v9297_v29, %v14578_v13  ;;  %v6903_v17 = vpack.i.b16 %v6885_v48, %v6885_v48  ;;  %v5097_v60 = vmul.bf16 %v4947_v57, %v14641_v50 }
 0x376   : > { %5173 = vmatprep.subr.bf16.mxu0 %v5093_v28  ;;  %v9298_v2 = vpack.i.b16 %v12735_v39, %v12735_v39  ;;  %v5099_v48 = vmul.bf16 %v4947_v57, %v14643_v51  ;;  %v5098_v57 = vmul.bf16 %v4940_v62, %v14644_v40 }
 0x377   : > { %v7072_v5 = vpack.i.b16 %v6927_v23, %v6927_v23  ;;  %v7065_v28 = vpack.i.b16 %v6923_v8, %v6923_v8  ;;  %v6935_v63 = vrot.slane %v6903_v17, %v14579_v53  ;;  %v6931_v18 = vrot.slane %v6903_v17, %v14578_v13 }
 0x378   : > { %5165 = vmatmul.mubr.bf16.vlgmr.msra.gmra.mrb[16].mxu0 %v11455_v35  ;;  %v6887_v8 = vunpack.i.h.s16 %v12735_v39 }
 0x379   : > { %5174 = vmatpush1.bf16.msra.mxu0 %v5092_v31  ;;  %5205 = vmatprep.mubr.bf16.mxu0 %v11635_v59  ;;  %v4961_v31 = vrot.slane %v4956_v61, %v14578_v13  ;;  %v7077_v21 = vrot.slane %v7072_v5, %v14578_v13  ;;  %v7086_v29 = vpack.i.b16 %v6935_v63, %v6935_v63 }
 0x37a   : > { %5175 = vmatprep.subr.bf16.mxu0 %v5095_v6  ;;  %v7070_v6 = vrot.slane %v7065_v28, %v14578_v13  ;;  %v7079_v23 = vpack.i.b16 %v6931_v18, %v6931_v18  ;;  %v4970_v61 = vpack.i.b16 %v4759_v34, %v4759_v34  ;;  %v4755_v5 = vrot.slane %v4657_v27, %v14578_v13  ;;  %v14648_v18 = vld [vmem:[#allocation35_spill] sm:$0xff] }
 0x37b   : > { %v7317_v17 = vmul.bf16 %v7077_v21, %v14645_v46  ;;  %v7319_v32 = vmul.bf16 %v7077_v21, %v14647_v12  ;;  %v7091_v28 = vrot.slane %v7086_v29, %v14578_v13  ;;  %v4954_v63 = vrot.slane %v4949_v10, %v14578_v13 }
 0x37c   : > { %v7316_v14 = vmul.bf16 %v7070_v6, %v14646_v25  ;;  %v7318_v21 = vmul.bf16 %v7070_v6, %v14648_v18  ;;  %v7084_v42 = vrot.slane %v7079_v23, %v14578_v13  ;;  %v6939_v34 = vrot.slane %v9298_v2, %v14578_v13 }
 0x37d   : > { %5176 = vmatpush1.bf16.msra.mxu0 %v5094_v19  ;;  %v6943_v19 = vrot.slane %v9298_v2, %v14579_v53  ;;  %7388 = vmatprep.subr.bf16.mxu1 %v7317_v17  ;;  %v7321_v27 = vmul.bf16 %v7091_v28, %v14645_v46  ;;  %v12771_v62 = vrot.slane %v4970_v61, %v14578_v13 }
 0x37e   : > { %5177 = vmatprep.subr.bf16.mxu0 %v5097_v60  ;;  %v5101_v60 = vmul.bf16 %v4961_v31, %v14641_v50  ;;  %7389 = vmatpush1.bf16.msra.mxu1 %v7316_v14  ;;  %v4963_v49 = vpack.i.b16 %v4755_v5, %v4755_v5  ;;  %v4767_v10 = vrot.slane %v9255_v58, %v14579_v53 }
 0x37f   : > { %7390 = vmatprep.subr.bf16.mxu1 %v7319_v32  ;;  %v7100_v29 = vpack.i.b16 %v6943_v19, %v6943_v19  ;;  %v5100_v14 = vmul.bf16 %v4954_v63, %v14642_v37  ;;  %v5103_v6 = vmul.bf16 %v4961_v31, %v14643_v51  ;;  %v5102_v2 = vmul.bf16 %v4954_v63, %v14644_v40 }
 0x380   : > { %v7320_v23 = vmul.bf16 %v7084_v42, %v14646_v25  ;;  %v7093_v17 = vpack.i.b16 %v6939_v34, %v6939_v34  ;;  %v6865_v61 = vcombine.high %v12726_v0, %v12726_v0  ;;  %v4968_v31 = vrot.slane %v4963_v49, %v14578_v13 }
 0x381   : > { %5178 = vmatpush1.bf16.msra.mxu0 %v5096_v52  ;;  %v6905_v52 = vpack.i.b16 %v6887_v8, %v6887_v8  ;;  %v7323_v8 = vmul.bf16 %v7091_v28, %v14647_v12  ;;  %v7105_v32 = vrot.slane %v7100_v29, %v14578_v13  ;;  %v4984_v5 = vpack.i.b16 %v4767_v10, %v4767_v10 }
 0x382   : > { %5179 = vmatprep.subr.bf16.mxu0 %v5099_v48  ;;  %v4641_v48 = vunpack.i.h.s16 %v4610_v15  ;;  %7391 = vmatpush1.bf16.msra.mxu1 %v7318_v21  ;;  %v5105_v15 = vmul.bf16 %v12771_v62, %v14641_v50  ;;  %v7322_v0 = vmul.bf16 %v7084_v42, %v14648_v18  ;;  %v7098_v49 = vrot.slane %v7093_v17, %v14578_v13 }
 0x383   : > { %7392 = vmatprep.subr.bf16.mxu1 %v7321_v27  ;;  %v6951_v19 = vrot.slane %v6905_v52, %v14579_v53  ;;  %v6947_v28 = vrot.slane %v6905_v52, %v14578_v13  ;;  %v9299_v21 = vpack.i.b16 %v6865_v61, %v6865_v61  ;;  %v5104_v34 = vmul.bf16 %v4968_v31, %v14642_v37 }
 0x384   : > { %v5107_v27 = vmul.bf16 %v12771_v62, %v14643_v51  ;;  %v4989_v29 = vrot.slane %v4984_v5, %v14578_v13  ;;  %v4612_v52 = vcombine.high %v12699_v16, %v12699_v16  ;;  %v1160_v62 = vsel %vm947_vm10, %v12539_v30, 0.0 }
 0x385   : > { %5180 = vmatpush1.bf16.msra.mxu0 %v5098_v57  ;;  %v4763_v57 = vrot.slane %v9255_v58, %v14578_v13  ;;  %v7325_v58 = vmul.bf16 %v7105_v32, %v14645_v46  ;;  %v7114_v63 = vpack.i.b16 %v6951_v19, %v6951_v19  ;;  %v1161_v16 = vsel %vm948_vm12, %v12542_v44, 0.0 }
 0x386   : > { %5181 = vmatprep.subr.bf16.mxu0 %v5101_v60  ;;  %v4659_v60 = vpack.i.b16 %v4641_v48, %v4641_v48  ;;  %7393 = vmatpush1.bf16.msra.mxu1 %v7320_v23  ;;  %v7324_v36 = vmul.bf16 %v7098_v49, %v14646_v25  ;;  %v7327_v48 = vmul.bf16 %v7105_v32, %v14647_v12 }
 0x387   : > { %7394 = vmatprep.subr.bf16.mxu1 %v7323_v8  ;;  %v4977_v42 = vpack.i.b16 %v4763_v57, %v4763_v57  ;;  %v7119_v20 = vrot.slane %v7114_v63, %v14578_v13  ;;  %v5106_v38 = vmul.bf16 %v4968_v31, %v14644_v40  ;;  %v5109_v30 = vmul.bf16 %v4989_v29, %v14641_v50 }
 0x388   : > { %v4775_v10 = vrot.slane %v4659_v60, %v14579_v53  ;;  %v4771_v43 = vrot.slane %v4659_v60, %v14578_v13  ;;  %v9256_v17 = vpack.i.b16 %v4612_v52, %v4612_v52  ;;  %v7326_v32 = vmul.bf16 %v7098_v49, %v14648_v18 }
 0x389   : > { %5182 = vmatpush1.bf16.msra.mxu0 %v5100_v14  ;;  %v756_v14 = vsel %vm543_vm6, %v12533_v41, 0.0  ;;  %v7107_v41 = vpack.i.b16 %v6947_v28, %v6947_v28  ;;  %v4982_v23 = vrot.slane %v4977_v42, %v14578_v13  ;;  %v7329_v31 = vmul.bf16 %v7119_v20, %v14645_v46 }
 0x38a   : > { %5183 = vmatprep.subr.bf16.mxu0 %v5103_v6  ;;  %v757_v6 = vsel %vm544_vm11, %v12536_v26, 0.0  ;;  %7395 = vmatpush1.bf16.msra.mxu1 %v7322_v0  ;;  %v6959_v26 = vrot.slane %v9299_v21, %v14579_v53  ;;  %v4998_v44 = vpack.i.b16 %v4775_v10, %v4775_v10  ;;  %v1214_v8 = vadd.f32 %v1160_v62, %v756_v14 }
 0x38b   : > { %7396 = vmatprep.subr.bf16.mxu1 %v7325_v58  ;;  %v1215_v19 = vadd.f32 %v1161_v16, %v757_v6  ;;  %v5108_v60 = vmul.bf16 %v4982_v23, %v14642_v37  ;;  %v4991_v0 = vpack.i.b16 %v4771_v43, %v4771_v43  ;;  %v4783_v58 = vrot.slane %v9256_v17, %v14579_v53 }
 0x38c   : > { %v7128_v5 = vpack.i.b16 %v6959_v26, %v6959_v26  ;;  %v5003_v28 = vrot.slane %v4998_v44, %v14578_v13  ;;  %v4643_v63 = vunpack.i.h.s16 %v4612_v52  ;;  %v5111_v49 = vmul.bf16 %v4989_v29, %v14643_v51 }
 0x38d   : > { %5184 = vmatpush1.bf16.msra.mxu0 %v5102_v2  ;;  %v6889_v2 = vunpack.i.h.s16 %v6865_v61  ;;  %v6955_v61 = vrot.slane %v9299_v21, %v14578_v13  ;;  %v7331_v42 = vmul.bf16 %v7119_v20, %v14647_v12  ;;  %v12844_v6 = vcombine.high %v12735_v39, %v12735_v39 }
 0x38e   : > { %5185 = vmatprep.subr.bf16.mxu0 %v5105_v15  ;;  %7397 = vmatpush1.bf16.msra.mxu1 %v7324_v36  ;;  %v7112_v15 = vrot.slane %v7107_v41, %v14578_v13  ;;  %v7133_v10 = vrot.slane %v7128_v5, %v14578_v13  ;;  %v5110_v52 = vmul.bf16 %v4982_v23, %v14644_v40 }
 0x38f   : > { %7398 = vmatprep.subr.bf16.mxu1 %v7327_v48  ;;  %v6907_v57 = vpack.i.b16 %v6889_v2, %v6889_v2  ;;  %v4996_v62 = vrot.slane %v4991_v0, %v14578_v13  ;;  %v4779_v29 = vrot.slane %v9256_v17, %v14578_v13  ;;  %v5113_v16 = vmul.bf16 %v5003_v28, %v14641_v50 }
 0x390   : > { %v7328_v21 = vmul.bf16 %v7112_v15, %v14646_v25  ;;  %v5012_v36 = vpack.i.b16 %v4783_v58, %v4783_v58  ;;  %v4661_v41 = vpack.i.b16 %v4643_v63, %v4643_v63  ;;  %v7330_v20 = vmul.bf16 %v7112_v15, %v14648_v18 }
 0x391   : > { %5186 = vmatpush1.bf16.msra.mxu0 %v5104_v34  ;;  %v9248_v34 = vpack.c.bf16 %v1215_v19, %v1214_v8  ;;  %v6967_v14 = vrot.slane %v6907_v57, %v14579_v53  ;;  %v6963_v26 = vrot.slane %v6907_v57, %v14578_v13  ;;  %v7333_v2 = vmul.bf16 %v7133_v10, %v14645_v46 }
 0x392   : > { %5187 = vmatprep.subr.bf16.mxu0 %v5107_v27  ;;  %7399 = vmatpush1.bf16.msra.mxu1 %v7326_v32  ;;  %v7121_v27 = vpack.i.b16 %v6955_v61, %v6955_v61  ;;  %v5005_v23 = vpack.i.b16 %v4779_v29, %v4779_v29  ;;  %v5112_v43 = vmul.bf16 %v4996_v62, %v14642_v37 }
 0x393   : > { %7400 = vmatprep.subr.bf16.mxu1 %v7329_v31  ;;  %v4620_v48 = vrot.slane %v9248_v34, %v14569_v4  ;;  %v5017_v44 = vrot.slane %v5012_v36, %v14578_v13  ;;  %v4791_v17 = vrot.slane %v4661_v41, %v14579_v53  ;;  %v5115_v19 = vmul.bf16 %v5003_v28, %v14643_v51 }
 0x394   : > { %v7126_v39 = vrot.slane %v7121_v27, %v14578_v13  ;;  %v7135_v15 = vpack.i.b16 %v6963_v26, %v6963_v26  ;;  %v7335_v61 = vmul.bf16 %v7133_v10, %v14647_v12  ;;  %v5114_v57 = vmul.bf16 %v4996_v62, %v14644_v40 }
 0x395   : > { %5188 = vmatpush1.bf16.msra.mxu0 %v5106_v38  ;;  %v7142_v38 = vpack.i.b16 %v6967_v14, %v6967_v14  ;;  %v4627_v8 = vrot.slane %v4620_v48, %v14569_v4  ;;  %v5117_v0 = vmul.bf16 %v5017_v44, %v14641_v50  ;;  %v5026_v58 = vpack.i.b16 %v4791_v17, %v4791_v17 }
 0x396   : > { %5189 = vmatprep.subr.bf16.mxu0 %v5109_v30  ;;  %7401 = vmatpush1.bf16.msra.mxu1 %v7328_v21  ;;  %v9300_v30 = vpack.i.b16 %v12844_v6, %v12844_v6  ;;  %v7332_v32 = vmul.bf16 %v7126_v39, %v14646_v25  ;;  %v4787_v28 = vrot.slane %v4661_v41, %v14578_v13 }
 0x397   : > { %7402 = vmatprep.subr.bf16.mxu1 %v7331_v42  ;;  %v7147_v31 = vrot.slane %v7142_v38, %v14578_v13  ;;  %v9257_v63 = vpack.i.b16 %v4627_v8, %v4627_v8  ;;  %v7334_v34 = vmul.bf16 %v7126_v39, %v14648_v18  ;;  %v5119_v14 = vmul.bf16 %v5017_v44, %v14643_v51 }
 0x398   : > { %v6975_v5 = vrot.slane %v9300_v30, %v14579_v53  ;;  %v6971_v21 = vrot.slane %v9300_v30, %v14578_v13  ;;  %v5019_v62 = vpack.i.b16 %v4787_v28, %v4787_v28  ;;  %v4645_v29 = vunpack.i.h.s16 %v4627_v8 }
 0x399   : > { %5190 = vmatpush1.bf16.msra.mxu0 %v5108_v60  ;;  %v5010_v60 = vrot.slane %v5005_v23, %v14578_v13  ;;  %v7337_v27 = vmul.bf16 %v7147_v31, %v14645_v46  ;;  %v7339_v48 = vmul.bf16 %v7147_v31, %v14647_v12  ;;  %v4795_v38 = vrot.slane %v9257_v63, %v14578_v13 }
 0x39a   : > { %5191 = vmatprep.subr.bf16.mxu0 %v5111_v49  ;;  %7403 = vmatpush1.bf16.msra.mxu1 %v7330_v20  ;;  %v7140_v49 = vrot.slane %v7135_v15, %v14578_v13  ;;  %v7156_v42 = vpack.i.b16 %v6975_v5, %v6975_v5  ;;  %v7149_v41 = vpack.i.b16 %v6971_v21, %v6971_v21 }
 0x39b   : > { %7404 = vmatprep.subr.bf16.mxu1 %v7333_v2  ;;  %v5116_v10 = vmul.bf16 %v5010_v60, %v14642_v37  ;;  %v5118_v39 = vmul.bf16 %v5010_v60, %v14644_v40  ;;  %v5024_v2 = vrot.slane %v5019_v62, %v14578_v13  ;;  %v4663_v30 = vpack.i.b16 %v4645_v29, %v4645_v29 }
 0x39c   : > { %v7336_v36 = vmul.bf16 %v7140_v49, %v14646_v25  ;;  %v7161_v20 = vrot.slane %v7156_v42, %v14578_v13  ;;  %v7154_v44 = vrot.slane %v7149_v41, %v14578_v13 }
 0x39d   : > { %5192 = vmatpush1.bf16.msra.mxu0 %v5110_v52  ;;  %v5031_v52 = vrot.slane %v5026_v58, %v14578_v13  ;;  %v5120_v8 = vmul.bf16 %v5024_v2, %v14642_v37 }
 0x39e   : > { %5193 = vmatprep.subr.bf16.mxu0 %v5113_v16  ;;  %7405 = vmatpush1.bf16.msra.mxu1 %v7332_v32  ;;  %v4799_v16 = vrot.slane %v9257_v63, %v14579_v53  ;;  %v7341_v17 = vmul.bf16 %v7161_v20, %v14645_v46  ;;  %v5033_v32 = vpack.i.b16 %v4795_v38, %v4795_v38 }
 0x39f   : > { %7406 = vmatprep.subr.bf16.mxu1 %v7335_v61  ;;  %v5121_v26 = vmul.bf16 %v5031_v52, %v14641_v50  ;;  %v4807_v61 = vrot.slane %v4663_v30, %v14579_v53  ;;  %v7340_v31 = vmul.bf16 %v7154_v44, %v14646_v25  ;;  %v7343_v5 = vmul.bf16 %v7161_v20, %v14647_v12 }
 0x3a0   : > { %v5040_v23 = vpack.i.b16 %v4799_v16, %v4799_v16  ;;  %v5038_v60 = vrot.slane %v5033_v32, %v14578_v13  ;;  %v7342_v63 = vmul.bf16 %v7154_v44, %v14648_v18 }
 0x3a1   : > { %5194 = vmatpush1.bf16.msra.mxu0 %v5112_v43  ;;  %v7338_v43 = vmul.bf16 %v7140_v49, %v14648_v18  ;;  %v5054_v28 = vpack.i.b16 %v4807_v61, %v4807_v61 }
 0x3a2   : > { %5195 = vmatprep.subr.bf16.mxu0 %v5115_v19  ;;  %7407 = vmatpush1.bf16.msra.mxu1 %v7334_v34  ;;  %v5123_v19 = vmul.bf16 %v5031_v52, %v14643_v51  ;;  %v5045_v15 = vrot.slane %v5040_v23, %v14578_v13  ;;  %v5124_v34 = vmul.bf16 %v5038_v60, %v14642_v37 }
 0x3a3   : > { %7408 = vmatprep.subr.bf16.mxu1 %v7337_v27  ;;  %v5059_v27 = vrot.slane %v5054_v28, %v14578_v13  ;;  %v5126_v42 = vmul.bf16 %v5038_v60, %v14644_v40 }
 0x3a4   : > { %v5125_v58 = vmul.bf16 %v5045_v15, %v14641_v50  ;;  %v5127_v21 = vmul.bf16 %v5045_v15, %v14643_v51 }
 0x3a5   : > { %5196 = vmatpush1.bf16.msra.mxu0 %v5114_v57  ;;  %v5122_v57 = vmul.bf16 %v5024_v2, %v14644_v40  ;;  %v5129_v52 = vmul.bf16 %v5059_v27, %v14641_v50  ;;  %v5131_v29 = vmul.bf16 %v5059_v27, %v14643_v51  ;;  %v773_v51 = vsel %vm560_vm14, %v12684_v45, 0.0 }
 0x3a6   : > { %5197 = vmatprep.subr.bf16.mxu0 %v5117_v0  ;;  %7409 = vmatpush1.bf16.msra.mxu1 %v7336_v36  ;;  %v4803_v0 = vrot.slane %v4663_v30, %v14578_v13 }
 0x3a7   : > { %7410 = vmatprep.subr.bf16.mxu1 %v7339_v48 }
 0x3a8   : > { %v5047_v49 = vpack.i.b16 %v4803_v0, %v4803_v0 }
 0x3a9   : > { %5198 = vmatpush1.bf16.msra.mxu0 %v5116_v10 }
 0x3aa   : > { %5199 = vmatprep.subr.bf16.mxu0 %v5119_v14  ;;  %7411 = vmatpush1.bf16.msra.mxu1 %v7338_v43  ;;  %v5052_v10 = vrot.slane %v5047_v49, %v14578_v13  ;;  %v14649_v14 = vmov 0  }
 0x3ab   : > { %7412 = vmatprep.subr.bf16.mxu1 %v7341_v17 }
 0x3ac   : > { %v5128_v62 = vmul.bf16 %v5052_v10, %v14642_v37  ;;  %v5130_v16 = vmul.bf16 %v5052_v10, %v14644_v40  ;;  %v6891_v37 = vunpack.i.h.s16 %v12844_v6  ;;  %v1176_v40 = vsel %vm963_vm8, %v12693_v11, 0.0 }
 0x3ad   : > { %5200 = vmatpush1.bf16.msra.mxu0 %v5118_v39 }
 0x3ae   : > { %5201 = vmatprep.subr.bf16.mxu0 %v5121_v26  ;;  %7413 = vmatpush1.bf16.msra.mxu1 %v7340_v31  ;;  %v6909_v20 = vpack.i.b16 %v6891_v37, %v6891_v37  ;;  %v1177_v26 = vsel %vm964_vm9, %v12696_v54, 0.0 }
 0x3af   : > { %7414 = vmatprep.subr.bf16.mxu1 %v7343_v5  ;;  %v1231_v38 = vadd.f32 %v1177_v26, %v773_v51 }
 0x3b0   : > { %v6983_v6 = vrot.slane %v6909_v20, %v14579_v53  ;;  %v6979_v39 = vrot.slane %v6909_v20, %v14578_v13 }
 0x3b1   : > { %5202 = vmatpush1.bf16.msra.mxu0 %v5120_v8 }
 0x3b2   : > { %5203 = vmatprep.subr.bf16.mxu0 %v5123_v19  ;;  %7415 = vmatpush1.bf16.msra.mxu1 %v7342_v63  ;;  %v7170_v30 = vpack.i.b16 %v6983_v6, %v6983_v6  ;;  %v7163_v23 = vpack.i.b16 %v6979_v39, %v6979_v39 }
 0x3b4   : > { %v7175_v44 = vrot.slane %v7170_v30, %v14578_v13  ;;  %v7168_v17 = vrot.slane %v7163_v23, %v14578_v13 }
 0x3b5   : > { %5204 = vmatpush1.bf16.msra.mxu0 %v5122_v57 }
 0x3b6   : > { %5214 = vmatprep.subr.bf16.mxu0 %v5125_v58  ;;  %v7345_v19 = vmul.bf16 %v7175_v44, %v14645_v46  ;;  %v7344_v32 = vmul.bf16 %v7168_v17, %v14646_v25  ;;  %v7347_v15 = vmul.bf16 %v7175_v44, %v14647_v12  ;;  %v7346_v31 = vmul.bf16 %v7168_v17, %v14648_v18 }
 0x3b8   : > { %5206 = vmatmul.mubr.bf16.vlgmr.msra.gmra.mrb[16].mxu0 %v11492_v24  ;;  %7416 = vmatprep.subr.bf16.mxu1 %v7345_v19 }
 0x3b9   : > { %5215 = vmatpush1.bf16.msra.mxu0 %v5124_v34  ;;  %5246 = vmatprep.mubr.bf16.mxu0 %v14649_v14 }
 0x3ba   : > { %5216 = vmatprep.subr.bf16.mxu0 %v5127_v21  ;;  %7417 = vmatpush1.bf16.msra.mxu1 %v7344_v32 }
 0x3bb   : > { %7418 = vmatprep.subr.bf16.mxu1 %v7347_v15 }
 0x3bd   : > { %5217 = vmatpush1.bf16.msra.mxu0 %v5126_v42 }
 0x3be   : > { %5218 = vmatprep.subr.bf16.mxu0 %v5129_v52  ;;  %7419 = vmatpush1.bf16.msra.mxu1 %v7346_v31 }
 0x3c1   : > { %5219 = vmatpush1.bf16.msra.mxu0 %v5128_v62  ;;  %7421 = vmatmul.mubr.bf16.vlgmr.msra.gmra.mrb[12].mxu1 %v11455_v35 }
 0x3c2   : > { %5220 = vmatprep.subr.bf16.mxu0 %v5131_v29  ;;  %7461 = vmatprep.mubr.bf16.mxu1 %v11635_v59 }
 0x3c5   : > { %5221 = vmatpush1.bf16.msra.mxu0 %v5130_v16 }
 0x3c8   : > { %9258 = vmatmul.mubr.msk.bf16.vlgmr.msra.gmra.mrb[16].mxu0 %vm2875_vm2, %v12558_v55  ;;  %v772_v55 = vsel %vm559_vm13, %v12681_v47, 0.0 }
 0x3c9   : > { %5300 = vmatprep.mubr.bf16.mxu0 %v14649_v14  ;;  %v1230_v2 = vadd.f32 %v1176_v40, %v772_v55 }
 0x3ca   : > { %v12913_v36 = vpop.f32.mrb[8].mxu1 }
 0x3cb   : > { %v12915_v41 = vpop.f32.mrb[9].mxu1  ;;  %v9295_v43 = vpack.c.bf16 %v1231_v38, %v1230_v2 }
 0x3cc   : > { %v6004_v50 = vpop.f32.mrb[10].mxu1 }
 0x3cd   : > { %v6005_v48 = vpop.f32.mrb[11].mxu1  ;;  %v6834_v8 = vrot.slane %v9295_v43, %v14569_v4 }
 0x3cf   : > { %v6850_v61 = vrot.slane %v6834_v8, %v14569_v4  ;;  %v6836_v50 = vcombine.high %v6834_v8, %v6834_v8 }
 0x3d1   : > { %v9301_v5 = vpack.i.b16 %v6850_v61, %v6850_v61  ;;  %v6893_v57 = vunpack.i.h.s16 %v6850_v61  ;;  %v6864_v55 = vrot.slane %v6836_v50, %v14569_v4 }
 0x3d3   : > { %v6991_v60 = vrot.slane %v9301_v5, %v14579_v53  ;;  %v6987_v0 = vrot.slane %v9301_v5, %v14578_v13  ;;  %v6911_v58 = vpack.i.b16 %v6893_v57, %v6893_v57  ;;  %v9302_v51 = vpack.i.b16 %v6864_v55, %v6864_v55 }
 0x3d4   : > { %v6895_v30 = vunpack.i.h.s16 %v6864_v55 }
 0x3d5   : > { %v7184_v28 = vpack.i.b16 %v6991_v60, %v6991_v60  ;;  %v7177_v63 = vpack.i.b16 %v6987_v0, %v6987_v0  ;;  %v6999_v34 = vrot.slane %v6911_v58, %v14579_v53  ;;  %v6995_v49 = vrot.slane %v6911_v58, %v14578_v13 }
 0x3d6   : > { %v7007_v39 = vrot.slane %v9302_v51, %v14579_v53  ;;  %v7003_v26 = vrot.slane %v9302_v51, %v14578_v13  ;;  %v6913_v17 = vpack.i.b16 %v6895_v30, %v6895_v30  ;;  %v6866_v60 = vcombine.high %v6850_v61, %v6850_v61 }
 0x3d7   : > { %v7189_v21 = vrot.slane %v7184_v28, %v14578_v13  ;;  %v7182_v27 = vrot.slane %v7177_v63, %v14578_v13  ;;  %v7198_v42 = vpack.i.b16 %v6999_v34, %v6999_v34  ;;  %v7191_v10 = vpack.i.b16 %v6995_v49, %v6995_v49 }
 0x3d8   : > { %v7212_v2 = vpack.i.b16 %v7007_v39, %v7007_v39  ;;  %v7205_v38 = vpack.i.b16 %v7003_v26, %v7003_v26  ;;  %v7015_v32 = vrot.slane %v6913_v17, %v14579_v53  ;;  %v7011_v15 = vrot.slane %v6913_v17, %v14578_v13 }
 0x3d9   : > { %v7349_v52 = vmul.bf16 %v7189_v21, %v14645_v46  ;;  %v7348_v62 = vmul.bf16 %v7182_v27, %v14646_v25  ;;  %v7351_v29 = vmul.bf16 %v7189_v21, %v14647_v12  ;;  %v7203_v16 = vrot.slane %v7198_v42, %v14578_v13 }
 0x3da   : > { %v7350_v48 = vmul.bf16 %v7182_v27, %v14648_v18  ;;  %v7196_v37 = vrot.slane %v7191_v10, %v14578_v13  ;;  %v7217_v43 = vrot.slane %v7212_v2, %v14578_v13  ;;  %v7210_v44 = vrot.slane %v7205_v38, %v14578_v13 }
 0x3db   : > { %7429 = vmatprep.subr.bf16.mxu1 %v7349_v52  ;;  %v7353_v20 = vmul.bf16 %v7203_v16, %v14645_v46  ;;  %v7355_v6 = vmul.bf16 %v7203_v16, %v14647_v12  ;;  %v7226_v5 = vpack.i.b16 %v7015_v32, %v7015_v32  ;;  %v7219_v57 = vpack.i.b16 %v7011_v15, %v7011_v15 }
 0x3dc   : > { %7430 = vmatpush1.bf16.msra.mxu1 %v7348_v62  ;;  %v7352_v40 = vmul.bf16 %v7196_v37, %v14646_v25  ;;  %v7354_v23 = vmul.bf16 %v7196_v37, %v14648_v18  ;;  %v7357_v8 = vmul.bf16 %v7217_v43, %v14645_v46  ;;  %v7356_v19 = vmul.bf16 %v7210_v44, %v14646_v25 }
 0x3dd   : > { %7431 = vmatprep.subr.bf16.mxu1 %v7351_v29  ;;  %v7359_v31 = vmul.bf16 %v7217_v43, %v14647_v12  ;;  %v7358_v0 = vmul.bf16 %v7210_v44, %v14648_v18  ;;  %v7231_v58 = vrot.slane %v7226_v5, %v14578_v13  ;;  %v7224_v28 = vrot.slane %v7219_v57, %v14578_v13 }
 0x3de   : > { %v9303_v63 = vpack.i.b16 %v6866_v60, %v6866_v60  ;;  %v6897_v16 = vunpack.i.h.s16 %v6866_v60  ;;  %v6868_v26 = vcombine.high %v6864_v55, %v6864_v55 }
 0x3df   : > { %v7361_v34 = vmul.bf16 %v7231_v58, %v14645_v46  ;;  %v7360_v27 = vmul.bf16 %v7224_v28, %v14646_v25  ;;  %v7363_v61 = vmul.bf16 %v7231_v58, %v14647_v12  ;;  %v7362_v62 = vmul.bf16 %v7224_v28, %v14648_v18 }
 0x3e0   : > { %7432 = vmatpush1.bf16.msra.mxu1 %v7350_v48  ;;  %v7023_v49 = vrot.slane %v9303_v63, %v14579_v53  ;;  %v7019_v21 = vrot.slane %v9303_v63, %v14578_v13  ;;  %v6915_v48 = vpack.i.b16 %v6897_v16, %v6897_v16  ;;  %v6899_v15 = vunpack.i.h.s16 %v6868_v26 }
 0x3e1   : > { %7433 = vmatprep.subr.bf16.mxu1 %v7353_v20 }
 0x3e2   : > { %v7240_v42 = vpack.i.b16 %v7023_v49, %v7023_v49  ;;  %v7233_v10 = vpack.i.b16 %v7019_v21, %v7019_v21  ;;  %v7031_v20 = vrot.slane %v6915_v48, %v14579_v53  ;;  %v7027_v51 = vrot.slane %v6915_v48, %v14578_v13  ;;  %v14650_v48 = vld [vmem:[#allocation95_spill] sm:$0xff] }
 0x3e3   : > { %v6917_v60 = vpack.i.b16 %v6899_v15, %v6899_v15 }
 0x3e4   : > { %7434 = vmatpush1.bf16.msra.mxu1 %v7352_v40  ;;  %v7245_v52 = vrot.slane %v7240_v42, %v14578_v13  ;;  %v7238_v29 = vrot.slane %v7233_v10, %v14578_v13  ;;  %v7247_v39 = vpack.i.b16 %v7027_v51, %v7027_v51  ;;  %v1178_v42 = vsel %vm965_vm15, %v12693_v11, 0.0 }
 0x3e5   : > { %7435 = vmatprep.subr.bf16.mxu1 %v7355_v6  ;;  %v7254_v6 = vpack.i.b16 %v7031_v20, %v7031_v20  ;;  %v7047_v63 = vrot.slane %v6917_v60, %v14579_v53  ;;  %v1179_v10 = vsel %vm966_vm4, %v12696_v54, 0.0 }
 0x3e6   : > { %v7365_v50 = vmul.bf16 %v7245_v52, %v14645_v46  ;;  %v7364_v37 = vmul.bf16 %v7238_v29, %v14646_v25  ;;  %v7367_v40 = vmul.bf16 %v7245_v52, %v14647_v12  ;;  %v7366_v2 = vmul.bf16 %v7238_v29, %v14648_v18 }
 0x3e7   : > { %v7259_v38 = vrot.slane %v7254_v6, %v14578_v13  ;;  %v7252_v30 = vrot.slane %v7247_v39, %v14578_v13  ;;  %v7282_v49 = vpack.i.b16 %v7047_v63, %v7047_v63  ;;  %v401_v29 = vcombine.high %v12203_v56, %v12203_v56  ;;  %v14652_v6 = vld [vmem:[#allocation45_spill] sm:$0xff] }
 0x3e8   : > { %7436 = vmatpush1.bf16.msra.mxu1 %v7354_v23  ;;  %v9304_v23 = vpack.i.b16 %v6868_v26, %v6868_v26  ;;  %v596_v39 = vcombine.high %v14652_v6, %v14652_v6  ;;  %v14653_v26 = vld [vmem:[#allocation46_spill] sm:$0xff] }
 0x3e9   : > { %7437 = vmatprep.subr.bf16.mxu1 %v7357_v8  ;;  %v7369_v43 = vmul.bf16 %v7259_v38, %v14645_v46  ;;  %v7368_v44 = vmul.bf16 %v7252_v30, %v14646_v25  ;;  %v7371_v55 = vmul.bf16 %v7259_v38, %v14647_v12  ;;  %v7287_v7 = vrot.slane %v7282_v49, %v14578_v13  ;;  %v14657_v49 = vld [vmem:[#allocation5_spill] sm:$0xff] }
 0x3ea   : > { %v7039_v17 = vrot.slane %v9304_v23, %v14579_v53  ;;  %v7035_v8 = vrot.slane %v9304_v23, %v14578_v13  ;;  %v1000_v56 = vcombine.high %v14653_v26, %v14653_v26 }
 0x3eb   : > { %v7379_v11 = vmul.bf16 %v7287_v7, %v14647_v12 }
 0x3ec   : > { %7438 = vmatpush1.bf16.msra.mxu1 %v7356_v19  ;;  %v7268_v19 = vpack.i.b16 %v7039_v17, %v7039_v17  ;;  %v7261_v32 = vpack.i.b16 %v7035_v8, %v7035_v8  ;;  %v13042_v8 = vrot.slane %v596_v39, %v14569_v4  ;;  %v13052_v15 = vrot.slane %v1000_v56, %v14569_v4 }
 0x3ed   : > { %7439 = vmatprep.subr.bf16.mxu1 %v7359_v31  ;;  %v7370_v31 = vmul.bf16 %v7252_v30, %v14648_v18 }
 0x3ee   : > { %v7273_v5 = vrot.slane %v7268_v19, %v14578_v13  ;;  %v7266_v57 = vrot.slane %v7261_v32, %v14578_v13  ;;  %14655 = vst [vmem:[#allocation97_spill] sm:$0xff] %v13042_v8  ;;  %14656 = vst [vmem:[#allocation48_spill] sm:$0xff] %v13052_v15 }
 0x3f0   : > { %7440 = vmatpush1.bf16.msra.mxu1 %v7358_v0  ;;  %v7373_v0 = vmul.bf16 %v7273_v5, %v14645_v46  ;;  %v7372_v58 = vmul.bf16 %v7266_v57, %v14646_v25  ;;  %v7375_v28 = vmul.bf16 %v7273_v5, %v14647_v12  ;;  %v7374_v33 = vmul.bf16 %v7266_v57, %v14648_v18 }
 0x3f1   : > { %7441 = vmatprep.subr.bf16.mxu1 %v7361_v34  ;;  %v7043_v34 = vrot.slane %v6917_v60, %v14578_v13 }
 0x3f3   : > { %v7275_v21 = vpack.i.b16 %v7043_v34, %v7043_v34 }
 0x3f4   : > { %7442 = vmatpush1.bf16.msra.mxu1 %v7360_v27  ;;  %v774_v27 = vsel %vm561_vm7, %v12681_v47, 0.0 }
 0x3f5   : > { %7443 = vmatprep.subr.bf16.mxu1 %v7363_v61  ;;  %v775_v61 = vsel %vm562_vm0, %v12684_v45, 0.0  ;;  %v7280_v9 = vrot.slane %v7275_v21, %v14578_v13  ;;  %v1232_v52 = vadd.f32 %v1178_v42, %v774_v27  ;;  %v13072_v21 = vrot.slane %v13042_v8, %v14578_v13 }
 0x3f6   : > { %v1233_v3 = vadd.f32 %v1179_v10, %v775_v61  ;;  %v13079_v61 = vrot.slane %v13042_v8, %v14579_v53  ;;  %v13083_v42 = vrot.slane %v13052_v15, %v14578_v13  ;;  %v13087_v10 = vrot.slane %v13052_v15, %v14579_v53 }
 0x3f7   : > { %v7376_v47 = vmul.bf16 %v7280_v9, %v14646_v25  ;;  %v7378_v16 = vmul.bf16 %v7280_v9, %v14648_v18 }
 0x3f8   : > { %7444 = vmatpush1.bf16.msra.mxu1 %v7362_v62  ;;  %v7377_v62 = vmul.bf16 %v7287_v7, %v14645_v46  ;;  %v9296_v45 = vpack.c.bf16 %v1233_v3, %v1232_v52 }
 0x3f9   : > { %7445 = vmatprep.subr.bf16.mxu1 %v7365_v50 }
 0x3fa   : > { %v6876_v54 = vrot.slane %v9296_v45, %v14569_v4 }
 0x3fc   : > { %7446 = vmatpush1.bf16.msra.mxu1 %v7364_v37  ;;  %v6883_v50 = vrot.slane %v6876_v54, %v14569_v4  ;;  %v805_v37 = vcombine.high %v14650_v48, %v14650_v48  ;;  %v9558_v48 = vld.sshfl [vmem:[%s11431_s7 + $0x8] sm:$0x3 pattern:$0x76325410] }
 0x3fd   : > { %7447 = vmatprep.subr.bf16.mxu1 %v7367_v40  ;;  %v13026_v40 = vrot.slane %v401_v29, %v14569_v4 }
 0x3fe   : > { %v9305_v20 = vpack.i.b16 %v6883_v50, %v6883_v50  ;;  %v6901_v51 = vunpack.i.h.s16 %v6883_v50  ;;  %v13035_v30 = vrot.slane %v805_v37, %v14569_v4  ;;  %v14658_v37 = vld [vmem:[#allocation42_spill] sm:$0xff] }
 0x3ff   : > { %14651 = vst [vmem:[#allocation96_spill] sm:$0xff] %v13026_v40  ;;  %v13039_v17 = vrot.slane %v13026_v40, %v14578_v13  ;;  %v13049_v32 = vrot.slane %v13026_v40, %v14579_v53 }
 0x400   : > { %7448 = vmatpush1.bf16.msra.mxu1 %v7366_v2  ;;  %v7055_v2 = vrot.slane %v9305_v20, %v14579_v53  ;;  %v7051_v38 = vrot.slane %v9305_v20, %v14578_v13  ;;  %14654 = vst [vmem:[#allocation47_spill] sm:$0xff] %v13035_v30  ;;  %v6919_v23 = vpack.i.b16 %v6901_v51, %v6901_v51 }
 0x401   : > { %7449 = vmatprep.subr.bf16.mxu1 %v7369_v43  ;;  %v13059_v57 = vrot.slane %v13035_v30, %v14578_v13  ;;  %v13063_v60 = vrot.slane %v13035_v30, %v14579_v53  ;;  %vm551_vm5 = vcmp.eq.s32.totalorder %v14657_v49, %v13039_v17  ;;  %vm552_vm6 = vcmp.eq.s32.totalorder %v14657_v49, %v13049_v32 }
 0x402   : > { %v7296_v43 = vpack.i.b16 %v7055_v2, %v7055_v2  ;;  %v7059_v19 = vrot.slane %v6919_v23, %v14578_v13  ;;  %v764_v52 = vsel %vm551_vm5, %v13072_v21, 0.0  ;;  %v765_v3 = vsel %vm552_vm6, %v13079_v61, 0.0 }
 0x403   : > { %vm955_vm11 = vcmp.eq.s32.totalorder %v14657_v49, %v13059_v57  ;;  %vm956_vm10 = vcmp.eq.s32.totalorder %v14657_v49, %v13063_v60  ;;  %vm553_vm12 = vcmp.eq.s32.totalorder %v14619_v1, %v13039_v17  ;;  %vm554_vm13 = vcmp.eq.s32.totalorder %v14619_v1, %v13049_v32 }
 0x404   : > { %7450 = vmatpush1.bf16.msra.mxu1 %v7368_v44  ;;  %v7289_v44 = vpack.i.b16 %v7051_v38, %v7051_v38  ;;  %vm957_vm14 = vcmp.eq.s32.totalorder %v14619_v1, %v13059_v57  ;;  %vm958_vm8 = vcmp.eq.s32.totalorder %v14619_v1, %v13063_v60 }
 0x405   : > { %7451 = vmatprep.subr.bf16.mxu1 %v7371_v55  ;;  %v7063_v55 = vrot.slane %v6919_v23, %v14579_v53 }
 0x406   : > { %v7294_v5 = vrot.slane %v7289_v44, %v14578_v13  ;;  %v6009_v44 = vpack.c.bf16 %v12913_v36, %v12913_v36 }
 0x408   : > { %7452 = vmatpush1.bf16.msra.mxu1 %v7370_v31  ;;  %v7301_v31 = vrot.slane %v7296_v43, %v14578_v13  ;;  %v7380_v63 = vmul.bf16 %v7294_v5, %v14646_v25  ;;  %v6015_v36 = vsel %vm3709_vm1, %v6009_v44, 0 }
 0x409   : > { %7453 = vmatprep.subr.bf16.mxu1 %v7373_v0  ;;  %v7310_v0 = vpack.i.b16 %v7063_v55, %v7063_v55  ;;  %v6010_v55 = vpack.c.bf16 %v12915_v41, %v12915_v41 }
 0x40a   : > { %v7383_v34 = vmul.bf16 %v7301_v31, %v14647_v12 }
 0x40b   : > { %v7315_v27 = vrot.slane %v7310_v0, %v14578_v13 }
 0x40c   : > { %7454 = vmatpush1.bf16.msra.mxu1 %v7372_v58  ;;  %v7303_v58 = vpack.i.b16 %v7059_v19, %v7059_v19  ;;  %v9259_v19 = vld [vmem:[%s14157_s1 + $0xc] sm:$0xf] }
 0x40d   : > { %7455 = vmatprep.subr.bf16.mxu1 %v7375_v28  ;;  %v7381_v28 = vmul.bf16 %v7301_v31, %v14645_v46  ;;  %v7385_v9 = vmul.bf16 %v7315_v27, %v14645_v46 }
 0x40e   : > { %v7308_v7 = vrot.slane %v7303_v58, %v14578_v13 }
 0x410   : > { %7456 = vmatpush1.bf16.msra.mxu1 %v7374_v33  ;;  %v7382_v33 = vmul.bf16 %v7294_v5, %v14648_v18  ;;  %v7384_v45 = vmul.bf16 %v7308_v7, %v14646_v25  ;;  %v7386_v46 = vmul.bf16 %v7308_v7, %v14648_v18  ;;  %v14659_v5 = vld [vmem:[#allocation89_spill] sm:$0xff] }
 0x411   : > { %7457 = vmatprep.subr.bf16.mxu1 %v7377_v62  ;;  %v1168_v62 = vsel %vm955_vm11, %v13083_v42, 0.0 }
 0x412   : > { %v1222_v54 = vadd.f32 %v1168_v62, %v764_v52  ;;  %v9275_v52 = vld [vmem:[%s14157_s1 + $0x10] sm:$0xf] }
 0x414   : > { %7458 = vmatpush1.bf16.msra.mxu1 %v7376_v47  ;;  %v1169_v47 = vsel %vm956_vm10, %v13087_v10, 0.0 }
 0x415   : > { %7459 = vmatprep.subr.bf16.mxu1 %v7379_v11  ;;  %v7387_v11 = vmul.bf16 %v7315_v27, %v14647_v12  ;;  %v1223_v29 = vadd.f32 %v1169_v47, %v765_v3  ;;  %v14660_v3 = vld [vmem:[#allocation31_spill] sm:$0xff] }
 0x418   : > { %7460 = vmatpush1.bf16.msra.mxu1 %v7378_v16  ;;  %v9278_v16 = vpack.c.bf16 %v1223_v29, %v1222_v54 }
 0x419   : > { %7470 = vmatprep.subr.bf16.mxu1 %v7381_v28 }
 0x41a   : > { %v6075_v50 = vrot.slane %v9278_v16, %v14569_v4  ;;  %v14662_v16 = vld [vmem:[#allocation32_spill] sm:$0xff] }
 0x41b   : > { %7462 = vmatmul.mubr.bf16.vlgmr.msra.gmra.mrb[12].mxu1 %v11492_v24 }
 0x41c   : > { %7502 = vmatprep.mubr.bf16.mxu1 %v14649_v14  ;;  %7471 = vmatpush1.bf16.msra.mxu1 %v7380_v63  ;;  %v6091_v25 = vrot.slane %v6075_v50, %v14569_v4  ;;  %v6083_v28 = vcombine.high %v6075_v50, %v6075_v50 }
 0x41d   : > { %7472 = vmatprep.subr.bf16.mxu1 %v7383_v34 }
 0x41e   : > { %v9281_v20 = vpack.i.b16 %v6091_v25, %v6091_v25  ;;  %v6133_v38 = vunpack.i.h.s16 %v6091_v25  ;;  %v13127_v34 = vrot.slane %v6083_v28, %v14569_v4 }
 0x420   : > { %7473 = vmatpush1.bf16.msra.mxu1 %v7382_v33  ;;  %v6175_v12 = vrot.slane %v9281_v20, %v14579_v53  ;;  %v6171_v31 = vrot.slane %v9281_v20, %v14578_v13  ;;  %v6151_v58 = vpack.i.b16 %v6133_v38, %v6133_v38 }
 0x421   : > { %7474 = vmatprep.subr.bf16.mxu1 %v7385_v9  ;;  %v9282_v9 = vpack.i.b16 %v13127_v34, %v13127_v34 }
 0x422   : > { %v6320_v51 = vpack.i.b16 %v6175_v12, %v6175_v12  ;;  %v6313_v41 = vpack.i.b16 %v6171_v31, %v6171_v31  ;;  %v6183_v63 = vrot.slane %v6151_v58, %v14579_v53  ;;  %v6179_v33 = vrot.slane %v6151_v58, %v14578_v13 }
 0x423   : > { %v6191_v29 = vrot.slane %v9282_v9, %v14579_v53  ;;  %v6187_v20 = vrot.slane %v9282_v9, %v14578_v13 }
 0x424   : > { %7475 = vmatpush1.bf16.msra.mxu1 %v7384_v45  ;;  %v6325_v2 = vrot.slane %v6320_v51, %v14578_v13  ;;  %v6318_v27 = vrot.slane %v6313_v41, %v14578_v13  ;;  %v6334_v7 = vpack.i.b16 %v6183_v63, %v6183_v63  ;;  %v6327_v47 = vpack.i.b16 %v6179_v33, %v6179_v33  ;;  %v14661_v45 = vld [vmem:[#allocation90_spill] sm:$0xff] }
 0x425   : > { %7476 = vmatprep.subr.bf16.mxu1 %v7387_v11  ;;  %v6348_v51 = vpack.i.b16 %v6191_v29, %v6191_v29 }
 0x426   : > { %v6565_v0 = vmul.bf16 %v6325_v2, %v14659_v5  ;;  %v6564_v62 = vmul.bf16 %v6318_v27, %v14660_v3  ;;  %v6567_v11 = vmul.bf16 %v6325_v2, %v14661_v45  ;;  %v6339_v54 = vrot.slane %v6334_v7, %v14578_v13 }
 0x427   : > { %v6566_v50 = vmul.bf16 %v6318_v27, %v14662_v16  ;;  %v6113_v2 = vcombine.high %v6091_v25, %v6091_v25 }
 0x428   : > { %7477 = vmatpush1.bf16.msra.mxu1 %v7386_v46  ;;  %v6135_v46 = vunpack.i.h.s16 %v13127_v34  ;;  %v6569_v12 = vmul.bf16 %v6339_v54, %v14659_v5 }
 0x429   : > { %v9283_v28 = vpack.i.b16 %v6113_v2, %v6113_v2 }
 0x42b   : > { %9306 = vmatmul.mubr.msk.bf16.vlgmr.msra.gmra.mrb[12].mxu1 %vm2875_vm2, %v9558_v48  ;;  %v6332_v48 = vrot.slane %v6327_v47, %v14578_v13 }
 0x42c   : > { %8924 = vmatprep.mubr.bf16.mxu1 %v14658_v37 }
 0x42d   : > { %v6570_v31 = vmul.bf16 %v6332_v48, %v14662_v16 }
 0x49b   : > { %v5248_v6 = vpop.f32.mrb[16].mxu0 }
 0x49c   : > { %v5257_v39 = vpack.c.bf16 %v5248_v6, %v5248_v6  ;;  %v5250_v26 = vpop.f32.mrb[17].mxu0  ;;  %v6153_v6 = vpack.i.b16 %v6135_v46, %v6135_v46 }
 0x49d   : > { %v5258_v18 = vpack.c.bf16 %v5250_v26, %v5250_v26  ;;  %v5252_v56 = vpop.f32.mrb[18].mxu0  ;;  %v9189_v26 = vld [vmem:[%s9728_s30 + $0x38] sm:$0x1] }
 0x49e   : > { %v5263_v23 = vsel %vm3709_vm1, %v5257_v39, 0  ;;  %v5253_v43 = vpop.f32.mrb[19].mxu0  ;;  %v9188_v39 = vld [vmem:[%s9728_s30 + $0x30] sm:$0x1]  ;;  %v6341_v56 = vpack.i.b16 %v6187_v20, %v6187_v20  ;;  %v6199_v44 = vrot.slane %v6153_v6, %v14579_v53  ;;  %v6195_v58 = vrot.slane %v6153_v6, %v14578_v13 }
 0x49f   : > { %9260 = vmatprep.subr.msk.bf16.mxu0 %vm3709_vm1, %v5258_v18  ;;  %v6568_v18 = vmul.bf16 %v6332_v48, %v14660_v3  ;;  %v241_v38 = vfloor.f32 %v9188_v39  ;;  %v6353_v43 = vrot.slane %v6348_v51, %v14578_v13  ;;  %v293_v63 = vmax.f32 %v9188_v39, 0.0 }
 0x4a0   : > { %5269 = vmatpush1.bf16.msra.mxu0 %v5263_v23  ;;  %v6571_v23 = vmul.bf16 %v6339_v54, %v14661_v45  ;;  %v6362_v41 = vpack.i.b16 %v6199_v44, %v6199_v44  ;;  %v294_v27 = vmax.f32 %v9189_v26, 0.0  ;;  %v6355_v9 = vpack.i.b16 %v6195_v58, %v6195_v58 }
 0x4a1   : > { %9276 = vmatprep.subr.msk.bf16.mxu0 %vm3709_vm1, %v6010_v55  ;;  %v242_v55 = vfloor.f32 %v9189_v26  ;;  %v6573_v25 = vmul.bf16 %v6353_v43, %v14659_v5  ;;  %v6575_v47 = vmul.bf16 %v6353_v43, %v14661_v45  ;;  %v6137_v54 = vunpack.i.h.s16 %v6113_v2 }
 0x4a2   : > { %v13161_v29 = vmin.f32 %v293_v63, 17.0  ;;  %v13163_v46 = vmin.f32 %v294_v27, 17.0  ;;  %v6360_v20 = vrot.slane %v6355_v9, %v14578_v13  ;;  %v6203_v51 = vrot.slane %v9283_v28, %v14578_v13 }
 0x4a3   : > { %9261 = vmatmul.mubr.msk.bf16.vlgmr.msra.gmra.mrb[8].mxu0 %vm3705_vm3, %v9259_v19  ;;  %v265_v19 = vmax.f32 %v241_v38, 0.0  ;;  %v6155_v26 = vpack.i.b16 %v6137_v54, %v6137_v54  ;;  %v6115_v58 = vcombine.high %v13127_v34, %v13127_v34 }
 0x4a4   : > { %6021 = vmatpush1.bf16.msra.mxu0 %v6015_v36  ;;  %6052 = vmatprep.mubr.bf16.mxu0 %v14649_v14  ;;  %v266_v36 = vmax.f32 %v242_v55, 0.0  ;;  %v6578_v9 = vmul.bf16 %v6360_v20, %v14662_v16 }
 0x4a5   : > { %6636 = vmatprep.subr.bf16.mxu0 %v6565_v0  ;;  %v6346_v0 = vrot.slane %v6341_v56, %v14578_v13  ;;  %v269_v33 = vmin.f32 %v265_v19, 17.0  ;;  %v274_v56 = vadd.f32 1.0, %v242_v55  ;;  %v6369_v55 = vpack.i.b16 %v6203_v51, %v6203_v51 }
 0x4a6   : > { %v6211_v34 = vrot.slane %v6155_v26, %v14578_v13 }
 0x4a7   : > { %v6572_v7 = vmul.bf16 %v6346_v0, %v14660_v3  ;;  %v6574_v48 = vmul.bf16 %v6346_v0, %v14662_v16  ;;  %v317_v2 = vsub.f32 %v269_v33, %v13161_v29  ;;  %v6215_v0 = vrot.slane %v6155_v26, %v14579_v53 }
 0x4a8   : > { %v278_v27 = vmax.f32 %v274_v56, 0.0 }
 0x4aa   : > { %v282_v51 = vmin.f32 %v278_v27, 17.0 }
 0x4af   : > { %9277 = vmatmul.mubr.msk.bf16.vlgmr.msra.gmra.mrb[8].mxu0 %vm3705_vm3, %v9275_v52  ;;  %v6207_v52 = vrot.slane %v9283_v28, %v14579_v53  ;;  %v766_v28 = vsel %vm553_vm12, %v13072_v21, 0.0 }
 0x4b0   : > { %6637 = vmatpush1.bf16.msra.mxu0 %v6564_v62  ;;  %6668 = vmatprep.mubr.bf16.mxu0 %v14658_v37  ;;  %v270_v62 = vmin.f32 %v266_v36, 17.0  ;;  %v767_v36 = vsel %vm554_vm13, %v13079_v61, 0.0 }
 0x4b1   : > { %6638 = vmatprep.subr.bf16.mxu0 %v6567_v11  ;;  %v6367_v11 = vrot.slane %v6362_v41, %v14578_v13  ;;  %v1171_v41 = vsel %vm958_vm8, %v13087_v10, 0.0 }
 0x4b2   : > { %v9472_v6 = vtrunc.f32 %v270_v62 }
 0x4b3   : > { %v6577_v39 = vmul.bf16 %v6367_v11, %v14659_v5 }
 0x4b4   : > { %6639 = vmatpush1.bf16.msra.mxu0 %v6566_v50  ;;  %v9470_v50 = vtrunc.f32 %v269_v33  ;;  %v9473_v19 = vcvt.f32.s32 %v9472_v6  ;;  %v321_v33 = vadd.f32 1.0, %v317_v2  ;;  %v6139_v2 = vunpack.i.h.s16 %v6115_v58 }
 0x4b5   : > { %6640 = vmatprep.subr.bf16.mxu0 %v6569_v12  ;;  %v6376_v12 = vpack.i.b16 %v6207_v52, %v6207_v52 }
 0x4b6   : > { %v9471_v43 = vcvt.f32.s32 %v9470_v50  ;;  %v1225_v50 = vadd.f32 %v1171_v41, %v767_v36 }
 0x4b7   : > { %v6381_v44 = vrot.slane %v6376_v12, %v14578_v13 }
 0x4b8   : > { %6641 = vmatpush1.bf16.msra.mxu0 %v6568_v18  ;;  %v273_v18 = vadd.f32 1.0, %v241_v38  ;;  %v6576_v38 = vmul.bf16 %v6360_v20, %v14660_v3 }
 0x4b9   : > { %6642 = vmatprep.subr.bf16.mxu0 %v6571_v23  ;;  %v318_v23 = vsub.f32 %v270_v62, %v13163_v46  ;;  %v6581_v52 = vmul.bf16 %v6381_v44, %v14659_v5  ;;  %v6374_v62 = vrot.slane %v6369_v55, %v14578_v13  ;;  %v6583_v20 = vmul.bf16 %v6381_v44, %v14661_v45 }
 0x4ba   : > { %v277_v63 = vmax.f32 %v273_v18, 0.0  ;;  %v6383_v18 = vpack.i.b16 %v6211_v34, %v6211_v34 }
 0x4bc   : > { %6643 = vmatpush1.bf16.msra.mxu0 %v6570_v31  ;;  %v6579_v31 = vmul.bf16 %v6367_v11, %v14661_v45  ;;  %v9284_v11 = vpack.i.b16 %v6115_v58, %v6115_v58  ;;  %v281_v12 = vmin.f32 %v277_v63, 17.0 }
 0x4bd   : > { %6644 = vmatprep.subr.bf16.mxu0 %v6573_v25  ;;  %v1170_v25 = vsel %vm957_vm14, %v13083_v42, 0.0 }
 0x4be   : > { %v1224_v54 = vadd.f32 %v1170_v25, %v766_v28  ;;  %v6223_v26 = vrot.slane %v9284_v11, %v14579_v53  ;;  %v9478_v55 = vtrunc.f32 %v281_v12  ;;  %v6219_v44 = vrot.slane %v9284_v11, %v14578_v13 }
 0x4bf   : > { %v6157_v25 = vpack.i.b16 %v6139_v2, %v6139_v2  ;;  %v325_v63 = vsub.f32 %v281_v12, %v13161_v29  ;;  %v326_v29 = vsub.f32 %v282_v51, %v13163_v46 }
 0x4c0   : > { %6645 = vmatpush1.bf16.msra.mxu0 %v6572_v7  ;;  %v322_v7 = vadd.f32 1.0, %v318_v23  ;;  %v9279_v23 = vpack.c.bf16 %v1225_v50, %v1224_v54  ;;  %v6404_v36 = vpack.i.b16 %v6223_v26, %v6223_v26  ;;  %v9479_v27 = vcvt.f32.s32 %v9478_v55 }
 0x4c1   : > { %6646 = vmatprep.subr.bf16.mxu0 %v6575_v47  ;;  %v6390_v47 = vpack.i.b16 %v6215_v0, %v6215_v0  ;;  %v6388_v0 = vrot.slane %v6383_v18, %v14578_v13  ;;  %v329_v12 = vsub.f32 1.0, %v325_v63  ;;  %v330_v26 = vsub.f32 1.0, %v326_v29  ;;  %v14663_v63 = vld [vmem:[#allocation11_spill] sm:$0xff]  ;;  %v13291_v29 = vld [vmem:[%s9728_s30 + $0x18] sm:$0x1] }
 0x4c2   : > { %v1509_v6 = vcombine.low %v321_v33, %v322_v7  ;;  %v13204_v58 = vrot.slane %v9279_v23, %v14569_v4  ;;  %v6409_v34 = vrot.slane %v6404_v36, %v14578_v13 }
 0x4c3   : > { %v6395_v56 = vrot.slane %v6390_v47, %v14578_v13  ;;  %v6231_v47 = vrot.slane %v6157_v25, %v14579_v53 }
 0x4c4   : > { %6647 = vmatpush1.bf16.msra.mxu0 %v6574_v48  ;;  %v1296_v48 = vcombine.low %v9471_v43, %v9473_v19  ;;  %v9480_v43 = vtrunc.f32 %v282_v51  ;;  %v1516_v19 = vrot.slane %v1509_v6, %v14569_v4  ;;  %v13215_v11 = vrot.slane %v13204_v58, %v14569_v4 }
 0x4c5   : > { %6648 = vmatprep.subr.bf16.mxu0 %v6577_v39  ;;  %v6580_v39 = vmul.bf16 %v6374_v62, %v14660_v3  ;;  %v6585_v28 = vmul.bf16 %v6395_v56, %v14659_v5  ;;  %v6589_v46 = vmul.bf16 %v6409_v34, %v14659_v5  ;;  %v6418_v51 = vpack.i.b16 %v6231_v47, %v6231_v47  ;;  %v13288_v47 = vld [vmem:[%s9728_s30 + $0x10] sm:$0x1] }
 0x4c6   : > { %v9481_v33 = vcvt.f32.s32 %v9480_v43  ;;  %v1523_v7 = vrot.slane %v1516_v19, %v14569_v4  ;;  %v6141_v23 = vunpack.i.h.s16 %v13215_v11 }
 0x4c8   : > { %6649 = vmatpush1.bf16.msra.mxu0 %v6576_v38  ;;  %v1303_v38 = vrot.slane %v1296_v48, %v14569_v4  ;;  %v6227_v48 = vrot.slane %v6157_v25, %v14578_v13  ;;  %v1736_v6 = vcombine.low %v9479_v27, %v9481_v33  ;;  %v13228_v18 = vrot.slane %v1523_v7, %v14578_v13 }
 0x4c9   : > { %6650 = vmatprep.subr.bf16.mxu0 %v6579_v31  ;;  %v6582_v31 = vmul.bf16 %v6374_v62, %v14662_v16  ;;  %v6587_v62 = vmul.bf16 %v6395_v56, %v14661_v45  ;;  %v9285_v56 = vpack.i.b16 %v13215_v11, %v13215_v11  ;;  %v13236_v2 = vrot.slane %v1523_v7, %v14579_v53 }
 0x4ca   : > { %v1310_v41 = vrot.slane %v1303_v38, %v14569_v4  ;;  %v6411_v38 = vpack.i.b16 %v6227_v48, %v6227_v48  ;;  %v1743_v55 = vrot.slane %v1736_v6, %v14569_v4  ;;  %v1949_v25 = vcombine.low %v329_v12, %v330_v26  ;;  %v9192_v48 = vld [vmem:[%s9728_s30 + $0x50] sm:$0x1] }
 0x4cb   : > { %v9196_v26 = vmul.f32 -1.442695, %v9192_v48 }
 0x4cc   : > { %6651 = vmatpush1.bf16.msra.mxu0 %v6578_v9  ;;  %v6584_v9 = vmul.bf16 %v6388_v0, %v14660_v3  ;;  %v13219_v54 = vrot.slane %v1310_v41, %v14578_v13  ;;  %v13222_v50 = vrot.slane %v1310_v41, %v14579_v53  ;;  %v6159_v41 = vpack.i.b16 %v6141_v23, %v6141_v23 }
 0x4cd   : > { %6652 = vmatprep.subr.bf16.mxu0 %v6581_v52  ;;  %v6397_v52 = vpack.i.b16 %v6219_v44, %v6219_v44  ;;  %v6239_v44 = vrot.slane %v9285_v56, %v14579_v53  ;;  %v13278_v7 = vrot.slane %v6411_v38, %v14578_v13  ;;  %9549 = vpow2.f32 %v9196_v26 }
 0x4ce   : > { %vm1447_vm9 = vcmp.eq.s32.totalorder %v14657_v49, %v13219_v54  ;;  %vm1448_vm7 = vcmp.eq.s32.totalorder %v14657_v49, %v13222_v50  ;;  %vm1449_vm0 = vcmp.eq.s32.totalorder %v14619_v1, %v13219_v54  ;;  %vm1450_vm15 = vcmp.eq.s32.totalorder %v14619_v1, %v13222_v50 }
 0x4cf   : > { %vm1451_vm4 = vcmp.eq.s32.totalorder %v14612_v22, %v13219_v54  ;;  %vm1452_vm5 = vcmp.eq.s32.totalorder %v14612_v22, %v13222_v50  ;;  %v13252_v19 = vsel %vm1447_vm9, %v13228_v18, 0.0  ;;  %v13261_v36 = vsel %vm1449_vm0, %v13228_v18, 0.0 }
 0x4d0   : > { %6653 = vmatpush1.bf16.msra.mxu0 %v6580_v39  ;;  %v6586_v39 = vmul.bf16 %v6388_v0, %v14662_v16  ;;  %v6423_v0 = vrot.slane %v6418_v51, %v14578_v13  ;;  %vm1453_vm6 = vcmp.eq.s32.totalorder %v14663_v63, %v13219_v54  ;;  %v13269_v27 = vsel %vm1450_vm15, %v13236_v2, 0.0 }
 0x4d1   : > { %6654 = vmatprep.subr.bf16.mxu0 %v6583_v20  ;;  %v6402_v20 = vrot.slane %v6397_v52, %v14578_v13  ;;  %v13275_v33 = vsel %vm1451_vm4, %v13228_v18, 0.0  ;;  %vm1454_vm11 = vcmp.eq.s32.totalorder %v14663_v63, %v13222_v50  ;;  %v1750_v52 = vrot.slane %v1743_v55, %v14569_v4 }
 0x4d2   : > { %v6593_v12 = vmul.bf16 %v6423_v0, %v14659_v5  ;;  %v6432_v6 = vpack.i.b16 %v6239_v44, %v6239_v44  ;;  %v1956_v51 = vrot.slane %v1949_v25, %v14569_v4  ;;  %v6592_v23 = vmul.bf16 %v13278_v7, %v14660_v3 }
 0x4d3   : > { %v6588_v43 = vmul.bf16 %v6402_v20, %v14660_v3  ;;  %v6595_v25 = vmul.bf16 %v6423_v0, %v14661_v45  ;;  %vm555_vm15 = vcmp.eq.s32.totalorder %v14612_v22, %v13039_v17  ;;  %vm556_vm4 = vcmp.eq.s32.totalorder %v14612_v22, %v13049_v32 }
 0x4d4   : > { %6655 = vmatpush1.bf16.msra.mxu0 %v6582_v31  ;;  %v6591_v31 = vmul.bf16 %v6409_v34, %v14661_v45  ;;  %v6235_v34 = vrot.slane %v9285_v56, %v14578_v13  ;;  %v6437_v48 = vrot.slane %v6432_v6, %v14578_v13 }
 0x4d5   : > { %6656 = vmatprep.subr.bf16.mxu0 %v6585_v28  ;;  %v13258_v28 = vsel %vm1448_vm7, %v13236_v2, 0.0 }
 0x4d8   : > { %6657 = vmatpush1.bf16.msra.mxu0 %v6584_v9  ;;  %v6084_v9 = vcombine.high %v13204_v58, %v13204_v58  ;;  %v9193_v58 = vld [vmem:[%s9728_s30 + $0x58] sm:$0x1]  ;;  %s9567_s30 = scalar_lea.vmem %s9566_s29, 512 }
 0x4d9   : > { %6658 = vmatprep.subr.bf16.mxu0 %v6587_v62  ;;  %v6590_v62 = vmul.bf16 %v6402_v20, %v14662_v16  ;;  %v6247_v20 = vrot.slane %v6159_v41, %v14579_v53  ;;  %v9197_v56 = vmul.f32 -1.442695, %v9193_v58  ;;  %p9569_p2 = scmp.lt.s32.totalorder %s9567_s30, %s9561_s28 }
 0x4da   : > { %v13303_v38 = vrot.slane %v6084_v9, %v14569_v4  ;;  %v13315_v9 = vsel %vm1452_vm5, %v13236_v2, 0.0  ;;  %vm959_vm5 = vcmp.eq.s32.totalorder %v14612_v22, %v13059_v57 }
 0x4db   : > { %9551 = vpow2.f32 %v9197_v56  ;;  %v1963_v56 = vrot.slane %v1956_v51, %v14569_v4  ;;  %p9570_p3 = por %p9569_p2, %p9568_p1 }
 0x4dc   : > { %6659 = vmatpush1.bf16.msra.mxu0 %v6586_v39  ;;  %v237_v39 = vfloor.f32 %v13288_v47  ;;  %v9286_v0 = vpack.i.b16 %v13303_v38, %v13303_v38  ;;  %v6143_v6 = vunpack.i.h.s16 %v13303_v38 }
 0x4dd   : > { %6660 = vmatprep.subr.bf16.mxu0 %v6589_v46  ;;  %v238_v46 = vfloor.f32 %v13291_v29  ;;  %p9571_p5 = pnand %p9570_p3, %p9564_p0 }
 0x4de   : > { %v253_v55 = vadd.f32 1.0, %v237_v39  ;;  %v13305_v44 = vmax.f32 %v237_v39, 0.0  ;;  %v13319_v39 = vrot.slane %v1750_v52, %v14578_v13  ;;  %v6161_v54 = vpack.i.b16 %v6143_v6, %v6143_v6  ;;  %v9550_v6 = vpop.eup %9549 }
 0x4df   : > { %v13307_v37 = vmax.f32 %v238_v46, 0.0  ;;  %v345_v40 = vadd.f32 1.0, %v9550_v6 }
 0x4e0   : > { %6661 = vmatpush1.bf16.msra.mxu0 %v6588_v43  ;;  %v254_v43 = vadd.f32 1.0, %v238_v46  ;;  %v257_v58 = vmax.f32 %v253_v55, 0.0  ;;  %v6594_v46 = vmul.bf16 %v13278_v7, %v14662_v16  ;;  %v13342_v7 = vsel %vm1453_vm6, %v13228_v18, 0.0 }
 0x4e1   : > { %6662 = vmatprep.subr.bf16.mxu0 %v6591_v31  ;;  %v6425_v31 = vpack.i.b16 %v6235_v34, %v6235_v34  ;;  %v6243_v34 = vrot.slane %v6159_v41, %v14578_v13  ;;  %v249_v41 = vmin.f32 %v13305_v44, 17.0  ;;  %v14251_v26 = vmin.f32 %v13307_v37, 17.0  ;;  %14664 = vst [vmem:[#allocation98_spill] sm:$0xff] %v13342_v7 }
 0x4e2   : > { %v258_v15 = vmax.f32 %v254_v43, 0.0  ;;  %v13334_v55 = vmin.f32 %v257_v58, 17.0  ;;  %vm1887_vm10 = vcmp.eq.s32.totalorder %v14657_v49, %v13319_v39  ;;  %vm1889_vm13 = vcmp.eq.s32.totalorder %v14619_v1, %v13319_v39 }
 0x4e3   : > { %vm1891_vm8 = vcmp.eq.s32.totalorder %v14612_v22, %v13319_v39  ;;  %v285_v18 = vmax.f32 %v13288_v47, 0.0  ;;  %v9456_v44 = vtrunc.f32 %v14251_v26  ;;  %v6599_v58 = vmul.bf16 %v6437_v48, %v14661_v45 }
 0x4e4   : > { %6663 = vmatpush1.bf16.msra.mxu0 %v6590_v62  ;;  %v6446_v62 = vpack.i.b16 %v6247_v20, %v6247_v20  ;;  %v6430_v20 = vrot.slane %v6425_v31, %v14578_v13  ;;  %v13336_v43 = vmin.f32 %v258_v15, 17.0  ;;  %v6439_v31 = vpack.i.b16 %v6243_v34, %v6243_v34 }
 0x4e5   : > { %6664 = vmatprep.subr.bf16.mxu0 %v6593_v12  ;;  %v13322_v12 = vrot.slane %v1750_v52, %v14579_v53  ;;  %v6597_v52 = vmul.bf16 %v6437_v48, %v14659_v5  ;;  %v6255_v15 = vrot.slane %v9286_v0, %v14579_v53  ;;  %v286_v26 = vmax.f32 %v13291_v29, 0.0  ;;  %v9552_v14 = vpop.eup %9551 }
 0x4e6   : > { %v13351_v51 = vrot.slane %v6446_v62, %v14578_v13  ;;  %v6596_v50 = vmul.bf16 %v6430_v20, %v14660_v3  ;;  %v9462_v62 = vtrunc.f32 %v13334_v55  ;;  %v9464_v34 = vtrunc.f32 %v13336_v43 }
 0x4e7   : > { %vm1888_vm12 = vcmp.eq.s32.totalorder %v14657_v49, %v13322_v12  ;;  %vm1890_vm14 = vcmp.eq.s32.totalorder %v14619_v1, %v13322_v12  ;;  %v13378_v8 = vrot.slane %v6439_v31, %v14578_v13  ;;  %v6251_v48 = vrot.slane %v9286_v0, %v14578_v13 }
 0x4e8   : > { %6665 = vmatpush1.bf16.msra.mxu0 %v6592_v23  ;;  %v13348_v23 = vsel %vm1454_vm11, %v13236_v2, 0.0  ;;  %v9454_v2 = vtrunc.f32 %v249_v41  ;;  %v6601_v47 = vmul.bf16 %v13351_v51, %v14659_v5  ;;  %v6263_v30 = vrot.slane %v6161_v54, %v14579_v53 }
 0x4e9   : > { %6666 = vmatprep.subr.bf16.mxu0 %v6595_v25  ;;  %14665 = vst [vmem:[#allocation49_spill] sm:$0xff] %v13348_v23  ;;  %v13369_v25 = vrot.slane %v1963_v56, %v14578_v13  ;;  %v289_v24 = vmin.f32 %v285_v18, 17.0  ;;  %v9457_v31 = vcvt.f32.s32 %v9456_v44  ;;  %v346_v23 = vadd.f32 1.0, %v9552_v14 }
 0x4ea   : > { %v9455_v7 = vcvt.f32.s32 %v9454_v2  ;;  %9553 = vrcp.f32 %v345_v40  ;;  %v9463_v29 = vcvt.f32.s32 %v9462_v62  ;;  %vm1892_vm9 = vcmp.eq.s32.totalorder %v14612_v22, %v13322_v12 }
 0x4eb   : > { %v13389_v0 = vrot.slane %v1963_v56, %v14579_v53  ;;  %v6600_v14 = vmul.bf16 %v13378_v8, %v14660_v3  ;;  %v6453_v40 = vpack.i.b16 %v6251_v48, %v6251_v48  ;;  %9555 = vrcp.f32 %v346_v23 }
 0x4ec   : > { %6667 = vmatpush1.bf16.msra.mxu0 %v6594_v46  ;;  %v6598_v46 = vmul.bf16 %v6430_v20, %v14662_v16  ;;  %v6259_v20 = vrot.slane %v6161_v54, %v14578_v13  ;;  %v290_v54 = vmin.f32 %v286_v26, 17.0  ;;  %v6603_v56 = vmul.bf16 %v13351_v51, %v14661_v45 }
 0x4ed   : > { %6677 = vmatprep.subr.bf16.mxu0 %v6597_v52  ;;  %v6460_v52 = vpack.i.b16 %v6255_v15, %v6255_v15  ;;  %v6114_v15 = vcombine.high %v13215_v11, %v13215_v11  ;;  %v6474_v18 = vpack.i.b16 %v6263_v30, %v6263_v30  ;;  %v301_v2 = vsub.f32 %v249_v41, %v289_v24 }
 0x4ee   : > { %v309_v11 = vsub.f32 %v13334_v55, %v289_v24  ;;  %v6467_v44 = vpack.i.b16 %v6259_v20, %v6259_v20  ;;  %v14666_v6 = vmin.f32 %v13307_v37, 17.0  ;;  %v310_v30 = vsub.f32 %v13336_v43, %v290_v54 }
 0x4ef   : > { %6669 = vmatmul.mubr.bf16.vlgmr.msra.gmra.mrb[20].mxu0 %v11455_v35  ;;  %v9465_v35 = vcvt.f32.s32 %v9464_v34  ;;  %v6465_v26 = vrot.slane %v6460_v52, %v14578_v13  ;;  %v13409_v34 = vsel %vm1888_vm12, %v13389_v0, 0.0  ;;  %v9287_v23 = vpack.i.b16 %v6114_v15, %v6114_v15 }
 0x4f0   : > { %6678 = vmatpush1.bf16.msra.mxu0 %v6596_v50  ;;  %6709 = vmatprep.mubr.bf16.mxu0 %v11635_v59  ;;  %v13397_v50 = vsel %vm1887_vm10, %v13369_v25, 0.0  ;;  %v302_v51 = vsub.f32 %v14666_v6, %v290_v54  ;;  %v13418_v24 = vsel %vm1889_vm13, %v13369_v25, 0.0  ;;  %v13430_v37 = vsel %vm1891_vm8, %v13369_v25, 0.0 }
 0x4f1   : > { %6679 = vmatprep.subr.bf16.mxu0 %v6599_v58  ;;  %v434_v58 = vcombine.low %v9455_v7, %v9457_v31  ;;  %v838_v62 = vcombine.low %v9463_v29, %v9465_v35  ;;  %v13424_v35 = vsel %vm1890_vm14, %v13389_v0, 0.0  ;;  %v6458_v41 = vrot.slane %v6453_v40, %v14578_v13 }
 0x4f2   : > { %v6602_v55 = vmul.bf16 %v13378_v8, %v14662_v16  ;;  %v13436_v43 = vrot.slane %v6474_v18, %v14578_v13  ;;  %v305_v7 = vadd.f32 1.0, %v301_v2  ;;  %v13440_v52 = vrot.slane %v6467_v44, %v14578_v13 }
 0x4f3   : > { %v441_v48 = vrot.slane %v434_v58, %v14569_v4  ;;  %v845_v20 = vrot.slane %v838_v62, %v14569_v4  ;;  %v6271_v31 = vrot.slane %v9287_v23, %v14579_v53  ;;  %v6145_v29 = vunpack.i.h.s16 %v6114_v15 }
 0x4f4   : > { %6680 = vmatpush1.bf16.msra.mxu0 %v6598_v46  ;;  %v313_v46 = vsub.f32 1.0, %v309_v11  ;;  %v306_v54 = vadd.f32 1.0, %v302_v51  ;;  %v314_v8 = vsub.f32 1.0, %v310_v30  ;;  %v13449_v40 = vsel %vm1892_vm9, %v13389_v0, 0.0 }
 0x4f5   : > { %6681 = vmatprep.subr.bf16.mxu0 %v6601_v47  ;;  %v6605_v47 = vmul.bf16 %v6465_v26, %v14659_v5  ;;  %v6607_v18 = vmul.bf16 %v6465_v26, %v14661_v45  ;;  %v6267_v2 = vrot.slane %v9287_v23, %v14578_v13  ;;  %v6606_v11 = vmul.bf16 %v6458_v41, %v14662_v16 }
 0x4f6   : > { %v6609_v15 = vmul.bf16 %v13436_v43, %v14659_v5  ;;  %v6608_v6 = vmul.bf16 %v13440_v52, %v14660_v3  ;;  %v6611_v51 = vmul.bf16 %v13436_v43, %v14661_v45  ;;  %v448_v26 = vrot.slane %v441_v48, %v14569_v4 }
 0x4f7   : > { %v852_v23 = vrot.slane %v845_v20, %v14569_v4  ;;  %v6488_v30 = vpack.i.b16 %v6271_v31, %v6271_v31  ;;  %vm1893_vm7 = vcmp.eq.s32.totalorder %v14663_v63, %v13319_v39  ;;  %vm1894_vm0 = vcmp.eq.s32.totalorder %v14663_v63, %v13322_v12 }
 0x4f8   : > { %6682 = vmatpush1.bf16.msra.mxu0 %v6600_v14  ;;  %v9554_v14 = vpop.eup %9553  ;;  %vm960_vm6 = vcmp.eq.s32.totalorder %v14612_v22, %v13063_v60  ;;  %v13478_v48 = vrot.slane %v448_v26, %v14578_v13  ;;  %v2193_v39 = vadd.f32 %v13424_v35, %v13269_v27  ;;  %v2195_v27 = vadd.f32 %v13449_v40, %v13315_v9 }
 0x4f9   : > { %6683 = vmatprep.subr.bf16.mxu0 %v6603_v56  ;;  %v6604_v56 = vmul.bf16 %v6458_v41, %v14660_v3  ;;  %v357_v44 = vmul.f32 %v9554_v14, %v305_v7  ;;  %v361_v58 = vmul.f32 %v9554_v14, %v313_v46  ;;  %v9556_v62 = vpop.eup %9555  ;;  %v6610_v7 = vmul.bf16 %v13440_v52, %v14662_v16 }
 0x4fa   : > { %v358_v41 = vmul.f32 %v9556_v62, %v306_v54  ;;  %v362_v59 = vmul.f32 %v9556_v62, %v314_v8  ;;  %v6481_v46 = vpack.i.b16 %v6267_v2, %v6267_v2  ;;  %v13481_v52 = vrot.slane %v448_v26, %v14579_v53 }
 0x4fb   : > { %v13484_v20 = vrot.slane %v852_v23, %v14578_v13  ;;  %v13487_v31 = vrot.slane %v852_v23, %v14579_v53  ;;  %v769_v2 = vsel %vm556_vm4, %v13079_v61, 0.0  ;;  %vm569_vm11 = vcmp.eq.s32.totalorder %v14657_v49, %v13478_v48 }
 0x4fc   : > { %6684 = vmatpush1.bf16.msra.mxu0 %v6602_v55  ;;  %v6163_v55 = vpack.i.b16 %v6145_v29, %v6145_v29  ;;  %v629_v43 = vcombine.low %v357_v44, %v358_v41  ;;  %v13490_v29 = vrot.slane %v6488_v30, %v14578_v13  ;;  %v1172_v44 = vsel %vm959_vm5, %v13083_v42, 0.0 }
 0x4fd   : > { %6685 = vmatprep.subr.bf16.mxu0 %v6605_v47  ;;  %v1033_v47 = vcombine.low %v361_v58, %v362_v59  ;;  %vm570_vm10 = vcmp.eq.s32.totalorder %v14657_v49, %v13481_v52  ;;  %vm973_vm12 = vcmp.eq.s32.totalorder %v14657_v49, %v13484_v20  ;;  %vm974_vm13 = vcmp.eq.s32.totalorder %v14657_v49, %v13487_v31 }
 0x4fe   : > { %v6279_v54 = vrot.slane %v6163_v55, %v14579_v53  ;;  %v636_v59 = vrot.slane %v629_v43, %v14569_v4  ;;  %v6275_v14 = vrot.slane %v6163_v55, %v14578_v13  ;;  %v6486_v61 = vrot.slane %v6481_v46, %v14578_v13 }
 0x4ff   : > { %v1040_v8 = vrot.slane %v1033_v47, %v14569_v4  ;;  %v6613_v30 = vmul.bf16 %v13490_v29, %v14659_v5  ;;  %v2125_v46 = vsel %vm1894_vm0, %v13389_v0, 0.0  ;;  %v2190_v47 = vadd.f32 %v13397_v50, %v13252_v19  ;;  %v14667_v50 = vld [vmem:[#allocation49_spill] sm:$0xff] }
 0x500   : > { %6686 = vmatpush1.bf16.msra.mxu0 %v6604_v56  ;;  %v6116_v56 = vcombine.high %v13303_v38, %v13303_v38  ;;  %v1173_v38 = vsel %vm960_vm6, %v13087_v10, 0.0  ;;  %v643_v58 = vrot.slane %v636_v59, %v14569_v4  ;;  %v6502_v55 = vpack.i.b16 %v6279_v54, %v6279_v54 }
 0x501   : > { %6687 = vmatprep.subr.bf16.mxu0 %v6607_v18  ;;  %v768_v18 = vsel %vm555_vm15, %v13072_v21, 0.0  ;;  %v1047_v17 = vrot.slane %v1040_v8, %v14569_v4  ;;  %v2191_v59 = vadd.f32 %v13409_v34, %v13258_v28  ;;  %v2192_v54 = vadd.f32 %v13418_v24, %v13261_v36 }
 0x502   : > { %v13525_v32 = vrot.slane %v643_v58, %v14578_v13  ;;  %v13528_v57 = vrot.slane %v643_v58, %v14579_v53  ;;  %v9288_v42 = vpack.i.b16 %v6116_v56, %v6116_v56  ;;  %v1226_v10 = vadd.f32 %v1172_v44, %v768_v18 }
 0x503   : > { %v13531_v60 = vrot.slane %v1047_v17, %v14578_v13  ;;  %v13534_v21 = vrot.slane %v1047_v17, %v14579_v53  ;;  %v6147_v8 = vunpack.i.h.s16 %v6116_v56  ;;  %v2194_v19 = vadd.f32 %v13430_v37, %v13275_v33 }
 0x504   : > { %6688 = vmatpush1.bf16.msra.mxu0 %v6606_v11  ;;  %v1227_v11 = vadd.f32 %v1173_v38, %v769_v2  ;;  %v783_v62 = vsel %vm570_vm10, %v13528_v57, 0.0  ;;  %v6287_v63 = vrot.slane %v9288_v42, %v14579_v53  ;;  %v6615_v28 = vmul.bf16 %v13490_v29, %v14661_v45 }
 0x505   : > { %6689 = vmatprep.subr.bf16.mxu0 %v6609_v15  ;;  %v782_v15 = vsel %vm569_vm11, %v13525_v32, 0.0  ;;  %v1186_v26 = vsel %vm973_vm12, %v13531_v60, 0.0  ;;  %v1187_v23 = vsel %vm974_vm13, %v13534_v21, 0.0  ;;  %v6507_v36 = vrot.slane %v6502_v55, %v14578_v13 }
 0x506   : > { %v1240_v41 = vadd.f32 %v1186_v26, %v782_v15  ;;  %v1241_v43 = vadd.f32 %v1187_v23, %v783_v62  ;;  %v9280_v12 = vpack.c.bf16 %v1227_v11, %v1226_v10  ;;  %v2197_v34 = vadd.f32 %v2125_v46, %v14667_v50 }
 0x507   : > { %v6283_v35 = vrot.slane %v9288_v42, %v14578_v13  ;;  %v6165_v33 = vpack.i.b16 %v6147_v8, %v6147_v8  ;;  %v13576_v56 = vpack.c.bf16 %v2192_v54, %v2190_v47  ;;  %v6614_v2 = vmul.bf16 %v6486_v61, %v14662_v16 }
 0x508   : > { %6690 = vmatpush1.bf16.msra.mxu0 %v6608_v6  ;;  %v2124_v6 = vsel %vm1893_vm7, %v13369_v25, 0.0  ;;  %v9326_v18 = vpack.c.bf16 %v1241_v43, %v1240_v41  ;;  %v6612_v25 = vmul.bf16 %v6486_v61, %v14660_v3  ;;  %v6516_v44 = vpack.i.b16 %v6287_v63, %v6287_v63 }
 0x509   : > { %6691 = vmatprep.subr.bf16.mxu0 %v6611_v51  ;;  %v6495_v51 = vpack.i.b16 %v6275_v14, %v6275_v14  ;;  %v6124_v9 = vrot.slane %v9280_v12, %v14569_v4  ;;  %v6617_v40 = vmul.bf16 %v6507_v36, %v14659_v5  ;;  %v13587_v42 = vpack.c.bf16 %v2193_v39, %v2191_v59 }
 0x50a   : > { %v8331_v0 = vrot.slane %v9326_v18, %v14569_v4  ;;  %v13589_v10 = vpack.c.bf16 %v2197_v34, %v2195_v27  ;;  %v6509_v11 = vpack.i.b16 %v6283_v35, %v6283_v35  ;;  %v6295_v15 = vrot.slane %v6165_v33, %v14579_v53 }
 0x50b   : > { %v6500_v24 = vrot.slane %v6495_v51, %v14578_v13  ;;  %v6521_v55 = vrot.slane %v6516_v44, %v14578_v13  ;;  %v6131_v41 = vrot.slane %v6124_v9, %v14569_v4  ;;  %v6291_v8 = vrot.slane %v6165_v33, %v14578_v13 }
 0x50c   : > { %6692 = vmatpush1.bf16.msra.mxu0 %v6610_v7  ;;  %v14668_v7 = vld [vmem:[#allocation98_spill] sm:$0xff]  ;;  %v13574_v37 = vrot.slane %v8331_v0, %v14569_v4  ;;  %v8339_v29 = vcombine.high %v8331_v0, %v8331_v0  ;;  %v6514_v54 = vrot.slane %v6509_v11, %v14578_v13  ;;  %v6530_v18 = vpack.i.b16 %v6295_v15, %v6295_v15 }
 0x50d   : > { %6693 = vmatprep.subr.bf16.mxu0 %v6613_v30  ;;  %v2196_v14 = vadd.f32 %v2124_v6, %v14668_v7  ;;  %v6616_v61 = vmul.bf16 %v6500_v24, %v14660_v3  ;;  %v6619_v30 = vmul.bf16 %v6507_v36, %v14661_v45  ;;  %v6618_v12 = vmul.bf16 %v6500_v24, %v14662_v16 }
 0x50e   : > { %v9329_v38 = vpack.i.b16 %v13574_v37, %v13574_v37  ;;  %v8389_v58 = vunpack.i.h.s16 %v13574_v37  ;;  %v13585_v17 = vrot.slane %v8339_v29, %v14569_v4  ;;  %v9289_v36 = vpack.i.b16 %v6131_v41, %v6131_v41 }
 0x50f   : > { %v13602_v59 = vpack.c.bf16 %v2196_v14, %v2194_v19  ;;  %v6620_v14 = vmul.bf16 %v6514_v54, %v14660_v3  ;;  %v6623_v24 = vmul.bf16 %v6521_v55, %v14661_v45  ;;  %v6535_v33 = vrot.slane %v6530_v18, %v14578_v13 }
 0x510   : > { %6694 = vmatpush1.bf16.msra.mxu0 %v6612_v25  ;;  %v8431_v62 = vrot.slane %v9329_v38, %v14579_v53  ;;  %v8427_v26 = vrot.slane %v9329_v38, %v14578_v13  ;;  %v8407_v23 = vpack.i.b16 %v8389_v58, %v8389_v58  ;;  %v9330_v43 = vpack.i.b16 %v13585_v17, %v13585_v17 }
 0x511   : > { %6695 = vmatprep.subr.bf16.mxu0 %v6615_v28  ;;  %v6621_v28 = vmul.bf16 %v6521_v55, %v14659_v5  ;;  %v8391_v7 = vunpack.i.h.s16 %v13585_v17  ;;  %v6523_v29 = vpack.i.b16 %v6291_v8, %v6291_v8  ;;  %v6303_v38 = vrot.slane %v9289_v36, %v14579_v53 }
 0x512   : > { %v8576_v6 = vpack.i.b16 %v8431_v62, %v8431_v62  ;;  %v8569_v46 = vpack.i.b16 %v8427_v26, %v8427_v26  ;;  %v8439_v47 = vrot.slane %v8407_v23, %v14579_v53  ;;  %v8435_v51 = vrot.slane %v8407_v23, %v14578_v13 }
 0x513   : > { %v8447_v34 = vrot.slane %v9330_v43, %v14579_v53  ;;  %v8409_v11 = vpack.i.b16 %v8391_v7, %v8391_v7  ;;  %v6622_v15 = vmul.bf16 %v6514_v54, %v14662_v16  ;;  %v6625_v62 = vmul.bf16 %v6535_v33, %v14659_v5 }
 0x514   : > { %6696 = vmatpush1.bf16.msra.mxu0 %v6614_v2  ;;  %v8581_v39 = vrot.slane %v8576_v6, %v14578_v13  ;;  %v8574_v25 = vrot.slane %v8569_v46, %v14578_v13  ;;  %v8590_v63 = vpack.i.b16 %v8439_v47, %v8439_v47  ;;  %v8583_v0 = vpack.i.b16 %v8435_v51, %v8435_v51 }
 0x515   : > { %6697 = vmatprep.subr.bf16.mxu0 %v6617_v40  ;;  %v6149_v2 = vunpack.i.h.s16 %v6131_v41  ;;  %v8443_v40 = vrot.slane %v9330_v43, %v14578_v13  ;;  %v6528_v26 = vrot.slane %v6523_v29, %v14578_v13  ;;  %v6299_v23 = vrot.slane %v9289_v36, %v14578_v13 }
 0x516   : > { %v8821_v19 = vmul.bf16 %v8581_v39, %v13587_v42  ;;  %v8820_v27 = vmul.bf16 %v8574_v25, %v13576_v56  ;;  %v8823_v50 = vmul.bf16 %v8581_v39, %v13589_v10  ;;  %v8595_v35 = vrot.slane %v8590_v63, %v14578_v13 }
 0x517   : > { %v8822_v44 = vmul.bf16 %v8574_v25, %v13602_v59  ;;  %v8588_v9 = vrot.slane %v8583_v0, %v14578_v13  ;;  %v8597_v41 = vpack.i.b16 %v8443_v40, %v8443_v40  ;;  %v6544_v43 = vpack.i.b16 %v6303_v38, %v6303_v38 }
 0x518   : > { %6698 = vmatpush1.bf16.msra.mxu0 %v6616_v61  ;;  %8892 = vmatprep.subr.bf16.mxu1 %v8821_v19  ;;  %v8825_v58 = vmul.bf16 %v8595_v35, %v13587_v42  ;;  %v8604_v61 = vpack.i.b16 %v8447_v34, %v8447_v34  ;;  %v8827_v6 = vmul.bf16 %v8595_v35, %v13589_v10 }
 0x519   : > { %6699 = vmatprep.subr.bf16.mxu0 %v6619_v30  ;;  %8893 = vmatpush1.bf16.msra.mxu1 %v8820_v27  ;;  %v6167_v30 = vpack.i.b16 %v6149_v2, %v6149_v2  ;;  %v8824_v55 = vmul.bf16 %v8588_v9, %v13576_v56  ;;  %v8455_v47 = vrot.slane %v8409_v11, %v14579_v53 }
 0x51a   : > { %8894 = vmatprep.subr.bf16.mxu1 %v8823_v50  ;;  %v8609_v46 = vrot.slane %v8604_v61, %v14578_v13  ;;  %v8369_v51 = vcombine.high %v13574_v37, %v13574_v37  ;;  %v6624_v54 = vmul.bf16 %v6528_v26, %v14660_v3  ;;  %v6627_v8 = vmul.bf16 %v6535_v33, %v14661_v45 }
 0x51b   : > { %v6537_v18 = vpack.i.b16 %v6299_v23, %v6299_v23  ;;  %v6311_v39 = vrot.slane %v6167_v30, %v14579_v53  ;;  %v8826_v25 = vmul.bf16 %v8588_v9, %v13602_v59  ;;  %v8602_v63 = vrot.slane %v8597_v41, %v14578_v13  ;;  %v14669_v23 = vld [vmem:[#allocation43_spill] sm:$0xff] }
 0x51c   : > { %6700 = vmatpush1.bf16.msra.mxu0 %v6618_v12  ;;  %v6549_v12 = vrot.slane %v6544_v43, %v14578_v13  ;;  %v8451_v37 = vrot.slane %v8409_v11, %v14578_v13  ;;  %v8618_v36 = vpack.i.b16 %v8455_v47, %v8455_v47  ;;  %v9331_v0 = vpack.i.b16 %v8369_v51, %v8369_v51 }
 0x51d   : > { %6701 = vmatprep.subr.bf16.mxu0 %v6621_v28  ;;  %8895 = vmatpush1.bf16.msra.mxu1 %v8822_v44  ;;  %v8829_v28 = vmul.bf16 %v8609_v46, %v13587_v42  ;;  %v6626_v19 = vmul.bf16 %v6528_v26, %v14662_v16  ;;  %v6307_v27 = vrot.slane %v6167_v30, %v14578_v13  ;;  %v8393_v2 = vunpack.i.h.s16 %v8369_v51 }
 0x51e   : > { %8896 = vmatprep.subr.bf16.mxu1 %v8825_v58  ;;  %v6542_v50 = vrot.slane %v6537_v18, %v14578_v13  ;;  %v6558_v34 = vpack.i.b16 %v6311_v39, %v6311_v39  ;;  %v8828_v35 = vmul.bf16 %v8602_v63, %v13576_v56  ;;  %v6629_v7 = vmul.bf16 %v6549_v12, %v14659_v5 }
 0x51f   : > { %v8623_v33 = vrot.slane %v8618_v36, %v14578_v13  ;;  %v8463_v29 = vrot.slane %v9331_v0, %v14579_v53  ;;  %v6551_v44 = vpack.i.b16 %v6307_v27, %v6307_v27  ;;  %v6631_v40 = vmul.bf16 %v6549_v12, %v14661_v45 }
 0x520   : > { %6702 = vmatpush1.bf16.msra.mxu0 %v6620_v14  ;;  %v8831_v14 = vmul.bf16 %v8609_v46, %v13589_v10  ;;  %v6628_v9 = vmul.bf16 %v6542_v50, %v14660_v3  ;;  %v6563_v38 = vrot.slane %v6558_v34, %v14578_v13  ;;  %v8830_v58 = vmul.bf16 %v8602_v63, %v13602_v59 }
 0x521   : > { %6703 = vmatprep.subr.bf16.mxu0 %v6623_v24  ;;  %8897 = vmatpush1.bf16.msra.mxu1 %v8824_v55  ;;  %v8611_v24 = vpack.i.b16 %v8451_v37, %v8451_v37  ;;  %v8459_v11 = vrot.slane %v9331_v0, %v14578_v13  ;;  %v8411_v26 = vpack.i.b16 %v8393_v2, %v8393_v2  ;;  %v14670_v41 = vmov 0  }
 0x522   : > { %8898 = vmatprep.subr.bf16.mxu1 %v8827_v6  ;;  %v6630_v30 = vmul.bf16 %v6542_v50, %v14662_v16  ;;  %v6556_v55 = vrot.slane %v6551_v44, %v14578_v13  ;;  %v6633_v43 = vmul.bf16 %v6563_v38, %v14659_v5  ;;  %v8835_v47 = vmul.bf16 %v8623_v33, %v13589_v10 }
 0x523   : > { %v8616_v61 = vrot.slane %v8611_v24, %v14578_v13  ;;  %v8625_v46 = vpack.i.b16 %v8459_v11, %v8459_v11  ;;  %v6635_v39 = vmul.bf16 %v6563_v38, %v14661_v45  ;;  %v8467_v63 = vrot.slane %v8411_v26, %v14578_v13 }
 0x524   : > { %6704 = vmatpush1.bf16.msra.mxu0 %v6622_v15  ;;  %v8833_v15 = vmul.bf16 %v8623_v33, %v13587_v42  ;;  %v6632_v18 = vmul.bf16 %v6556_v55, %v14660_v3  ;;  %vm571_vm14 = vcmp.eq.s32.totalorder %v14619_v1, %v13478_v48  ;;  %vm572_vm8 = vcmp.eq.s32.totalorder %v14619_v1, %v13481_v52 }
 0x525   : > { %6705 = vmatprep.subr.bf16.mxu0 %v6625_v62  ;;  %8899 = vmatpush1.bf16.msra.mxu1 %v8826_v25  ;;  %v8632_v62 = vpack.i.b16 %v8463_v29, %v8463_v29  ;;  %v8832_v6 = vmul.bf16 %v8616_v61, %v13576_v56  ;;  %v8834_v5 = vmul.bf16 %v8616_v61, %v13602_v59  ;;  %v13698_v61 = vpop.f32.mrb[12].mxu1 }
 0x526   : > { %8900 = vmatprep.subr.bf16.mxu1 %v8829_v28  ;;  %v8630_v25 = vrot.slane %v8625_v46, %v14578_v13  ;;  %v8639_v45 = vpack.i.b16 %v8467_v63, %v8467_v63  ;;  %v13700_v11 = vpop.f32.mrb[13].mxu1  ;;  %vm975_vm9 = vcmp.eq.s32.totalorder %v14619_v1, %v13484_v20  ;;  %vm976_vm7 = vcmp.eq.s32.totalorder %v14619_v1, %v13487_v31 }
 0x527   : > { %v8637_v51 = vrot.slane %v8632_v62, %v14578_v13  ;;  %vm573_vm0 = vcmp.eq.s32.totalorder %v14612_v22, %v13478_v48  ;;  %vm574_vm15 = vcmp.eq.s32.totalorder %v14612_v22, %v13481_v52  ;;  %vm977_vm4 = vcmp.eq.s32.totalorder %v14612_v22, %v13484_v20 }
 0x528   : > { %6706 = vmatpush1.bf16.msra.mxu0 %v6624_v54  ;;  %v8471_v54 = vrot.slane %v8411_v26, %v14579_v53  ;;  %v8836_v3 = vmul.bf16 %v8630_v25, %v13576_v56  ;;  %v8838_v27 = vmul.bf16 %v8630_v25, %v13602_v59  ;;  %v8644_v50 = vrot.slane %v8639_v45, %v14578_v13 }
 0x529   : > { %6707 = vmatprep.subr.bf16.mxu0 %v6627_v8  ;;  %8901 = vmatpush1.bf16.msra.mxu1 %v8828_v35  ;;  %v8371_v8 = vcombine.high %v13585_v17, %v13585_v17  ;;  %v8837_v12 = vmul.bf16 %v8637_v51, %v13587_v42  ;;  %v6634_v17 = vmul.bf16 %v6556_v55, %v14662_v16  ;;  %v784_v55 = vsel %vm571_vm14, %v13525_v32, 0.0 }
 0x52a   : > { %8902 = vmatprep.subr.bf16.mxu1 %v8831_v14  ;;  %v8646_v28 = vpack.i.b16 %v8471_v54, %v8471_v54  ;;  %v8839_v36 = vmul.bf16 %v8637_v51, %v13589_v10  ;;  %v8840_v14 = vmul.bf16 %v8644_v50, %v13576_v56  ;;  %v8842_v2 = vmul.bf16 %v8644_v50, %v13602_v59 }
 0x52b   : > { %v9332_v37 = vpack.i.b16 %v8371_v8, %v8371_v8  ;;  %v8395_v26 = vunpack.i.h.s16 %v8371_v8  ;;  %v1189_v51 = vsel %vm976_vm7, %v13534_v21, 0.0  ;;  %vm978_vm5 = vcmp.eq.s32.totalorder %v14612_v22, %v13487_v31 }
 0x52c   : > { %6708 = vmatpush1.bf16.msra.mxu0 %v6626_v19  ;;  %v8651_v0 = vrot.slane %v8646_v28, %v14578_v13  ;;  %v1190_v48 = vsel %vm977_vm4, %v13531_v60, 0.0 }
 0x52d   : > { %6718 = vmatprep.subr.bf16.mxu0 %v6629_v7  ;;  %8903 = vmatpush1.bf16.msra.mxu1 %v8830_v58  ;;  %v8479_v19 = vrot.slane %v9332_v37, %v14579_v53  ;;  %v8475_v16 = vrot.slane %v9332_v37, %v14578_v13  ;;  %v13684_v7 = vld.sshfl [vmem:[%s11431_s7 + $0x8] sm:$0x3 pattern:$0x76325410] }
 0x52e   : > { %8904 = vmatprep.subr.bf16.mxu1 %v8833_v15  ;;  %v8841_v34 = vmul.bf16 %v8651_v0, %v13587_v42  ;;  %v8843_v33 = vmul.bf16 %v8651_v0, %v13589_v10  ;;  %v7508_v15 = vpop.f32.mrb[14].mxu1 }
 0x52f   : > { %6710 = vmatmul.mubr.bf16.vlgmr.msra.gmra.mrb[20].mxu0 %v14669_v23  ;;  %v8660_v35 = vpack.i.b16 %v8479_v19, %v8479_v19  ;;  %v8653_v24 = vpack.i.b16 %v8475_v16, %v8475_v16  ;;  %v7509_v62 = vpop.f32.mrb[15].mxu1 }
 0x530   : > { %6719 = vmatpush1.bf16.msra.mxu0 %v6628_v9  ;;  %6750 = vmatprep.mubr.bf16.mxu0 %v14670_v41 }
 0x531   : > { %6720 = vmatprep.subr.bf16.mxu0 %v6631_v40  ;;  %8905 = vmatpush1.bf16.msra.mxu1 %v8832_v6  ;;  %v8665_v29 = vrot.slane %v8660_v35, %v14578_v13  ;;  %v8658_v44 = vrot.slane %v8653_v24, %v14578_v13  ;;  %v1188_v6 = vsel %vm975_vm9, %v13531_v60, 0.0 }
 0x532   : > { %8906 = vmatprep.subr.bf16.mxu1 %v8835_v47  ;;  %v1242_v54 = vadd.f32 %v1188_v6, %v784_v55 }
 0x533   : > { %v8845_v9 = vmul.bf16 %v8665_v29, %v13587_v42  ;;  %v8844_v40 = vmul.bf16 %v8658_v44, %v13576_v56  ;;  %v8847_v38 = vmul.bf16 %v8665_v29, %v13589_v10  ;;  %v8846_v58 = vmul.bf16 %v8658_v44, %v13602_v59 }
 0x534   : > { %6721 = vmatpush1.bf16.msra.mxu0 %v6630_v30  ;;  %v8413_v30 = vpack.i.b16 %v8395_v26, %v8395_v26 }
 0x535   : > { %6722 = vmatprep.subr.bf16.mxu0 %v6633_v43  ;;  %8907 = vmatpush1.bf16.msra.mxu1 %v8834_v5  ;;  %v785_v43 = vsel %vm572_vm8, %v13528_v57, 0.0 }
 0x536   : > { %8908 = vmatprep.subr.bf16.mxu1 %v8837_v12  ;;  %v8487_v46 = vrot.slane %v8413_v30, %v14579_v53  ;;  %v8483_v47 = vrot.slane %v8413_v30, %v14578_v13  ;;  %v1243_v8 = vadd.f32 %v1189_v51, %v785_v43 }
 0x538   : > { %6723 = vmatpush1.bf16.msra.mxu0 %v6632_v18  ;;  %v8674_v18 = vpack.i.b16 %v8487_v46, %v8487_v46  ;;  %v9327_v5 = vpack.c.bf16 %v1243_v8, %v1242_v54 }
 0x539   : > { %6724 = vmatprep.subr.bf16.mxu0 %v6635_v39  ;;  %8909 = vmatpush1.bf16.msra.mxu1 %v8836_v3  ;;  %v8667_v39 = vpack.i.b16 %v8483_v47, %v8483_v47 }
 0x53a   : > { %8910 = vmatprep.subr.bf16.mxu1 %v8839_v36  ;;  %v8679_v25 = vrot.slane %v8674_v18, %v14578_v13  ;;  %v8338_v12 = vrot.slane %v9327_v5, %v14569_v4 }
 0x53b   : > { %v8672_v63 = vrot.slane %v8667_v39, %v14578_v13 }
 0x53c   : > { %6725 = vmatpush1.bf16.msra.mxu0 %v6634_v17  ;;  %v8849_v28 = vmul.bf16 %v8679_v25, %v13587_v42  ;;  %v8851_v17 = vmul.bf16 %v8679_v25, %v13589_v10  ;;  %v8354_v3 = vrot.slane %v8338_v12, %v14569_v4  ;;  %v8340_v62 = vcombine.high %v8338_v12, %v8338_v12 }
 0x53d   : > { %8911 = vmatpush1.bf16.msra.mxu1 %v8838_v27  ;;  %v8848_v37 = vmul.bf16 %v8672_v63, %v13576_v56  ;;  %v8850_v45 = vmul.bf16 %v8672_v63, %v13602_v59 }
 0x53e   : > { %8912 = vmatprep.subr.bf16.mxu1 %v8841_v34  ;;  %v9333_v36 = vpack.i.b16 %v8354_v3, %v8354_v3  ;;  %v8397_v0 = vunpack.i.h.s16 %v8354_v3  ;;  %v8368_v43 = vrot.slane %v8340_v62, %v14569_v4 }
 0x53f   : > { %9290 = vmatmul.mubr.msk.bf16.vlgmr.msra.gmra.mrb[20].mxu0 %vm2875_vm2, %v13684_v7 }
 0x540   : > { %6804 = vmatprep.mubr.bf16.mxu0 %v14670_v41  ;;  %v8495_v19 = vrot.slane %v9333_v36, %v14579_v53  ;;  %v8491_v27 = vrot.slane %v9333_v36, %v14578_v13  ;;  %v8415_v50 = vpack.i.b16 %v8397_v0, %v8397_v0  ;;  %v9334_v6 = vpack.i.b16 %v8368_v43, %v8368_v43 }
 0x541   : > { %8913 = vmatpush1.bf16.msra.mxu1 %v8840_v14  ;;  %v8399_v8 = vunpack.i.h.s16 %v8368_v43  ;;  %v8370_v0 = vcombine.high %v8354_v3, %v8354_v3 }
 0x542   : > { %8914 = vmatprep.subr.bf16.mxu1 %v8843_v33  ;;  %v8688_v16 = vpack.i.b16 %v8495_v19, %v8495_v19  ;;  %v8681_v34 = vpack.i.b16 %v8491_v27, %v8491_v27  ;;  %v8503_v35 = vrot.slane %v8415_v50, %v14579_v53  ;;  %v8499_v14 = vrot.slane %v8415_v50, %v14578_v13 }
 0x543   : > { %v8511_v51 = vrot.slane %v9334_v6, %v14579_v53  ;;  %v8507_v54 = vrot.slane %v9334_v6, %v14578_v13  ;;  %v8417_v12 = vpack.i.b16 %v8399_v8, %v8399_v8  ;;  %v8372_v8 = vcombine.high %v8368_v43, %v8368_v43 }
 0x544   : > { %v8693_v24 = vrot.slane %v8688_v16, %v14578_v13  ;;  %v8686_v33 = vrot.slane %v8681_v34, %v14578_v13  ;;  %v8702_v29 = vpack.i.b16 %v8503_v35, %v8503_v35  ;;  %v8695_v44 = vpack.i.b16 %v8499_v14, %v8499_v14 }
 0x545   : > { %8915 = vmatpush1.bf16.msra.mxu1 %v8842_v2  ;;  %v14671_v2 = vld [vmem:[#allocation41_spill] sm:$0xff]  ;;  %v8716_v18 = vpack.i.b16 %v8511_v51, %v8511_v51  ;;  %v8709_v39 = vpack.i.b16 %v8507_v54, %v8507_v54  ;;  %v8515_v36 = vrot.slane %v8417_v12, %v14578_v13  ;;  %v9335_v16 = vpack.i.b16 %v8370_v0, %v8370_v0 }
 0x546   : > { %8916 = vmatprep.subr.bf16.mxu1 %v8845_v9  ;;  %v8853_v9 = vmul.bf16 %v8693_v24, %v13587_v42  ;;  %v8707_v15 = vrot.slane %v8702_v29, %v14578_v13  ;;  %v8854_v26 = vmul.bf16 %v8686_v33, %v13602_v59  ;;  %v8700_v30 = vrot.slane %v8695_v44, %v14578_v13 }
 0x547   : > { %v8721_v25 = vrot.slane %v8716_v18, %v14578_v13  ;;  %v8714_v63 = vrot.slane %v8709_v39, %v14578_v13  ;;  %v8723_v27 = vpack.i.b16 %v8515_v36, %v8515_v36  ;;  %v8527_v14 = vrot.slane %v9335_v16, %v14579_v53 }
 0x548   : > { %v8857_v55 = vmul.bf16 %v8707_v15, %v13587_v42  ;;  %v8856_v46 = vmul.bf16 %v8700_v30, %v13576_v56  ;;  %v8859_v47 = vmul.bf16 %v8707_v15, %v13589_v10  ;;  %v8858_v5 = vmul.bf16 %v8700_v30, %v13602_v59 }
 0x549   : > { %8917 = vmatpush1.bf16.msra.mxu1 %v8844_v40  ;;  %v8852_v40 = vmul.bf16 %v8686_v33, %v13576_v56  ;;  %v8862_v50 = vmul.bf16 %v8714_v63, %v13602_v59  ;;  %v8728_v35 = vrot.slane %v8723_v27, %v14578_v13  ;;  %v8744_v29 = vpack.i.b16 %v8527_v14, %v8527_v14 }
 0x54a   : > { %8918 = vmatprep.subr.bf16.mxu1 %v8847_v38  ;;  %v8855_v38 = vmul.bf16 %v8693_v24, %v13589_v10  ;;  %v8523_v24 = vrot.slane %v9335_v16, %v14578_v13  ;;  %v8403_v36 = vunpack.i.h.s16 %v8372_v8 }
 0x54b   : > { %v8864_v3 = vmul.bf16 %v8728_v35, %v13576_v56  ;;  %v8866_v15 = vmul.bf16 %v8728_v35, %v13602_v59 }
 0x54c   : > { %v8737_v44 = vpack.i.b16 %v8523_v24, %v8523_v24 }
 0x54d   : > { %8919 = vmatpush1.bf16.msra.mxu1 %v8846_v58  ;;  %v14672_v58 = vld [vmem:[#allocation44_spill] sm:$0xff] }
 0x54e   : > { %8920 = vmatprep.subr.bf16.mxu1 %v8849_v28  ;;  %v8861_v28 = vmul.bf16 %v8721_v25, %v13587_v42  ;;  %v8742_v62 = vrot.slane %v8737_v44, %v14578_v13  ;;  %v787_v44 = vsel %vm574_vm15, %v13528_v57, 0.0 }
 0x550   : > { %v8870_v39 = vmul.bf16 %v8742_v62, %v13602_v59 }
 0x551   : > { %8921 = vmatpush1.bf16.msra.mxu1 %v8848_v37  ;;  %v8860_v37 = vmul.bf16 %v8714_v63, %v13576_v56 }
 0x552   : > { %8922 = vmatprep.subr.bf16.mxu1 %v8851_v17  ;;  %v8863_v17 = vmul.bf16 %v8721_v25, %v13589_v10  ;;  %v9336_v25 = vpack.i.b16 %v8372_v8, %v8372_v8 }
 0x555   : > { %8923 = vmatpush1.bf16.msra.mxu1 %v8850_v45  ;;  %v8519_v45 = vrot.slane %v8417_v12, %v14579_v53  ;;  %v8543_v12 = vrot.slane %v9336_v25, %v14579_v53 }
 0x556   : > { %8933 = vmatprep.subr.bf16.mxu1 %v8853_v9 }
 0x557   : > { %v8730_v19 = vpack.i.b16 %v8519_v45, %v8519_v45 }
 0x558   : > { %8925 = vmatmul.mubr.bf16.vlgmr.msra.gmra.mrb[16].mxu1 %v14671_v2 }
 0x559   : > { %8965 = vmatprep.mubr.bf16.mxu1 %v14672_v58  ;;  %8934 = vmatpush1.bf16.msra.mxu1 %v8852_v40  ;;  %v8735_v34 = vrot.slane %v8730_v19, %v14578_v13  ;;  %v8749_v40 = vrot.slane %v8744_v29, %v14578_v13  ;;  %v786_v29 = vsel %vm573_vm0, %v13525_v32, 0.0 }
 0x55a   : > { %8935 = vmatprep.subr.bf16.mxu1 %v8855_v38  ;;  %v8401_v38 = vunpack.i.h.s16 %v8370_v0 }
 0x55b   : > { %v8865_v33 = vmul.bf16 %v8735_v34, %v13587_v42  ;;  %v8867_v9 = vmul.bf16 %v8735_v34, %v13589_v10 }
 0x55c   : > { %v8419_v30 = vpack.i.b16 %v8401_v38, %v8401_v38 }
 0x55d   : > { %8936 = vmatpush1.bf16.msra.mxu1 %v8854_v26  ;;  %v8869_v26 = vmul.bf16 %v8749_v40, %v13587_v42 }
 0x55e   : > { %8937 = vmatprep.subr.bf16.mxu1 %v8857_v55  ;;  %v8535_v55 = vrot.slane %v8419_v30, %v14579_v53  ;;  %v8531_v6 = vrot.slane %v8419_v30, %v14578_v13 }
 0x560   : > { %v8758_v51 = vpack.i.b16 %v8535_v55, %v8535_v55  ;;  %v8751_v54 = vpack.i.b16 %v8531_v6, %v8531_v6  ;;  %v14673_v6 = vld [vmem:[#allocation96_spill] sm:$0xff] }
 0x561   : > { %8938 = vmatpush1.bf16.msra.mxu1 %v8856_v46  ;;  %v8868_v46 = vmul.bf16 %v8742_v62, %v13576_v56 }
 0x562   : > { %8939 = vmatprep.subr.bf16.mxu1 %v8859_v47  ;;  %v8871_v47 = vmul.bf16 %v8749_v40, %v13589_v10  ;;  %v8763_v18 = vrot.slane %v8758_v51, %v14578_v13  ;;  %v1244_v40 = vadd.f32 %v1190_v48, %v786_v29 }
 0x564   : > { %v8873_v63 = vmul.bf16 %v8763_v18, %v13587_v42  ;;  %v8875_v43 = vmul.bf16 %v8763_v18, %v13589_v10 }
 0x565   : > { %8940 = vmatpush1.bf16.msra.mxu1 %v8858_v5  ;;  %v8756_v5 = vrot.slane %v8751_v54, %v14578_v13  ;;  %v14674_v54 = vld [vmem:[#allocation47_spill] sm:$0xff] }
 0x566   : > { %8941 = vmatprep.subr.bf16.mxu1 %v8861_v28  ;;  %v8539_v28 = vrot.slane %v9336_v25, %v14578_v13  ;;  %v837_v8 = vcombine.high %v14674_v54, %v14674_v54  ;;  %v14675_v25 = vld [vmem:[#allocation97_spill] sm:$0xff] }
 0x567   : > { %v8874_v27 = vmul.bf16 %v8756_v5, %v13602_v59 }
 0x568   : > { %v8765_v45 = vpack.i.b16 %v8539_v28, %v8539_v28 }
 0x569   : > { %8942 = vmatpush1.bf16.msra.mxu1 %v8860_v37  ;;  %v8872_v37 = vmul.bf16 %v8756_v5, %v13576_v56 }
 0x56a   : > { %8943 = vmatprep.subr.bf16.mxu1 %v8863_v17  ;;  %v8772_v17 = vpack.i.b16 %v8543_v12, %v8543_v12  ;;  %v8770_v19 = vrot.slane %v8765_v45, %v14578_v13 }
 0x56c   : > { %v8777_v0 = vrot.slane %v8772_v17, %v14578_v13  ;;  %v8876_v34 = vmul.bf16 %v8770_v19, %v13576_v56  ;;  %v8878_v20 = vmul.bf16 %v8770_v19, %v13602_v59  ;;  %v13827_v19 = vrot.slane %v837_v8, %v14578_v13 }
 0x56d   : > { %8944 = vmatpush1.bf16.msra.mxu1 %v8862_v50  ;;  %v8421_v50 = vpack.i.b16 %v8403_v36, %v8403_v36 }
 0x56e   : > { %8945 = vmatprep.subr.bf16.mxu1 %v8865_v33  ;;  %v8877_v16 = vmul.bf16 %v8777_v0, %v13587_v42  ;;  %v8879_v24 = vmul.bf16 %v8777_v0, %v13589_v10  ;;  %vm967_vm10 = vcmp.eq.s32.totalorder %v14657_v49, %v13827_v19  ;;  %vm969_vm8 = vcmp.eq.s32.totalorder %v14619_v1, %v13827_v19 }
 0x56f   : > { %v8551_v35 = vrot.slane %v8421_v50, %v14579_v53  ;;  %v8547_v14 = vrot.slane %v8421_v50, %v14578_v13  ;;  %vm971_vm15 = vcmp.eq.s32.totalorder %v14612_v22, %v13827_v19 }
 0x571   : > { %8946 = vmatpush1.bf16.msra.mxu1 %v8864_v3  ;;  %v8786_v33 = vpack.i.b16 %v8551_v35, %v8551_v35  ;;  %v8779_v3 = vpack.i.b16 %v8547_v14, %v8547_v14 }
 0x572   : > { %8947 = vmatprep.subr.bf16.mxu1 %v8867_v9  ;;  %v1191_v9 = vsel %vm978_vm5, %v13534_v21, 0.0 }
 0x573   : > { %v8791_v52 = vrot.slane %v8786_v33, %v14578_v13  ;;  %v8784_v31 = vrot.slane %v8779_v3, %v14578_v13  ;;  %v1245_v38 = vadd.f32 %v1191_v9, %v787_v44 }
 0x575   : > { %8948 = vmatpush1.bf16.msra.mxu1 %v8866_v15  ;;  %v8881_v15 = vmul.bf16 %v8791_v52, %v13587_v42  ;;  %v9328_v62 = vpack.c.bf16 %v1245_v38, %v1244_v40  ;;  %v8880_v32 = vmul.bf16 %v8784_v31, %v13576_v56  ;;  %v8883_v57 = vmul.bf16 %v8791_v52, %v13589_v10 }
 0x576   : > { %8949 = vmatprep.subr.bf16.mxu1 %v8869_v26  ;;  %v8882_v26 = vmul.bf16 %v8784_v31, %v13602_v59 }
 0x577   : > { %v8380_v60 = vrot.slane %v9328_v62, %v14569_v4 }
 0x579   : > { %8950 = vmatpush1.bf16.msra.mxu1 %v8868_v46  ;;  %v8387_v21 = vrot.slane %v8380_v60, %v14569_v4  ;;  %v433_v46 = vcombine.high %v14673_v6, %v14673_v6 }
 0x57a   : > { %8951 = vmatprep.subr.bf16.mxu1 %v8871_v47 }
 0x57b   : > { %v9337_v30 = vpack.i.b16 %v8387_v21, %v8387_v21  ;;  %v8405_v55 = vunpack.i.h.s16 %v8387_v21  ;;  %v13824_v0 = vrot.slane %v433_v46, %v14579_v53 }
 0x57d   : > { %8952 = vmatpush1.bf16.msra.mxu1 %v8870_v39  ;;  %v8559_v47 = vrot.slane %v9337_v30, %v14579_v53  ;;  %v8555_v51 = vrot.slane %v9337_v30, %v14578_v13  ;;  %v8423_v18 = vpack.i.b16 %v8405_v55, %v8405_v55  ;;  %vm564_vm11 = vcmp.eq.s32.totalorder %v14657_v49, %v13824_v0 }
 0x57e   : > { %8953 = vmatprep.subr.bf16.mxu1 %v8873_v63  ;;  %v628_v63 = vcombine.high %v14675_v25, %v14675_v25  ;;  %v14677_v25 = vld [vmem:[#allocation91_spill] sm:$0xff]  ;;  %vm566_vm14 = vcmp.eq.s32.totalorder %v14619_v1, %v13824_v0  ;;  %vm568_vm0 = vcmp.eq.s32.totalorder %v14612_v22, %v13824_v0 }
 0x57f   : > { %v8800_v39 = vpack.i.b16 %v8559_v47, %v8559_v47  ;;  %v8793_v5 = vpack.i.b16 %v8555_v51, %v8555_v51  ;;  %v8567_v12 = vrot.slane %v8423_v18, %v14579_v53  ;;  %v8563_v28 = vrot.slane %v8423_v18, %v14578_v13 }
 0x580   : > { %v13840_v33 = vrot.slane %v628_v63, %v14578_v13  ;;  %v13843_v3 = vrot.slane %v628_v63, %v14579_v53  ;;  %v7514_v18 = vpack.c.bf16 %v13700_v11, %v13700_v11 }
 0x581   : > { %8954 = vmatpush1.bf16.msra.mxu1 %v8872_v37  ;;  %v13816_v37 = vrot.slane %v433_v46, %v14578_v13  ;;  %v8805_v45 = vrot.slane %v8800_v39, %v14578_v13  ;;  %v8798_v36 = vrot.slane %v8793_v5, %v14578_v13  ;;  %v8807_v50 = vpack.i.b16 %v8563_v28, %v8563_v28  ;;  %v9291_v39 = vld [vmem:[%s14157_s1 + $0x14] sm:$0xf] }
 0x582   : > { %8955 = vmatprep.subr.bf16.mxu1 %v8875_v43  ;;  %v14676_v43 = vld [vmem:[#allocation48_spill] sm:$0xff]  ;;  %v777_v31 = vsel %vm564_vm11, %v13843_v3, 0.0  ;;  %v781_v19 = vsel %vm568_vm0, %v13843_v3, 0.0 }
 0x583   : > { %v1032_v17 = vcombine.high %v14676_v43, %v14676_v43  ;;  %v8884_v35 = vmul.bf16 %v8798_v36, %v13576_v56  ;;  %v8887_v14 = vmul.bf16 %v8805_v45, %v13589_v10  ;;  %vm563_vm6 = vcmp.eq.s32.totalorder %v14657_v49, %v13816_v37 }
 0x584   : > { %v8886_v48 = vmul.bf16 %v8798_v36, %v13602_v59  ;;  %v8812_v9 = vrot.slane %v8807_v50, %v14578_v13  ;;  %vm565_vm13 = vcmp.eq.s32.totalorder %v14619_v1, %v13816_v37  ;;  %vm567_vm7 = vcmp.eq.s32.totalorder %v14612_v22, %v13816_v37 }
 0x585   : > { %8956 = vmatpush1.bf16.msra.mxu1 %v8874_v27  ;;  %v8814_v27 = vpack.i.b16 %v8567_v12, %v8567_v12  ;;  %v13846_v29 = vrot.slane %v1032_v17, %v14578_v13  ;;  %v13849_v44 = vrot.slane %v1032_v17, %v14579_v53 }
 0x586   : > { %8957 = vmatprep.subr.bf16.mxu1 %v8877_v16  ;;  %v13831_v16 = vrot.slane %v837_v8, %v14579_v53 }
 0x587   : > { %v1180_v40 = vsel %vm967_vm10, %v13846_v29, 0.0 }
 0x588   : > { %vm968_vm12 = vcmp.eq.s32.totalorder %v14657_v49, %v13831_v16  ;;  %v8890_v49 = vmul.bf16 %v8812_v9, %v13602_v59  ;;  %vm970_vm9 = vcmp.eq.s32.totalorder %v14619_v1, %v13831_v16  ;;  %v1182_v1 = vsel %vm969_vm8, %v13846_v29, 0.0 }
 0x589   : > { %8958 = vmatpush1.bf16.msra.mxu1 %v8876_v34  ;;  %v8885_v34 = vmul.bf16 %v8805_v45, %v13587_v42  ;;  %v1181_v38 = vsel %vm968_vm12, %v13849_v44, 0.0  ;;  %vm972_vm4 = vcmp.eq.s32.totalorder %v14612_v22, %v13831_v16  ;;  %v1184_v22 = vsel %vm971_vm15, %v13846_v29, 0.0 }
 0x58a   : > { %8959 = vmatprep.subr.bf16.mxu1 %v8879_v24  ;;  %v8819_v24 = vrot.slane %v8814_v27, %v14578_v13  ;;  %v1185_v16 = vsel %vm972_vm4, %v13849_v44, 0.0 }
 0x58c   : > { %v8889_v52 = vmul.bf16 %v8819_v24, %v13587_v42  ;;  %v8891_v62 = vmul.bf16 %v8819_v24, %v13589_v10 }
 0x58d   : > { %8960 = vmatpush1.bf16.msra.mxu1 %v8878_v20  ;;  %v776_v20 = vsel %vm563_vm6, %v13840_v33, 0.0 }
 0x58e   : > { %8961 = vmatprep.subr.bf16.mxu1 %v8881_v15  ;;  %v8888_v15 = vmul.bf16 %v8812_v9, %v13576_v56 }
 0x591   : > { %8962 = vmatpush1.bf16.msra.mxu1 %v8880_v32  ;;  %v1234_v32 = vadd.f32 %v1180_v40, %v776_v20  ;;  %v14680_v40 = vld [vmem:[#allocation38_spill] sm:$0xff] }
 0x592   : > { %8963 = vmatprep.subr.bf16.mxu1 %v8883_v57  ;;  %v1235_v57 = vadd.f32 %v1181_v38, %v777_v31 }
 0x594   : > { %v9310_v42 = vpack.c.bf16 %v1235_v57, %v1234_v32  ;;  %v14681_v32 = vld [vmem:[#allocation42_spill] sm:$0xff] }
 0x595   : > { %8964 = vmatpush1.bf16.msra.mxu1 %v8882_v26 }
 0x596   : > { %8974 = vmatprep.subr.bf16.mxu1 %v8885_v34  ;;  %v7579_v60 = vrot.slane %v9310_v42, %v14569_v4  ;;  %v9307_v34 = vld [vmem:[%s14157_s1 + $0x18] sm:$0xf] }
 0x598   : > { %8966 = vmatmul.mubr.bf16.vlgmr.msra.gmra.mrb[16].mxu1 %v14669_v23  ;;  %v7595_v21 = vrot.slane %v7579_v60, %v14569_v4  ;;  %v7587_v28 = vcombine.high %v7579_v60, %v7579_v60 }
 0x599   : > { %9006 = vmatprep.mubr.bf16.mxu1 %v14670_v41  ;;  %8975 = vmatpush1.bf16.msra.mxu1 %v8884_v35  ;;  %v14678_v35 = vld [vmem:[#allocation37_spill] sm:$0xff] }
 0x59a   : > { %8976 = vmatprep.subr.bf16.mxu1 %v8887_v14  ;;  %v9313_v26 = vpack.i.b16 %v7595_v21, %v7595_v21  ;;  %v7637_v51 = vunpack.i.h.s16 %v7595_v21  ;;  %v13890_v17 = vrot.slane %v7587_v28, %v14569_v4 }
 0x59c   : > { %v7679_v56 = vrot.slane %v9313_v26, %v14579_v53  ;;  %v7675_v5 = vrot.slane %v9313_v26, %v14578_v13  ;;  %v7655_v12 = vpack.i.b16 %v7637_v51, %v7637_v51  ;;  %v9314_v50 = vpack.i.b16 %v13890_v17, %v13890_v17 }
 0x59d   : > { %8977 = vmatpush1.bf16.msra.mxu1 %v8886_v48  ;;  %v14679_v48 = vld [vmem:[#allocation92_spill] sm:$0xff]  ;;  %v7639_v31 = vunpack.i.h.s16 %v13890_v17 }
 0x59e   : > { %8978 = vmatprep.subr.bf16.mxu1 %v8889_v52  ;;  %v7824_v30 = vpack.i.b16 %v7679_v56, %v7679_v56  ;;  %v7817_v11 = vpack.i.b16 %v7675_v5, %v7675_v5  ;;  %v7687_v43 = vrot.slane %v7655_v12, %v14579_v53  ;;  %v7683_v36 = vrot.slane %v7655_v12, %v14578_v13 }
 0x59f   : > { %v7695_v20 = vrot.slane %v9314_v50, %v14579_v53  ;;  %v7657_v42 = vpack.i.b16 %v7639_v31, %v7639_v31  ;;  %v7617_v56 = vcombine.high %v7595_v21, %v7595_v21 }
 0x5a0   : > { %v7829_v59 = vrot.slane %v7824_v30, %v14578_v13  ;;  %v7822_v45 = vrot.slane %v7817_v11, %v14578_v13  ;;  %v7838_v27 = vpack.i.b16 %v7687_v43, %v7687_v43  ;;  %v7831_v24 = vpack.i.b16 %v7683_v36, %v7683_v36 }
 0x5a1   : > { %8979 = vmatpush1.bf16.msra.mxu1 %v8888_v15  ;;  %v7641_v5 = vunpack.i.h.s16 %v7617_v56 }
 0x5a2   : > { %8980 = vmatprep.subr.bf16.mxu1 %v8891_v62  ;;  %v8069_v63 = vmul.bf16 %v7829_v59, %v14677_v25  ;;  %v8068_v14 = vmul.bf16 %v7822_v45, %v14678_v35  ;;  %v8071_v9 = vmul.bf16 %v7829_v59, %v14679_v48  ;;  %v7843_v52 = vrot.slane %v7838_v27, %v14578_v13 }
 0x5a3   : > { %v8070_v38 = vmul.bf16 %v7822_v45, %v14680_v40  ;;  %v7836_v15 = vrot.slane %v7831_v24, %v14578_v13  ;;  %v7691_v62 = vrot.slane %v9314_v50, %v14578_v13  ;;  %v9315_v59 = vpack.i.b16 %v7617_v56, %v7617_v56 }
 0x5a4   : > { %v8073_v57 = vmul.bf16 %v7843_v52, %v14677_v25  ;;  %v8075_v30 = vmul.bf16 %v7843_v52, %v14679_v48  ;;  %v7659_v43 = vpack.i.b16 %v7641_v5, %v7641_v5  ;;  %v778_v24 = vsel %vm565_vm13, %v13840_v33, 0.0 }
 0x5a5   : > { %8981 = vmatpush1.bf16.msra.mxu1 %v8890_v49  ;;  %v7852_v49 = vpack.i.b16 %v7695_v20, %v7695_v20  ;;  %v8072_v60 = vmul.bf16 %v7836_v15, %v14678_v35  ;;  %v7845_v26 = vpack.i.b16 %v7691_v62, %v7691_v62  ;;  %v1183_v52 = vsel %vm970_vm9, %v13849_v44, 0.0 }
 0x5a8   : > { %9338 = vmatmul.mubr.msk.bf16.vlgmr.msra.gmra.mrb[16].mxu1 %vm2875_vm2, %v13684_v7  ;;  %v7513_v7 = vpack.c.bf16 %v13698_v61, %v13698_v61 }
 0x5aa   : > { %v7519_v61 = vsel %vm3709_vm1, %v7513_v7, 0  ;;  %v7711_v7 = vrot.slane %v9315_v59, %v14579_v53 }
 0x5ac   : > { %v7880_v28 = vpack.i.b16 %v7711_v7, %v7711_v7 }
 0x5ae   : > { %v7885_v36 = vrot.slane %v7880_v28, %v14578_v13 }
 0x5b0   : > { %v8085_v31 = vmul.bf16 %v7885_v36, %v14677_v25 }
 0x612   : > { %v6752_v10 = vpop.f32.mrb[20].mxu0 }
 0x613   : > { %v6761_v55 = vpack.c.bf16 %v6752_v10, %v6752_v10  ;;  %v6754_v6 = vpop.f32.mrb[21].mxu0  ;;  %v7857_v10 = vrot.slane %v7852_v49, %v14578_v13 }
 0x614   : > { %v6762_v46 = vpack.c.bf16 %v6754_v6, %v6754_v6  ;;  %v6756_v47 = vpop.f32.mrb[22].mxu0  ;;  %v8074_v6 = vmul.bf16 %v7836_v15, %v14680_v40  ;;  %v7715_v15 = vrot.slane %v7659_v43, %v14578_v13 }
 0x615   : > { %v6767_v54 = vsel %vm3709_vm1, %v6761_v55, 0  ;;  %v6757_v8 = vpop.f32.mrb[23].mxu0  ;;  %v7703_v55 = vrot.slane %v7657_v42, %v14579_v53  ;;  %v7699_v47 = vrot.slane %v7657_v42, %v14578_v13  ;;  %v8077_v51 = vmul.bf16 %v7857_v10, %v14677_v25 }
 0x616   : > { %9292 = vmatprep.subr.msk.bf16.mxu0 %vm3709_vm1, %v6762_v46  ;;  %v7850_v46 = vrot.slane %v7845_v26, %v14578_v13  ;;  %v8087_v42 = vmul.bf16 %v7885_v36, %v14679_v48 }
 0x617   : > { %6773 = vmatpush1.bf16.msra.mxu0 %v6767_v54  ;;  %v7866_v54 = vpack.i.b16 %v7703_v55, %v7703_v55  ;;  %v7859_v8 = vpack.i.b16 %v7699_v47, %v7699_v47 }
 0x618   : > { %9308 = vmatprep.subr.msk.bf16.mxu0 %vm3709_vm1, %v7514_v18  ;;  %v8076_v21 = vmul.bf16 %v7850_v46, %v14678_v35  ;;  %v8079_v18 = vmul.bf16 %v7857_v10, %v14679_v48 }
 0x619   : > { %v7864_v12 = vrot.slane %v7859_v8, %v14578_v13 }
 0x61a   : > { %9293 = vmatmul.mubr.msk.bf16.vlgmr.msra.gmra.mrb[8].mxu0 %vm3705_vm3, %v9291_v39  ;;  %v7871_v39 = vrot.slane %v7866_v54, %v14578_v13 }
 0x61b   : > { %7525 = vmatpush1.bf16.msra.mxu0 %v7519_v61  ;;  %7556 = vmatprep.mubr.bf16.mxu0 %v14670_v41  ;;  %v7707_v61 = vrot.slane %v9315_v59, %v14578_v13  ;;  %v8080_v45 = vmul.bf16 %v7864_v12, %v14678_v35  ;;  %v8082_v20 = vmul.bf16 %v7864_v12, %v14680_v40 }
 0x61c   : > { %8140 = vmatprep.subr.bf16.mxu0 %v8069_v63  ;;  %v8078_v63 = vmul.bf16 %v7850_v46, %v14680_v40  ;;  %v8081_v11 = vmul.bf16 %v7871_v39, %v14677_v25  ;;  %v8083_v50 = vmul.bf16 %v7871_v39, %v14679_v48 }
 0x61d   : > { %v7873_v27 = vpack.i.b16 %v7707_v61, %v7707_v61 }
 0x626   : > { %9309 = vmatmul.mubr.msk.bf16.vlgmr.msra.gmra.mrb[8].mxu0 %vm3705_vm3, %v9307_v34  ;;  %v7719_v34 = vrot.slane %v7659_v43, %v14579_v53 }
 0x627   : > { %8141 = vmatpush1.bf16.msra.mxu0 %v8068_v14  ;;  %8172 = vmatprep.mubr.bf16.mxu0 %v14681_v32  ;;  %v7619_v14 = vcombine.high %v13890_v17, %v13890_v17  ;;  %v1236_v32 = vadd.f32 %v1182_v1, %v778_v24 }
 0x628   : > { %8142 = vmatprep.subr.bf16.mxu0 %v8071_v9  ;;  %v779_v9 = vsel %vm566_vm14, %v13843_v3, 0.0  ;;  %v7894_v62 = vpack.i.b16 %v7719_v34, %v7719_v34 }
 0x629   : > { %v9316_v17 = vpack.i.b16 %v7619_v14, %v7619_v14 }
 0x62a   : > { %v7899_v26 = vrot.slane %v7894_v62, %v14578_v13 }
 0x62b   : > { %8143 = vmatpush1.bf16.msra.mxu0 %v8070_v38  ;;  %v7878_v38 = vrot.slane %v7873_v27, %v14578_v13  ;;  %v7727_v56 = vrot.slane %v9316_v17, %v14579_v53  ;;  %v7723_v46 = vrot.slane %v9316_v17, %v14578_v13 }
 0x62c   : > { %8144 = vmatprep.subr.bf16.mxu0 %v8073_v57  ;;  %v1237_v57 = vadd.f32 %v1183_v52, %v779_v9  ;;  %v8089_v47 = vmul.bf16 %v7899_v26, %v14677_v25  ;;  %v8091_v7 = vmul.bf16 %v7899_v26, %v14679_v48 }
 0x62d   : > { %v8084_v49 = vmul.bf16 %v7878_v38, %v14678_v35  ;;  %v8086_v55 = vmul.bf16 %v7878_v38, %v14680_v40  ;;  %v7908_v59 = vpack.i.b16 %v7727_v56, %v7727_v56  ;;  %v7901_v8 = vpack.i.b16 %v7723_v46, %v7723_v46 }
 0x62e   : > { %v9311_v10 = vpack.c.bf16 %v1237_v57, %v1236_v32 }
 0x62f   : > { %8145 = vmatpush1.bf16.msra.mxu0 %v8072_v60  ;;  %v7887_v60 = vpack.i.b16 %v7715_v15, %v7715_v15  ;;  %v7906_v12 = vrot.slane %v7901_v8, %v14578_v13 }
 0x630   : > { %8146 = vmatprep.subr.bf16.mxu0 %v8075_v30  ;;  %v7643_v30 = vunpack.i.h.s16 %v7619_v14  ;;  %v7586_v54 = vrot.slane %v9311_v10, %v14569_v4 }
 0x631   : > { %v8094_v24 = vmul.bf16 %v7906_v12, %v14680_v40 }
 0x632   : > { %v13962_v5 = vrot.slane %v7586_v54, %v14569_v4  ;;  %v7588_v38 = vcombine.high %v7586_v54, %v7586_v54 }
 0x633   : > { %8147 = vmatpush1.bf16.msra.mxu0 %v8074_v6  ;;  %v7892_v6 = vrot.slane %v7887_v60, %v14578_v13 }
 0x634   : > { %8148 = vmatprep.subr.bf16.mxu0 %v8077_v51  ;;  %v7661_v51 = vpack.i.b16 %v7643_v30, %v7643_v30  ;;  %v9317_v43 = vpack.i.b16 %v13962_v5, %v13962_v5  ;;  %v7645_v14 = vunpack.i.h.s16 %v13962_v5 }
 0x636   : > { %v7735_v39 = vrot.slane %v7661_v51, %v14579_v53  ;;  %v7731_v28 = vrot.slane %v7661_v51, %v14578_v13  ;;  %v7743_v34 = vrot.slane %v9317_v43, %v14579_v53  ;;  %v7739_v1 = vrot.slane %v9317_v43, %v14578_v13 }
 0x637   : > { %8149 = vmatpush1.bf16.msra.mxu0 %v8076_v21  ;;  %v8088_v21 = vmul.bf16 %v7892_v6, %v14678_v35 }
 0x638   : > { %8150 = vmatprep.subr.bf16.mxu0 %v8079_v18  ;;  %v7913_v18 = vrot.slane %v7908_v59, %v14578_v13  ;;  %v7915_v36 = vpack.i.b16 %v7731_v28, %v7731_v28  ;;  %v7929_v62 = vpack.i.b16 %v7739_v1, %v7739_v1 }
 0x63a   : > { %v8093_v61 = vmul.bf16 %v7913_v18, %v14677_v25  ;;  %v8095_v27 = vmul.bf16 %v7913_v18, %v14679_v48  ;;  %v7920_v9 = vrot.slane %v7915_v36, %v14578_v13  ;;  %v7934_v60 = vrot.slane %v7929_v62, %v14578_v13 }
 0x63b   : > { %8151 = vmatpush1.bf16.msra.mxu0 %v8078_v63  ;;  %v8090_v63 = vmul.bf16 %v7892_v6, %v14680_v40 }
 0x63c   : > { %8152 = vmatprep.subr.bf16.mxu0 %v8081_v11  ;;  %v7922_v11 = vpack.i.b16 %v7735_v39, %v7735_v39  ;;  %v8096_v15 = vmul.bf16 %v7920_v9, %v14678_v35  ;;  %v8102_v54 = vmul.bf16 %v7934_v60, %v14680_v40 }
 0x63f   : > { %8153 = vmatpush1.bf16.msra.mxu0 %v8080_v45  ;;  %v8092_v45 = vmul.bf16 %v7906_v12, %v14678_v35 }
 0x640   : > { %8154 = vmatprep.subr.bf16.mxu0 %v8083_v50  ;;  %v7927_v50 = vrot.slane %v7922_v11, %v14578_v13 }
 0x642   : > { %v8097_v52 = vmul.bf16 %v7927_v50, %v14677_v25  ;;  %v8099_v17 = vmul.bf16 %v7927_v50, %v14679_v48 }
 0x643   : > { %8155 = vmatpush1.bf16.msra.mxu0 %v8082_v20  ;;  %v7936_v20 = vpack.i.b16 %v7743_v34, %v7743_v34 }
 0x644   : > { %8156 = vmatprep.subr.bf16.mxu0 %v8085_v31  ;;  %v7663_v31 = vpack.i.b16 %v7645_v14, %v7645_v14 }
 0x645   : > { %v7941_v32 = vrot.slane %v7936_v20, %v14578_v13 }
 0x646   : > { %v7751_v57 = vrot.slane %v7663_v31, %v14579_v53  ;;  %v7747_v26 = vrot.slane %v7663_v31, %v14578_v13 }
 0x647   : > { %8157 = vmatpush1.bf16.msra.mxu0 %v8084_v49  ;;  %v13984_v49 = vrot.slane %v7588_v38, %v14569_v4  ;;  %v8101_v56 = vmul.bf16 %v7941_v32, %v14677_v25  ;;  %v8103_v46 = vmul.bf16 %v7941_v32, %v14679_v48 }
 0x648   : > { %8158 = vmatprep.subr.bf16.mxu0 %v8087_v42  ;;  %v8098_v42 = vmul.bf16 %v7920_v9, %v14680_v40  ;;  %v7950_v30 = vpack.i.b16 %v7751_v57, %v7751_v57  ;;  %v7943_v6 = vpack.i.b16 %v7747_v26, %v7747_v26 }
 0x649   : > { %v9318_v10 = vpack.i.b16 %v13984_v49, %v13984_v49  ;;  %v7647_v51 = vunpack.i.h.s16 %v13984_v49  ;;  %v7620_v0 = vcombine.high %v13984_v49, %v13984_v49 }
 0x64b   : > { %8159 = vmatpush1.bf16.msra.mxu0 %v8086_v55  ;;  %v8100_v55 = vmul.bf16 %v7934_v60, %v14678_v35  ;;  %v7759_v59 = vrot.slane %v9318_v10, %v14579_v53  ;;  %v7755_v8 = vrot.slane %v9318_v10, %v14578_v13  ;;  %v7665_v39 = vpack.i.b16 %v7647_v51, %v7647_v51 }
 0x64c   : > { %8160 = vmatprep.subr.bf16.mxu0 %v8089_v47  ;;  %v7955_v47 = vrot.slane %v7950_v30, %v14578_v13  ;;  %v780_v60 = vsel %vm567_vm7, %v13840_v33, 0.0  ;;  %v9320_v49 = vpack.i.b16 %v7620_v0, %v7620_v0  ;;  %v1239_v33 = vadd.f32 %v1185_v16, %v781_v19 }
 0x64d   : > { %v7964_v18 = vpack.i.b16 %v7759_v59, %v7759_v59  ;;  %v7957_v12 = vpack.i.b16 %v7755_v8, %v7755_v8  ;;  %v7767_v11 = vrot.slane %v7665_v39, %v14579_v53  ;;  %v7651_v59 = vunpack.i.h.s16 %v7620_v0 }
 0x64e   : > { %v8107_v28 = vmul.bf16 %v7955_v47, %v14679_v48  ;;  %v7787_v8 = vrot.slane %v9320_v49, %v14578_v13 }
 0x64f   : > { %8161 = vmatpush1.bf16.msra.mxu0 %v8088_v21  ;;  %v7948_v21 = vrot.slane %v7943_v6, %v14578_v13  ;;  %v7962_v43 = vrot.slane %v7957_v12, %v14578_v13  ;;  %v7978_v50 = vpack.i.b16 %v7767_v11, %v7767_v11  ;;  %v1238_v6 = vadd.f32 %v1184_v22, %v780_v60 }
 0x650   : > { %8162 = vmatprep.subr.bf16.mxu0 %v8091_v7  ;;  %v8105_v7 = vmul.bf16 %v7955_v47, %v14677_v25  ;;  %v7791_v47 = vrot.slane %v9320_v49, %v14579_v53 }
 0x651   : > { %v7983_v9 = vrot.slane %v7978_v50, %v14578_v13  ;;  %v9312_v51 = vpack.c.bf16 %v1239_v33, %v1238_v6 }
 0x653   : > { %8163 = vmatpush1.bf16.msra.mxu0 %v8090_v63  ;;  %v8104_v63 = vmul.bf16 %v7948_v21, %v14678_v35 }
 0x654   : > { %8164 = vmatprep.subr.bf16.mxu0 %v8093_v61  ;;  %v7969_v61 = vrot.slane %v7964_v18, %v14578_v13  ;;  %v8020_v18 = vpack.i.b16 %v7791_v47, %v7791_v47 }
 0x657   : > { %8165 = vmatpush1.bf16.msra.mxu0 %v8092_v45  ;;  %v7763_v45 = vrot.slane %v7665_v39, %v14578_v13  ;;  %v7669_v39 = vpack.i.b16 %v7651_v59, %v7651_v59 }
 0x658   : > { %8166 = vmatprep.subr.bf16.mxu0 %v8095_v27  ;;  %v8109_v27 = vmul.bf16 %v7969_v61, %v14677_v25 }
 0x659   : > { %v7971_v34 = vpack.i.b16 %v7763_v45, %v7763_v45  ;;  %v7799_v11 = vrot.slane %v7669_v39, %v14579_v53 }
 0x65b   : > { %8167 = vmatpush1.bf16.msra.mxu0 %v8094_v24  ;;  %v8111_v24 = vmul.bf16 %v7969_v61, %v14679_v48  ;;  %v7976_v20 = vrot.slane %v7971_v34, %v14578_v13  ;;  %v8025_v61 = vrot.slane %v8020_v18, %v14578_v13  ;;  %v8034_v50 = vpack.i.b16 %v7799_v11, %v7799_v11  ;;  %v9339_v18 = vld [vmem:[%s14157_s1 + $0x20] sm:$0xf] }
 0x65c   : > { %8168 = vmatprep.subr.bf16.mxu0 %v8097_v52  ;;  %v8110_v52 = vmul.bf16 %v7962_v43, %v14680_v40 }
 0x65d   : > { %v8114_v26 = vmul.bf16 %v7976_v20, %v14680_v40 }
 0x65f   : > { %8169 = vmatpush1.bf16.msra.mxu0 %v8096_v15  ;;  %v8113_v15 = vmul.bf16 %v7983_v9, %v14677_v25 }
 0x660   : > { %8170 = vmatprep.subr.bf16.mxu0 %v8099_v17  ;;  %v8112_v17 = vmul.bf16 %v7976_v20, %v14678_v35 }
 0x663   : > { %8171 = vmatpush1.bf16.msra.mxu0 %v8098_v42  ;;  %v8115_v42 = vmul.bf16 %v7983_v9, %v14679_v48 }
 0x664   : > { %8181 = vmatprep.subr.bf16.mxu0 %v8101_v56 }
 0x666   : > { %8173 = vmatmul.mubr.bf16.vlgmr.msra.gmra.mrb[24].mxu0 %v14671_v2  ;;  %v7618_v2 = vcombine.high %v13962_v5, %v13962_v5  ;;  %v8108_v5 = vmul.bf16 %v7962_v43, %v14678_v35 }
 0x667   : > { %8182 = vmatpush1.bf16.msra.mxu0 %v8100_v55  ;;  %8213 = vmatprep.mubr.bf16.mxu0 %v14672_v58  ;;  %v8106_v58 = vmul.bf16 %v7948_v21, %v14680_v40 }
 0x668   : > { %8183 = vmatprep.subr.bf16.mxu0 %v8103_v46  ;;  %v9319_v36 = vpack.i.b16 %v7618_v2, %v7618_v2  ;;  %v7649_v1 = vunpack.i.h.s16 %v7618_v2  ;;  %v8013_v2 = vpack.i.b16 %v7787_v8, %v7787_v8  ;;  %v9323_v8 = vld [vmem:[%s14157_s1 + $0x1c] sm:$0xf] }
 0x66a   : > { %v7775_v14 = vrot.slane %v9319_v36, %v14579_v53  ;;  %v7771_v38 = vrot.slane %v9319_v36, %v14578_v13  ;;  %v7667_v62 = vpack.i.b16 %v7649_v1, %v7649_v1  ;;  %v8018_v45 = vrot.slane %v8013_v2, %v14578_v13 }
 0x66b   : > { %8184 = vmatpush1.bf16.msra.mxu0 %v8102_v54  ;;  %v7795_v36 = vrot.slane %v7669_v39, %v14578_v13 }
 0x66c   : > { %8185 = vmatprep.subr.bf16.mxu0 %v8105_v7  ;;  %v7992_v31 = vpack.i.b16 %v7775_v14, %v7775_v14  ;;  %v7985_v57 = vpack.i.b16 %v7771_v38, %v7771_v38  ;;  %v7783_v37 = vrot.slane %v7667_v62, %v14579_v53  ;;  %v7779_v10 = vrot.slane %v7667_v62, %v14578_v13 }
 0x66d   : > { %v8124_v34 = vmul.bf16 %v8018_v45, %v14678_v35  ;;  %v8027_v14 = vpack.i.b16 %v7795_v36, %v7795_v36 }
 0x66e   : > { %v7997_v32 = vrot.slane %v7992_v31, %v14578_v13  ;;  %v7990_v30 = vrot.slane %v7985_v57, %v14578_v13  ;;  %v8006_v55 = vpack.i.b16 %v7783_v37, %v7783_v37  ;;  %v7999_v44 = vpack.i.b16 %v7779_v10, %v7779_v10 }
 0x66f   : > { %8186 = vmatpush1.bf16.msra.mxu0 %v8104_v63  ;;  %v7628_v63 = vrot.slane %v9312_v51, %v14569_v4  ;;  %v8032_v20 = vrot.slane %v8027_v14, %v14578_v13 }
 0x670   : > { %8187 = vmatprep.subr.bf16.mxu0 %v8107_v28  ;;  %v8117_v56 = vmul.bf16 %v7997_v32, %v14677_v25  ;;  %v8116_v3 = vmul.bf16 %v7990_v30, %v14678_v35  ;;  %v8119_v29 = vmul.bf16 %v7997_v32, %v14679_v48  ;;  %v8011_v46 = vrot.slane %v8006_v55, %v14578_v13 }
 0x671   : > { %v8118_v54 = vmul.bf16 %v7990_v30, %v14680_v40  ;;  %v8004_v21 = vrot.slane %v7999_v44, %v14578_v13  ;;  %v8130_v0 = vmul.bf16 %v8032_v20, %v14680_v40 }
 0x672   : > { %v8121_v7 = vmul.bf16 %v8011_v46, %v14677_v25  ;;  %v8123_v28 = vmul.bf16 %v8011_v46, %v14679_v48 }
 0x673   : > { %8188 = vmatpush1.bf16.msra.mxu0 %v8106_v58  ;;  %v8120_v12 = vmul.bf16 %v8004_v21, %v14678_v35  ;;  %v7635_v58 = vrot.slane %v7628_v63, %v14569_v4  ;;  %v8122_v43 = vmul.bf16 %v8004_v21, %v14680_v40  ;;  %v8039_v4 = vrot.slane %v8034_v50, %v14578_v13 }
 0x674   : > { %8189 = vmatprep.subr.bf16.mxu0 %v8109_v27  ;;  %v8125_v27 = vmul.bf16 %v8025_v61, %v14677_v25 }
 0x675   : > { %v7653_v1 = vunpack.i.h.s16 %v7635_v58  ;;  %v8129_v38 = vmul.bf16 %v8039_v4, %v14677_v25  ;;  %v8131_v57 = vmul.bf16 %v8039_v4, %v14679_v48 }
 0x677   : > { %8190 = vmatpush1.bf16.msra.mxu0 %v8108_v5  ;;  %v9321_v5 = vpack.i.b16 %v7635_v58, %v7635_v58  ;;  %v7671_v62 = vpack.i.b16 %v7653_v1, %v7653_v1 }
 0x678   : > { %8191 = vmatprep.subr.bf16.mxu0 %v8111_v24  ;;  %v8127_v24 = vmul.bf16 %v8025_v61, %v14679_v48 }
 0x679   : > { %v7807_v9 = vrot.slane %v9321_v5, %v14579_v53  ;;  %v7803_v31 = vrot.slane %v9321_v5, %v14578_v13  ;;  %v7815_v37 = vrot.slane %v7671_v62, %v14579_v53  ;;  %v7811_v19 = vrot.slane %v7671_v62, %v14578_v13 }
 0x67b   : > { %8192 = vmatpush1.bf16.msra.mxu0 %v8110_v52  ;;  %v8126_v52 = vmul.bf16 %v8018_v45, %v14680_v40  ;;  %v8041_v32 = vpack.i.b16 %v7803_v31, %v7803_v31  ;;  %v8062_v16 = vpack.i.b16 %v7815_v37, %v7815_v37 }
 0x67c   : > { %8193 = vmatprep.subr.bf16.mxu0 %v8113_v15  ;;  %v8048_v15 = vpack.i.b16 %v7807_v9, %v7807_v9 }
 0x67d   : > { %v8046_v60 = vrot.slane %v8041_v32, %v14578_v13  ;;  %v8067_v53 = vrot.slane %v8062_v16, %v14578_v13 }
 0x67f   : > { %8194 = vmatpush1.bf16.msra.mxu0 %v8112_v17  ;;  %v8128_v17 = vmul.bf16 %v8032_v20, %v14678_v35  ;;  %v8134_v10 = vmul.bf16 %v8046_v60, %v14680_v40  ;;  %v8137_v49 = vmul.bf16 %v8067_v53, %v14677_v25  ;;  %v8139_v33 = vmul.bf16 %v8067_v53, %v14679_v48 }
 0x680   : > { %8195 = vmatprep.subr.bf16.mxu0 %v8115_v42  ;;  %v8053_v42 = vrot.slane %v8048_v15, %v14578_v13 }
 0x682   : > { %v8133_v22 = vmul.bf16 %v8053_v42, %v14677_v25  ;;  %v8135_v30 = vmul.bf16 %v8053_v42, %v14679_v48 }
 0x683   : > { %8196 = vmatpush1.bf16.msra.mxu0 %v8114_v26  ;;  %v8132_v26 = vmul.bf16 %v8046_v60, %v14678_v35 }
 0x684   : > { %8197 = vmatprep.subr.bf16.mxu0 %v8117_v56  ;;  %v8055_v56 = vpack.i.b16 %v7811_v19, %v7811_v19 }
 0x686   : > { %v8060_v55 = vrot.slane %v8055_v56, %v14578_v13  ;;  %v9008_v13 = vpop.f32.mrb[16].mxu1 }
 0x687   : > { %8198 = vmatpush1.bf16.msra.mxu0 %v8116_v3 }
 0x688   : > { %8199 = vmatprep.subr.bf16.mxu0 %v8119_v29  ;;  %v8136_v6 = vmul.bf16 %v8060_v55, %v14678_v35  ;;  %v8138_v3 = vmul.bf16 %v8060_v55, %v14680_v40  ;;  %v9010_v29 = vpop.f32.mrb[17].mxu1 }
 0x689   : > { %v9012_v44 = vpop.f32.mrb[18].mxu1  ;;  %v9018_v21 = vpack.c.bf16 %v9010_v29, %v9010_v29 }
 0x68a   : > { %v9013_v25 = vpop.f32.mrb[19].mxu1 }
 0x68b   : > { %8200 = vmatpush1.bf16.msra.mxu0 %v8118_v54  ;;  %v9017_v54 = vpack.c.bf16 %v9008_v13, %v9008_v13 }
 0x68c   : > { %8201 = vmatprep.subr.bf16.mxu0 %v8121_v7 }
 0x68d   : > { %v9023_v7 = vsel %vm3709_vm1, %v9017_v54, 0 }
 0x68f   : > { %8202 = vmatpush1.bf16.msra.mxu0 %v8120_v12 }
 0x690   : > { %8203 = vmatprep.subr.bf16.mxu0 %v8123_v28 }
 0x693   : > { %8204 = vmatpush1.bf16.msra.mxu0 %v8122_v43 }
 0x694   : > { %8205 = vmatprep.subr.bf16.mxu0 %v8125_v27 }
 0x697   : > { %8206 = vmatpush1.bf16.msra.mxu0 %v8124_v34 }
 0x698   : > { %8207 = vmatprep.subr.bf16.mxu0 %v8127_v24 }
 0x69b   : > { %8208 = vmatpush1.bf16.msra.mxu0 %v8126_v52 }
 0x69c   : > { %8209 = vmatprep.subr.bf16.mxu0 %v8129_v38 }
 0x69f   : > { %8210 = vmatpush1.bf16.msra.mxu0 %v8128_v17 }
 0x6a0   : > { %8211 = vmatprep.subr.bf16.mxu0 %v8131_v57 }
 0x6a3   : > { %8212 = vmatpush1.bf16.msra.mxu0 %v8130_v0 }
 0x6a4   : > { %8222 = vmatprep.subr.bf16.mxu0 %v8133_v22 }
 0x6a6   : > { %8214 = vmatmul.mubr.bf16.vlgmr.msra.gmra.mrb[24].mxu0 %v14669_v23  ;;  %v9560_v23 = vld.sshfl [vmem:[%s11431_s7 + $0x8] sm:$0x3 pattern:$0x76325410] }
 0x6a7   : > { %8223 = vmatpush1.bf16.msra.mxu0 %v8132_v26  ;;  %8254 = vmatprep.mubr.bf16.mxu0 %v14670_v41 }
 0x6a8   : > { %8224 = vmatprep.subr.bf16.mxu0 %v8135_v30 }
 0x6ab   : > { %8225 = vmatpush1.bf16.msra.mxu0 %v8134_v10 }
 0x6ac   : > { %8226 = vmatprep.subr.bf16.mxu0 %v8137_v49 }
 0x6af   : > { %8227 = vmatpush1.bf16.msra.mxu0 %v8136_v6 }
 0x6b0   : > { %8228 = vmatprep.subr.bf16.mxu0 %v8139_v33 }
 0x6b3   : > { %8229 = vmatpush1.bf16.msra.mxu0 %v8138_v3 }
 0x6b6   : > { %9322 = vmatmul.mubr.msk.bf16.vlgmr.msra.gmra.mrb[24].mxu0 %vm2875_vm2, %v9560_v23 }
 0x6b7   : > { %8308 = vmatprep.mubr.bf16.mxu0 %v14670_v41 }
 0x789   : > { %v8256_v46 = vpop.f32.mrb[24].mxu0 }
 0x78a   : > { %v8265_v47 = vpack.c.bf16 %v8256_v46, %v8256_v46  ;;  %v8258_v35 = vpop.f32.mrb[25].mxu0 }
 0x78b   : > { %v8266_v59 = vpack.c.bf16 %v8258_v35, %v8258_v35  ;;  %v8260_v48 = vpop.f32.mrb[26].mxu0 }
 0x78c   : > { %v8271_v51 = vsel %vm3709_vm1, %v8265_v47, 0  ;;  %v8261_v40 = vpop.f32.mrb[27].mxu0 }
 0x78d   : > { %9324 = vmatprep.subr.msk.bf16.mxu0 %vm3709_vm1, %v8266_v59 }
 0x78e   : > { %8277 = vmatpush1.bf16.msra.mxu0 %v8271_v51 }
 0x78f   : > { %9340 = vmatprep.subr.msk.bf16.mxu0 %vm3709_vm1, %v9018_v21 }
 0x791   : > { %9325 = vmatmul.mubr.msk.bf16.vlgmr.msra.gmra.mrb[8].mxu0 %vm3705_vm3, %v9323_v8 }
 0x792   : > { %9029 = vmatpush1.bf16.msra.mxu0 %v9023_v7  ;;  %9060 = vmatprep.mubr.bf16.mxu0 %v14670_v41 }
 0x79d   : > { %9341 = vmatmul.mubr.msk.bf16.vlgmr.msra.gmra.mrb[8].mxu0 %vm3705_vm3, %v9339_v18 }
 0x870   : > { %v9062_v39 = vpop.f32.mrb[8].mxu0 }
 0x871   : > { %9071 = vst [vmem:[%s203_s11] sm:$0xff] %v9062_v39  ;;  %v9064_v41 = vpop.f32.mrb[9].mxu0 }
 0x872   : > { %9072 = vst [vmem:[%s203_s11 + $0x8] sm:$0xff] %v9064_v41  ;;  %v9066_v63 = vpop.f32.mrb[10].mxu0 }
 0x873   : > { %v9067_v12 = vpop.f32.mrb[11].mxu0 }
 0x874   : > { %9574 = shalt.err (!%p9571_p5)
}
 0x875   : > { %s9575_s4 = scalar_lea.hbm %s14111_s26, 256  ;;  %s9579_s7 = scalar_lea.hbm %s14159_s3, 512 }
 0x876   : > { %p9576_p6 = scmp.ne.s32.totalorder %s14111_s26, %s9575_s4  ;;  %p9580_p10 = scmp.lt.u32.totalorder %s14111_s26, %s14159_s3 }
 0x877   : > { %p9581_p11 = scmp.lt.u32.totalorder %s9579_s7, %s9575_s4  ;;  %p9583_p13 = scmp.lt.u32.totalorder %s9575_s4, %s14111_s26 }
 0x878   : > { %p9577_p7 = pnand %p9576_p6, %p9705_p4 }
 0x879   : > { %p9582_p12 = por %p9581_p11, %p9580_p10 }
 0x87a   : > { %p9578_p9 = pneg %p9577_p7 }
 0x87b   : > { %p9584_p0 = por %p9583_p13, %p9582_p12 }
 0x87d   : > { %p9585_p1 = pnand %p9584_p0, %p9578_p9 }
 0x87f   : > { %9588 = shalt.err (!%p9585_p1)
}
 0x880   : > { %9482 = dma.vmem_to_hbm [thread:$0]  (%p9705_p4), %s14106_s18, 256, %s14111_s26, %s9074_s27  }
 0x881 PF: > { %p9488_p2 = scmp.ge.s32.totalorder %s9639_s17, 2  ;;  %s9102_s10 = sand.u32 1, %s9619_s12  }
 0x882   : > { %s9103_s11 = scalar_lea.sflag [#allocation3], %s9102_s10 }
 0x883   : > { %p9485_p3 = pnand %p9488_p2, %p9712_p8 }
 0x885   : > { %9614 = dma.done.wait (!%p9485_p3), %s9103_s11, 256  }
 0x886   : > { %9616 = vsyncadd (!%p9485_p3), %s9103_s11, 4294967040  ;;  %s16_s17 = sadd.s32 1, %s9639_s17   ;;  %s14682_s12 = smov %s9623_s13 }
 0x887   : > { %p13_p5 = scmp.ge.s32.totalorder %s16_s17, 4   ;;  %s14683_s13 = smov %s9627_s14 }
 0x888   : > { %s14684_s14 = smov %s9718_s25  ;;  %s14685_s15 = smov %s9635_s16 }
 0x889   : > { %s14686_s16 = smov %s14688_s20  ;;  %15 = sbr.rel (!%p13_p5) target bundleno = 4 (0x4), region = 80 }
 0x890   :  { %9108 = vsyncpa [#allocation3], 1 }
 0x891   :  { %9110 = vsyncpa [#allocation3 + $0x1], 1 }

</bundles_post_ra>
